<compile_context>
chip_gen: v7x
topology: tpu7x:2x2x1
jax: 0.10.0
libtpu: 0.0.40
codegen_flags: <defaults>
</compile_context>

<pallas_src>
import functools

import jax
import jax.numpy as jnp
from jax.experimental import pallas as pl
from jax.experimental.pallas import tpu as pltpu


# dot_general dimension numbers for "A @ B.T" (contract last dims of both).
_NT = (((1,), (1,)), ((), ()))


# -----------------------------------------------------------------------------
# Fused Inception kernel (one image per grid step)
# -----------------------------------------------------------------------------
def _inception_kernel(x_ref, w1_ref, b1_ref, wr_ref, br_ref, w3_ref, b3_ref,
                      w5_ref, b5_ref, wp_ref, bp_ref, o_ref,
                      xpool_ref, r2p_ref, r3p_ref,
                      *, H, W, c1, cr3, c3, cr5, c5, cp):
    """Whole InceptionModule forward for one image.

    x_ref : (1, H, W, Cin)                     input tile (NHWC)
    w1_ref: (c1, Cin),      b1_ref: (c1, 1)    branch-1 1x1 conv (channel-first)
    wr_ref: (Cin, cr3+cr5), br_ref: (1, cr3+cr5)  fused 1x1 reduce stems
    w3_ref: (c3, 9*cr3),    b3_ref: (c3, 1)    3x3 conv as im2col matmul
    w5_ref: (c5, 25*cr5),   b5_ref: (c5, 1)    5x5 conv as im2col matmul
    wp_ref: (cp, Cin),      bp_ref: (cp, 1)    pool-branch 1x1 conv
    o_ref : (1, c1+c3+c5+cp, H*W)              channel-first, lane-dense output
    xpool_ref/r2p_ref/r3p_ref : VMEM padded staging buffers
    """
    f32 = jnp.float32
    HW = H * W
    Cin = x_ref.shape[-1]

    x = x_ref[0]                               # (H, W, Cin)
    x_flat = x.reshape(HW, Cin)                # (H*W, Cin)

    # ---- branch 1: 1x1 conv, computed channel-first (c1, HW) ----------------
    y1 = jax.lax.dot_general(w1_ref[...], x_flat, _NT,
                             preferred_element_type=f32) + b1_ref[...]

    # ---- fused 1x1 reduce stems (branches 2 & 3) + ReLU, spatial-major ------
    rstem = jnp.dot(x_flat, wr_ref[...], preferred_element_type=f32) + br_ref[...]
    rstem = jnp.maximum(rstem, 0.0)            # (HW, cr3 + cr5)
    r2 = rstem[:, :cr3].reshape(H, W, cr3)
    r3 = rstem[:, cr3:].reshape(H, W, cr5)

    # ---- branch 2: zero-pad r2 (pad=1), im2col, single (c3 x 9*cr3) matmul --
    r2p_ref[...] = jnp.zeros(r2p_ref.shape, f32)
    r2p_ref[1:1 + H, 1:1 + W, :] = r2
    taps3 = [r2p_ref[kh:kh + H, kw:kw + W, :].reshape(HW, cr3)
             for kh in range(3) for kw in range(3)]
    col3 = jnp.concatenate(taps3, axis=1)      # (HW, 9*cr3), stays in VMEM/vregs
    y3 = jax.lax.dot_general(w3_ref[...], col3, _NT,
                             preferred_element_type=f32) + b3_ref[...]

    # ---- branch 3: zero-pad r3 (pad=2), im2col, single (c5 x 25*cr5) matmul -
    r3p_ref[...] = jnp.zeros(r3p_ref.shape, f32)
    r3p_ref[2:2 + H, 2:2 + W, :] = r3
    taps5 = [r3p_ref[kh:kh + H, kw:kw + W, :].reshape(HW, cr5)
             for kh in range(5) for kw in range(5)]
    col5 = jnp.concatenate(taps5, axis=1)      # (HW, 25*cr5)
    y5 = jax.lax.dot_general(w5_ref[...], col5, _NT,
                             preferred_element_type=f32) + b5_ref[...]

    # ---- branch 4: 3x3 / stride-1 max-pool (-inf padding) + 1x1 conv --------
    xpool_ref[...] = jnp.full(xpool_ref.shape, -jnp.inf, f32)
    xpool_ref[1:1 + H, 1:1 + W, :] = x
    m = x                                      # center tap is always in-bounds
    for kh in range(3):
        for kw in range(3):
            if kh == 1 and kw == 1:
                continue
            m = jnp.maximum(m, xpool_ref[kh:kh + H, kw:kw + W, :])
    yp = jax.lax.dot_general(wp_ref[...], m.reshape(HW, Cin), _NT,
                             preferred_element_type=f32) + bp_ref[...]

    # ---- lane-dense channel-first stores: rows of (c_i, H*W) ----------------
    o_ref[0, 0:c1, :] = y1.astype(o_ref.dtype)
    o_ref[0, c1:c1 + c3, :] = y3.astype(o_ref.dtype)
    o_ref[0, c1 + c3:c1 + c3 + c5, :] = y5.astype(o_ref.dtype)
    o_ref[0, c1 + c3 + c5:, :] = yp.astype(o_ref.dtype)


# -----------------------------------------------------------------------------
# InceptionModule forward (NCHW in / NCHW out, like PyTorch)
# -----------------------------------------------------------------------------
@jax.jit
def inception_forward(x_nchw, p):
    N, Cin, H, W = x_nchw.shape
    c1 = p["w1"].shape[-1]
    cr3, c3 = p["w2r"].shape[-1], p["w2"].shape[-1]
    cr5, c5 = p["w3r"].shape[-1], p["w3"].shape[-1]
    cp = p["w4"].shape[-1]
    c_total = c1 + c3 + c5 + cp
    HW = H * W
    f32 = jnp.float32

    # NCHW -> NHWC once at the boundary (channels ride TPU lanes in-kernel);
    # the output needs no transpose (kernel already emits channel-first).
    x = jnp.transpose(x_nchw, (0, 2, 3, 1))

    # Pre-pack weights once per call (tiny XLA-side work).
    w1t = p["w1"].reshape(Cin, c1).T.astype(f32)                   # (c1, Cin)
    b1t = p["b1"].reshape(c1, 1).astype(f32)
    wr = jnp.concatenate([p["w2r"].reshape(Cin, cr3),
                          p["w3r"].reshape(Cin, cr5)], axis=1).astype(f32)
    br = jnp.concatenate([p["b2r"], p["b3r"]]).reshape(1, cr3 + cr5).astype(f32)
    w3t = p["w2"].reshape(9 * cr3, c3).T.astype(f32)               # (c3, 9*cr3)
    b3t = p["b2"].reshape(c3, 1).astype(f32)
    w5t = p["w3"].reshape(25 * cr5, c5).T.astype(f32)              # (c5, 25*cr5)
    b5t = p["b3"].reshape(c5, 1).astype(f32)
    wpt = p["w4"].reshape(Cin, cp).T.astype(f32)                   # (cp, Cin)
    bpt = p["b4"].reshape(cp, 1).astype(f32)

    kernel = functools.partial(_inception_kernel, H=H, W=W, c1=c1, cr3=cr3,
                               c3=c3, cr5=cr5, c5=c5, cp=cp)

    def const_spec(shape):
        return pl.BlockSpec(shape, lambda n: (0, 0))

    out = pl.pallas_call(
        kernel,
        out_shape=jax.ShapeDtypeStruct((N, c_total, HW), x.dtype),
        grid=(N,),
        in_specs=[
            pl.BlockSpec((1, H, W, Cin), lambda n: (n, 0, 0, 0)),
            const_spec(w1t.shape), const_spec(b1t.shape),
            const_spec(wr.shape), const_spec(br.shape),
            const_spec(w3t.shape), const_spec(b3t.shape),
            const_spec(w5t.shape), const_spec(b5t.shape),
            const_spec(wpt.shape), const_spec(bpt.shape),
        ],
        out_specs=pl.BlockSpec((1, c_total, HW), lambda n: (n, 0, 0)),
        scratch_shapes=[
            pltpu.VMEM((H + 2, W + 2, Cin), f32),     # -inf-padded x (maxpool)
            pltpu.VMEM((H + 2, W + 2, cr3), f32),     # zero-padded r2 (3x3)
            pltpu.VMEM((H + 4, W + 4, cr5), f32),     # zero-padded r3 (5x5)
        ],
        compiler_params=pltpu.CompilerParams(
            dimension_semantics=("parallel",)),
    )(x, w1t, b1t, wr, br, w3t, b3t, w5t, b5t, wpt, bpt)

    return out.reshape(N, c_total, H, W)              # channel-first already


# -----------------------------------------------------------------------------
# Pure-JAX reference (semantics of the PyTorch module) for a correctness check.
# -----------------------------------------------------------------------------
def ref_forward(x_nchw, p):
    def conv(x, w, b, pad):
        y = jax.lax.conv_general_dilated(
            x, w, (1, 1), [(pad, pad), (pad, pad)],
            dimension_numbers=("NCHW", "HWIO", "NCHW"))
        return y + b[None, :, None, None]

    b1 = conv(x_nchw, p["w1"], p["b1"], 0)
    b2 = conv(jax.nn.relu(conv(x_nchw, p["w2r"], p["b2r"], 0)), p["w2"], p["b2"], 1)
    b3 = conv(jax.nn.relu(conv(x_nchw, p["w3r"], p["b3r"], 0)), p["w3"], p["b3"], 2)
    pooled = jax.lax.reduce_window(
        x_nchw, -jnp.inf, jax.lax.max,
        (1, 1, 3, 3), (1, 1, 1, 1), [(0, 0), (0, 0), (1, 1), (1, 1)])
    b4 = conv(pooled, p["w4"], p["b4"], 0)
    return jnp.concatenate([b1, b2, b3, b4], axis=1)


if __name__ == "__main__":
    # Small shapes consistent with the module.
    N, Cin, H, W = 2, 4, 16, 16
    out_1x1, out_r3, out_3x3, out_r5, out_5x5, out_pool = 8, 4, 8, 4, 8, 8

    key = jax.random.PRNGKey(0)
    keys = jax.random.split(key, 17)

    def winit(k, shape, fan_in):
        bound = 1.0 / (fan_in ** 0.5)
        return jax.random.uniform(k, shape, jnp.float32, -bound, bound)

    # Weights stored HWIO (K, K, Cin, Cout); deterministic uniform init.
    params = {
        "w1":  winit(keys[0], (1, 1, Cin, out_1x1), Cin),
        "b1":  winit(keys[1], (out_1x1,), Cin),
        "w2r": winit(keys[2], (1, 1, Cin, out_r3), Cin),
        "b2r": winit(keys[3], (out_r3,), Cin),
        "w2":  winit(keys[4], (3, 3, out_r3, out_3x3), out_r3 * 9),
        "b2":  winit(keys[5], (out_3x3,), out_r3 * 9),
        "w3r": winit(keys[6], (1, 1, Cin, out_r5), Cin),
        "b3r": winit(keys[7], (out_r5,), Cin),
        "w3":  winit(keys[8], (5, 5, out_r5, out_5x5), out_r5 * 25),
        "b3":  winit(keys[9], (out_5x5,), out_r5 * 25),
        "w4":  winit(keys[10], (1, 1, Cin, out_pool), Cin),
        "b4":  winit(keys[11], (out_pool,), Cin),
    }

    x = jax.random.normal(keys[16], (N, Cin, H, W), jnp.float32)

    y = jax.block_until_ready(inception_forward(x, params))
    y_ref = ref_forward(x, params)

    assert y.shape == (N, out_1x1 + out_3x3 + out_5x5 + out_pool, H, W), y.shape
    assert jnp.allclose(y, y_ref, atol=1e-4, rtol=1e-4), \
        float(jnp.max(jnp.abs(y - y_ref)))
    print("KERNEL_OK")
</pallas_src>

<mosaic_0001>
module attributes {stable_mosaic.version = 11 : i64} {
  func.func @_inception_kernel(%arg0: i32, %arg1: memref<1x16x16x4xf32, #tpu.memory_space<vmem>>, %arg2: memref<8x4xf32, #tpu.memory_space<vmem>>, %arg3: memref<8x1xf32, #tpu.memory_space<vmem>>, %arg4: memref<4x8xf32, #tpu.memory_space<vmem>>, %arg5: memref<1x8xf32, #tpu.memory_space<vmem>>, %arg6: memref<8x36xf32, #tpu.memory_space<vmem>>, %arg7: memref<8x1xf32, #tpu.memory_space<vmem>>, %arg8: memref<8x100xf32, #tpu.memory_space<vmem>>, %arg9: memref<8x1xf32, #tpu.memory_space<vmem>>, %arg10: memref<8x4xf32, #tpu.memory_space<vmem>>, %arg11: memref<8x1xf32, #tpu.memory_space<vmem>>, %arg12: memref<1x32x256xf32, #tpu.memory_space<vmem>>, %arg13: memref<18x18x4xf32, #tpu.memory_space<vmem>>, %arg14: memref<18x18x4xf32, #tpu.memory_space<vmem>>, %arg15: memref<20x20x4xf32, #tpu.memory_space<vmem>>) attributes {dimension_semantics = [#tpu.dimension_semantics<parallel>], iteration_bounds = array<i64: 2>, scalar_prefetch = 0 : i64, scratch_operands = 3 : i64, tpu.core_type = #tpu.core_type<tc>, window_params = [{transform_indices = @transform_0, window_bounds = array<i64: 1, 16, 16, 4>}, {pipeline_mode = #tpu.pipeline_mode<synchronous>, transform_indices = @transform_1, window_bounds = array<i64: 8, 4>}, {pipeline_mode = #tpu.pipeline_mode<synchronous>, transform_indices = @transform_2, window_bounds = array<i64: 8, 1>}, {pipeline_mode = #tpu.pipeline_mode<synchronous>, transform_indices = @transform_3, window_bounds = array<i64: 4, 8>}, {pipeline_mode = #tpu.pipeline_mode<synchronous>, transform_indices = @transform_4, window_bounds = array<i64: 1, 8>}, {pipeline_mode = #tpu.pipeline_mode<synchronous>, transform_indices = @transform_5, window_bounds = array<i64: 8, 36>}, {pipeline_mode = #tpu.pipeline_mode<synchronous>, transform_indices = @transform_6, window_bounds = array<i64: 8, 1>}, {pipeline_mode = #tpu.pipeline_mode<synchronous>, transform_indices = @transform_7, window_bounds = array<i64: 8, 100>}, {pipeline_mode = #tpu.pipeline_mode<synchronous>, transform_indices = @transform_8, window_bounds = array<i64: 8, 1>}, {pipeline_mode = #tpu.pipeline_mode<synchronous>, transform_indices = @transform_9, window_bounds = array<i64: 8, 4>}, {pipeline_mode = #tpu.pipeline_mode<synchronous>, transform_indices = @transform_10, window_bounds = array<i64: 8, 1>}, {transform_indices = @transform_11, window_bounds = array<i64: 1, 32, 256>}]} {
    %c0 = arith.constant 0 : index
    %c0_0 = arith.constant 0 : index
    %c0_1 = arith.constant 0 : index
    %c0_2 = arith.constant 0 : index
    %0 = vector.load %arg1[%c0, %c0_0, %c0_1, %c0_2] : memref<1x16x16x4xf32, #tpu.memory_space<vmem>>, vector<1x16x16x4xf32>
    %1 = vector.shape_cast %0 : vector<1x16x16x4xf32> to vector<16x16x4xf32>
    %2 = vector.shape_cast %1 : vector<16x16x4xf32> to vector<256x4xf32>
    %c0_3 = arith.constant 0 : index
    %c0_4 = arith.constant 0 : index
    %3 = vector.load %arg2[%c0_3, %c0_4] : memref<8x4xf32, #tpu.memory_space<vmem>>, vector<8x4xf32>
    %cst = arith.constant dense<0.000000e+00> : vector<8x256xf32>
    %4 = tpu.matmul %3, %2, %cst {dimension_numbers = #tpu.dot_dimension_numbers<[1], [1], [0], [0], [0, 0, 1, 0], [], []>} : vector<8x4xf32>, vector<256x4xf32>, vector<8x256xf32> -> vector<8x256xf32>
    %c0_5 = arith.constant 0 : index
    %c0_6 = arith.constant 0 : index
    %5 = vector.load %arg3[%c0_5, %c0_6] : memref<8x1xf32, #tpu.memory_space<vmem>>, vector<8x1xf32>
    %6 = vector.broadcast %5 : vector<8x1xf32> to vector<8x256xf32>
    %7 = arith.addf %4, %6 : vector<8x256xf32>
    %c0_7 = arith.constant 0 : index
    %c0_8 = arith.constant 0 : index
    %8 = vector.load %arg4[%c0_7, %c0_8] : memref<4x8xf32, #tpu.memory_space<vmem>>, vector<4x8xf32>
    %cst_9 = arith.constant dense<0.000000e+00> : vector<256x8xf32>
    %9 = tpu.matmul %2, %8, %cst_9 {dimension_numbers = #tpu.dot_dimension_numbers<[1], [0], [0], [1], [0, 0, 1, 1], [], []>} : vector<256x4xf32>, vector<4x8xf32>, vector<256x8xf32> -> vector<256x8xf32>
    %c0_10 = arith.constant 0 : index
    %c0_11 = arith.constant 0 : index
    %10 = vector.load %arg5[%c0_10, %c0_11] : memref<1x8xf32, #tpu.memory_space<vmem>>, vector<1x8xf32>
    %11 = vector.broadcast %10 : vector<1x8xf32> to vector<256x8xf32>
    %12 = arith.addf %9, %11 : vector<256x8xf32>
    %cst_12 = arith.constant 0.000000e+00 : f32
    %13 = vector.broadcast %cst_12 : f32 to vector<256x8xf32>
    %14 = arith.maximumf %12, %13 : vector<256x8xf32>
    %15 = vector.extract_strided_slice %14 {offsets = [0, 0], sizes = [256, 4], strides = [1, 1]} : vector<256x8xf32> to vector<256x4xf32>
    %16 = vector.shape_cast %15 : vector<256x4xf32> to vector<16x16x4xf32>
    %17 = vector.extract_strided_slice %14 {offsets = [0, 4], sizes = [256, 4], strides = [1, 1]} : vector<256x8xf32> to vector<256x4xf32>
    %18 = vector.shape_cast %17 : vector<256x4xf32> to vector<16x16x4xf32>
    %cst_13 = arith.constant 0.000000e+00 : f32
    %19 = vector.broadcast %cst_13 : f32 to vector<18x18x4xf32>
    %c0_14 = arith.constant 0 : index
    %c0_15 = arith.constant 0 : index
    %c0_16 = arith.constant 0 : index
    %20 = vector.load %arg14[%c0_14, %c0_15, %c0_16] : memref<18x18x4xf32, #tpu.memory_space<vmem>>, vector<18x18x4xf32>
    tpu.vector_store %arg14[%c0_14, %c0_15, %c0_16], %19 {strides = array<i32>} : memref<18x18x4xf32, #tpu.memory_space<vmem>>, vector<18x18x4xf32>,
    %c1 = arith.constant 1 : index
    %c1_17 = arith.constant 1 : index
    %c0_18 = arith.constant 0 : index
    %21 = vector.load %arg14[%c1, %c1_17, %c0_18] : memref<18x18x4xf32, #tpu.memory_space<vmem>>, vector<16x16x4xf32>
    tpu.vector_store %arg14[%c1, %c1_17, %c0_18], %16 {strides = array<i32>} : memref<18x18x4xf32, #tpu.memory_space<vmem>>, vector<16x16x4xf32>,
    %c0_19 = arith.constant 0 : index
    %c0_20 = arith.constant 0 : index
    %c0_21 = arith.constant 0 : index
    %22 = vector.load %arg14[%c0_19, %c0_20, %c0_21] : memref<18x18x4xf32, #tpu.memory_space<vmem>>, vector<16x16x4xf32>
    %23 = vector.shape_cast %22 : vector<16x16x4xf32> to vector<256x4xf32>
    %c0_22 = arith.constant 0 : index
    %c1_23 = arith.constant 1 : index
    %c0_24 = arith.constant 0 : index
    %24 = vector.load %arg14[%c0_22, %c1_23, %c0_24] : memref<18x18x4xf32, #tpu.memory_space<vmem>>, vector<16x16x4xf32>
    %25 = vector.shape_cast %24 : vector<16x16x4xf32> to vector<256x4xf32>
    %c0_25 = arith.constant 0 : index
    %c2 = arith.constant 2 : index
    %c0_26 = arith.constant 0 : index
    %26 = vector.load %arg14[%c0_25, %c2, %c0_26] : memref<18x18x4xf32, #tpu.memory_space<vmem>>, vector<16x16x4xf32>
    %27 = vector.shape_cast %26 : vector<16x16x4xf32> to vector<256x4xf32>
    %c1_27 = arith.constant 1 : index
    %c0_28 = arith.constant 0 : index
    %c0_29 = arith.constant 0 : index
    %28 = vector.load %arg14[%c1_27, %c0_28, %c0_29] : memref<18x18x4xf32, #tpu.memory_space<vmem>>, vector<16x16x4xf32>
    %29 = vector.shape_cast %28 : vector<16x16x4xf32> to vector<256x4xf32>
    %c1_30 = arith.constant 1 : index
    %c1_31 = arith.constant 1 : index
    %c0_32 = arith.constant 0 : index
    %30 = vector.load %arg14[%c1_30, %c1_31, %c0_32] : memref<18x18x4xf32, #tpu.memory_space<vmem>>, vector<16x16x4xf32>
    %31 = vector.shape_cast %30 : vector<16x16x4xf32> to vector<256x4xf32>
    %c1_33 = arith.constant 1 : index
    %c2_34 = arith.constant 2 : index
    %c0_35 = arith.constant 0 : index
    %32 = vector.load %arg14[%c1_33, %c2_34, %c0_35] : memref<18x18x4xf32, #tpu.memory_space<vmem>>, vector<16x16x4xf32>
    %33 = vector.shape_cast %32 : vector<16x16x4xf32> to vector<256x4xf32>
    %c2_36 = arith.constant 2 : index
    %c0_37 = arith.constant 0 : index
    %c0_38 = arith.constant 0 : index
    %34 = vector.load %arg14[%c2_36, %c0_37, %c0_38] : memref<18x18x4xf32, #tpu.memory_space<vmem>>, vector<16x16x4xf32>
    %35 = vector.shape_cast %34 : vector<16x16x4xf32> to vector<256x4xf32>
    %c2_39 = arith.constant 2 : index
    %c1_40 = arith.constant 1 : index
    %c0_41 = arith.constant 0 : index
    %36 = vector.load %arg14[%c2_39, %c1_40, %c0_41] : memref<18x18x4xf32, #tpu.memory_space<vmem>>, vector<16x16x4xf32>
    %37 = vector.shape_cast %36 : vector<16x16x4xf32> to vector<256x4xf32>
    %c2_42 = arith.constant 2 : index
    %c2_43 = arith.constant 2 : index
    %c0_44 = arith.constant 0 : index
    %38 = vector.load %arg14[%c2_42, %c2_43, %c0_44] : memref<18x18x4xf32, #tpu.memory_space<vmem>>, vector<16x16x4xf32>
    %39 = vector.shape_cast %38 : vector<16x16x4xf32> to vector<256x4xf32>
    %40 = tpu.concatenate %23, %25, %27, %29, %31, %33, %35, %37, %39 in 1 : vector<256x4xf32>, vector<256x4xf32>, vector<256x4xf32>, vector<256x4xf32>, vector<256x4xf32>, vector<256x4xf32>, vector<256x4xf32>, vector<256x4xf32>, vector<256x4xf32> -> vector<256x36xf32>
    %c0_45 = arith.constant 0 : index
    %c0_46 = arith.constant 0 : index
    %41 = vector.load %arg6[%c0_45, %c0_46] : memref<8x36xf32, #tpu.memory_space<vmem>>, vector<8x36xf32>
    %cst_47 = arith.constant dense<0.000000e+00> : vector<8x256xf32>
    %42 = tpu.matmul %41, %40, %cst_47 {dimension_numbers = #tpu.dot_dimension_numbers<[1], [1], [0], [0], [0, 0, 1, 0], [], []>} : vector<8x36xf32>, vector<256x36xf32>, vector<8x256xf32> -> vector<8x256xf32>
    %c0_48 = arith.constant 0 : index
    %c0_49 = arith.constant 0 : index
    %43 = vector.load %arg7[%c0_48, %c0_49] : memref<8x1xf32, #tpu.memory_space<vmem>>, vector<8x1xf32>
    %44 = vector.broadcast %43 : vector<8x1xf32> to vector<8x256xf32>
    %45 = arith.addf %42, %44 : vector<8x256xf32>
    %cst_50 = arith.constant 0.000000e+00 : f32
    %46 = vector.broadcast %cst_50 : f32 to vector<20x20x4xf32>
    %c0_51 = arith.constant 0 : index
    %c0_52 = arith.constant 0 : index
    %c0_53 = arith.constant 0 : index
    %47 = vector.load %arg15[%c0_51, %c0_52, %c0_53] : memref<20x20x4xf32, #tpu.memory_space<vmem>>, vector<20x20x4xf32>
    tpu.vector_store %arg15[%c0_51, %c0_52, %c0_53], %46 {strides = array<i32>} : memref<20x20x4xf32, #tpu.memory_space<vmem>>, vector<20x20x4xf32>,
    %c2_54 = arith.constant 2 : index
    %c2_55 = arith.constant 2 : index
    %c0_56 = arith.constant 0 : index
    %48 = vector.load %arg15[%c2_54, %c2_55, %c0_56] : memref<20x20x4xf32, #tpu.memory_space<vmem>>, vector<16x16x4xf32>
    tpu.vector_store %arg15[%c2_54, %c2_55, %c0_56], %18 {strides = array<i32>} : memref<20x20x4xf32, #tpu.memory_space<vmem>>, vector<16x16x4xf32>,
    %c0_57 = arith.constant 0 : index
    %c0_58 = arith.constant 0 : index
    %c0_59 = arith.constant 0 : index
    %49 = vector.load %arg15[%c0_57, %c0_58, %c0_59] : memref<20x20x4xf32, #tpu.memory_space<vmem>>, vector<16x16x4xf32>
    %50 = vector.shape_cast %49 : vector<16x16x4xf32> to vector<256x4xf32>
    %c0_60 = arith.constant 0 : index
    %c1_61 = arith.constant 1 : index
    %c0_62 = arith.constant 0 : index
    %51 = vector.load %arg15[%c0_60, %c1_61, %c0_62] : memref<20x20x4xf32, #tpu.memory_space<vmem>>, vector<16x16x4xf32>
    %52 = vector.shape_cast %51 : vector<16x16x4xf32> to vector<256x4xf32>
    %c0_63 = arith.constant 0 : index
    %c2_64 = arith.constant 2 : index
    %c0_65 = arith.constant 0 : index
    %53 = vector.load %arg15[%c0_63, %c2_64, %c0_65] : memref<20x20x4xf32, #tpu.memory_space<vmem>>, vector<16x16x4xf32>
    %54 = vector.shape_cast %53 : vector<16x16x4xf32> to vector<256x4xf32>
    %c0_66 = arith.constant 0 : index
    %c3 = arith.constant 3 : index
    %c0_67 = arith.constant 0 : index
    %55 = vector.load %arg15[%c0_66, %c3, %c0_67] : memref<20x20x4xf32, #tpu.memory_space<vmem>>, vector<16x16x4xf32>
    %56 = vector.shape_cast %55 : vector<16x16x4xf32> to vector<256x4xf32>
    %c0_68 = arith.constant 0 : index
    %c4 = arith.constant 4 : index
    %c0_69 = arith.constant 0 : index
    %57 = vector.load %arg15[%c0_68, %c4, %c0_69] : memref<20x20x4xf32, #tpu.memory_space<vmem>>, vector<16x16x4xf32>
    %58 = vector.shape_cast %57 : vector<16x16x4xf32> to vector<256x4xf32>
    %c1_70 = arith.constant 1 : index
    %c0_71 = arith.constant 0 : index
    %c0_72 = arith.constant 0 : index
    %59 = vector.load %arg15[%c1_70, %c0_71, %c0_72] : memref<20x20x4xf32, #tpu.memory_space<vmem>>, vector<16x16x4xf32>
    %60 = vector.shape_cast %59 : vector<16x16x4xf32> to vector<256x4xf32>
    %c1_73 = arith.constant 1 : index
    %c1_74 = arith.constant 1 : index
    %c0_75 = arith.constant 0 : index
    %61 = vector.load %arg15[%c1_73, %c1_74, %c0_75] : memref<20x20x4xf32, #tpu.memory_space<vmem>>, vector<16x16x4xf32>
    %62 = vector.shape_cast %61 : vector<16x16x4xf32> to vector<256x4xf32>
    %c1_76 = arith.constant 1 : index
    %c2_77 = arith.constant 2 : index
    %c0_78 = arith.constant 0 : index
    %63 = vector.load %arg15[%c1_76, %c2_77, %c0_78] : memref<20x20x4xf32, #tpu.memory_space<vmem>>, vector<16x16x4xf32>
    %64 = vector.shape_cast %63 : vector<16x16x4xf32> to vector<256x4xf32>
    %c1_79 = arith.constant 1 : index
    %c3_80 = arith.constant 3 : index
    %c0_81 = arith.constant 0 : index
    %65 = vector.load %arg15[%c1_79, %c3_80, %c0_81] : memref<20x20x4xf32, #tpu.memory_space<vmem>>, vector<16x16x4xf32>
    %66 = vector.shape_cast %65 : vector<16x16x4xf32> to vector<256x4xf32>
    %c1_82 = arith.constant 1 : index
    %c4_83 = arith.constant 4 : index
    %c0_84 = arith.constant 0 : index
    %67 = vector.load %arg15[%c1_82, %c4_83, %c0_84] : memref<20x20x4xf32, #tpu.memory_space<vmem>>, vector<16x16x4xf32>
    %68 = vector.shape_cast %67 : vector<16x16x4xf32> to vector<256x4xf32>
    %c2_85 = arith.constant 2 : index
    %c0_86 = arith.constant 0 : index
    %c0_87 = arith.constant 0 : index
    %69 = vector.load %arg15[%c2_85, %c0_86, %c0_87] : memref<20x20x4xf32, #tpu.memory_space<vmem>>, vector<16x16x4xf32>
    %70 = vector.shape_cast %69 : vector<16x16x4xf32> to vector<256x4xf32>
    %c2_88 = arith.constant 2 : index
    %c1_89 = arith.constant 1 : index
    %c0_90 = arith.constant 0 : index
    %71 = vector.load %arg15[%c2_88, %c1_89, %c0_90] : memref<20x20x4xf32, #tpu.memory_space<vmem>>, vector<16x16x4xf32>
    %72 = vector.shape_cast %71 : vector<16x16x4xf32> to vector<256x4xf32>
    %c2_91 = arith.constant 2 : index
    %c2_92 = arith.constant 2 : index
    %c0_93 = arith.constant 0 : index
    %73 = vector.load %arg15[%c2_91, %c2_92, %c0_93] : memref<20x20x4xf32, #tpu.memory_space<vmem>>, vector<16x16x4xf32>
    %74 = vector.shape_cast %73 : vector<16x16x4xf32> to vector<256x4xf32>
    %c2_94 = arith.constant 2 : index
    %c3_95 = arith.constant 3 : index
    %c0_96 = arith.constant 0 : index
    %75 = vector.load %arg15[%c2_94, %c3_95, %c0_96] : memref<20x20x4xf32, #tpu.memory_space<vmem>>, vector<16x16x4xf32>
    %76 = vector.shape_cast %75 : vector<16x16x4xf32> to vector<256x4xf32>
    %c2_97 = arith.constant 2 : index
    %c4_98 = arith.constant 4 : index
    %c0_99 = arith.constant 0 : index
    %77 = vector.load %arg15[%c2_97, %c4_98, %c0_99] : memref<20x20x4xf32, #tpu.memory_space<vmem>>, vector<16x16x4xf32>
    %78 = vector.shape_cast %77 : vector<16x16x4xf32> to vector<256x4xf32>
    %c3_100 = arith.constant 3 : index
    %c0_101 = arith.constant 0 : index
    %c0_102 = arith.constant 0 : index
    %79 = vector.load %arg15[%c3_100, %c0_101, %c0_102] : memref<20x20x4xf32, #tpu.memory_space<vmem>>, vector<16x16x4xf32>
    %80 = vector.shape_cast %79 : vector<16x16x4xf32> to vector<256x4xf32>
    %c3_103 = arith.constant 3 : index
    %c1_104 = arith.constant 1 : index
    %c0_105 = arith.constant 0 : index
    %81 = vector.load %arg15[%c3_103, %c1_104, %c0_105] : memref<20x20x4xf32, #tpu.memory_space<vmem>>, vector<16x16x4xf32>
    %82 = vector.shape_cast %81 : vector<16x16x4xf32> to vector<256x4xf32>
    %c3_106 = arith.constant 3 : index
    %c2_107 = arith.constant 2 : index
    %c0_108 = arith.constant 0 : index
    %83 = vector.load %arg15[%c3_106, %c2_107, %c0_108] : memref<20x20x4xf32, #tpu.memory_space<vmem>>, vector<16x16x4xf32>
    %84 = vector.shape_cast %83 : vector<16x16x4xf32> to vector<256x4xf32>
    %c3_109 = arith.constant 3 : index
    %c3_110 = arith.constant 3 : index
    %c0_111 = arith.constant 0 : index
    %85 = vector.load %arg15[%c3_109, %c3_110, %c0_111] : memref<20x20x4xf32, #tpu.memory_space<vmem>>, vector<16x16x4xf32>
    %86 = vector.shape_cast %85 : vector<16x16x4xf32> to vector<256x4xf32>
    %c3_112 = arith.constant 3 : index
    %c4_113 = arith.constant 4 : index
    %c0_114 = arith.constant 0 : index
    %87 = vector.load %arg15[%c3_112, %c4_113, %c0_114] : memref<20x20x4xf32, #tpu.memory_space<vmem>>, vector<16x16x4xf32>
    %88 = vector.shape_cast %87 : vector<16x16x4xf32> to vector<256x4xf32>
    %c4_115 = arith.constant 4 : index
    %c0_116 = arith.constant 0 : index
    %c0_117 = arith.constant 0 : index
    %89 = vector.load %arg15[%c4_115, %c0_116, %c0_117] : memref<20x20x4xf32, #tpu.memory_space<vmem>>, vector<16x16x4xf32>
    %90 = vector.shape_cast %89 : vector<16x16x4xf32> to vector<256x4xf32>
    %c4_118 = arith.constant 4 : index
    %c1_119 = arith.constant 1 : index
    %c0_120 = arith.constant 0 : index
    %91 = vector.load %arg15[%c4_118, %c1_119, %c0_120] : memref<20x20x4xf32, #tpu.memory_space<vmem>>, vector<16x16x4xf32>
    %92 = vector.shape_cast %91 : vector<16x16x4xf32> to vector<256x4xf32>
    %c4_121 = arith.constant 4 : index
    %c2_122 = arith.constant 2 : index
    %c0_123 = arith.constant 0 : index
    %93 = vector.load %arg15[%c4_121, %c2_122, %c0_123] : memref<20x20x4xf32, #tpu.memory_space<vmem>>, vector<16x16x4xf32>
    %94 = vector.shape_cast %93 : vector<16x16x4xf32> to vector<256x4xf32>
    %c4_124 = arith.constant 4 : index
    %c3_125 = arith.constant 3 : index
    %c0_126 = arith.constant 0 : index
    %95 = vector.load %arg15[%c4_124, %c3_125, %c0_126] : memref<20x20x4xf32, #tpu.memory_space<vmem>>, vector<16x16x4xf32>
    %96 = vector.shape_cast %95 : vector<16x16x4xf32> to vector<256x4xf32>
    %c4_127 = arith.constant 4 : index
    %c4_128 = arith.constant 4 : index
    %c0_129 = arith.constant 0 : index
    %97 = vector.load %arg15[%c4_127, %c4_128, %c0_129] : memref<20x20x4xf32, #tpu.memory_space<vmem>>, vector<16x16x4xf32>
    %98 = vector.shape_cast %97 : vector<16x16x4xf32> to vector<256x4xf32>
    %99 = tpu.concatenate %50, %52, %54, %56, %58, %60, %62, %64, %66, %68, %70, %72, %74, %76, %78, %80 in 1 : vector<256x4xf32>, vector<256x4xf32>, vector<256x4xf32>, vector<256x4xf32>, vector<256x4xf32>, vector<256x4xf32>, vector<256x4xf32>, vector<256x4xf32>, vector<256x4xf32>, vector<256x4xf32>, vector<256x4xf32>, vector<256x4xf32>, vector<256x4xf32>, vector<256x4xf32>, vector<256x4xf32>, vector<256x4xf32> -> vector<256x64xf32>
    %100 = tpu.concatenate %82, %84, %86, %88, %90, %92, %94, %96, %98 in 1 : vector<256x4xf32>, vector<256x4xf32>, vector<256x4xf32>, vector<256x4xf32>, vector<256x4xf32>, vector<256x4xf32>, vector<256x4xf32>, vector<256x4xf32>, vector<256x4xf32> -> vector<256x36xf32>
    %101 = tpu.concatenate %99, %100 in 1 : vector<256x64xf32>, vector<256x36xf32> -> vector<256x100xf32>
    %c0_130 = arith.constant 0 : index
    %c0_131 = arith.constant 0 : index
    %102 = vector.load %arg8[%c0_130, %c0_131] : memref<8x100xf32, #tpu.memory_space<vmem>>, vector<8x100xf32>
    %cst_132 = arith.constant dense<0.000000e+00> : vector<8x256xf32>
    %103 = tpu.matmul %102, %101, %cst_132 {dimension_numbers = #tpu.dot_dimension_numbers<[1], [1], [0], [0], [0, 0, 1, 0], [], []>} : vector<8x100xf32>, vector<256x100xf32>, vector<8x256xf32> -> vector<8x256xf32>
    %c0_133 = arith.constant 0 : index
    %c0_134 = arith.constant 0 : index
    %104 = vector.load %arg9[%c0_133, %c0_134] : memref<8x1xf32, #tpu.memory_space<vmem>>, vector<8x1xf32>
    %105 = vector.broadcast %104 : vector<8x1xf32> to vector<8x256xf32>
    %106 = arith.addf %103, %105 : vector<8x256xf32>
    %cst_135 = arith.constant 0xFF800000 : f32
    %107 = vector.broadcast %cst_135 : f32 to vector<18x18x4xf32>
    %c0_136 = arith.constant 0 : index
    %c0_137 = arith.constant 0 : index
    %c0_138 = arith.constant 0 : index
    %108 = vector.load %arg13[%c0_136, %c0_137, %c0_138] : memref<18x18x4xf32, #tpu.memory_space<vmem>>, vector<18x18x4xf32>
    tpu.vector_store %arg13[%c0_136, %c0_137, %c0_138], %107 {strides = array<i32>} : memref<18x18x4xf32, #tpu.memory_space<vmem>>, vector<18x18x4xf32>,
    %c1_139 = arith.constant 1 : index
    %c1_140 = arith.constant 1 : index
    %c0_141 = arith.constant 0 : index
    %109 = vector.load %arg13[%c1_139, %c1_140, %c0_141] : memref<18x18x4xf32, #tpu.memory_space<vmem>>, vector<16x16x4xf32>
    tpu.vector_store %arg13[%c1_139, %c1_140, %c0_141], %1 {strides = array<i32>} : memref<18x18x4xf32, #tpu.memory_space<vmem>>, vector<16x16x4xf32>,
    %c0_142 = arith.constant 0 : index
    %c0_143 = arith.constant 0 : index
    %c0_144 = arith.constant 0 : index
    %110 = vector.load %arg13[%c0_142, %c0_143, %c0_144] : memref<18x18x4xf32, #tpu.memory_space<vmem>>, vector<16x16x4xf32>
    %111 = arith.maximumf %1, %110 : vector<16x16x4xf32>
    %c0_145 = arith.constant 0 : index
    %c1_146 = arith.constant 1 : index
    %c0_147 = arith.constant 0 : index
    %112 = vector.load %arg13[%c0_145, %c1_146, %c0_147] : memref<18x18x4xf32, #tpu.memory_space<vmem>>, vector<16x16x4xf32>
    %113 = arith.maximumf %111, %112 : vector<16x16x4xf32>
    %c0_148 = arith.constant 0 : index
    %c2_149 = arith.constant 2 : index
    %c0_150 = arith.constant 0 : index
    %114 = vector.load %arg13[%c0_148, %c2_149, %c0_150] : memref<18x18x4xf32, #tpu.memory_space<vmem>>, vector<16x16x4xf32>
    %115 = arith.maximumf %113, %114 : vector<16x16x4xf32>
    %c1_151 = arith.constant 1 : index
    %c0_152 = arith.constant 0 : index
    %c0_153 = arith.constant 0 : index
    %116 = vector.load %arg13[%c1_151, %c0_152, %c0_153] : memref<18x18x4xf32, #tpu.memory_space<vmem>>, vector<16x16x4xf32>
    %117 = arith.maximumf %115, %116 : vector<16x16x4xf32>
    %c1_154 = arith.constant 1 : index
    %c2_155 = arith.constant 2 : index
    %c0_156 = arith.constant 0 : index
    %118 = vector.load %arg13[%c1_154, %c2_155, %c0_156] : memref<18x18x4xf32, #tpu.memory_space<vmem>>, vector<16x16x4xf32>
    %119 = arith.maximumf %117, %118 : vector<16x16x4xf32>
    %c2_157 = arith.constant 2 : index
    %c0_158 = arith.constant 0 : index
    %c0_159 = arith.constant 0 : index
    %120 = vector.load %arg13[%c2_157, %c0_158, %c0_159] : memref<18x18x4xf32, #tpu.memory_space<vmem>>, vector<16x16x4xf32>
    %121 = arith.maximumf %119, %120 : vector<16x16x4xf32>
    %c2_160 = arith.constant 2 : index
    %c1_161 = arith.constant 1 : index
    %c0_162 = arith.constant 0 : index
    %122 = vector.load %arg13[%c2_160, %c1_161, %c0_162] : memref<18x18x4xf32, #tpu.memory_space<vmem>>, vector<16x16x4xf32>
    %123 = arith.maximumf %121, %122 : vector<16x16x4xf32>
    %c2_163 = arith.constant 2 : index
    %c2_164 = arith.constant 2 : index
    %c0_165 = arith.constant 0 : index
    %124 = vector.load %arg13[%c2_163, %c2_164, %c0_165] : memref<18x18x4xf32, #tpu.memory_space<vmem>>, vector<16x16x4xf32>
    %125 = arith.maximumf %123, %124 : vector<16x16x4xf32>
    %c0_166 = arith.constant 0 : index
    %c0_167 = arith.constant 0 : index
    %126 = vector.load %arg10[%c0_166, %c0_167] : memref<8x4xf32, #tpu.memory_space<vmem>>, vector<8x4xf32>
    %127 = vector.shape_cast %125 : vector<16x16x4xf32> to vector<256x4xf32>
    %cst_168 = arith.constant dense<0.000000e+00> : vector<8x256xf32>
    %128 = tpu.matmul %126, %127, %cst_168 {dimension_numbers = #tpu.dot_dimension_numbers<[1], [1], [0], [0], [0, 0, 1, 0], [], []>} : vector<8x4xf32>, vector<256x4xf32>, vector<8x256xf32> -> vector<8x256xf32>
    %c0_169 = arith.constant 0 : index
    %c0_170 = arith.constant 0 : index
    %129 = vector.load %arg11[%c0_169, %c0_170] : memref<8x1xf32, #tpu.memory_space<vmem>>, vector<8x1xf32>
    %130 = vector.broadcast %129 : vector<8x1xf32> to vector<8x256xf32>
    %131 = arith.addf %128, %130 : vector<8x256xf32>
    %c0_171 = arith.constant 0 : index
    %c0_172 = arith.constant 0 : index
    %c0_173 = arith.constant 0 : index
    %132 = vector.load %arg12[%c0_171, %c0_172, %c0_173] : memref<1x32x256xf32, #tpu.memory_space<vmem>>, vector<1x8x256xf32>
    %133 = vector.shape_cast %132 : vector<1x8x256xf32> to vector<8x256xf32>
    %134 = vector.shape_cast %7 : vector<8x256xf32> to vector<1x8x256xf32>
    tpu.vector_store %arg12[%c0_171, %c0_172, %c0_173], %134 {strides = array<i32>} : memref<1x32x256xf32, #tpu.memory_space<vmem>>, vector<1x8x256xf32>,
    %c0_174 = arith.constant 0 : index
    %c8 = arith.constant 8 : index
    %c0_175 = arith.constant 0 : index
    %135 = vector.load %arg12[%c0_174, %c8, %c0_175] : memref<1x32x256xf32, #tpu.memory_space<vmem>>, vector<1x8x256xf32>
    %136 = vector.shape_cast %135 : vector<1x8x256xf32> to vector<8x256xf32>
    %137 = vector.shape_cast %45 : vector<8x256xf32> to vector<1x8x256xf32>
    tpu.vector_store %arg12[%c0_174, %c8, %c0_175], %137 {strides = array<i32>} : memref<1x32x256xf32, #tpu.memory_space<vmem>>, vector<1x8x256xf32>,
    %c0_176 = arith.constant 0 : index
    %c16 = arith.constant 16 : index
    %c0_177 = arith.constant 0 : index
    %138 = vector.load %arg12[%c0_176, %c16, %c0_177] : memref<1x32x256xf32, #tpu.memory_space<vmem>>, vector<1x8x256xf32>
    %139 = vector.shape_cast %138 : vector<1x8x256xf32> to vector<8x256xf32>
    %140 = vector.shape_cast %106 : vector<8x256xf32> to vector<1x8x256xf32>
    tpu.vector_store %arg12[%c0_176, %c16, %c0_177], %140 {strides = array<i32>} : memref<1x32x256xf32, #tpu.memory_space<vmem>>, vector<1x8x256xf32>,
    %c0_178 = arith.constant 0 : index
    %c24 = arith.constant 24 : index
    %c0_179 = arith.constant 0 : index
    %141 = vector.load %arg12[%c0_178, %c24, %c0_179] : memref<1x32x256xf32, #tpu.memory_space<vmem>>, vector<1x8x256xf32>
    %142 = vector.shape_cast %141 : vector<1x8x256xf32> to vector<8x256xf32>
    %143 = vector.shape_cast %131 : vector<8x256xf32> to vector<1x8x256xf32>
    tpu.vector_store %arg12[%c0_178, %c24, %c0_179], %143 {strides = array<i32>} : memref<1x32x256xf32, #tpu.memory_space<vmem>>, vector<1x8x256xf32>,
    return
  }
  func.func @transform_0(%arg0: i32) -> (i32, i32, i32, i32) {
    %c0_i32 = arith.constant 0 : i32
    %c0_i32_0 = arith.constant 0 : i32
    %c0_i32_1 = arith.constant 0 : i32
    %c0_i32_2 = arith.constant 0 : i32
    return %arg0, %c0_i32, %c0_i32_0, %c0_i32_1 : i32, i32, i32, i32
  }
  func.func @transform_1(%arg0: i32) -> (i32, i32) {
    %c0_i32 = arith.constant 0 : i32
    %c0_i32_0 = arith.constant 0 : i32
    %c0_i32_1 = arith.constant 0 : i32
    return %c0_i32, %c0_i32_0 : i32, i32
  }
  func.func @transform_2(%arg0: i32) -> (i32, i32) {
    %c0_i32 = arith.constant 0 : i32
    %c0_i32_0 = arith.constant 0 : i32
    %c0_i32_1 = arith.constant 0 : i32
    return %c0_i32, %c0_i32_0 : i32, i32
  }
  func.func @transform_3(%arg0: i32) -> (i32, i32) {
    %c0_i32 = arith.constant 0 : i32
    %c0_i32_0 = arith.constant 0 : i32
    %c0_i32_1 = arith.constant 0 : i32
    return %c0_i32, %c0_i32_0 : i32, i32
  }
  func.func @transform_4(%arg0: i32) -> (i32, i32) {
    %c0_i32 = arith.constant 0 : i32
    %c0_i32_0 = arith.constant 0 : i32
    %c0_i32_1 = arith.constant 0 : i32
    return %c0_i32, %c0_i32_0 : i32, i32
  }
  func.func @transform_5(%arg0: i32) -> (i32, i32) {
    %c0_i32 = arith.constant 0 : i32
    %c0_i32_0 = arith.constant 0 : i32
    %c0_i32_1 = arith.constant 0 : i32
    return %c0_i32, %c0_i32_0 : i32, i32
  }
  func.func @transform_6(%arg0: i32) -> (i32, i32) {
    %c0_i32 = arith.constant 0 : i32
    %c0_i32_0 = arith.constant 0 : i32
    %c0_i32_1 = arith.constant 0 : i32
    return %c0_i32, %c0_i32_0 : i32, i32
  }
  func.func @transform_7(%arg0: i32) -> (i32, i32) {
    %c0_i32 = arith.constant 0 : i32
    %c0_i32_0 = arith.constant 0 : i32
    %c0_i32_1 = arith.constant 0 : i32
    return %c0_i32, %c0_i32_0 : i32, i32
  }
  func.func @transform_8(%arg0: i32) -> (i32, i32) {
    %c0_i32 = arith.constant 0 : i32
    %c0_i32_0 = arith.constant 0 : i32
    %c0_i32_1 = arith.constant 0 : i32
    return %c0_i32, %c0_i32_0 : i32, i32
  }
  func.func @transform_9(%arg0: i32) -> (i32, i32) {
    %c0_i32 = arith.constant 0 : i32
    %c0_i32_0 = arith.constant 0 : i32
    %c0_i32_1 = arith.constant 0 : i32
    return %c0_i32, %c0_i32_0 : i32, i32
  }
  func.func @transform_10(%arg0: i32) -> (i32, i32) {
    %c0_i32 = arith.constant 0 : i32
    %c0_i32_0 = arith.constant 0 : i32
    %c0_i32_1 = arith.constant 0 : i32
    return %c0_i32, %c0_i32_0 : i32, i32
  }
  func.func @transform_11(%arg0: i32) -> (i32, i32, i32) {
    %c0_i32 = arith.constant 0 : i32
    %c0_i32_0 = arith.constant 0 : i32
    %c0_i32_1 = arith.constant 0 : i32
    return %arg0, %c0_i32, %c0_i32_0 : i32, i32, i32
  }
}

</mosaic_0001>

<bundles_post_ra>
// kernel: inception_forward.1
= control target key start
LH: loop header
LB: loop body
LE: loop exit
PB: predicated region body
PF: predicated region fallthrough
CT: control target
= control target key end

     0   :  { %s11945_s17 = smov 0   ;;  %s18671_s0 = inlined_call_operand.vmem [shape: f32[2,16,16,4], index: 0, kind: input, shape index: {}]   ;;  %s18672_s1 = inlined_call_operand.vmem [shape: f32[8,4], index: 1, kind: input, shape index: {}]   ;;  %s18673_s2 = inlined_call_operand.vmem [shape: f32[8,1], index: 2, kind: input, shape index: {}]   ;;  %s18674_s3 = inlined_call_operand.vmem [shape: f32[4,8], index: 3, kind: input, shape index: {}]   ;;  %s18675_s4 = inlined_call_operand.vmem [shape: f32[1,8], index: 4, kind: input, shape index: {}]   ;;  %s18676_s5 = inlined_call_operand.vmem [shape: f32[8,36], index: 5, kind: input, shape index: {}]   ;;  %s18677_s6 = inlined_call_operand.vmem [shape: f32[8,1], index: 6, kind: input, shape index: {}]   ;;  %s18678_s7 = inlined_call_operand.vmem [shape: f32[8,100], index: 7, kind: input, shape index: {}]   ;;  %s18679_s8 = inlined_call_operand.vmem [shape: f32[8,1], index: 8, kind: input, shape index: {}]   ;;  %s18680_s9 = inlined_call_operand.vmem [shape: f32[8,4], index: 9, kind: input, shape index: {}]   ;;  %s18681_s10 = inlined_call_operand.vmem [shape: f32[8,1], index: 10, kind: input, shape index: {}]   ;;  %s18682_s11 = inlined_call_operand.vmem [shape: f32[2,32,256], index: 11, kind: output, shape index: {}]  }
   0x1 LB: > { %s8598_s18 = sadd.s32 4294967295, %s11863_s17   ;;  %p8602_p0 = scmp.ge.s32.totalorder %s11863_s17, 1  ;;  %s11863_s17 = sphi %s11945_s17, %s21_s17  }
   0x2   : > { %p337_p1 = scmp.lt.s32.totalorder %s11863_s17, 3 }
   0x4   : > { %p338_p2 = pnand %p8602_p0, %p337_p1 }
   0x6   : > { %341 = sbr.rel (%p338_p2) target bundleno = 1914 (0x77a), region = 64 }
   0xd   : > { %v597_v0 = vld [vmem:[%s18674_s3] sm:$0xf]  ;;  %vm605_vm0 = vcmask 1043456   ;;  %p11958_p3 = scmp.lt.s32.totalorder %s8598_s18, 1  ;;  %vm426_vm1 = vcmask 31744   ;;  %v11865_v1 = vmov -inf  }
   0xe   : > { %8946 = vmatprep.subr.msk.mxu1 %vm605_vm0, %v597_v0  ;;  %7758 = vst.msk [vmem:[#allocation2] sm:$0xff] %vm426_vm1, %v11865_v1  ;;  %7759 = vst.msk [vmem:[#allocation2 + $0x8] sm:$0xff] %vm426_vm1, %v11865_v1  ;;  %vm868_vm2 = vcmask 25600   ;;  %v12002_v2 = vld [vmem:[%s18672_s1] sm:$0xff]  ;;  %v11866_v4 = vmov 0.0   ;;  %v11867_v5 = vmov 0  }
   0xf   : > { %7761 = vst.msk [vmem:[#allocation2 + $0x18] sm:$0xff] %vm426_vm1, %v11865_v1  ;;  %7762 = vst.msk [vmem:[#allocation2 + $0x20] sm:$0xff] %vm426_vm1, %v11865_v1  ;;  %v12007_v3 = vld [vmem:[%s18673_s2] sm:$0xff]  ;;  %8947 = vmatpush3.msk.msra.mxu1 %vm605_vm0, %v597_v0  ;;  %s20385_s18 = smov (!%p11958_p3, %s8598_s18), 1  ;;  %8809 = vmatprep.mubr.msk.f32.mxu0 %vm426_vm1, %v12002_v2  ;;  %v19180_v12 = vmov 0  ;;  %s11868_s30 = smov 4  }
  0x10   : > { %7764 = vst.msk [vmem:[#allocation2 + $0x30] sm:$0xff] %vm426_vm1, %v11865_v1  ;;  %7765 = vst.msk [vmem:[#allocation2 + $0x38] sm:$0xff] %vm426_vm1, %v11865_v1  ;;  %9216 = vset.pattern.permute.xlu0 %v11867_v5  ;;  %9242 = vset.pattern.permute.xlu1 %v11867_v5  ;;  %s8775_s26 = sshll.u32 %s20385_s18, 8  ;;  %s11869_s12 = smov 8   ;;  %vm2710_vm4 = vcmask 27648   ;;  %vm2299_vm5 = vcmask 64512  }
  0x11   : > { %7767 = vst.msk [vmem:[#allocation2 + $0x48] sm:$0xff] %vm426_vm1, %v11865_v1  ;;  %7768 = vst.msk [vmem:[#allocation2 + $0x50] sm:$0xff] %vm426_vm1, %v11865_v1  ;;  %423 = vperm.xlu0 %9216, %v12007_v3   ;;  %s12229_s29 = scalar_lea.vmem %s18671_s0, %s8775_s26  ;;  %s11870_s15 = smov 24   ;;  %vm2332_vm6 = vcmask 97280   ;;  %vm2365_vm7 = vcmask 130048   ;;  %vm2398_vm8 = vcmask 162816  }
  0x12   : > { %7770 = vst.msk [vmem:[#allocation2 + $0x60] sm:$0xff] %vm426_vm1, %v11865_v1  ;;  %7771 = vst.msk [vmem:[#allocation2 + $0x68] sm:$0xff] %vm426_vm1, %v11865_v1  ;;  %v12232_v6 = vld [vmem:[%s12229_s29] sm:$0xff]  ;;  %v12235_v7 = vld [vmem:[%s12229_s29 + $0x8] sm:$0xff]  ;;  %s11871_s16 = smov 28   ;;  %s11872_s19 = smov 32  }
  0x13   : > { %7773 = vst.msk [vmem:[#allocation2 + $0x78] sm:$0xff] %vm426_vm1, %v11865_v1  ;;  %7774 = vst.msk [vmem:[#allocation2 + $0x80] sm:$0xff] %vm426_vm1, %v11865_v1  ;;  %v12238_v8 = vld [vmem:[%s12229_s29 + $0x10] sm:$0xff]  ;;  %8948 = vmatprep.mubr.msk.f32.mxu1 %vm426_vm1, %v12232_v6  ;;  %v12249_v9 = vld [vmem:[%s12229_s29 + $0x18] sm:$0xff]  ;;  %v8999_v19 = vpack.c.bf16 %v12235_v7, %v12232_v6  ;;  %s11873_s22 = smov 124   ;;  %s11874_s23 = smov 12  }
  0x14   : > { %7776 = vst.msk [vmem:[#allocation2 + $0x90] sm:$0xff] %vm426_vm1, %v11865_v1  ;;  %7777 = vst.msk [vmem:[#allocation2 + $0x98] sm:$0xff] %vm426_vm1, %v11865_v1  ;;  %v12252_v10 = vld [vmem:[%s12229_s29 + $0x20] sm:$0xff]  ;;  %v12255_v11 = vld [vmem:[%s12229_s29 + $0x28] sm:$0xff]  ;;  %8949 = vmatmul.mubr.msk.f32.vlgmr.msra.gmra.mrb[0].mxu1 %vm426_vm1, %v12235_v7  ;;  %v9005_v28 = vpack.c.bf16 %v12249_v9, %v12238_v8  ;;  %s11875_s24 = smov 16   ;;  %s11876_s25 = smov 20  }
  0x15   : > { %7779 = vst.msk [vmem:[#allocation2 + $0xa8] sm:$0xff] %vm426_vm1, %v11865_v1  ;;  %7780 = vst.msk [vmem:[#allocation2 + $0xb0] sm:$0xff] %vm426_vm1, %v11865_v1  ;;  %8951 = vmatprep.mubr.msk.f32.mxu1 %vm426_vm1, %v12238_v8  ;;  %v12274_v13 = vld [vmem:[%s12229_s29 + $0x30] sm:$0xff]  ;;  %v12277_v14 = vld [vmem:[%s12229_s29 + $0x38] sm:$0xff]  ;;  %v9011_v30 = vpack.c.bf16 %v12255_v11, %v12252_v10  ;;  %s8776_s26 = sshll.u32 %s20385_s18, 6  ;;  %vm2431_vm9 = vcmask 195584  }
  0x16   : > { %7782 = vst.msk [vmem:[#allocation2 + $0xc0] sm:$0xff] %vm426_vm1, %v11865_v1  ;;  %7783 = vst.msk [vmem:[#allocation2 + $0xc8] sm:$0xff] %vm426_vm1, %v11865_v1  ;;  %v12280_v15 = vld [vmem:[%s12229_s29 + $0x70] sm:$0xff]  ;;  %v12287_v16 = vld [vmem:[%s12229_s29 + $0x78] sm:$0xff]  ;;  %v9017_v47 = vpack.c.bf16 %v12277_v14, %v12274_v13  ;;  %vm2464_vm10 = vcmask 228352   ;;  %vm2497_vm11 = vcmask 261120  }
  0x17   : > { %7785 = vst.msk [vmem:[#allocation2 + $0xd8] sm:$0xff] %vm426_vm1, %v11865_v1  ;;  %7786 = vst.msk [vmem:[#allocation2 + $0xe0] sm:$0xff] %vm426_vm1, %v11865_v1  ;;  %v12290_v17 = vld [vmem:[%s12229_s29 + $0x80] sm:$0xff]  ;;  %v12293_v18 = vld [vmem:[%s12229_s29 + $0x88] sm:$0xff]  ;;  %vm2537_vm12 = vcmask 293888   ;;  %s11877_s21 = smov 36  }
  0x18   : > { %7788 = vst.msk [vmem:[#allocation2 + $0xf0] sm:$0xff] %vm426_vm1, %v11865_v1  ;;  %7789 = vst.msk [vmem:[#allocation2 + $0xf8] sm:$0xff] %vm426_vm1, %v11865_v1  ;;  %8952 = vmatmul.mubr.msk.f32.gmra.mrb[2].mxu1 %vm426_vm1, %v12249_v9  ;;  %v8996_v20 = vpack.c.bf16 %v12293_v18, %v12290_v17  ;;  %v12310_v21 = vld [vmem:[%s12229_s29 + $0x40] sm:$0xff]  ;;  %v12313_v22 = vld [vmem:[%s12229_s29 + $0x48] sm:$0xff]  ;;  %s11880_s27 = smov 48   ;;  %s11881_s28 = smov 52  }
  0x19   : > { %7791 = vst.msk [vmem:[#allocation2 + $0x108] sm:$0xff] %vm426_vm1, %v11865_v1  ;;  %7792 = vst.msk [vmem:[#allocation2 + $0x110] sm:$0xff] %vm426_vm1, %v11865_v1  ;;  %v12316_v23 = vld [vmem:[%s12229_s29 + $0x90] sm:$0xff]  ;;  %8954 = vmatprep.mubr.msk.f32.mxu1 %vm426_vm1, %v12252_v10  ;;  %v12325_v24 = vld [vmem:[%s12229_s29 + $0x98] sm:$0xff]  ;;  %v9023_v60 = vpack.c.bf16 %v12313_v22, %v12310_v21  ;;  %s11882_s18 = smov 56   ;;  %vm5941_vm14 = vcmask 326656  }
  0x1a   : > { %7794 = vst.msk [vmem:[#allocation2 + $0x120] sm:$0xff] %vm426_vm1, %v11865_v1  ;;  %7795 = vst.msk [vmem:[#allocation2 + $0x128] sm:$0xff] %vm426_vm1, %v11865_v1  ;;  %v12330_v25 = vld [vmem:[%s12229_s29 + $0xa0] sm:$0xff]  ;;  %v12333_v26 = vld [vmem:[%s12229_s29 + $0xa8] sm:$0xff]  ;;  %v9002_v27 = vpack.c.bf16 %v12325_v24, %v12316_v23  ;;  %vm5974_vm15 = vcmask 359424   ;;  %s11883_s13 = smov 60  }
  0x1b   : > { %7797 = vst.msk [vmem:[#allocation2 + $0x138] sm:$0xff] %vm426_vm1, %v11865_v1  ;;  %7798 = vst.msk [vmem:[#allocation2 + $0x140] sm:$0xff] %vm426_vm1, %v11865_v1  ;;  %v9008_v29 = vpack.c.bf16 %v12333_v26, %v12330_v25  ;;  %v12370_v31 = vld [vmem:[%s12229_s29 + $0x50] sm:$0xff]  ;;  %v12377_v32 = vld [vmem:[%s12229_s29 + $0x58] sm:$0xff]  ;;  %vm6007_vm0 = vcmask 392192  }
  0x1c   : > { %7800 = vst.msk [vmem:[#allocation2 + $0x150] sm:$0xff] %vm426_vm1, %v11865_v1  ;;  %7801 = vst.msk [vmem:[#allocation2 + $0x158] sm:$0xff] %vm426_vm1, %v11865_v1  ;;  %8955 = vmatmul.mubr.msk.f32.gmra.mrb[4].mxu1 %vm426_vm1, %v12255_v11  ;;  %v12384_v33 = vld [vmem:[%s12229_s29 + $0xb0] sm:$0xff]  ;;  %v12387_v34 = vld [vmem:[%s12229_s29 + $0xb8] sm:$0xff] }
  0x1d   : > { %7803 = vst.msk [vmem:[#allocation2 + $0x168] sm:$0xff] %vm426_vm1, %v11865_v1  ;;  %7804 = vst.msk [vmem:[#allocation2 + $0x170] sm:$0xff] %vm426_vm1, %v11865_v1  ;;  %8957 = vmatprep.mubr.msk.f32.mxu1 %vm426_vm1, %v12274_v13  ;;  %v9014_v35 = vpack.c.bf16 %v12387_v34, %v12384_v33  ;;  %v12398_v36 = vld [vmem:[%s12229_s29 + $0xc0] sm:$0xff]  ;;  %v12401_v37 = vld [vmem:[%s12229_s29 + $0xc8] sm:$0xff] }
  0x1e   : > { %7806 = vst.msk [vmem:[#allocation2 + $0x180] sm:$0xff] %vm426_vm1, %v11865_v1  ;;  %7807 = vst.msk [vmem:[#allocation2 + $0x188] sm:$0xff] %vm426_vm1, %v11865_v1  ;;  %v12410_v38 = vld [vmem:[%s12229_s29 + $0xd0] sm:$0xff]  ;;  %v12413_v39 = vld [vmem:[%s12229_s29 + $0xd8] sm:$0xff]  ;;  %v9020_v50 = vpack.c.bf16 %v12401_v37, %v12398_v36 }
  0x1f   : > { %7809 = vst.msk [vmem:[#allocation2 + $0x198] sm:$0xff] %vm426_vm1, %v11865_v1  ;;  %7810 = vst.msk [vmem:[#allocation2 + $0x1a0] sm:$0xff] %vm426_vm1, %v11865_v1  ;;  %v12416_v40 = vld [vmem:[%s12229_s29 + $0x60] sm:$0xff]  ;;  %v12427_v41 = vld [vmem:[%s12229_s29 + $0x68] sm:$0xff]  ;;  %v9026_v62 = vpack.c.bf16 %v12413_v39, %v12410_v38 }
  0x20   : > { %7760 = vst.msk [vmem:[#allocation2 + $0x10] sm:$0x3] %vm868_vm2, %v11865_v1  ;;  %7763 = vst.msk [vmem:[#allocation2 + $0x28] sm:$0x3] %vm868_vm2, %v11865_v1  ;;  %8958 = vmatmul.mubr.msk.f32.gmra.mrb[6].mxu1 %vm426_vm1, %v12277_v14  ;;  %v12430_v42 = vld [vmem:[%s12229_s29 + $0xe0] sm:$0xff]  ;;  %v12433_v43 = vld [vmem:[%s12229_s29 + $0xe8] sm:$0xff] }
  0x21   : > { %7766 = vst.msk [vmem:[#allocation2 + $0x40] sm:$0x3] %vm868_vm2, %v11865_v1  ;;  %7769 = vst.msk [vmem:[#allocation2 + $0x58] sm:$0x3] %vm868_vm2, %v11865_v1  ;;  %8960 = vmatprep.mubr.msk.f32.mxu1 %vm426_vm1, %v12310_v21  ;;  %v12444_v44 = vld [vmem:[%s12229_s29 + $0xf0] sm:$0xff]  ;;  %v12447_v45 = vld [vmem:[%s12229_s29 + $0xf8] sm:$0xff]  ;;  %s12761_s29 = scalar_lea.vmem %s18682_s11, %s8776_s26 }
  0x22   : > { %7772 = vst.msk [vmem:[#allocation2 + $0x70] sm:$0x3] %vm868_vm2, %v11865_v1  ;;  %7775 = vst.msk [vmem:[#allocation2 + $0x88] sm:$0x3] %vm868_vm2, %v11865_v1  ;;  %s11879_s26 = smov 44  }
  0x23   : > { %7778 = vst.msk [vmem:[#allocation2 + $0xa0] sm:$0x3] %vm868_vm2, %v11865_v1  ;;  %7781 = vst.msk [vmem:[#allocation2 + $0xb8] sm:$0x3] %vm868_vm2, %v11865_v1 }
  0x24   : > { %7784 = vst.msk [vmem:[#allocation2 + $0xd0] sm:$0x3] %vm868_vm2, %v11865_v1  ;;  %7787 = vst.msk [vmem:[#allocation2 + $0xe8] sm:$0x3] %vm868_vm2, %v11865_v1  ;;  %8961 = vmatmul.mubr.msk.f32.gmra.mrb[8].mxu1 %vm426_vm1, %v12313_v22 }
  0x25   : > { %7790 = vst.msk [vmem:[#allocation2 + $0x100] sm:$0x3] %vm868_vm2, %v11865_v1  ;;  %7793 = vst.msk [vmem:[#allocation2 + $0x118] sm:$0x3] %vm868_vm2, %v11865_v1  ;;  %8963 = vmatprep.mubr.msk.f32.mxu1 %vm426_vm1, %v12370_v31 }
  0x26   : > { %7796 = vst.msk [vmem:[#allocation2 + $0x130] sm:$0x3] %vm868_vm2, %v11865_v1  ;;  %7799 = vst.msk [vmem:[#allocation2 + $0x148] sm:$0x3] %vm868_vm2, %v11865_v1 }
  0x27   : > { %7802 = vst.msk [vmem:[#allocation2 + $0x160] sm:$0x3] %vm868_vm2, %v11865_v1  ;;  %7805 = vst.msk [vmem:[#allocation2 + $0x178] sm:$0x3] %vm868_vm2, %v11865_v1 }
  0x28   : > { %7808 = vst.msk [vmem:[#allocation2 + $0x190] sm:$0x3] %vm868_vm2, %v11865_v1  ;;  %7811 = vst.msk [vmem:[#allocation2 + $0x1a8] sm:$0x3] %vm868_vm2, %v11865_v1  ;;  %8964 = vmatmul.mubr.msk.f32.gmra.mrb[10].mxu1 %vm426_vm1, %v12377_v32 }
  0x29   : > { %866 = vst.msk [vmem:[#allocation3] sm:$0xff] %vm426_vm1, %v11866_v4  ;;  %867 = vst.msk [vmem:[#allocation3 + $0x8] sm:$0xff] %vm426_vm1, %v11866_v4  ;;  %8966 = vmatprep.mubr.msk.f32.mxu1 %vm426_vm1, %v12416_v40 }
  0x2a   : > { %869 = vst.msk [vmem:[#allocation3 + $0x10] sm:$0x3] %vm868_vm2, %v11866_v4  ;;  %872 = vst.msk [vmem:[#allocation3 + $0x28] sm:$0x3] %vm868_vm2, %v11866_v4 }
  0x2b   : > { %870 = vst.msk [vmem:[#allocation3 + $0x18] sm:$0xff] %vm426_vm1, %v11866_v4  ;;  %871 = vst.msk [vmem:[#allocation3 + $0x20] sm:$0xff] %vm426_vm1, %v11866_v4 }
  0x2c   : > { %873 = vst.msk [vmem:[#allocation3 + $0x30] sm:$0xff] %vm426_vm1, %v11866_v4  ;;  %874 = vst.msk [vmem:[#allocation3 + $0x38] sm:$0xff] %vm426_vm1, %v11866_v4  ;;  %8967 = vmatmul.mubr.msk.f32.gmra.mrb[12].mxu1 %vm426_vm1, %v12427_v41 }
  0x2d   : > { %875 = vst.msk [vmem:[#allocation3 + $0x40] sm:$0x3] %vm868_vm2, %v11866_v4  ;;  %878 = vst.msk [vmem:[#allocation3 + $0x58] sm:$0x3] %vm868_vm2, %v11866_v4  ;;  %8969 = vmatprep.mubr.msk.f32.mxu1 %vm426_vm1, %v12280_v15 }
  0x2e   : > { %876 = vst.msk [vmem:[#allocation3 + $0x48] sm:$0xff] %vm426_vm1, %v11866_v4  ;;  %877 = vst.msk [vmem:[#allocation3 + $0x50] sm:$0xff] %vm426_vm1, %v11866_v4 }
  0x2f   : > { %879 = vst.msk [vmem:[#allocation3 + $0x60] sm:$0xff] %vm426_vm1, %v11866_v4  ;;  %880 = vst.msk [vmem:[#allocation3 + $0x68] sm:$0xff] %vm426_vm1, %v11866_v4 }
  0x30   : > { %881 = vst.msk [vmem:[#allocation3 + $0x70] sm:$0x3] %vm868_vm2, %v11866_v4  ;;  %884 = vst.msk [vmem:[#allocation3 + $0x88] sm:$0x3] %vm868_vm2, %v11866_v4  ;;  %v986_v46 = vld [vmem:[#allocation3 + $0x1] sm:$0xff]  ;;  %8970 = vmatmul.mubr.msk.f32.gmra.mrb[14].mxu1 %vm426_vm1, %v12287_v16 }
  0x31   : > { %882 = vst.msk [vmem:[#allocation3 + $0x78] sm:$0xff] %vm426_vm1, %v11866_v4  ;;  %883 = vst.msk [vmem:[#allocation3 + $0x80] sm:$0xff] %vm426_vm1, %v11866_v4  ;;  %v987_v48 = vld [vmem:[#allocation3 + $0x9] sm:$0xff]  ;;  %8972 = vmatprep.mubr.msk.f32.mxu1 %vm426_vm1, %v12290_v17 }
  0x32   : > { %885 = vst.msk [vmem:[#allocation3 + $0x90] sm:$0xff] %vm426_vm1, %v11866_v4  ;;  %886 = vst.msk [vmem:[#allocation3 + $0x98] sm:$0xff] %vm426_vm1, %v11866_v4  ;;  %v9217_v51 = vpack.i.bf16 %v987_v48, %v986_v46  ;;  %v1018_v59 = vld [vmem:[#allocation3 + $0x2] sm:$0xff]  ;;  %v1019_v63 = vld [vmem:[#allocation3 + $0xa] sm:$0xff]  ;;  %v9029_v46 = vpack.c.bf16 %v12377_v32, %v12370_v31  ;;  %v9035_v48 = vpack.c.bf16 %v12427_v41, %v12416_v40 }
  0x33   : > { %887 = vst.msk [vmem:[#allocation3 + $0xa0] sm:$0x3] %vm868_vm2, %v11866_v4  ;;  %890 = vst.msk [vmem:[#allocation3 + $0xb8] sm:$0x3] %vm868_vm2, %v11866_v4  ;;  %v9222_v5 = vpack.i.bf16 %v1019_v63, %v1018_v59 }
  0x34   : > { %888 = vst.msk [vmem:[#allocation3 + $0xa8] sm:$0xff] %vm426_vm1, %v11866_v4  ;;  %889 = vst.msk [vmem:[#allocation3 + $0xb0] sm:$0xff] %vm426_vm1, %v11866_v4  ;;  %9218 = vrot.lane.b32.xlu0 %v9217_v51, %s11868_s30  ;;  %8973 = vmatmul.mubr.msk.f32.gmra.mrb[16].mxu1 %vm426_vm1, %v12293_v18 }
  0x35   : > { %891 = vst.msk [vmem:[#allocation3 + $0xc0] sm:$0xff] %vm426_vm1, %v11866_v4  ;;  %892 = vst.msk [vmem:[#allocation3 + $0xc8] sm:$0xff] %vm426_vm1, %v11866_v4  ;;  %8975 = vmatprep.mubr.msk.f32.mxu1 %vm426_vm1, %v12316_v23  ;;  %9223 = vrot.lane.b32.xlu1 %v9222_v5, %s11869_s12 }
  0x36   : > { %893 = vst.msk [vmem:[#allocation3 + $0xd0] sm:$0x3] %vm868_vm2, %v11866_v4  ;;  %896 = vst.msk [vmem:[#allocation3 + $0xe8] sm:$0x3] %vm868_vm2, %v11866_v4 }
  0x37   : > { %894 = vst.msk [vmem:[#allocation3 + $0xd8] sm:$0xff] %vm426_vm1, %v11866_v4  ;;  %895 = vst.msk [vmem:[#allocation3 + $0xe0] sm:$0xff] %vm426_vm1, %v11866_v4 }
  0x38   : > { %897 = vst.msk [vmem:[#allocation3 + $0xf0] sm:$0xff] %vm426_vm1, %v11866_v4  ;;  %898 = vst.msk [vmem:[#allocation3 + $0xf8] sm:$0xff] %vm426_vm1, %v11866_v4  ;;  %8976 = vmatmul.mubr.msk.f32.gmra.mrb[18].mxu1 %vm426_vm1, %v12325_v24 }
  0x39   : > { %899 = vst.msk [vmem:[#allocation3 + $0x100] sm:$0x3] %vm868_vm2, %v11866_v4  ;;  %902 = vst.msk [vmem:[#allocation3 + $0x118] sm:$0x3] %vm868_vm2, %v11866_v4  ;;  %8978 = vmatprep.mubr.msk.f32.mxu1 %vm426_vm1, %v12330_v25 }
  0x3a   : > { %900 = vst.msk [vmem:[#allocation3 + $0x108] sm:$0xff] %vm426_vm1, %v11866_v4  ;;  %901 = vst.msk [vmem:[#allocation3 + $0x110] sm:$0xff] %vm426_vm1, %v11866_v4 }
  0x3b   : > { %903 = vst.msk [vmem:[#allocation3 + $0x120] sm:$0xff] %vm426_vm1, %v11866_v4  ;;  %904 = vst.msk [vmem:[#allocation3 + $0x128] sm:$0xff] %vm426_vm1, %v11866_v4 }
  0x3c   : > { %905 = vst.msk [vmem:[#allocation3 + $0x130] sm:$0x3] %vm868_vm2, %v11866_v4  ;;  %908 = vst.msk [vmem:[#allocation3 + $0x148] sm:$0x3] %vm868_vm2, %v11866_v4  ;;  %8979 = vmatmul.mubr.msk.f32.gmra.mrb[20].mxu1 %vm426_vm1, %v12333_v26 }
  0x3d   : > { %906 = vst.msk [vmem:[#allocation3 + $0x138] sm:$0xff] %vm426_vm1, %v11866_v4  ;;  %907 = vst.msk [vmem:[#allocation3 + $0x140] sm:$0xff] %vm426_vm1, %v11866_v4  ;;  %8981 = vmatprep.mubr.msk.f32.mxu1 %vm426_vm1, %v12384_v33 }
  0x3e   : > { %909 = vst.msk [vmem:[#allocation3 + $0x150] sm:$0xff] %vm426_vm1, %v11866_v4  ;;  %910 = vst.msk [vmem:[#allocation3 + $0x158] sm:$0xff] %vm426_vm1, %v11866_v4 }
  0x3f   : > { %911 = vst.msk [vmem:[#allocation3 + $0x160] sm:$0x3] %vm868_vm2, %v11866_v4  ;;  %914 = vst.msk [vmem:[#allocation3 + $0x178] sm:$0x3] %vm868_vm2, %v11866_v4 }
  0x40   : > { %912 = vst.msk [vmem:[#allocation3 + $0x168] sm:$0xff] %vm426_vm1, %v11866_v4  ;;  %913 = vst.msk [vmem:[#allocation3 + $0x170] sm:$0xff] %vm426_vm1, %v11866_v4  ;;  %8982 = vmatmul.mubr.msk.f32.gmra.mrb[22].mxu1 %vm426_vm1, %v12387_v34 }
  0x41   : > { %915 = vst.msk [vmem:[#allocation3 + $0x180] sm:$0xff] %vm426_vm1, %v11866_v4  ;;  %916 = vst.msk [vmem:[#allocation3 + $0x188] sm:$0xff] %vm426_vm1, %v11866_v4  ;;  %8984 = vmatprep.mubr.msk.f32.mxu1 %vm426_vm1, %v12398_v36 }
  0x42   : > { %917 = vst.msk [vmem:[#allocation3 + $0x190] sm:$0x3] %vm868_vm2, %v11866_v4  ;;  %920 = vst.msk [vmem:[#allocation3 + $0x1a8] sm:$0x3] %vm868_vm2, %v11866_v4  ;;  %vm6040_vm2 = vcmask 424960  }
  0x43   : > { %918 = vst.msk [vmem:[#allocation3 + $0x198] sm:$0xff] %vm426_vm1, %v11866_v4  ;;  %919 = vst.msk [vmem:[#allocation3 + $0x1a0] sm:$0xff] %vm426_vm1, %v11866_v4 }
  0x44   : > { %2708 = vst.msk [vmem:[#allocation4] sm:$0xff] %vm426_vm1, %v11866_v4  ;;  %2709 = vst.msk [vmem:[#allocation4 + $0x8] sm:$0xff] %vm426_vm1, %v11866_v4  ;;  %8985 = vmatmul.mubr.msk.f32.gmra.mrb[24].mxu1 %vm426_vm1, %v12401_v37 }
  0x45   : > { %2712 = vst.msk [vmem:[#allocation4 + $0x18] sm:$0xff] %vm426_vm1, %v11866_v4  ;;  %2713 = vst.msk [vmem:[#allocation4 + $0x20] sm:$0xff] %vm426_vm1, %v11866_v4  ;;  %8987 = vmatprep.mubr.msk.f32.mxu1 %vm426_vm1, %v12410_v38 }
  0x46   : > { %2715 = vst.msk [vmem:[#allocation4 + $0x30] sm:$0xff] %vm426_vm1, %v11866_v4  ;;  %2716 = vst.msk [vmem:[#allocation4 + $0x38] sm:$0xff] %vm426_vm1, %v11866_v4 }
  0x47   : > { %2718 = vst.msk [vmem:[#allocation4 + $0x48] sm:$0xff] %vm426_vm1, %v11866_v4  ;;  %2719 = vst.msk [vmem:[#allocation4 + $0x50] sm:$0xff] %vm426_vm1, %v11866_v4 }
  0x48   : > { %2721 = vst.msk [vmem:[#allocation4 + $0x60] sm:$0xff] %vm426_vm1, %v11866_v4  ;;  %2722 = vst.msk [vmem:[#allocation4 + $0x68] sm:$0xff] %vm426_vm1, %v11866_v4  ;;  %8988 = vmatmul.mubr.msk.f32.gmra.mrb[26].mxu1 %vm426_vm1, %v12413_v39 }
  0x49   : > { %2724 = vst.msk [vmem:[#allocation4 + $0x78] sm:$0xff] %vm426_vm1, %v11866_v4  ;;  %2725 = vst.msk [vmem:[#allocation4 + $0x80] sm:$0xff] %vm426_vm1, %v11866_v4  ;;  %8990 = vmatprep.mubr.msk.f32.mxu1 %vm426_vm1, %v12430_v42 }
  0x4a   : > { %2727 = vst.msk [vmem:[#allocation4 + $0x90] sm:$0xff] %vm426_vm1, %v11866_v4  ;;  %2728 = vst.msk [vmem:[#allocation4 + $0x98] sm:$0xff] %vm426_vm1, %v11866_v4  ;;  %v1177_v0 = vld [vmem:[#allocation3 + $0x198] sm:$0xff]  ;;  %v1178_v1 = vld [vmem:[#allocation3 + $0x1a0] sm:$0xff] }
  0x4b   : > { %2730 = vst.msk [vmem:[#allocation4 + $0xa8] sm:$0xff] %vm426_vm1, %v11866_v4  ;;  %2731 = vst.msk [vmem:[#allocation4 + $0xb0] sm:$0xff] %vm426_vm1, %v11866_v4  ;;  %v1242_v51 = vld [vmem:[#allocation3 + $0x1a2] sm:$0xff] }
  0x4c   : > { %2733 = vst.msk [vmem:[#allocation4 + $0xc0] sm:$0xff] %vm426_vm1, %v11866_v4  ;;  %2734 = vst.msk [vmem:[#allocation4 + $0xc8] sm:$0xff] %vm426_vm1, %v11866_v4  ;;  %8991 = vmatmul.mubr.msk.f32.gmra.mrb[28].mxu1 %vm426_vm1, %v12433_v43 }
  0x4d   : > { %2736 = vst.msk [vmem:[#allocation4 + $0xd8] sm:$0xff] %vm426_vm1, %v11866_v4  ;;  %2737 = vst.msk [vmem:[#allocation4 + $0xe0] sm:$0xff] %vm426_vm1, %v11866_v4  ;;  %8993 = vmatprep.mubr.msk.f32.mxu1 %vm426_vm1, %v12444_v44 }
  0x4e   : > { %2739 = vst.msk [vmem:[#allocation4 + $0xf0] sm:$0xff] %vm426_vm1, %v11866_v4  ;;  %2740 = vst.msk [vmem:[#allocation4 + $0xf8] sm:$0xff] %vm426_vm1, %v11866_v4 }
  0x4f   : > { %2742 = vst.msk [vmem:[#allocation4 + $0x108] sm:$0xff] %vm426_vm1, %v11866_v4  ;;  %2743 = vst.msk [vmem:[#allocation4 + $0x110] sm:$0xff] %vm426_vm1, %v11866_v4 }
  0x50   : > { %2745 = vst.msk [vmem:[#allocation4 + $0x120] sm:$0xff] %vm426_vm1, %v11866_v4  ;;  %2746 = vst.msk [vmem:[#allocation4 + $0x128] sm:$0xff] %vm426_vm1, %v11866_v4  ;;  %8994 = vmatmul.mubr.msk.f32.gmra.mrb[30].mxu1 %vm426_vm1, %v12447_v45 }
  0x51   : > { %2748 = vst.msk [vmem:[#allocation4 + $0x138] sm:$0xff] %vm426_vm1, %v11866_v4  ;;  %2749 = vst.msk [vmem:[#allocation4 + $0x140] sm:$0xff] %vm426_vm1, %v11866_v4 }
  0x52   : > { %2751 = vst.msk [vmem:[#allocation4 + $0x150] sm:$0xff] %vm426_vm1, %v11866_v4  ;;  %2752 = vst.msk [vmem:[#allocation4 + $0x158] sm:$0xff] %vm426_vm1, %v11866_v4 }
  0x53   : > { %2754 = vst.msk [vmem:[#allocation4 + $0x168] sm:$0xff] %vm426_vm1, %v11866_v4  ;;  %2755 = vst.msk [vmem:[#allocation4 + $0x170] sm:$0xff] %vm426_vm1, %v11866_v4 }
  0x54   : > { %2757 = vst.msk [vmem:[#allocation4 + $0x180] sm:$0xff] %vm426_vm1, %v11866_v4  ;;  %2758 = vst.msk [vmem:[#allocation4 + $0x188] sm:$0xff] %vm426_vm1, %v11866_v4 }
  0x55   : > { %2760 = vst.msk [vmem:[#allocation4 + $0x198] sm:$0xff] %vm426_vm1, %v11866_v4  ;;  %2761 = vst.msk [vmem:[#allocation4 + $0x1a0] sm:$0xff] %vm426_vm1, %v11866_v4 }
  0x56   : > { %2763 = vst.msk [vmem:[#allocation4 + $0x1b0] sm:$0xff] %vm426_vm1, %v11866_v4  ;;  %2764 = vst.msk [vmem:[#allocation4 + $0x1b8] sm:$0xff] %vm426_vm1, %v11866_v4 }
  0x57   : > { %2766 = vst.msk [vmem:[#allocation4 + $0x1c8] sm:$0xff] %vm426_vm1, %v11866_v4  ;;  %2767 = vst.msk [vmem:[#allocation4 + $0x1d0] sm:$0xff] %vm426_vm1, %v11866_v4 }
  0x58   : > { %19174 = vst [vmem:[#allocation5_spill] sm:$0xff] %v12232_v6  ;;  %19175 = vst [vmem:[#allocation6_spill] sm:$0xff] %v12235_v7 }
  0x59   : > { %19176 = vst [vmem:[#allocation7_spill] sm:$0xff] %v12238_v8  ;;  %7813 = vst.msk [vmem:[#allocation2 + $0x19] sm:$0xff] %vm426_vm1, %v12232_v6 }
  0x5a   : > { %7814 = vst.msk [vmem:[#allocation2 + $0x21] sm:$0xff] %vm426_vm1, %v12235_v7  ;;  %7815 = vst.msk [vmem:[#allocation2 + $0x31] sm:$0xff] %vm426_vm1, %v12238_v8 }
  0x5b   : > { %19177 = vst [vmem:[#allocation8_spill] sm:$0xff] %v12249_v9  ;;  %19178 = vst [vmem:[#allocation9_spill] sm:$0xff] %v12252_v10 }
  0x5c   : > { %19179 = vst [vmem:[#allocation10_spill] sm:$0xff] %v12255_v11  ;;  %7816 = vst.msk [vmem:[#allocation2 + $0x39] sm:$0xff] %vm426_vm1, %v12249_v9 }
  0x5d   : > { %7817 = vst.msk [vmem:[#allocation2 + $0x49] sm:$0xff] %vm426_vm1, %v12252_v10  ;;  %7818 = vst.msk [vmem:[#allocation2 + $0x51] sm:$0xff] %vm426_vm1, %v12255_v11 }
  0x5e   : > { %vm12269_vm3 = vmpackc.low %vm426_vm1, %vm426_vm1  ;;  %19183 = vst [vmem:[#allocation12_spill] sm:$0xff] %v12274_v13 }
  0x5f   : > { %v19181_v12 = vsel %vm12269_vm3, 4294967295, %v19180_v12  ;;  %19184 = vst [vmem:[#allocation13_spill] sm:$0xff] %v12277_v14  ;;  %19185 = vst [vmem:[#allocation14_spill] sm:$0xff] %v12280_v15  ;;  %8998 = vmatprep.subr.msk.bf16.mxu0 %vm12269_vm3, %v8996_v20 }
  0x60   : > { %19182 = vst [vmem:[#allocation11_spill] sm:$0xff] %v19181_v12  ;;  %7819 = vst.msk [vmem:[#allocation2 + $0x61] sm:$0xff] %vm426_vm1, %v12274_v13  ;;  %9001 = vmatpush3.bf16.xpose.msk.msra.mxu0 %vm12269_vm3, %v8999_v19  ;;  %v9227_v19 = vpack.i.bf16 %v1178_v1, %v1177_v0 }
  0x61   : > { %7820 = vst.msk [vmem:[#allocation2 + $0x69] sm:$0xff] %vm426_vm1, %v12277_v14  ;;  %19186 = vst [vmem:[#allocation15_spill] sm:$0xff] %v12287_v16  ;;  %9004 = vmatprep.subr.msk.bf16.mxu0 %vm12269_vm3, %v9002_v27  ;;  %v1209_v27 = vld [vmem:[#allocation3 + $0x199] sm:$0xff] }
  0x62   : > { %19187 = vst [vmem:[#allocation16_spill] sm:$0xff] %v12290_v17  ;;  %19188 = vst [vmem:[#allocation17_spill] sm:$0xff] %v12293_v18  ;;  %9228 = vrot.lane.b32.xlu0 %v9227_v19, %s11870_s15 }
  0x63   : > { %7827 = vst.msk [vmem:[#allocation2 + $0xc1] sm:$0xff] %vm426_vm1, %v12280_v15  ;;  %7828 = vst.msk [vmem:[#allocation2 + $0xc9] sm:$0xff] %vm426_vm1, %v12287_v16 }
  0x64   : > { %7829 = vst.msk [vmem:[#allocation2 + $0xd9] sm:$0xff] %vm426_vm1, %v12290_v17  ;;  %7830 = vst.msk [vmem:[#allocation2 + $0xe1] sm:$0xff] %vm426_vm1, %v12293_v18 }
  0x65   : > { %19189 = vst [vmem:[#allocation18_spill] sm:$0xff] %v12310_v21  ;;  %19190 = vst [vmem:[#allocation19_spill] sm:$0xff] %v12313_v22 }
  0x66   : > { %19191 = vst [vmem:[#allocation20_spill] sm:$0xff] %v12316_v23  ;;  %7821 = vst.msk [vmem:[#allocation2 + $0x79] sm:$0xff] %vm426_vm1, %v12310_v21 }
  0x67   : > { %7822 = vst.msk [vmem:[#allocation2 + $0x81] sm:$0xff] %vm426_vm1, %v12313_v22  ;;  %19192 = vst [vmem:[#allocation21_spill] sm:$0xff] %v12325_v24 }
  0x68   : > { %7831 = vst.msk [vmem:[#allocation2 + $0xf1] sm:$0xff] %vm426_vm1, %v12316_v23  ;;  %19193 = vst [vmem:[#allocation22_spill] sm:$0xff] %v12330_v25  ;;  %9007 = vmatpush3.bf16.xpose.msk.msra.mxu0 %vm12269_vm3, %v9005_v28  ;;  %v1210_v28 = vld [vmem:[#allocation3 + $0x1a1] sm:$0xff] }
  0x69   : > { %19194 = vst [vmem:[#allocation23_spill] sm:$0xff] %v12333_v26  ;;  %7832 = vst.msk [vmem:[#allocation2 + $0xf9] sm:$0xff] %vm426_vm1, %v12325_v24  ;;  %9010 = vmatprep.subr.msk.bf16.mxu0 %vm12269_vm3, %v9008_v29 }
  0x6a   : > { %7833 = vst.msk [vmem:[#allocation2 + $0x109] sm:$0xff] %vm426_vm1, %v12330_v25  ;;  %7834 = vst.msk [vmem:[#allocation2 + $0x111] sm:$0xff] %vm426_vm1, %v12333_v26  ;;  %v7862_v20 = vld [vmem:[#allocation2 + $0xc8] sm:$0xff] }
  0x6b   : > { %19195 = vst [vmem:[#allocation24_spill] sm:$0xff] %v12370_v31  ;;  %7823 = vst.msk [vmem:[#allocation2 + $0x91] sm:$0xff] %vm426_vm1, %v12370_v31 }
  0x6c   : > { %19196 = vst [vmem:[#allocation25_spill] sm:$0xff] %v12377_v32  ;;  %7824 = vst.msk [vmem:[#allocation2 + $0x99] sm:$0xff] %vm426_vm1, %v12377_v32 }
  0x6d   : > { %19197 = vst [vmem:[#allocation26_spill] sm:$0xff] %v12384_v33  ;;  %19198 = vst [vmem:[#allocation27_spill] sm:$0xff] %v12387_v34 }
  0x6e   : > { %7835 = vst.msk [vmem:[#allocation2 + $0x121] sm:$0xff] %vm426_vm1, %v12384_v33  ;;  %7836 = vst.msk [vmem:[#allocation2 + $0x129] sm:$0xff] %vm426_vm1, %v12387_v34 }
  0x6f   : > { %19199 = vst [vmem:[#allocation28_spill] sm:$0xff] %v12398_v36  ;;  %19200 = vst [vmem:[#allocation29_spill] sm:$0xff] %v12401_v37 }
  0x70   : > { %9013 = vmatpush3.bf16.xpose.msk.msra.mxu0 %vm12269_vm3, %v9011_v30  ;;  %7837 = vst.msk [vmem:[#allocation2 + $0x139] sm:$0xff] %vm426_vm1, %v12398_v36  ;;  %7838 = vst.msk [vmem:[#allocation2 + $0x141] sm:$0xff] %vm426_vm1, %v12401_v37  ;;  %v2531_v30 = vld [vmem:[%s18677_s6] sm:$0xff] }
  0x71   : > { %9016 = vmatprep.subr.msk.bf16.mxu0 %vm12269_vm3, %v9014_v35  ;;  %19201 = vst [vmem:[#allocation30_spill] sm:$0xff] %v12410_v38  ;;  %19202 = vst [vmem:[#allocation31_spill] sm:$0xff] %v12413_v39  ;;  %v9232_v35 = vpack.i.bf16 %v1210_v28, %v1209_v27  ;;  %2534 = vperm.xlu1 %9242, %v2531_v30  }
  0x72   : > { %19203 = vst [vmem:[#allocation32_spill] sm:$0xff] %v12416_v40  ;;  %7839 = vst.msk [vmem:[#allocation2 + $0x151] sm:$0xff] %vm426_vm1, %v12410_v38 }
  0x73   : > { %7840 = vst.msk [vmem:[#allocation2 + $0x159] sm:$0xff] %vm426_vm1, %v12413_v39  ;;  %7825 = vst.msk [vmem:[#allocation2 + $0xa9] sm:$0xff] %vm426_vm1, %v12416_v40  ;;  %v8048_v49 = vld [vmem:[#allocation2 + $0x98] sm:$0xff]  ;;  %9233 = vrot.lane.b32.xlu0 %v9232_v35, %s11871_s16 }
  0x74   : > { %19204 = vst [vmem:[#allocation33_spill] sm:$0xff] %v12430_v42  ;;  %19205 = vst [vmem:[#allocation34_spill] sm:$0xff] %v12433_v43  ;;  %v7890_v52 = vmax.f32 %v12427_v41, %v8048_v49  ;;  %v7922_v53 = vld [vmem:[#allocation2 + $0x99] sm:$0xff]  ;;  %v9038_v49 = vpack.c.bf16 %v12447_v45, %v12444_v44 }
  0x75   : > { %7826 = vst.msk [vmem:[#allocation2 + $0xb1] sm:$0xff] %vm426_vm1, %v12427_v41  ;;  %7841 = vst.msk [vmem:[#allocation2 + $0x169] sm:$0xff] %vm426_vm1, %v12430_v42  ;;  %v8112_v55 = vld [vmem:[#allocation2 + $0x9a] sm:$0xff]  ;;  %v9041_v41 = vpack.c.bf16 %v12287_v16, %v12280_v15 }
  0x76   : > { %7842 = vst.msk [vmem:[#allocation2 + $0x171] sm:$0xff] %vm426_vm1, %v12433_v43  ;;  %19206 = vst [vmem:[#allocation35_spill] sm:$0xff] %v12444_v44  ;;  %v7954_v54 = vmax.f32 %v7890_v52, %v7922_v53 }
  0x77   : > { %19207 = vst [vmem:[#allocation36_spill] sm:$0xff] %v12447_v45  ;;  %7843 = vst.msk [vmem:[#allocation2 + $0x181] sm:$0xff] %vm426_vm1, %v12444_v44 }
  0x78   : > { %7844 = vst.msk [vmem:[#allocation2 + $0x189] sm:$0xff] %vm426_vm1, %v12447_v45  ;;  %9019 = vmatpush3.bf16.xpose.msk.msra.mxu0 %vm12269_vm3, %v9017_v47  ;;  %v8018_v56 = vmax.f32 %v7954_v54, %v8112_v55  ;;  %v9032_v47 = vpack.c.bf16 %v12433_v43, %v12430_v42  ;;  %vm13496_vm13 = vmpackc.low %vm2537_vm12, %vm2537_vm12 }
  0x79   : > { %9022 = vmatprep.subr.msk.bf16.mxu0 %vm12269_vm3, %v9020_v50  ;;  %v1241_v50 = vld [vmem:[#allocation3 + $0x19a] sm:$0xff]  ;;  %2717 = vst.msk [vmem:[#allocation4 + $0x40] sm:$0xf] %vm2710_vm4, %v11866_v4  ;;  %2711 = vst.msk [vmem:[#allocation4 + $0x10] sm:$0xf] %vm2710_vm4, %v11866_v4 }
  0x7a   : > { %v9237_v52 = vpack.i.bf16 %v1242_v51, %v1241_v50  ;;  %2714 = vst.msk [vmem:[#allocation4 + $0x28] sm:$0xf] %vm2710_vm4, %v11866_v4  ;;  %2720 = vst.msk [vmem:[#allocation4 + $0x58] sm:$0xf] %vm2710_vm4, %v11866_v4 }
  0x7b   : > { %2723 = vst.msk [vmem:[#allocation4 + $0x70] sm:$0xf] %vm2710_vm4, %v11866_v4  ;;  %2726 = vst.msk [vmem:[#allocation4 + $0x88] sm:$0xf] %vm2710_vm4, %v11866_v4 }
  0x7c   : > { %v8050_v57 = vld [vmem:[#allocation2 + $0xb0] sm:$0xff]  ;;  %9238 = vrot.lane.b32.xlu0 %v9237_v52, %s11872_s19  ;;  %2729 = vst.msk [vmem:[#allocation4 + $0xa0] sm:$0xf] %vm2710_vm4, %v11866_v4  ;;  %2732 = vst.msk [vmem:[#allocation4 + $0xb8] sm:$0xf] %vm2710_vm4, %v11866_v4 }
  0x7d   : > { %v8114_v58 = vld [vmem:[#allocation2 + $0xb2] sm:$0xff]  ;;  %v8082_v61 = vmax.f32 %v8018_v56, %v8050_v57  ;;  %2735 = vst.msk [vmem:[#allocation4 + $0xd0] sm:$0xf] %vm2710_vm4, %v11866_v4  ;;  %2738 = vst.msk [vmem:[#allocation4 + $0xe8] sm:$0xf] %vm2710_vm4, %v11866_v4 }
  0x7e   : > { %2741 = vst.msk [vmem:[#allocation4 + $0x100] sm:$0xf] %vm2710_vm4, %v11866_v4  ;;  %2744 = vst.msk [vmem:[#allocation4 + $0x118] sm:$0xf] %vm2710_vm4, %v11866_v4 }
  0x7f   : > { %v8146_v3 = vmax.f32 %v8082_v61, %v8114_v58  ;;  %2747 = vst.msk [vmem:[#allocation4 + $0x130] sm:$0xf] %vm2710_vm4, %v11866_v4  ;;  %2750 = vst.msk [vmem:[#allocation4 + $0x148] sm:$0xf] %vm2710_vm4, %v11866_v4 }
  0x80   : > { %9025 = vmatpush3.bf16.xpose.msk.msra.mxu0 %vm12269_vm3, %v9023_v60  ;;  %2753 = vst.msk [vmem:[#allocation4 + $0x160] sm:$0xf] %vm2710_vm4, %v11866_v4  ;;  %2756 = vst.msk [vmem:[#allocation4 + $0x178] sm:$0xf] %vm2710_vm4, %v11866_v4 }
  0x81   : > { %v12481_v29 = vmax.f32 %v8146_v3, %v7862_v20  ;;  %9028 = vmatprep.subr.msk.bf16.mxu0 %vm12269_vm3, %v9026_v62  ;;  %2759 = vst.msk [vmem:[#allocation4 + $0x190] sm:$0xf] %vm2710_vm4, %v11866_v4  ;;  %2762 = vst.msk [vmem:[#allocation4 + $0x1a8] sm:$0xf] %vm2710_vm4, %v11866_v4 }
  0x82   : > { %2765 = vst.msk [vmem:[#allocation4 + $0x1c0] sm:$0xf] %vm2710_vm4, %v11866_v4  ;;  %2768 = vst.msk [vmem:[#allocation4 + $0x1d8] sm:$0xf] %vm2710_vm4, %v11866_v4  ;;  %vm6073_vm4 = vcmask 457728  }
  0x83   : > { %19208 = vst [vmem:[#allocation37_spill] sm:$0xff] %v12481_v29 }
  0x88   : > { %9031 = vmatpush3.bf16.xpose.msk.msra.mxu0 %vm12269_vm3, %v9029_v46 }
  0x89   : > { %9034 = vmatprep.subr.msk.bf16.mxu0 %vm12269_vm3, %v9032_v47 }
  0x90   : > { %9037 = vmatpush3.bf16.xpose.msk.msra.mxu0 %vm12269_vm3, %v9035_v48 }
  0x91   : > { %9040 = vmatprep.subr.msk.bf16.mxu0 %vm12269_vm3, %v9038_v49 }
  0x98   : > { %9043 = vmatpush3.bf16.xpose.msk.msra.mxu0 %vm12269_vm3, %v9041_v41 }
  0x9f   : > { %8810 = vmatmul.mubr.msk.f32.vlgmr.msra.gmra.mrb[0].mxu0 %vm426_vm1, %v12002_v2  ;;  %v12581_v2 = vld [vmem:[%s18675_s4] ss:$0 sm:$0xff] }
  0xe7   : > { %v8950_v53 = vpop.f32.mrb[0].mxu1 }
  0xe8   : > { %v681_v54 = vadd.f32 %v8950_v53, %v12581_v2  ;;  %v675_v55 = vpop.f32.mrb[1].mxu1 }
  0xe9   : > { %v676_v56 = vadd.f32 %v12581_v2, %v675_v55 }
  0xea   : > { %v835_v57 = vmax.f32 %v681_v54, 0.0 }
  0xeb   : > { %v834_v58 = vmax.f32 %v676_v56, 0.0  ;;  %v8953_v59 = vpop.f32.mrb[2].mxu1 }
  0xec   : > { %923 = vst.msk [vmem:[#allocation3 + $0x21] sm:$0xff] %vm426_vm1, %v835_v57  ;;  %v691_v60 = vadd.f32 %v8953_v59, %v12581_v2  ;;  %2803 = vrot.lane.b32.xlu1 %v835_v57, %s11873_s22  ;;  %v685_v4 = vpop.f32.mrb[3].mxu1 }
  0xed   : > { %922 = vst.msk [vmem:[#allocation3 + $0x19] sm:$0xff] %vm426_vm1, %v834_v58  ;;  %v686_v61 = vadd.f32 %v12581_v2, %v685_v4  ;;  %2801 = vrot.lane.b32.xlu0 %v834_v58, %s11873_s22 }
  0xee   : > { %v837_v62 = vmax.f32 %v691_v60, 0.0 }
  0xef   : > { %v836_v63 = vmax.f32 %v686_v61, 0.0  ;;  %v8956_v0 = vpop.f32.mrb[4].mxu1 }
  0xf0   : > { %925 = vst.msk [vmem:[#allocation3 + $0x39] sm:$0xff] %vm426_vm1, %v837_v62  ;;  %v701_v1 = vadd.f32 %v8956_v0, %v12581_v2  ;;  %2807 = vrot.lane.b32.xlu1 %v837_v62, %s11873_s22  ;;  %v695_v3 = vpop.f32.mrb[5].mxu1 }
  0xf1   : > { %924 = vst.msk [vmem:[#allocation3 + $0x31] sm:$0xff] %vm426_vm1, %v836_v63  ;;  %v696_v5 = vadd.f32 %v12581_v2, %v695_v3  ;;  %2805 = vrot.lane.b32.xlu0 %v836_v63, %s11873_s22 }
  0xf2   : > { %v839_v19 = vmax.f32 %v701_v1, 0.0 }
  0xf3   : > { %v838_v20 = vmax.f32 %v696_v5, 0.0  ;;  %v1021_v27 = vld [vmem:[#allocation3 + $0x22] sm:$0xff]  ;;  %v8959_v30 = vpop.f32.mrb[6].mxu1 }
  0xf4   : > { %v989_v28 = vld [vmem:[#allocation3 + $0x21] sm:$0xff]  ;;  %927 = vst.msk [vmem:[#allocation3 + $0x51] sm:$0xff] %vm426_vm1, %v839_v19  ;;  %2811 = vrot.lane.b32.xlu1 %v839_v19, %s11873_s22  ;;  %v988_v46 = vld [vmem:[#allocation3 + $0x19] sm:$0xff]  ;;  %v711_v47 = vadd.f32 %v8959_v30, %v12581_v2  ;;  %v705_v48 = vpop.f32.mrb[7].mxu1 }
  0xf5   : > { %v1020_v35 = vld [vmem:[#allocation3 + $0x1a] sm:$0xff]  ;;  %926 = vst.msk [vmem:[#allocation3 + $0x49] sm:$0xff] %vm426_vm1, %v838_v20  ;;  %v9243_v41 = vpack.i.bf16 %v989_v28, %v988_v46  ;;  %v12602_v50 = vadd.f32 %v12581_v2, %v705_v48 }
  0xf6   : > { %v9248_v49 = vpack.i.bf16 %v1021_v27, %v1020_v35  ;;  %v841_v51 = vmax.f32 %v711_v47, 0.0  ;;  %v1050_v52 = vld [vmem:[#allocation3 + $0x18] sm:$0xff]  ;;  %v1051_v53 = vld [vmem:[#allocation3 + $0x20] sm:$0xff] }
  0xf7   : > { %v840_v54 = vmax.f32 %v12602_v50, 0.0  ;;  %v8962_v55 = vpop.f32.mrb[8].mxu1  ;;  %v9253_v59 = vpack.i.bf16 %v1051_v53, %v1050_v52  ;;  %v1085_v19 = vld [vmem:[#allocation3 + $0x39] sm:$0xff] }
  0xf8   : > { %9249 = vrot.lane.b32.xlu0 %v9248_v49, %s11869_s12  ;;  %9244 = vrot.lane.b32.xlu1 %v9243_v41, %s11868_s30  ;;  %929 = vst.msk [vmem:[#allocation3 + $0x69] sm:$0xff] %vm426_vm1, %v841_v51  ;;  %v12609_v56 = vadd.f32 %v8962_v55, %v12581_v2  ;;  %v715_v57 = vpop.f32.mrb[9].mxu1  ;;  %v1052_v60 = vld [vmem:[#allocation3 + $0x30] sm:$0xff]  ;;  %v1053_v4 = vld [vmem:[#allocation3 + $0x38] sm:$0xff] }
  0xf9   : > { %928 = vst.msk [vmem:[#allocation3 + $0x61] sm:$0xff] %vm426_vm1, %v840_v54  ;;  %v12613_v58 = vadd.f32 %v12581_v2, %v715_v57  ;;  %v12622_v0 = vpack.i.bf16 %v1053_v4, %v1052_v60  ;;  %v1084_v5 = vld [vmem:[#allocation3 + $0x31] sm:$0xff]  ;;  %v1117_v47 = vld [vmem:[#allocation3 + $0x3a] sm:$0xff] }
  0xfa   : > { %v843_v61 = vmax.f32 %v12609_v56, 0.0  ;;  %v12638_v30 = vpack.i.bf16 %v1085_v19, %v1084_v5  ;;  %v1116_v46 = vld [vmem:[#allocation3 + $0x32] sm:$0xff] }
  0xfb   : > { %v842_v62 = vmax.f32 %v12613_v58, 0.0  ;;  %v8965_v63 = vpop.f32.mrb[10].mxu1  ;;  %v9288_v53 = vpack.i.bf16 %v1117_v47, %v1116_v46  ;;  %v993_v19 = vld [vmem:[#allocation3 + $0x51] sm:$0xff] }
  0xfc   : > { %2809 = vrot.lane.b32.xlu0 %v838_v20, %s11873_s22  ;;  %9254 = vrot.lane.b32.xlu1 %v9253_v59, %s11874_s23  ;;  %931 = vst.msk [vmem:[#allocation3 + $0x81] sm:$0xff] %vm426_vm1, %v843_v61  ;;  %v12628_v1 = vadd.f32 %v8965_v63, %v12581_v2  ;;  %v725_v3 = vpop.f32.mrb[11].mxu1  ;;  %v992_v5 = vld [vmem:[#allocation3 + $0x49] sm:$0xff] }
  0xfd   : > { %930 = vst.msk [vmem:[#allocation3 + $0x79] sm:$0xff] %vm426_vm1, %v842_v62  ;;  %v12631_v20 = vadd.f32 %v12581_v2, %v725_v3 }
  0xfe   : > { %v845_v27 = vmax.f32 %v12628_v1, 0.0 }
  0xff   : > { %v18693_v28 = vmax.f32 %v12631_v20, 0.0  ;;  %v8968_v35 = vpop.f32.mrb[12].mxu1 }
 0x100   : > { %9279 = vrot.lane.b32.xlu0 %v12622_v0, %s11874_s23  ;;  %9259 = vrot.lane.b32.xlu1 %v9243_v41, %s11875_s24  ;;  %933 = vst.msk [vmem:[#allocation3 + $0x99] sm:$0xff] %vm426_vm1, %v845_v27  ;;  %v12647_v48 = vadd.f32 %v8968_v35, %v12581_v2  ;;  %v735_v50 = vpop.f32.mrb[13].mxu1 }
 0x101   : > { %932 = vst.msk [vmem:[#allocation3 + $0x91] sm:$0xff] %vm426_vm1, %v18693_v28  ;;  %v12652_v41 = vadd.f32 %v12581_v2, %v735_v50  ;;  %v9308_v50 = vpack.i.bf16 %v993_v19, %v992_v5  ;;  %v1121_v28 = vld [vmem:[#allocation3 + $0x6a] sm:$0xff] }
 0x102   : > { %v18688_v52 = vmax.f32 %v12647_v48, 0.0 }
 0x103   : > { %v18686_v55 = vmax.f32 %v12652_v41, 0.0  ;;  %v8971_v57 = vpop.f32.mrb[14].mxu1 }
 0x104   : > { %9284 = vrot.lane.b32.xlu0 %v12638_v30, %s11875_s24  ;;  %9264 = vrot.lane.b32.xlu1 %v9248_v49, %s11876_s25  ;;  %935 = vst.msk [vmem:[#allocation3 + $0xb1] sm:$0xff] %vm426_vm1, %v18688_v52  ;;  %v12661_v59 = vadd.f32 %v8971_v57, %v12581_v2  ;;  %v745_v60 = vpop.f32.mrb[15].mxu1 }
 0x105   : > { %934 = vst.msk [vmem:[#allocation3 + $0xa9] sm:$0xff] %vm426_vm1, %v18686_v55  ;;  %v12668_v49 = vadd.f32 %v12581_v2, %v745_v60  ;;  %v1149_v55 = vld [vmem:[#allocation3 + $0x48] sm:$0xff] }
 0x106   : > { %v18683_v4 = vmax.f32 %v12661_v59, 0.0 }
 0x107   : > { %v18684_v63 = vmax.f32 %v12668_v49, 0.0  ;;  %v8974_v3 = vpop.f32.mrb[16].mxu1 }
 0x108   : > { %9289 = vrot.lane.b32.xlu0 %v9288_v53, %s11876_s25  ;;  %2815 = vrot.lane.b32.xlu1 %v841_v51, %s11873_s22  ;;  %937 = vst.msk [vmem:[#allocation3 + $0xc9] sm:$0xff] %vm426_vm1, %v18683_v4  ;;  %v12677_v35 = vadd.f32 %v8974_v3, %v12581_v2  ;;  %v755_v46 = vpop.f32.mrb[17].mxu1  ;;  %v1024_v3 = vld [vmem:[#allocation3 + $0x4a] sm:$0xff]  ;;  %v1025_v4 = vld [vmem:[#allocation3 + $0x52] sm:$0xff] }
 0x109   : > { %936 = vst.msk [vmem:[#allocation3 + $0xc1] sm:$0xff] %vm426_vm1, %v18684_v63  ;;  %v12684_v51 = vadd.f32 %v12581_v2, %v755_v46  ;;  %v9313_v63 = vpack.i.bf16 %v1025_v4, %v1024_v3 }
 0x10a   : > { %v18685_v47 = vmax.f32 %v12677_v35, 0.0 }
 0x10b   : > { %v18687_v57 = vmax.f32 %v12684_v51, 0.0  ;;  %v8977_v60 = vpop.f32.mrb[18].mxu1  ;;  %v1033_v12 = vld [vmem:[#allocation3 + $0xb2] sm:$0xff] }
 0x10c   : > { %2813 = vrot.lane.b32.xlu0 %v840_v54, %s11873_s22  ;;  %9269 = vrot.lane.b32.xlu1 %v12638_v30, %s11868_s30  ;;  %939 = vst.msk [vmem:[#allocation3 + $0xe1] sm:$0xff] %vm426_vm1, %v18685_v47  ;;  %v12694_v54 = vadd.f32 %v8977_v60, %v12581_v2  ;;  %v765_v46 = vpop.f32.mrb[19].mxu1  ;;  %v12706_v60 = vld [vmem:[#allocation3 + $0x50] sm:$0xff]  ;;  %v1157_v44 = vld [vmem:[#allocation3 + $0xa8] sm:$0xff] }
 0x10d   : > { %938 = vst.msk [vmem:[#allocation3 + $0xd9] sm:$0xff] %vm426_vm1, %v18687_v57  ;;  %v12701_v5 = vadd.f32 %v12581_v2, %v765_v46  ;;  %v9333_v4 = vpack.i.bf16 %v12706_v60, %v1149_v55  ;;  %v1032_v29 = vld [vmem:[#allocation3 + $0xaa] sm:$0xff] }
 0x10e   : > { %v18689_v19 = vmax.f32 %v12694_v54, 0.0 }
 0x10f   : > { %v18690_v47 = vmax.f32 %v12701_v5, 0.0  ;;  %v8980_v46 = vpop.f32.mrb[20].mxu1 }
 0x110   : > { %9309 = vrot.lane.b32.xlu0 %v9308_v50, %s11868_s30  ;;  %9274 = vrot.lane.b32.xlu1 %v9288_v53, %s11869_s12  ;;  %941 = vst.msk [vmem:[#allocation3 + $0xf9] sm:$0xff] %vm426_vm1, %v18689_v19  ;;  %v12719_v3 = vadd.f32 %v8980_v46, %v12581_v2  ;;  %v775_v57 = vpop.f32.mrb[21].mxu1  ;;  %v1089_v46 = vld [vmem:[#allocation3 + $0x69] sm:$0xff]  ;;  %v1096_v42 = vld [vmem:[#allocation3 + $0xc1] sm:$0xff] }
 0x111   : > { %940 = vst.msk [vmem:[#allocation3 + $0xf1] sm:$0xff] %vm426_vm1, %v18690_v47  ;;  %v12722_v52 = vadd.f32 %v12581_v2, %v775_v57  ;;  %v1088_v57 = vld [vmem:[#allocation3 + $0x61] sm:$0xff] }
 0x112   : > { %v18691_v19 = vmax.f32 %v12719_v3, 0.0  ;;  %v1128_v37 = vld [vmem:[#allocation3 + $0xc2] sm:$0xff] }
 0x113   : > { %v18692_v47 = vmax.f32 %v12722_v52, 0.0  ;;  %v1037_v34 = vld [vmem:[#allocation3 + $0xe2] sm:$0xff] }
 0x114   : > { %9314 = vrot.lane.b32.xlu0 %v9313_v63, %s11869_s12  ;;  %9294 = vrot.lane.b32.xlu1 %v12622_v0, %s11870_s15  ;;  %943 = vst.msk [vmem:[#allocation3 + $0x111] sm:$0xff] %vm426_vm1, %v18691_v19  ;;  %v1056_v0 = vld [vmem:[#allocation3 + $0x60] sm:$0xff]  ;;  %v9363_v19 = vpack.i.bf16 %v1089_v46, %v1088_v57 }
 0x115   : > { %942 = vst.msk [vmem:[#allocation3 + $0x109] sm:$0xff] %vm426_vm1, %v18692_v47  ;;  %v1120_v47 = vld [vmem:[#allocation3 + $0x62] sm:$0xff]  ;;  %v1036_v36 = vld [vmem:[#allocation3 + $0xda] sm:$0xff] }
 0x116   : > { %v12935_v33 = vld [vmem:[#allocation3 + $0xe0] sm:$0xff] }
 0x117   : > { %19226 = vst [vmem:[#allocation48_spill] sm:$0xff] %v12935_v33  ;;  %v1101_v31 = vld [vmem:[#allocation3 + $0xf9] sm:$0xff] }
 0x118   : > { %9334 = vrot.lane.b32.xlu0 %v9333_v4, %s11870_s15  ;;  %9299 = vrot.lane.b32.xlu1 %v12638_v30, %s11871_s16  ;;  %v1057_v30 = vld [vmem:[#allocation3 + $0x68] sm:$0xff]  ;;  %v1069_v25 = vld [vmem:[#allocation3 + $0xf8] sm:$0xff] }
 0x119   : > { %v9358_v55 = vpack.i.bf16 %v1057_v30, %v1056_v0  ;;  %v424_v0 = vpop.permute.xlu0 %423  ;;  %v1132_v18 = vld [vmem:[#allocation3 + $0xf2] sm:$0xff]  ;;  %v1133_v17 = vld [vmem:[#allocation3 + $0xfa] sm:$0xff] }
 0x11c   : > { %9339 = vrot.lane.b32.xlu0 %v9308_v50, %s11871_s16  ;;  %9304 = vrot.lane.b32.xlu1 %v9288_v53, %s11872_s19  ;;  %v8983_v53 = vpop.f32.mrb[22].mxu1 }
 0x11d   : > { %v12748_v56 = vadd.f32 %v8983_v53, %v12581_v2  ;;  %v19209_v53 = vmax.f32 %v12631_v20, 0.0 }
 0x120   : > { %9344 = vrot.lane.b32.xlu0 %v9313_v63, %s11872_s19  ;;  %2819 = vrot.lane.b32.xlu1 %v843_v61, %s11873_s22  ;;  %v785_v61 = vpop.f32.mrb[23].mxu1 }
 0x121   : > { %v12752_v58 = vadd.f32 %v12581_v2, %v785_v61  ;;  %v8986_v61 = vpop.f32.mrb[24].mxu1 }
 0x124   : > { %2817 = vrot.lane.b32.xlu0 %v842_v62, %s11873_s22  ;;  %9319 = vrot.lane.b32.xlu1 %v9333_v4, %s11874_s23  ;;  %v18694_v62 = vmax.f32 %v12748_v56, 0.0  ;;  %v9368_v4 = vpack.i.bf16 %v1121_v28, %v1120_v47  ;;  %v997_v47 = vld [vmem:[#allocation3 + $0x81] sm:$0xff] }
 0x126   : > { %945 = vst.msk [vmem:[#allocation3 + $0x129] sm:$0xff] %vm426_vm1, %v18694_v62  ;;  %v12780_v62 = vadd.f32 %v8986_v61, %v12581_v2  ;;  %v12805_v61 = vpop.permute.xlu0 %9218 }
 0x128   : > { %9359 = vrot.lane.b32.xlu0 %v9358_v55, %s11874_s23  ;;  %9324 = vrot.lane.b32.xlu1 %v9308_v50, %s11875_s24  ;;  %v18695_v50 = vmax.f32 %v12752_v58, 0.0  ;;  %19210 = vst [vmem:[#allocation38_spill] sm:$0xff] %v12780_v62 }
 0x12a   : > { %944 = vst.msk [vmem:[#allocation3 + $0x121] sm:$0xff] %vm426_vm1, %v18695_v50  ;;  %v1029_v50 = vld [vmem:[#allocation3 + $0x82] sm:$0xff] }
 0x12c   : > { %9364 = vrot.lane.b32.xlu0 %v9363_v19, %s11875_s24  ;;  %9329 = vrot.lane.b32.xlu1 %v9313_v63, %s11876_s25  ;;  %v996_v63 = vld [vmem:[#allocation3 + $0x79] sm:$0xff] }
 0x12d   : > { %v1105_v6 = vld [vmem:[#allocation3 + $0x129] sm:$0xff] }
 0x130   : > { %9369 = vrot.lane.b32.xlu0 %v9368_v4, %s11876_s25  ;;  %2823 = vrot.lane.b32.xlu1 %v845_v27, %s11873_s22  ;;  %v18696_v27 = vmax.f32 %v12780_v62, 0.0 }
 0x132   : > { %947 = vst.msk [vmem:[#allocation3 + $0x141] sm:$0xff] %vm426_vm1, %v18696_v27  ;;  %v12819_v27 = vpop.permute.xlu0 %9228 }
 0x133   : > { %19214 = vst [vmem:[#allocation40_spill] sm:$0xff] %v12819_v27 }
 0x134   : > { %2821 = vrot.lane.b32.xlu0 %v19209_v53, %s11873_s22  ;;  %9349 = vrot.lane.b32.xlu1 %v9363_v19, %s11868_s30 }
 0x138   : > { %9354 = vrot.lane.b32.xlu1 %v9368_v4, %s11869_s12 }
 0x13c   : > { %9374 = vrot.lane.b32.xlu1 %v9358_v55, %s11870_s15 }
 0x140   : > { %9379 = vrot.lane.b32.xlu1 %v9363_v19, %s11871_s16 }
 0x144   : > { %9384 = vrot.lane.b32.xlu1 %v9368_v4, %s11872_s19  ;;  %v19213_v4 = vmax.f32 %v12652_v41, 0.0 }
 0x172   : > { %v592_v30 = vpop.f32.mrb[0].mxu0 }
 0x173   : > { %v593_v57 = vadd.f32 %v592_v30, %v424_v0  ;;  %v594_v46 = vpop.f32.mrb[1].mxu0  ;;  %v9388_v30 = vpack.i.bf16 %v997_v47, %v996_v63  ;;  %v1154_v63 = vld [vmem:[#allocation3 + $0x80] sm:$0xff] }
 0x174   : > { %v595_v28 = vadd.f32 %v594_v46, %v424_v0  ;;  %v795_v0 = vpop.f32.mrb[25].mxu1  ;;  %v1028_v46 = vld [vmem:[#allocation3 + $0x7a] sm:$0xff] }
 0x175   : > { %8535 = vst [vmem:[%s12761_s29] sm:$0xff] %v593_v57  ;;  %v12783_v1 = vadd.f32 %v12581_v2, %v795_v0  ;;  %9389 = vrot.lane.b32.xlu0 %v9388_v30, %s11868_s30  ;;  %v9393_v57 = vpack.i.bf16 %v1029_v50, %v1028_v46  ;;  %v19211_v50 = vmax.f32 %v12647_v48, 0.0  ;;  %v8989_v53 = vpop.f32.mrb[26].mxu1  ;;  %v1060_v46 = vld [vmem:[#allocation3 + $0x90] sm:$0xff] }
 0x176   : > { %8536 = vst [vmem:[%s12761_s29 + $0x8] sm:$0xff] %v595_v28  ;;  %v1153_v28 = vld [vmem:[#allocation3 + $0x78] sm:$0xff]  ;;  %v12808_v55 = vadd.f32 %v8989_v53, %v12581_v2  ;;  %v805_v0 = vpop.f32.mrb[27].mxu1 }
 0x177   : > { %v18698_v20 = vmax.f32 %v12783_v1, 0.0  ;;  %v9413_v47 = vpack.i.bf16 %v1154_v63, %v1153_v28  ;;  %2827 = vrot.lane.b32.xlu1 %v19211_v50, %s11873_s22  ;;  %v1061_v28 = vld [vmem:[#allocation3 + $0x98] sm:$0xff]  ;;  %v12811_v19 = vadd.f32 %v12581_v2, %v805_v0 }
 0x178   : > { %19212 = vst [vmem:[#allocation39_spill] sm:$0xff] %v12808_v55  ;;  %v18697_v63 = vmax.f32 %v12808_v55, 0.0  ;;  %v9438_v50 = vpack.i.bf16 %v1061_v28, %v1060_v46  ;;  %v1092_v53 = vld [vmem:[#allocation3 + $0x91] sm:$0xff]  ;;  %v1093_v0 = vld [vmem:[#allocation3 + $0x99] sm:$0xff]  ;;  %v12830_v46 = vpop.permute.xlu0 %9233  ;;  %v12832_v28 = vpop.permute.xlu1 %9223 }
 0x179   : > { %946 = vst.msk [vmem:[#allocation3 + $0x139] sm:$0xff] %vm426_vm1, %v18698_v20  ;;  %9394 = vrot.lane.b32.xlu0 %v9393_v57, %s11869_s12  ;;  %v18700_v48 = vmax.f32 %v12811_v19, 0.0  ;;  %v9443_v41 = vpack.i.bf16 %v1093_v0, %v1092_v53  ;;  %19215 = vst [vmem:[#allocation41_spill] sm:$0xff] %v12830_v46  ;;  %v19217_v53 = vmax.f32 %v12661_v59, 0.0  ;;  %v19220_v59 = vmax.f32 %v12668_v49, 0.0  ;;  %v1158_v49 = vld [vmem:[#allocation3 + $0xb0] sm:$0xff] }
 0x17a   : > { %949 = vst.msk [vmem:[#allocation3 + $0x159] sm:$0xff] %vm426_vm1, %v18697_v63  ;;  %v8992_v63 = vpop.f32.mrb[28].mxu1 }
 0x17b   : > { %9399 = vrot.lane.b32.xlu1 %v9413_v47, %s11874_s23  ;;  %948 = vst.msk [vmem:[#allocation3 + $0x151] sm:$0xff] %vm426_vm1, %v18700_v48  ;;  %v12836_v16 = vadd.f32 %v8992_v63, %v12581_v2  ;;  %v815_v48 = vpop.f32.mrb[29].mxu1  ;;  %v1000_v63 = vld [vmem:[#allocation3 + $0xa9] sm:$0xff] }
 0x17c   : > { %v12839_v15 = vadd.f32 %v12581_v2, %v815_v48  ;;  %v12846_v0 = vpop.permute.xlu1 %2534  ;;  %v1001_v48 = vld [vmem:[#allocation3 + $0xb1] sm:$0xff] }
 0x17d   : > { %9414 = vrot.lane.b32.xlu0 %v9413_v47, %s11870_s15  ;;  %v1124_v47 = vld [vmem:[#allocation3 + $0x92] sm:$0xff]  ;;  %19216 = vst [vmem:[#allocation42_spill] sm:$0xff] %v12836_v16  ;;  %19218 = vst [vmem:[#allocation43_spill] sm:$0xff] %v12846_v0 }
 0x17f   : > { %9404 = vrot.lane.b32.xlu1 %v9388_v30, %s11875_s24 }
 0x181   : > { %9419 = vrot.lane.b32.xlu0 %v9388_v30, %s11871_s16  ;;  %v18705_v30 = vmax.f32 %v12836_v16, 0.0 }
 0x183   : > { %9409 = vrot.lane.b32.xlu1 %v9393_v57, %s11876_s25  ;;  %951 = vst.msk [vmem:[#allocation3 + $0x171] sm:$0xff] %vm426_vm1, %v18705_v30  ;;  %v9473_v30 = vpack.i.bf16 %v1033_v12, %v1032_v29  ;;  %v8995_v12 = vpop.f32.mrb[30].mxu1 }
 0x184   : > { %v12875_v29 = vadd.f32 %v8995_v12, %v12581_v2  ;;  %v1064_v12 = vld [vmem:[#allocation3 + $0xc0] sm:$0xff] }
 0x185   : > { %9424 = vrot.lane.b32.xlu0 %v9393_v57, %s11872_s19  ;;  %v18706_v57 = vmax.f32 %v12839_v15, 0.0 }
 0x186   : > { %19221 = vst [vmem:[#allocation45_spill] sm:$0xff] %v12875_v29 }
 0x187   : > { %2831 = vrot.lane.b32.xlu1 %v19217_v53, %s11873_s22  ;;  %950 = vst.msk [vmem:[#allocation3 + $0x169] sm:$0xff] %vm426_vm1, %v18706_v57  ;;  %v2804_v53 = vpop.permute.xlu1 %2803 }
 0x188   : > { %2899 = vst.msk [vmem:[#allocation4 + $0x3a] sm:$0xff] %vm426_vm1, %v2804_v53 }
 0x189   : > { %2825 = vrot.lane.b32.xlu0 %v19213_v4, %s11873_s22  ;;  %v1125_v4 = vld [vmem:[#allocation3 + $0x9a] sm:$0xff] }
 0x18a   : > { %v9448_v20 = vpack.i.bf16 %v1125_v4, %v1124_v47  ;;  %v12849_v47 = vpop.permute.xlu0 %9238  ;;  %v9468_v4 = vpack.i.bf16 %v1001_v48, %v1000_v63  ;;  %v9493_v63 = vpack.i.bf16 %v1158_v49, %v1157_v44  ;;  %v18708_v44 = vmax.f32 %v12875_v29, 0.0 }
 0x18b   : > { %19219 = vst [vmem:[#allocation44_spill] sm:$0xff] %v12849_v47  ;;  %9429 = vrot.lane.b32.xlu1 %v9443_v41, %s11868_s30  ;;  %v2808_v57 = vpop.permute.xlu1 %2807 }
 0x18c   : > { %2901 = vst.msk [vmem:[#allocation4 + $0x52] sm:$0xff] %vm426_vm1, %v2808_v57  ;;  %v825_v57 = vpop.f32.mrb[31].mxu1  ;;  %953 = vst.msk [vmem:[#allocation3 + $0x189] sm:$0xff] %vm426_vm1, %v18708_v44 }
 0x18d   : > { %9439 = vrot.lane.b32.xlu0 %v9438_v50, %s11874_s23 }
 0x18e   : > { %v2802_v45 = vpop.permute.xlu0 %2801 }
 0x18f   : > { %2898 = vst.msk [vmem:[#allocation4 + $0x32] sm:$0xff] %vm426_vm1, %v2802_v45  ;;  %9434 = vrot.lane.b32.xlu1 %v9448_v20, %s11869_s12  ;;  %v2812_v48 = vpop.permute.xlu1 %2811 }
 0x190   : > { %2903 = vst.msk [vmem:[#allocation4 + $0x6a] sm:$0xff] %vm426_vm1, %v2812_v48 }
 0x191   : > { %9444 = vrot.lane.b32.xlu0 %v9443_v41, %s11875_s24 }
 0x193   : > { %9454 = vrot.lane.b32.xlu1 %v9438_v50, %s11870_s15  ;;  %v12877_v53 = vpop.permute.xlu1 %9244  ;;  %v13157_v46 = vld [vmem:[#allocation4 + $0x53] sm:$0xff] }
 0x194   : > { %v9247_v55 = vunpack.i.h.bf16 %v12877_v53  ;;  %19267 = vst [vmem:[#allocation89_spill] sm:$0xff] %v13157_v46 }
 0x195   : > { %9449 = vrot.lane.b32.xlu0 %v9448_v20, %s11876_s25 }
 0x197   : > { %9459 = vrot.lane.b32.xlu1 %v9443_v41, %s11871_s16  ;;  %v12890_v49 = vpop.permute.xlu1 %9254 }
 0x198   : > { %v9257_v62 = vunpack.i.h.bf16 %v12890_v49 }
 0x199   : > { %2829 = vrot.lane.b32.xlu0 %v19220_v59, %s11873_s22  ;;  %v2806_v59 = vpop.permute.xlu0 %2805 }
 0x19a   : > { %2900 = vst.msk [vmem:[#allocation4 + $0x4a] sm:$0xff] %vm426_vm1, %v2806_v59  ;;  %v12880_v59 = vadd.f32 %v12581_v2, %v825_v57  ;;  %v19223_v2 = vmax.f32 %v12677_v35, 0.0  ;;  %v1065_v57 = vld [vmem:[#allocation3 + $0xc8] sm:$0xff] }
 0x19b   : > { %9464 = vrot.lane.b32.xlu1 %v9448_v20, %s11872_s19  ;;  %v12901_v48 = vpop.permute.xlu1 %9259  ;;  %v1097_v35 = vld [vmem:[#allocation3 + $0xc9] sm:$0xff] }
 0x19c   : > { %19222 = vst [vmem:[#allocation46_spill] sm:$0xff] %v12880_v59  ;;  %v18709_v50 = vmax.f32 %v12880_v59, 0.0  ;;  %v9523_v39 = vpack.i.bf16 %v1097_v35, %v1096_v42  ;;  %v13134_v59 = vld [vmem:[#allocation4 + $0x3b] sm:$0xff] }
 0x19d   : > { %9469 = vrot.lane.b32.xlu0 %v9468_v4, %s11868_s30  ;;  %v12872_v45 = vpop.permute.xlu0 %9249 }
 0x19e   : > { %952 = vst.msk [vmem:[#allocation3 + $0x181] sm:$0xff] %vm426_vm1, %v18709_v50  ;;  %v9518_v50 = vpack.i.bf16 %v1065_v57, %v1064_v12 }
 0x19f   : > { %2835 = vrot.lane.b32.xlu1 %v19223_v2, %s11873_s22  ;;  %v12909_v43 = vpop.permute.xlu1 %9264 }
 0x1a1   : > { %9474 = vrot.lane.b32.xlu0 %v9473_v30, %s11869_s12  ;;  %v2810_v41 = vpop.permute.xlu0 %2809 }
 0x1a2   : > { %2902 = vst.msk [vmem:[#allocation4 + $0x62] sm:$0xff] %vm426_vm1, %v2810_v41  ;;  %v19224_v41 = vmax.f32 %v12684_v51, 0.0  ;;  %v1129_v51 = vld [vmem:[#allocation3 + $0xca] sm:$0xff] }
 0x1a3   : > { %9479 = vrot.lane.b32.xlu1 %v9493_v63, %s11874_s23  ;;  %v2816_v38 = vpop.permute.xlu1 %2815  ;;  %v9528_v12 = vpack.i.bf16 %v1129_v51, %v1128_v37 }
 0x1a4   : > { %2905 = vst.msk [vmem:[#allocation4 + $0x82] sm:$0xff] %vm426_vm1, %v2816_v38 }
 0x1a5   : > { %9494 = vrot.lane.b32.xlu0 %v9493_v63, %s11870_s15  ;;  %v12899_v20 = vpop.permute.xlu0 %9279 }
 0x1a7   : > { %9484 = vrot.lane.b32.xlu1 %v9468_v4, %s11875_s24  ;;  %v12919_v57 = vpop.permute.xlu1 %9269 }
 0x1a9   : > { %9499 = vrot.lane.b32.xlu0 %v9468_v4, %s11871_s16  ;;  %v12907_v44 = vpop.permute.xlu0 %9284  ;;  %v1005_v4 = vld [vmem:[#allocation3 + $0xe1] sm:$0xff] }
 0x1ab   : > { %9489 = vrot.lane.b32.xlu1 %v9473_v30, %s11876_s25  ;;  %v12925_v38 = vpop.permute.xlu1 %9274 }
 0x1ad   : > { %9504 = vrot.lane.b32.xlu0 %v9473_v30, %s11872_s19  ;;  %v12913_v2 = vpop.permute.xlu0 %9289  ;;  %v9553_v30 = vpack.i.bf16 %v1037_v34, %v1036_v36 }
 0x1af   : > { %9509 = vrot.lane.b32.xlu1 %v9523_v39, %s11868_s30  ;;  %v12931_v51 = vpop.permute.xlu1 %9294 }
 0x1b1   : > { %2833 = vrot.lane.b32.xlu0 %v19224_v41, %s11873_s22  ;;  %v2814_v63 = vpop.permute.xlu0 %2813  ;;  %v1004_v41 = vld [vmem:[#allocation3 + $0xd9] sm:$0xff] }
 0x1b2   : > { %2904 = vst.msk [vmem:[#allocation4 + $0x7a] sm:$0xff] %vm426_vm1, %v2814_v63  ;;  %v9548_v35 = vpack.i.bf16 %v1005_v4, %v1004_v41  ;;  %v12933_v63 = vld [vmem:[#allocation3 + $0xd8] sm:$0xff] }
 0x1b3   : > { %9514 = vrot.lane.b32.xlu1 %v9528_v12, %s11869_s12  ;;  %19225 = vst [vmem:[#allocation47_spill] sm:$0xff] %v12933_v63  ;;  %v9573_v4 = vpack.i.bf16 %v12935_v33, %v12933_v63  ;;  %v12943_v26 = vpop.permute.xlu1 %9299  ;;  %v13155_v63 = vld [vmem:[#allocation4 + $0x4b] sm:$0xff] }
 0x1b4   : > { %19266 = vst [vmem:[#allocation88_spill] sm:$0xff] %v13155_v63  ;;  %v9272_v63 = vunpack.i.h.bf16 %v12919_v57 }
 0x1b5   : > { %9519 = vrot.lane.b32.xlu0 %v9518_v50, %s11874_s23  ;;  %v12923_v42 = vpop.permute.xlu0 %9309 }
 0x1b7   : > { %9534 = vrot.lane.b32.xlu1 %v9518_v50, %s11870_s15  ;;  %v12949_v36 = vpop.permute.xlu1 %9304  ;;  %v1068_v50 = vld [vmem:[#allocation3 + $0xf0] sm:$0xff] }
 0x1b8   : > { %v9598_v23 = vpack.i.bf16 %v1069_v25, %v1068_v50  ;;  %v9608_v25 = vpack.i.bf16 %v1133_v17, %v1132_v18  ;;  %v1165_v18 = vld [vmem:[#allocation3 + $0x108] sm:$0xff] }
 0x1b9   : > { %9524 = vrot.lane.b32.xlu0 %v9523_v39, %s11875_s24  ;;  %v12929_v37 = vpop.permute.xlu0 %9314 }
 0x1bb   : > { %9539 = vrot.lane.b32.xlu1 %v9523_v39, %s11871_s16  ;;  %v2820_v24 = vpop.permute.xlu1 %2819  ;;  %v1100_v39 = vld [vmem:[#allocation3 + $0xf1] sm:$0xff] }
 0x1bc   : > { %2907 = vst.msk [vmem:[#allocation4 + $0x9a] sm:$0xff] %vm426_vm1, %v2820_v24 }
 0x1bd   : > { %9529 = vrot.lane.b32.xlu0 %v9528_v12, %s11876_s25  ;;  %v12939_v41 = vpop.permute.xlu0 %9334 }
 0x1bf   : > { %9544 = vrot.lane.b32.xlu1 %v9528_v12, %s11872_s19  ;;  %v12959_v22 = vpop.permute.xlu1 %9319  ;;  %v9603_v12 = vpack.i.bf16 %v1101_v31, %v1100_v39  ;;  %v1041_v39 = vld [vmem:[#allocation3 + $0x112] sm:$0xff] }
 0x1c1   : > { %9549 = vrot.lane.b32.xlu0 %v9548_v35, %s11868_s30  ;;  %v12947_v34 = vpop.permute.xlu0 %9339 }
 0x1c3   : > { %9559 = vrot.lane.b32.xlu1 %v9573_v4, %s11874_s23  ;;  %v12965_v21 = vpop.permute.xlu1 %9324 }
 0x1c5   : > { %9554 = vrot.lane.b32.xlu0 %v9553_v30, %s11869_s12  ;;  %v12953_v40 = vpop.permute.xlu0 %9344 }
 0x1c7   : > { %9564 = vrot.lane.b32.xlu1 %v9548_v35, %s11875_s24  ;;  %v12971_v14 = vpop.permute.xlu1 %9329 }
 0x1c9   : > { %9574 = vrot.lane.b32.xlu0 %v9573_v4, %s11870_s15  ;;  %v2818_v32 = vpop.permute.xlu0 %2817  ;;  %v1008_v4 = vld [vmem:[#allocation3 + $0x109] sm:$0xff] }
 0x1ca   : > { %2906 = vst.msk [vmem:[#allocation4 + $0x92] sm:$0xff] %vm426_vm1, %v2818_v32  ;;  %v1009_v32 = vld [vmem:[#allocation3 + $0x111] sm:$0xff] }
 0x1cb   : > { %9569 = vrot.lane.b32.xlu1 %v9553_v30, %s11876_s25  ;;  %v9628_v31 = vpack.i.bf16 %v1009_v32, %v1008_v4  ;;  %v2824_v11 = vpop.permute.xlu1 %2823 }
 0x1cc   : > { %2909 = vst.msk [vmem:[#allocation4 + $0xb2] sm:$0xff] %vm426_vm1, %v2824_v11 }
 0x1cd   : > { %9579 = vrot.lane.b32.xlu0 %v9548_v35, %s11871_s16  ;;  %v12963_v24 = vpop.permute.xlu0 %9359  ;;  %v1040_v35 = vld [vmem:[#allocation3 + $0x10a] sm:$0xff] }
 0x1ce   : > { %v9633_v17 = vpack.i.bf16 %v1041_v39, %v1040_v35 }
 0x1cf   : > { %9589 = vrot.lane.b32.xlu1 %v9603_v12, %s11868_s30  ;;  %v12981_v4 = vpop.permute.xlu1 %9349 }
 0x1d1   : > { %9584 = vrot.lane.b32.xlu0 %v9553_v30, %s11872_s19  ;;  %v12969_v50 = vpop.permute.xlu0 %9364  ;;  %v1166_v30 = vld [vmem:[#allocation3 + $0x110] sm:$0xff] }
 0x1d2   : > { %v9653_v32 = vpack.i.bf16 %v1166_v30, %v1165_v18  ;;  %v1073_v18 = vld [vmem:[#allocation3 + $0x128] sm:$0xff] }
 0x1d3   : > { %9594 = vrot.lane.b32.xlu1 %v9608_v25, %s11869_s12  ;;  %v12987_v11 = vpop.permute.xlu1 %9354 }
 0x1d4   : > { %19228 = vst [vmem:[#allocation50_spill] sm:$0xff] %v12987_v11 }
 0x1d5   : > { %9599 = vrot.lane.b32.xlu0 %v9598_v23, %s11874_s23  ;;  %v12975_v13 = vpop.permute.xlu0 %9369 }
 0x1d7   : > { %9614 = vrot.lane.b32.xlu1 %v9598_v23, %s11870_s15  ;;  %v12993_v39 = vpop.permute.xlu1 %9374 }
 0x1d8   : > { %19230 = vst [vmem:[#allocation52_spill] sm:$0xff] %v12993_v39 }
 0x1d9   : > { %9604 = vrot.lane.b32.xlu0 %v9603_v12, %s11875_s24  ;;  %v2822_v10 = vpop.permute.xlu0 %2821 }
 0x1da   : > { %2908 = vst.msk [vmem:[#allocation4 + $0xaa] sm:$0xff] %vm426_vm1, %v2822_v10  ;;  %v1072_v10 = vld [vmem:[#allocation3 + $0x120] sm:$0xff] }
 0x1db   : > { %9619 = vrot.lane.b32.xlu1 %v9603_v12, %s11871_s16  ;;  %v12999_v23 = vpop.permute.xlu1 %9379  ;;  %v9678_v9 = vpack.i.bf16 %v1073_v18, %v1072_v10  ;;  %v1104_v12 = vld [vmem:[#allocation3 + $0x121] sm:$0xff]  ;;  %v1012_v10 = vld [vmem:[#allocation3 + $0x139] sm:$0xff] }
 0x1dc   : > { %19232 = vst [vmem:[#allocation54_spill] sm:$0xff] %v12999_v23  ;;  %v1013_v18 = vld [vmem:[#allocation3 + $0x141] sm:$0xff] }
 0x1dd   : > { %9609 = vrot.lane.b32.xlu0 %v9608_v25, %s11876_s25 }
 0x1df   : > { %9624 = vrot.lane.b32.xlu1 %v9608_v25, %s11872_s19  ;;  %v13005_v0 = vpop.permute.xlu1 %9384  ;;  %v9683_v25 = vpack.i.bf16 %v1105_v6, %v1104_v12  ;;  %v1044_v12 = vld [vmem:[#allocation3 + $0x13a] sm:$0xff] }
 0x1e0   : > { %19234 = vst [vmem:[#allocation56_spill] sm:$0xff] %v13005_v0 }
 0x1e1   : > { %9629 = vrot.lane.b32.xlu0 %v9628_v31, %s11868_s30 }
 0x1e3   : > { %9639 = vrot.lane.b32.xlu1 %v9653_v32, %s11874_s23 }
 0x1e5   : > { %9634 = vrot.lane.b32.xlu0 %v9633_v17, %s11869_s12 }
 0x1e7   : > { %v12985_v8 = vpop.permute.xlu0 %9389  ;;  %9644 = vrot.lane.b32.xlu1 %v9628_v31, %s11875_s24 }
 0x1e8   : > { %19227 = vst [vmem:[#allocation49_spill] sm:$0xff] %v12985_v8 }
 0x1e9   : > { %9654 = vrot.lane.b32.xlu0 %v9653_v32, %s11870_s15  ;;  %v2828_v23 = vpop.permute.xlu1 %2827 }
 0x1ea   : > { %2911 = vst.msk [vmem:[#allocation4 + $0xca] sm:$0xff] %vm426_vm1, %v2828_v23 }
 0x1eb   : > { %v12991_v35 = vpop.permute.xlu0 %9394  ;;  %9649 = vrot.lane.b32.xlu1 %v9633_v17, %s11876_s25 }
 0x1ec   : > { %19229 = vst [vmem:[#allocation51_spill] sm:$0xff] %v12991_v35  ;;  %v1136_v35 = vld [vmem:[#allocation3 + $0x122] sm:$0xff] }
 0x1ed   : > { %9659 = vrot.lane.b32.xlu0 %v9628_v31, %s11871_s16  ;;  %v13015_v6 = vpop.permute.xlu1 %9399  ;;  %v9708_v31 = vpack.i.bf16 %v1013_v18, %v1012_v10 }
 0x1ee   : > { %19236 = vst [vmem:[#allocation58_spill] sm:$0xff] %v13015_v6 }
 0x1ef   : > { %v12997_v30 = vpop.permute.xlu0 %9414  ;;  %9669 = vrot.lane.b32.xlu1 %v9683_v25, %s11868_s30 }
 0x1f0   : > { %19231 = vst [vmem:[#allocation53_spill] sm:$0xff] %v12997_v30  ;;  %v1137_v30 = vld [vmem:[#allocation3 + $0x12a] sm:$0xff] }
 0x1f1   : > { %9664 = vrot.lane.b32.xlu0 %v9633_v17, %s11872_s19  ;;  %v9688_v32 = vpack.i.bf16 %v1137_v30, %v1136_v35  ;;  %v1169_v35 = vld [vmem:[#allocation3 + $0x138] sm:$0xff] }
 0x1f3   : > { %v13003_v7 = vpop.permute.xlu0 %9419  ;;  %9674 = vrot.lane.b32.xlu1 %v9688_v32, %s11869_s12 }
 0x1f4   : > { %19233 = vst [vmem:[#allocation55_spill] sm:$0xff] %v13003_v7  ;;  %v13021_v7 = vpop.permute.xlu1 %9404 }
 0x1f5   : > { %9679 = vrot.lane.b32.xlu0 %v9678_v9, %s11874_s23  ;;  %19238 = vst [vmem:[#allocation60_spill] sm:$0xff] %v13021_v7 }
 0x1f7   : > { %v13009_v39 = vpop.permute.xlu0 %9424  ;;  %9694 = vrot.lane.b32.xlu1 %v9678_v9, %s11870_s15  ;;  %v1077_v9 = vld [vmem:[#allocation3 + $0x158] sm:$0xff] }
 0x1f8   : > { %19235 = vst [vmem:[#allocation57_spill] sm:$0xff] %v13009_v39  ;;  %v1045_v39 = vld [vmem:[#allocation3 + $0x142] sm:$0xff]  ;;  %v13027_v6 = vpop.permute.xlu1 %9409 }
 0x1f9   : > { %9684 = vrot.lane.b32.xlu0 %v9683_v25, %s11875_s24  ;;  %v9713_v17 = vpack.i.bf16 %v1045_v39, %v1044_v12  ;;  %19240 = vst [vmem:[#allocation62_spill] sm:$0xff] %v13027_v6  ;;  %v1109_v6 = vld [vmem:[#allocation3 + $0x159] sm:$0xff] }
 0x1fb   : > { %v2826_v0 = vpop.permute.xlu0 %2825  ;;  %9699 = vrot.lane.b32.xlu1 %v9683_v25, %s11871_s16  ;;  %v1108_v25 = vld [vmem:[#allocation3 + $0x151] sm:$0xff] }
 0x1fc   : > { %2910 = vst.msk [vmem:[#allocation4 + $0xc2] sm:$0xff] %vm426_vm1, %v2826_v0  ;;  %v1170_v0 = vld [vmem:[#allocation3 + $0x140] sm:$0xff] }
 0x1fd   : > { %9689 = vrot.lane.b32.xlu0 %v9688_v32, %s11876_s25  ;;  %v9733_v10 = vpack.i.bf16 %v1170_v0, %v1169_v35  ;;  %v1076_v35 = vld [vmem:[#allocation3 + $0x150] sm:$0xff] }
 0x1ff   : > { %v13019_v23 = vpop.permute.xlu0 %9439  ;;  %9704 = vrot.lane.b32.xlu1 %v9688_v32, %s11872_s19  ;;  %v9763_v32 = vpack.i.bf16 %v1109_v6, %v1108_v25  ;;  %v1049_v25 = vld [vmem:[#allocation3 + $0x172] sm:$0xff] }
 0x200   : > { %19237 = vst [vmem:[#allocation59_spill] sm:$0xff] %v13019_v23  ;;  %v2832_v23 = vpop.permute.xlu1 %2831 }
 0x201   : > { %9709 = vrot.lane.b32.xlu0 %v9708_v31, %s11868_s30  ;;  %2913 = vst.msk [vmem:[#allocation4 + $0xe2] sm:$0xff] %vm426_vm1, %v2832_v23  ;;  %v9758_v23 = vpack.i.bf16 %v1077_v9, %v1076_v35  ;;  %v1016_v35 = vld [vmem:[#allocation3 + $0x169] sm:$0xff]  ;;  %v1017_v9 = vld [vmem:[#allocation3 + $0x171] sm:$0xff] }
 0x202   : > { %v9788_v6 = vpack.i.bf16 %v1017_v9, %v1016_v35 }
 0x203   : > { %v13025_v30 = vpop.permute.xlu0 %9444  ;;  %9719 = vrot.lane.b32.xlu1 %v9733_v10, %s11874_s23 }
 0x204   : > { %19239 = vst [vmem:[#allocation61_spill] sm:$0xff] %v13025_v30  ;;  %v13037_v12 = vpop.permute.xlu1 %9429  ;;  %v1140_v30 = vld [vmem:[#allocation3 + $0x152] sm:$0xff] }
 0x205   : > { %9714 = vrot.lane.b32.xlu0 %v9713_v17, %s11869_s12  ;;  %19242 = vst [vmem:[#allocation64_spill] sm:$0xff] %v13037_v12 }
 0x207   : > { %v13031_v18 = vpop.permute.xlu0 %9449  ;;  %9724 = vrot.lane.b32.xlu1 %v9708_v31, %s11875_s24 }
 0x208   : > { %19241 = vst [vmem:[#allocation63_spill] sm:$0xff] %v13031_v18  ;;  %v13043_v18 = vpop.permute.xlu1 %9434 }
 0x209   : > { %9734 = vrot.lane.b32.xlu0 %v9733_v10, %s11870_s15  ;;  %19244 = vst [vmem:[#allocation66_spill] sm:$0xff] %v13043_v18 }
 0x20b   : > { %v2830_v39 = vpop.permute.xlu0 %2829  ;;  %9729 = vrot.lane.b32.xlu1 %v9713_v17, %s11876_s25 }
 0x20c   : > { %2912 = vst.msk [vmem:[#allocation4 + $0xda] sm:$0xff] %vm426_vm1, %v2830_v39  ;;  %v13049_v12 = vpop.permute.xlu1 %9454 }
 0x20d   : > { %9739 = vrot.lane.b32.xlu0 %v9708_v31, %s11871_s16  ;;  %19246 = vst [vmem:[#allocation68_spill] sm:$0xff] %v13049_v12  ;;  %v1048_v31 = vld [vmem:[#allocation3 + $0x16a] sm:$0xff] }
 0x20f   : > { %v13041_v0 = vpop.permute.xlu0 %9469  ;;  %9749 = vrot.lane.b32.xlu1 %v9763_v32, %s11868_s30 }
 0x210   : > { %19243 = vst [vmem:[#allocation65_spill] sm:$0xff] %v13041_v0  ;;  %v1141_v0 = vld [vmem:[#allocation3 + $0x15a] sm:$0xff]  ;;  %v13055_v18 = vpop.permute.xlu1 %9459 }
 0x211   : > { %9744 = vrot.lane.b32.xlu0 %v9713_v17, %s11872_s19  ;;  %19248 = vst [vmem:[#allocation70_spill] sm:$0xff] %v13055_v18  ;;  %v9768_v10 = vpack.i.bf16 %v1141_v0, %v1140_v30  ;;  %v13069_v17 = vpack.i.bf16 %v1049_v25, %v1048_v31  ;;  %v1173_v30 = vld [vmem:[#allocation3 + $0x168] sm:$0xff]  ;;  %v1174_v0 = vld [vmem:[#allocation3 + $0x170] sm:$0xff] }
 0x212   : > { %v9813_v9 = vpack.i.bf16 %v1174_v0, %v1173_v30  ;;  %v1081_v30 = vld [vmem:[#allocation3 + $0x188] sm:$0xff] }
 0x213   : > { %v13047_v39 = vpop.permute.xlu0 %9474  ;;  %9754 = vrot.lane.b32.xlu1 %v9768_v10, %s11869_s12 }
 0x214   : > { %19245 = vst [vmem:[#allocation67_spill] sm:$0xff] %v13047_v39  ;;  %v13061_v12 = vpop.permute.xlu1 %9464 }
 0x215   : > { %9759 = vrot.lane.b32.xlu0 %v9758_v23, %s11874_s23  ;;  %19250 = vst [vmem:[#allocation72_spill] sm:$0xff] %v13061_v12  ;;  %v1113_v12 = vld [vmem:[#allocation3 + $0x189] sm:$0xff] }
 0x217   : > { %v13053_v7 = vpop.permute.xlu0 %9494  ;;  %9774 = vrot.lane.b32.xlu1 %v9758_v23, %s11870_s15  ;;  %v9220_v23 = vunpack.i.l.bf16 %v12805_v61 }
 0x218   : > { %19247 = vst [vmem:[#allocation69_spill] sm:$0xff] %v13053_v7  ;;  %v2836_v18 = vpop.permute.xlu1 %2835 }
 0x219   : > { %9764 = vrot.lane.b32.xlu0 %v9763_v32, %s11875_s24  ;;  %2915 = vst.msk [vmem:[#allocation4 + $0xfa] sm:$0xff] %vm426_vm1, %v2836_v18 }
 0x21b   : > { %v13059_v39 = vpop.permute.xlu0 %9499  ;;  %9779 = vrot.lane.b32.xlu1 %v9763_v32, %s11871_s16  ;;  %v955_v32 = vld [vmem:[#allocation3 + $0x8] sm:$0xff] }
 0x21c   : > { %19249 = vst [vmem:[#allocation71_spill] sm:$0xff] %v13059_v39  ;;  %v13073_v35 = vpop.permute.xlu1 %9479 }
 0x21d   : > { %9769 = vrot.lane.b32.xlu0 %v9768_v10, %s11876_s25  ;;  %19252 = vst [vmem:[#allocation74_spill] sm:$0xff] %v13073_v35 }
 0x21f   : > { %v13065_v7 = vpop.permute.xlu0 %9504  ;;  %9784 = vrot.lane.b32.xlu1 %v9768_v10, %s11872_s19  ;;  %v1112_v10 = vld [vmem:[#allocation3 + $0x181] sm:$0xff] }
 0x220   : > { %19251 = vst [vmem:[#allocation73_spill] sm:$0xff] %v13065_v7  ;;  %v13080_v7 = vpop.permute.xlu1 %9484 }
 0x221   : > { %9789 = vrot.lane.b32.xlu0 %v9788_v6, %s11868_s30  ;;  %19254 = vst [vmem:[#allocation76_spill] sm:$0xff] %v13080_v7  ;;  %v9221_v7 = vunpack.i.h.bf16 %v12805_v61 }
 0x223   : > { %v2834_v39 = vpop.permute.xlu0 %2833  ;;  %9799 = vrot.lane.b32.xlu1 %v9813_v9, %s11874_s23  ;;  %v2268_v8 = vsel %vm426_vm1, %v955_v32, %v9221_v7  ;;  %v1145_v7 = vld [vmem:[#allocation3 + $0x18a] sm:$0xff] }
 0x224   : > { %2914 = vst.msk [vmem:[#allocation4 + $0xf2] sm:$0xff] %vm426_vm1, %v2834_v39  ;;  %v13086_v25 = vpop.permute.xlu1 %9489  ;;  %v1080_v39 = vld [vmem:[#allocation3 + $0x180] sm:$0xff]  ;;  %v13122_v32 = vld [vmem:[#allocation4 + $0x39] sm:$0xff] }
 0x225   : > { %9794 = vrot.lane.b32.xlu0 %v13069_v17, %s11869_s12  ;;  %19256 = vst [vmem:[#allocation78_spill] sm:$0xff] %v13086_v25  ;;  %v9225_v25 = vunpack.i.l.bf16 %v12832_v28  ;;  %19260 = vst [vmem:[#allocation82_spill] sm:$0xff] %v13122_v32  ;;  %v11779_v32 = vld [vmem:[#allocation3 + $0x20] sm:$0xff] }
 0x227   : > { %v13078_v18 = vpop.permute.xlu0 %9519  ;;  %9804 = vrot.lane.b32.xlu1 %v9788_v6, %s11875_s24 }
 0x228   : > { %19253 = vst [vmem:[#allocation75_spill] sm:$0xff] %v13078_v18  ;;  %v954_v18 = vld [vmem:[#allocation3] sm:$0xff]  ;;  %v13094_v35 = vpop.permute.xlu1 %9509 }
 0x229   : > { %9814 = vrot.lane.b32.xlu0 %v9813_v9, %s11870_s15  ;;  %v2267_v11 = vsel %vm426_vm1, %v954_v18, %v9220_v23  ;;  %v13115_v9 = vld [vmem:[#allocation4 + $0x3a] sm:$0xff]  ;;  %v1144_v23 = vld [vmem:[#allocation3 + $0x182] sm:$0xff] }
 0x22a   : > { %v13118_v18 = vsel %vm2299_vm5, %v2267_v11, %v9225_v25  ;;  %v13130_v11 = vld [vmem:[#allocation4 + $0x32] sm:$0xff]  ;;  %v13149_v27 = vpack.i.bf16 %v1145_v7, %v1144_v23  ;;  %v9287_v7 = vunpack.i.h.bf16 %v12907_v44 }
 0x22b   : > { %v13084_v31 = vpop.permute.xlu0 %9524  ;;  %v13132_v25 = vld [vmem:[#allocation4 + $0x33] sm:$0xff]  ;;  %9809 = vrot.lane.b32.xlu1 %v13069_v17, %s11876_s25 }
 0x22c   : > { %19255 = vst [vmem:[#allocation77_spill] sm:$0xff] %v13084_v31  ;;  %v13098_v31 = vpack.i.bf16 %v1081_v30, %v1080_v39  ;;  %v13107_v29 = vpop.permute.xlu1 %9514  ;;  %v13111_v39 = vpack.i.bf16 %v1113_v12, %v1112_v10  ;;  %v13113_v30 = vld [vmem:[#allocation4 + $0x31] sm:$0xff]  ;;  %19262 = vst [vmem:[#allocation84_spill] sm:$0xff] %v13132_v25  ;;  %v13141_v12 = vld [vmem:[#allocation4 + $0x49] sm:$0xff]  ;;  %v9282_v25 = vunpack.i.h.bf16 %v12899_v20 }
 0x22d   : > { %9819 = vrot.lane.b32.xlu0 %v9788_v6, %s11871_s16  ;;  %19258 = vst [vmem:[#allocation80_spill] sm:$0xff] %v13107_v29  ;;  %19259 = vst [vmem:[#allocation81_spill] sm:$0xff] %v13113_v30  ;;  %v13145_v10 = vld [vmem:[#allocation4 + $0x52] sm:$0xff]  ;;  %v9252_v6 = vunpack.i.h.bf16 %v12872_v45  ;;  %v9251_v30 = vunpack.i.l.bf16 %v12872_v45 }
 0x22e   : > { %19264 = vst [vmem:[#allocation86_spill] sm:$0xff] %v13145_v10  ;;  %v19272_v10 = vmax.f32 %v12701_v5, 0.0 }
 0x22f   : > { %v13091_v0 = vpop.permute.xlu0 %9529  ;;  %9844 = vrot.lane.b32.xlu1 %v13098_v31, %s11870_s15 }
 0x230   : > { %19257 = vst [vmem:[#allocation79_spill] sm:$0xff] %v13091_v0  ;;  %v9226_v0 = vunpack.i.h.bf16 %v12832_v28  ;;  %v9246_v28 = vunpack.i.l.bf16 %v12877_v53  ;;  %v13143_v53 = vld [vmem:[#allocation4 + $0x51] sm:$0xff] }
 0x231   : > { %9824 = vrot.lane.b32.xlu0 %v13069_v17, %s11872_s19  ;;  %v9256_v17 = vunpack.i.l.bf16 %v12890_v49 }
 0x232   : > { %v2301_v16 = vsel %vm2299_vm5, %v2268_v8, %v9226_v0  ;;  %v13139_v0 = vpop.permute.xlu1 %9534  ;;  %v13153_v8 = vld [vmem:[#allocation4 + $0x4a] sm:$0xff] }
 0x233   : > { %v13104_v61 = vpop.permute.xlu0 %9549  ;;  %19263 = vst [vmem:[#allocation85_spill] sm:$0xff] %v13139_v0  ;;  %19265 = vst [vmem:[#allocation87_spill] sm:$0xff] %v13153_v8  ;;  %v11778_v0 = vld [vmem:[#allocation3 + $0x18] sm:$0xff]  ;;  %v2334_v49 = vsel %vm2332_vm6, %v2301_v16, %v9257_v62  ;;  %v9292_v16 = vunpack.i.h.bf16 %v12913_v2  ;;  %9849 = vrot.lane.b32.xlu1 %v13111_v39, %s11871_s16 }
 0x234   : > { %v2269_v47 = vsel %vm426_vm1, %v11778_v0, %v9246_v28  ;;  %v9281_v0 = vunpack.i.l.bf16 %v12899_v20  ;;  %v9261_v28 = vunpack.i.l.bf16 %v12901_v48  ;;  %v13196_v20 = vld [vmem:[#allocation4 + $0x69] sm:$0xff] }
 0x235   : > { %9829 = vrot.lane.b32.xlu0 %v13098_v31, %s11874_s23  ;;  %v2333_v31 = vsel %vm2332_vm6, %v13118_v18, %v9256_v17  ;;  %v13223_v17 = vld [vmem:[#allocation4 + $0x6a] sm:$0xff] }
 0x236   : > { %v13176_v23 = vpop.permute.xlu1 %9539 }
 0x237   : > { %v13128_v33 = vpop.permute.xlu0 %9554  ;;  %19269 = vst [vmem:[#allocation91_spill] sm:$0xff] %v13176_v23  ;;  %v9286_v23 = vunpack.i.l.bf16 %v12907_v44  ;;  %v13204_v44 = vld [vmem:[#allocation4 + $0x62] sm:$0xff]  ;;  %9854 = vrot.lane.b32.xlu1 %v13149_v27, %s11872_s19 }
 0x238   : > { %19261 = vst [vmem:[#allocation83_spill] sm:$0xff] %v13128_v33  ;;  %v2270_v33 = vsel %vm426_vm1, %v11779_v32, %v9247_v55  ;;  %v2302_v55 = vsel %vm2299_vm5, %v2269_v47, %v9251_v30  ;;  %v9262_v32 = vunpack.i.h.bf16 %v12901_v48  ;;  %v13194_v47 = vld [vmem:[#allocation4 + $0x61] sm:$0xff]  ;;  %v9267_v48 = vunpack.i.h.bf16 %v12909_v43 }
 0x239   : > { %9834 = vrot.lane.b32.xlu0 %v13111_v39, %s11875_s24  ;;  %v9266_v30 = vunpack.i.l.bf16 %v12909_v43  ;;  %v2335_v45 = vsel %vm2332_vm6, %v2302_v55, %v9281_v0  ;;  %v9271_v43 = vunpack.i.l.bf16 %v12919_v57  ;;  %v13225_v0 = vld [vmem:[#allocation4 + $0x6b] sm:$0xff]  ;;  %v11781_v39 = vld [vmem:[#allocation3 + $0x30] sm:$0xff] }
 0x23a   : > { %v13213_v46 = vpop.permute.xlu1 %9544  ;;  %v2367_v8 = vsel %vm2365_vm7, %v2334_v49, %v9262_v32  ;;  %v2368_v57 = vsel %vm2365_vm7, %v2335_v45, %v9286_v23 }
 0x23b   : > { %v13170_v29 = vpop.permute.xlu0 %9574  ;;  %19271 = vst [vmem:[#allocation93_spill] sm:$0xff] %v13213_v46  ;;  %v2271_v49 = vsel %vm426_vm1, %v11781_v39, %v9271_v43  ;;  %v9301_v43 = vunpack.i.l.bf16 %v12943_v26 }
 0x23c   : > { %19268 = vst [vmem:[#allocation90_spill] sm:$0xff] %v13170_v29  ;;  %v2303_v29 = vsel %vm2299_vm5, %v2270_v33, %v9252_v6  ;;  %v9291_v33 = vunpack.i.l.bf16 %v12913_v2  ;;  %v13206_v6 = vld [vmem:[#allocation4 + $0x63] sm:$0xff] }
 0x23d   : > { %9839 = vrot.lane.b32.xlu0 %v13149_v27, %s11876_s25  ;;  %v2336_v2 = vsel %vm2332_vm6, %v2303_v29, %v9282_v25  ;;  %v2400_v25 = vsel %vm2398_vm8, %v2367_v8, %v9267_v48  ;;  %v9277_v8 = vunpack.i.h.bf16 %v12925_v38  ;;  %v9276_v48 = vunpack.i.l.bf16 %v12925_v38 }
 0x23e   : > { %v2369_v55 = vsel %vm2365_vm7, %v2336_v2, %v9287_v7  ;;  %v11780_v7 = vld [vmem:[#allocation3 + $0x38] sm:$0xff]  ;;  %v9311_v2 = vunpack.i.l.bf16 %v12923_v42  ;;  %v13245_v5 = vpop.permute.xlu1 %9559  ;;  %v9342_v38 = vunpack.i.h.bf16 %v12947_v34  ;;  %v9346_v27 = vunpack.i.l.bf16 %v12953_v40 }
 0x23f   : > { %v13202_v62 = vpop.permute.xlu0 %9579  ;;  %v2402_v32 = vsel %vm2398_vm8, %v2369_v55, %v9292_v16  ;;  %v2272_v45 = vsel %vm426_vm1, %v11780_v7, %v9272_v63  ;;  %v9296_v16 = vunpack.i.l.bf16 %v12931_v51  ;;  %v19274_v63 = vmax.f32 %v12722_v52, 0.0  ;;  %v11782_v7 = vld [vmem:[#allocation3 + $0x48] sm:$0xff] }
 0x240   : > { %19270 = vst [vmem:[#allocation92_spill] sm:$0xff] %v13202_v62  ;;  %v2366_v62 = vsel %vm2365_vm7, %v2333_v31, %v9261_v28  ;;  %v2401_v28 = vsel %vm2398_vm8, %v2368_v57, %v9291_v33  ;;  %v9312_v31 = vunpack.i.h.bf16 %v12923_v42  ;;  %v9337_v33 = vunpack.i.h.bf16 %v12939_v41 }
 0x241   : > { %2837 = vrot.lane.b32.xlu0 %v19272_v10, %s11873_s22  ;;  %v2399_v10 = vsel %vm2398_vm8, %v2366_v62, %v9266_v30  ;;  %v9297_v30 = vunpack.i.h.bf16 %v12931_v51  ;;  %v9336_v62 = vunpack.i.l.bf16 %v12939_v41  ;;  %v9302_v42 = vunpack.i.h.bf16 %v12943_v26 }
 0x242   : > { %v9341_v57 = vunpack.i.l.bf16 %v12947_v34  ;;  %v9307_v51 = vunpack.i.h.bf16 %v12949_v36  ;;  %v9306_v52 = vunpack.i.l.bf16 %v12949_v36  ;;  %v2274_v41 = vsel %vm426_vm1, %v12706_v60, %v9312_v31 }
 0x243   : > { %v13239_v23 = vpop.permute.xlu0 %9584  ;;  %v2273_v39 = vsel %vm426_vm1, %v11782_v7, %v9311_v2  ;;  %v9347_v26 = vunpack.i.h.bf16 %v12953_v40  ;;  %v9317_v34 = vunpack.i.h.bf16 %v12929_v37  ;;  %v9316_v29 = vunpack.i.l.bf16 %v12929_v37 }
 0x244   : > { %19273 = vst [vmem:[#allocation94_spill] sm:$0xff] %v13239_v23  ;;  %v2432_v36 = vsel %vm2431_vm9, %v2399_v10, %v9296_v16  ;;  %v2433_v18 = vsel %vm2431_vm9, %v2400_v25, %v9297_v30  ;;  %v19275_v60 = vmax.f32 %v12752_v58, 0.0  ;;  %v2434_v31 = vsel %vm2431_vm9, %v2401_v28, %v9336_v62  ;;  %v13299_v30 = vld [vmem:[#allocation4 + $0x81] sm:$0xff] }
 0x245   : > { %2841 = vrot.lane.b32.xlu0 %v19274_v63, %s11873_s22  ;;  %v13271_v63 = vpop.permute.xlu1 %9564  ;;  %v2435_v2 = vsel %vm2431_vm9, %v2402_v32, %v9337_v33  ;;  %v2465_v40 = vsel %vm2464_vm10, %v2432_v36, %v9301_v43  ;;  %v2466_v7 = vsel %vm2464_vm10, %v2433_v18, %v9302_v42  ;;  %v19276_v23 = vmax.f32 %v12694_v54, 0.0  ;;  %v13297_v32 = vld [vmem:[#allocation4 + $0x79] sm:$0xff]  ;;  %19278 = vst [vmem:[#allocation96_spill] sm:$0xff] %v13299_v30 }
 0x246   : > { %v2467_v37 = vsel %vm2464_vm10, %v2434_v31, %v9341_v57  ;;  %v2468_v10 = vsel %vm2464_vm10, %v2435_v2, %v9342_v38  ;;  %v13290_v25 = vsel %vm2497_vm11, %v2465_v40, %v9306_v52  ;;  %v13293_v58 = vsel %vm2497_vm11, %v2466_v7, %v9307_v51  ;;  %19277 = vst [vmem:[#allocation95_spill] sm:$0xff] %v13297_v32  ;;  %v13311_v62 = vld [vmem:[#allocation4 + $0x7a] sm:$0xff] }
 0x247   : > { %v13264_v55 = vpop.permute.xlu0 %9599  ;;  %2839 = vrot.lane.b32.xlu1 %v19276_v23, %s11873_s22  ;;  %v13302_v18 = vsel %vm2497_vm11, %v2467_v37, %v9346_v27  ;;  %v13305_v54 = vsel %vm2497_vm11, %v2468_v10, %v9347_v26  ;;  %v9322_v23 = vunpack.i.h.bf16 %v12959_v22  ;;  %v9321_v16 = vunpack.i.l.bf16 %v12959_v22  ;;  %19279 = vst [vmem:[#allocation97_spill] sm:$0xff] %v13311_v62  ;;  %v13313_v42 = vld [vmem:[#allocation4 + $0x7b] sm:$0xff]  ;;  %v13357_v37 = vld [vmem:[#allocation4 + $0x91] sm:$0xff] }
 0x248   : > { %19280 = vst [vmem:[#allocation98_spill] sm:$0xff] %v13313_v42  ;;  %v9362_v43 = vunpack.i.h.bf16 %v12963_v24  ;;  %v9361_v38 = vunpack.i.l.bf16 %v12963_v24  ;;  %v9326_v57 = vunpack.i.l.bf16 %v12965_v21  ;;  %v19281_v51 = vmax.f32 %v12783_v1, 0.0  ;;  %v2530_v22 = vld [vmem:[%s18676_s5] sm:$0xff]  ;;  %19285 = vst [vmem:[#allocation101_spill] sm:$0xff] %v13357_v37  ;;  %v19293_v42 = vld [vmem:[#allocation83_spill] sm:$0xff] }
 0x249   : > { %2845 = vrot.lane.b32.xlu0 %v19275_v60, %s11873_s22  ;;  %v13309_v33 = vpop.permute.xlu1 %9569  ;;  %v2304_v52 = vsel %vm2299_vm5, %v2271_v49, %v9276_v48  ;;  %v2305_v26 = vsel %vm2299_vm5, %v2272_v45, %v9277_v8  ;;  %v9327_v27 = vunpack.i.h.bf16 %v12965_v21  ;;  %v19282_v24 = vmax.f32 %v12719_v3, 0.0  ;;  %v13332_v1 = vld [vmem:[#allocation4 + $0x82] sm:$0xff]  ;;  %8876 = vmatprep.mubr.msk.f32.mxu1 %vm2537_vm12, %v2530_v22  ;;  %v13359_v10 = vld [vmem:[#allocation4 + $0x99] sm:$0xff]  ;;  %v19296_v62 = vld [vmem:[#allocation47_spill] sm:$0xff] }
 0x24a   : > { %19283 = vst [vmem:[#allocation99_spill] sm:$0xff] %v13332_v1  ;;  %v13334_v60 = vld [vmem:[#allocation4 + $0x83] sm:$0xff]  ;;  %v2306_v31 = vsel %vm2299_vm5, %v2273_v39, %v9316_v29  ;;  %v9366_v49 = vunpack.i.l.bf16 %v12969_v50  ;;  %v2307_v2 = vsel %vm2299_vm5, %v2274_v41, %v9317_v34  ;;  %v2337_v39 = vsel %vm2332_vm6, %v2304_v52, %v9321_v16  ;;  %19286 = vst [vmem:[#allocation102_spill] sm:$0xff] %v13359_v10  ;;  %v13376_v48 = vld [vmem:[#allocation4 + $0x9a] sm:$0xff] }
 0x24b   : > { %v13295_v28 = vpop.permute.xlu0 %9604  ;;  %2843 = vrot.lane.b32.xlu1 %v19282_v24, %s11873_s22  ;;  %19284 = vst [vmem:[#allocation100_spill] sm:$0xff] %v13334_v60  ;;  %v13341_v21 = vld [vmem:[#allocation4 + $0x1] sm:$0xff]  ;;  %v13343_v8 = vld [vmem:[#allocation4 + $0x9] sm:$0xff]  ;;  %v2338_v22 = vsel %vm2332_vm6, %v2305_v26, %v9322_v23  ;;  %v2339_v41 = vsel %vm2332_vm6, %v2306_v31, %v9361_v38  ;;  %v13366_v34 = vsel %vm2332_vm6, %v2307_v2, %v9362_v43  ;;  %v19288_v16 = vmax.f32 %v12811_v19, 0.0  ;;  %v19292_v23 = vld [vmem:[#allocation80_spill] sm:$0xff] }
 0x24c   : > { %v13369_v24 = vsel %vm2365_vm7, %v2337_v39, %v9326_v57  ;;  %v13374_v52 = vld [vmem:[#allocation4 + $0x2] sm:$0xff]  ;;  %19289 = vst [vmem:[#allocation104_spill] sm:$0xff] %v13376_v48  ;;  %v13379_v3 = vsel %vm2365_vm7, %v2338_v22, %v9327_v27  ;;  %v19290_v43 = vmax.f32 %v12748_v56, 0.0  ;;  %v13388_v19 = vld [vmem:[#allocation4 + $0xa] sm:$0xff]  ;;  %v13395_v27 = vsel %vm2365_vm7, %v2339_v41, %v9366_v49  ;;  %v13410_v41 = vld [vmem:[#allocation4 + $0x19] sm:$0xff] }
 0x24d   : > { %2849 = vrot.lane.b32.xlu0 %v19281_v51, %s11873_s22  ;;  %v13355_v7 = vpop.permute.xlu1 %9589  ;;  %v13361_v51 = vld [vmem:[#allocation4 + $0x92] sm:$0xff]  ;;  %v13390_v26 = vld [vmem:[#allocation4 + $0x3] sm:$0xff]  ;;  %v9511_v36 = vunpack.i.l.bf16 %v13094_v35  ;;  %v9551_v29 = vunpack.i.l.bf16 %v13104_v61  ;;  %v19291_v22 = vmax.f32 %v12839_v15, 0.0  ;;  %v9552_v2 = vunpack.i.h.bf16 %v13104_v61 }
 0x24e   : > { %19287 = vst [vmem:[#allocation103_spill] sm:$0xff] %v13361_v51  ;;  %v13392_v31 = vld [vmem:[#allocation4 + $0xb] sm:$0xff]  ;;  %v13412_v40 = vld [vmem:[#allocation4 + $0x21] sm:$0xff]  ;;  %v9517_v57 = vunpack.i.h.bf16 %v19292_v23  ;;  %v9516_v46 = vunpack.i.l.bf16 %v19292_v23  ;;  %v9556_v38 = vunpack.i.l.bf16 %v19293_v42  ;;  %v971_v51 = vld [vmem:[#allocation3 + $0xc8] sm:$0xff]  ;;  %v9602_v1 = vunpack.i.h.bf16 %v13264_v55 }
 0x24f   : > { %v13339_v45 = vpop.permute.xlu0 %9609  ;;  %2847 = vrot.lane.b32.xlu1 %v19290_v43, %s11873_s22  ;;  %v9512_v43 = vunpack.i.h.bf16 %v13094_v35  ;;  %v19294_v56 = vld [vmem:[#allocation38_spill] sm:$0xff]  ;;  %v9567_v37 = vunpack.i.h.bf16 %v13271_v63  ;;  %v9566_v10 = vunpack.i.l.bf16 %v13271_v63 }
 0x250   : > { %v19295_v60 = vmax.f32 %v19294_v56, 0.0  ;;  %v9562_v56 = vunpack.i.h.bf16 %v13245_v5  ;;  %v19297_v61 = vld [vmem:[#allocation46_spill] sm:$0xff] }
 0x251   : > { %2853 = vrot.lane.b32.xlu0 %v19288_v16, %s11873_s22  ;;  %v13408_v49 = vpop.permute.xlu1 %9594  ;;  %v9868_v16 = vpack.i.bf16 %v13388_v19, %v13374_v52  ;;  %v9557_v52 = vunpack.i.h.bf16 %v19293_v42  ;;  %v9561_v19 = vunpack.i.l.bf16 %v13245_v5  ;;  %v2284_v23 = vsel %vm426_vm1, %v971_v51, %v9512_v43  ;;  %v19299_v51 = vld [vmem:[#allocation48_spill] sm:$0xff]  ;;  %v19300_v43 = vld [vmem:[#allocation39_spill] sm:$0xff] }
 0x252   : > { %v9601_v42 = vunpack.i.l.bf16 %v13264_v55  ;;  %v19298_v32 = vmax.f32 %v19297_v61, 0.0  ;;  %v2317_v5 = vsel %vm2299_vm5, %v2284_v23, %v9517_v57  ;;  %v19301_v55 = vmax.f32 %v19300_v43, 0.0 }
 0x253   : > { %v13398_v39 = vpop.permute.xlu0 %9629  ;;  %2851 = vrot.lane.b32.xlu1 %v19295_v60, %s11873_s22  ;;  %v2285_v60 = vsel %vm426_vm1, %v19296_v62, %v9551_v29  ;;  %v9572_v61 = vunpack.i.h.bf16 %v13309_v33 }
 0x254   : > { %v2318_v29 = vsel %vm2299_vm5, %v2285_v60, %v9556_v38 }
 0x255   : > { %2857 = vrot.lane.b32.xlu0 %v19291_v22, %s11873_s22  ;;  %v970_v22 = vld [vmem:[#allocation3 + $0xc0] sm:$0xff]  ;;  %v9615_v15 = vpop.permute.xlu1 %9614  ;;  %v2351_v23 = vsel %vm2332_vm6, %v2318_v29, %v9601_v42 }
 0x256   : > { %v2283_v48 = vsel %vm426_vm1, %v970_v22, %v9511_v36  ;;  %v2286_v36 = vsel %vm426_vm1, %v19299_v51, %v9552_v2  ;;  %v2350_v2 = vsel %vm2332_vm6, %v2317_v5, %v9562_v56  ;;  %v9616_v57 = vunpack.i.l.bf16 %v9615_v15 }
 0x257   : > { %v13433_v35 = vpop.permute.xlu0 %9634  ;;  %v2316_v62 = vsel %vm2299_vm5, %v2283_v48, %v9516_v46  ;;  %2855 = vrot.lane.b32.xlu1 %v19301_v55, %s11873_s22  ;;  %v2319_v22 = vsel %vm2299_vm5, %v2286_v36, %v9557_v52  ;;  %v9606_v46 = vunpack.i.l.bf16 %v13295_v28  ;;  %v9617_v48 = vunpack.i.h.bf16 %v9615_v15 }
 0x258   : > { %v2349_v63 = vsel %vm2332_vm6, %v2316_v62, %v9561_v19  ;;  %v2352_v60 = vsel %vm2332_vm6, %v2319_v22, %v9602_v1  ;;  %v2383_v19 = vsel %vm2365_vm7, %v2350_v2, %v9567_v37  ;;  %v9607_v56 = vunpack.i.h.bf16 %v13295_v28  ;;  %v19303_v62 = vld [vmem:[#allocation42_spill] sm:$0xff] }
 0x259   : > { %2861 = vrot.lane.b32.xlu0 %v19298_v32, %s11873_s22  ;;  %v9571_v32 = vunpack.i.l.bf16 %v13309_v33  ;;  %v9620_v38 = vpop.permute.xlu1 %9619  ;;  %v2382_v52 = vsel %vm2365_vm7, %v2349_v63, %v9566_v10  ;;  %v19302_v33 = vpack.i.bf16 %v13343_v8, %v13341_v21  ;;  %v9611_v51 = vunpack.i.l.bf16 %v13339_v45 }
 0x25a   : > { %v9622_v36 = vunpack.i.h.bf16 %v9620_v38  ;;  %v9621_v15 = vunpack.i.l.bf16 %v9620_v38  ;;  %v19304_v42 = vmax.f32 %v19303_v62, 0.0  ;;  %v2416_v10 = vsel %vm2398_vm8, %v2383_v19, %v9572_v61 }
 0x25b   : > { %v9655_v30 = vpop.permute.xlu0 %9654  ;;  %v2415_v1 = vsel %vm2398_vm8, %v2382_v52, %v9571_v32  ;;  %v9612_v37 = vunpack.i.h.bf16 %v13339_v45  ;;  %v2384_v21 = vsel %vm2365_vm7, %v2351_v23, %v9606_v46  ;;  %v2449_v8 = vsel %vm2431_vm9, %v2416_v10, %v9617_v48 }
 0x25c   : > { %2859 = vrot.lane.b32.xlu1 %v19304_v42, %s11873_s22  ;;  %v9656_v5 = vunpack.i.l.bf16 %v9655_v30  ;;  %v2448_v28 = vsel %vm2431_vm9, %v2415_v1, %v9616_v57  ;;  %v9657_v43 = vunpack.i.h.bf16 %v9655_v30  ;;  %v2385_v61 = vsel %vm2365_vm7, %v2352_v60, %v9607_v56  ;;  %v19305_v57 = vld [vmem:[#allocation45_spill] sm:$0xff] }
 0x25d   : > { %9859 = vrot.lane.b32.xlu0 %v19302_v33, %s11868_s30  ;;  %v9625_v55 = vpop.permute.xlu1 %9624  ;;  %v2417_v45 = vsel %vm2398_vm8, %v2384_v21, %v9611_v51  ;;  %v2481_v32 = vsel %vm2464_vm10, %v2448_v28, %v9621_v15  ;;  %v2482_v46 = vsel %vm2464_vm10, %v2449_v8, %v9622_v36  ;;  %v19306_v23 = vmax.f32 %v19305_v57, 0.0  ;;  %v2996_v33 = vld [vmem:[#allocation4 + $0x1a] sm:$0xff]  ;;  %v2997_v56 = vld [vmem:[#allocation4 + $0x22] sm:$0xff] }
 0x25e   : > { %v9627_v2 = vunpack.i.h.bf16 %v9625_v55  ;;  %v9626_v38 = vunpack.i.l.bf16 %v9625_v55  ;;  %v2418_v30 = vsel %vm2398_vm8, %v2385_v61, %v9612_v37  ;;  %v2450_v48 = vsel %vm2431_vm9, %v2417_v45, %v9656_v5  ;;  %v19312_v8 = vld [vmem:[#allocation44_spill] sm:$0xff]  ;;  %v19316_v61 = vld [vmem:[#allocation49_spill] sm:$0xff] }
 0x25f   : > { %v9660_v29 = vpop.permute.xlu0 %9659  ;;  %v2451_v51 = vsel %vm2431_vm9, %v2418_v30, %v9657_v43  ;;  %v19309_v1 = vunpack.i.h.bf16 %v12969_v50  ;;  %v19310_v37 = vunpack.i.l.bf16 %v12971_v14  ;;  %v19311_v28 = vpack.i.bf16 %v13392_v31, %v13390_v26 }
 0x260   : > { %v9662_v22 = vunpack.i.h.bf16 %v9660_v29  ;;  %v9661_v63 = vunpack.i.l.bf16 %v9660_v29  ;;  %2863 = vrot.lane.b32.xlu1 %v19306_v23, %s11873_s22  ;;  %v2514_v52 = vsel %vm2497_vm11, %v2481_v32, %v9626_v38  ;;  %v19313_v55 = vpack.i.bf16 %v13412_v40, %v13410_v41  ;;  %v11784_v23 = vld [vmem:[#allocation3 + $0x60] sm:$0xff]  ;;  %s11878_s22 = smov 40  }
 0x261   : > { %9869 = vrot.lane.b32.xlu0 %v9868_v16, %s11869_s12  ;;  %v2515_v16 = vsel %vm2497_vm11, %v2482_v46, %v9627_v2  ;;  %v13501_v62 = vpop.permute.xlu1 %9639  ;;  %v2373_v10 = vsel %vm2365_vm7, %v13366_v34, %v19309_v1  ;;  %v2403_v5 = vsel %vm2398_vm8, %v13369_v24, %v19310_v37  ;;  %v9873_v24 = vpack.i.bf16 %v2997_v56, %v2996_v33  ;;  %v11783_v46 = vld [vmem:[#allocation3 + $0x68] sm:$0xff]  ;;  %v19323_v56 = vld [vmem:[#allocation82_spill] sm:$0xff] }
 0x262   : > { %v9044_v42 = vpack.c.bf16 %v2515_v16, %v2514_v52  ;;  %v2483_v29 = vsel %vm2464_vm10, %v2450_v48, %v9661_v63  ;;  %v2484_v21 = vsel %vm2464_vm10, %v2451_v51, %v9662_v22  ;;  %v3028_v22 = vld [vmem:[#allocation4 + $0x1b] sm:$0xff]  ;;  %v3029_v63 = vld [vmem:[#allocation4 + $0x23] sm:$0xff]  ;;  %v19314_v26 = vunpack.i.h.bf16 %v12971_v14 }
 0x263   : > { %v9665_v19 = vpop.permute.xlu0 %9664  ;;  %v19315_v2 = vunpack.i.l.bf16 %v12975_v13  ;;  %v9392_v45 = vunpack.i.h.bf16 %v19316_v61  ;;  %v19317_v41 = vpack.c.bf16 %v13293_v58, %v13290_v25  ;;  %v19318_v14 = vunpack.i.h.bf16 %v12975_v13  ;;  %v19321_v52 = vld [vmem:[#allocation50_spill] sm:$0xff]  ;;  %v19324_v51 = vld [vmem:[#allocation81_spill] sm:$0xff] }
 0x264   : > { %v9667_v36 = vunpack.i.h.bf16 %v9665_v19  ;;  %v9666_v15 = vunpack.i.l.bf16 %v9665_v19  ;;  %9864 = vrot.lane.b32.xlu1 %v19313_v55, %s11868_s30  ;;  %9046 = vmatprep.subr.msk.bf16.mxu1 %vm13496_vm13, %v9044_v42  ;;  %v2404_v31 = vsel %vm2398_vm8, %v13379_v3, %v19314_v26  ;;  %v19319_v57 = vunpack.i.h.bf16 %v12981_v4  ;;  %v19322_v19 = vld [vmem:[#allocation52_spill] sm:$0xff] }
 0x265   : > { %9879 = vrot.lane.b32.xlu0 %v19311_v28, %s11874_s23  ;;  %v2405_v38 = vsel %vm2398_vm8, %v13395_v27, %v19315_v2  ;;  %9049 = vmatpush3.bf16.xpose.msk.msra.mxu1 %vm13496_vm13, %v19317_v41  ;;  %v2406_v3 = vsel %vm2398_vm8, %v2373_v10, %v19318_v14  ;;  %v19320_v30 = vunpack.i.l.bf16 %v12981_v4  ;;  %v9391_v25 = vunpack.i.l.bf16 %v19316_v61  ;;  %v13552_v58 = vpop.permute.xlu1 %9644  ;;  %v19327_v10 = vld [vmem:[#allocation54_spill] sm:$0xff]  ;;  %v19330_v41 = vld [vmem:[#allocation57_spill] sm:$0xff] }
 0x266   : > { %v2516_v50 = vsel %vm2497_vm11, %v2483_v29, %v9666_v15  ;;  %v2517_v34 = vsel %vm2497_vm11, %v2484_v21, %v9667_v36  ;;  %v2276_v27 = vsel %vm426_vm1, %v11783_v46, %v19319_v57  ;;  %v9357_v16 = vunpack.i.h.bf16 %v19321_v52  ;;  %v19326_v15 = vld [vmem:[#allocation53_spill] sm:$0xff]  ;;  %v11785_v21 = vld [vmem:[#allocation3 + $0x80] sm:$0xff] }
 0x267   : > { %v13535_v40 = vpop.permute.xlu0 %9679  ;;  %v9050_v32 = vpack.c.bf16 %v2517_v34, %v2516_v50  ;;  %v2275_v48 = vsel %vm426_vm1, %v11784_v23, %v19320_v30  ;;  %v9377_v13 = vunpack.i.h.bf16 %v19322_v19  ;;  %v9376_v33 = vunpack.i.l.bf16 %v19322_v19  ;;  %v19328_v34 = vld [vmem:[#allocation55_spill] sm:$0xff] }
 0x268   : > { %v19325_v36 = vpack.i.bf16 %v19323_v56, %v19324_v51  ;;  %v9883_v4 = vpack.i.bf16 %v3029_v63, %v3028_v22  ;;  %v9417_v42 = vunpack.i.h.bf16 %v19326_v15  ;;  %v9416_v1 = vunpack.i.l.bf16 %v19326_v15  ;;  %9874 = vrot.lane.b32.xlu1 %v9873_v24, %s11869_s12  ;;  %v19329_v63 = vld [vmem:[#allocation56_spill] sm:$0xff]  ;;  %v19331_v46 = vld [vmem:[#allocation51_spill] sm:$0xff] }
 0x269   : > { %9052 = vmatprep.subr.msk.bf16.mxu1 %vm13496_vm13, %v9050_v32  ;;  %v9382_v37 = vunpack.i.h.bf16 %v19327_v10  ;;  %v9381_v29 = vunpack.i.l.bf16 %v19327_v10  ;;  %v2278_v28 = vsel %vm426_vm1, %v11785_v21, %v9392_v45  ;;  %v9356_v50 = vunpack.i.l.bf16 %v19321_v52  ;;  %v13578_v24 = vpop.permute.xlu1 %9649 }
 0x26a   : > { %9889 = vrot.lane.b32.xlu0 %v19325_v36, %s11868_s30  ;;  %v9422_v55 = vunpack.i.h.bf16 %v19328_v34  ;;  %v9421_v26 = vunpack.i.l.bf16 %v19328_v34  ;;  %v9387_v2 = vunpack.i.h.bf16 %v19329_v63  ;;  %v9386_v61 = vunpack.i.l.bf16 %v19329_v63  ;;  %v19336_v63 = vld [vmem:[#allocation84_spill] sm:$0xff] }
 0x26b   : > { %v13572_v22 = vpop.permute.xlu0 %9684  ;;  %v9427_v32 = vunpack.i.h.bf16 %v19330_v41  ;;  %v9426_v14 = vunpack.i.l.bf16 %v19330_v41  ;;  %v9397_v45 = vunpack.i.h.bf16 %v19331_v46  ;;  %v9396_v57 = vunpack.i.l.bf16 %v19331_v46 }
 0x26c   : > { %v2436_v23 = vsel %vm2431_vm9, %v2403_v5, %v9376_v33  ;;  %v2437_v30 = vsel %vm2431_vm9, %v2404_v31, %v9377_v13  ;;  %v19332_v52 = vpack.i.bf16 %v13115_v9, %v13130_v11  ;;  %v2438_v19 = vsel %vm2431_vm9, %v2405_v38, %v9416_v1  ;;  %9884 = vrot.lane.b32.xlu1 %v9883_v4, %s11874_s23  ;;  %v19333_v31 = vld [vmem:[#allocation58_spill] sm:$0xff] }
 0x26d   : > { %v2439_v56 = vsel %vm2431_vm9, %v2406_v3, %v9417_v42  ;;  %v2469_v51 = vsel %vm2464_vm10, %v2436_v23, %v9381_v29  ;;  %v2470_v36 = vsel %vm2464_vm10, %v2437_v30, %v9382_v37  ;;  %v2471_v15 = vsel %vm2464_vm10, %v2438_v19, %v9421_v26  ;;  %v13604_v38 = vld [vmem:[#allocation4 + $0xa9] sm:$0xff]  ;;  %v13606_v3 = vld [vmem:[#allocation4 + $0xb1] sm:$0xff]  ;;  %v13664_v23 = vld [vmem:[#allocation4 + $0xc1] sm:$0xff] }
 0x26e   : > { %9894 = vrot.lane.b32.xlu0 %v19332_v52, %s11869_s12  ;;  %v2472_v5 = vsel %vm2464_vm10, %v2439_v56, %v9422_v55  ;;  %v9402_v13 = vunpack.i.h.bf16 %v19333_v31  ;;  %v9401_v33 = vunpack.i.l.bf16 %v19333_v31  ;;  %v19334_v11 = vpack.c.bf16 %v13305_v54, %v13302_v18  ;;  %v13608_v4 = vld [vmem:[#allocation4 + $0xaa] sm:$0xff]  ;;  %v13622_v54 = vpop.permute.xlu1 %9669  ;;  %v19339_v19 = vld [vmem:[#allocation60_spill] sm:$0xff] }
 0x26f   : > { %v13597_v9 = vpop.permute.xlu0 %9689  ;;  %v13611_v42 = vsel %vm2497_vm11, %v2469_v51, %v9386_v61  ;;  %v13614_v1 = vsel %vm2497_vm11, %v2470_v36, %v9387_v2  ;;  %v13617_v10 = vsel %vm2497_vm11, %v2471_v15, %v9426_v14  ;;  %v13620_v18 = vsel %vm2497_vm11, %v2472_v5, %v9427_v32  ;;  %v11786_v37 = vld [vmem:[#allocation3 + $0x78] sm:$0xff]  ;;  %v19335_v55 = vld [vmem:[#allocation59_spill] sm:$0xff]  ;;  %v19340_v36 = vld [vmem:[#allocation61_spill] sm:$0xff] }
 0x270   : > { %9055 = vmatpush3.bf16.xpose.msk.msra.mxu1 %vm13496_vm13, %v19334_v11  ;;  %v2277_v29 = vsel %vm426_vm1, %v11786_v37, %v9391_v25  ;;  %v2308_v21 = vsel %vm2299_vm5, %v2275_v48, %v9356_v50  ;;  %v2309_v34 = vsel %vm2299_vm5, %v2276_v27, %v9357_v16  ;;  %v9441_v26 = vunpack.i.l.bf16 %v19335_v55  ;;  %v13632_v61 = vld [vmem:[#allocation4 + $0xb2] sm:$0xff]  ;;  %v13666_v30 = vld [vmem:[#allocation4 + $0xc9] sm:$0xff] }
 0x271   : > { %v19337_v2 = vpack.i.bf16 %v13134_v59, %v19336_v63  ;;  %v2310_v41 = vsel %vm2299_vm5, %v2277_v29, %v9396_v57  ;;  %v13636_v32 = vsel %vm2299_vm5, %v2278_v28, %v9397_v45  ;;  %v19338_v48 = vpack.i.bf16 %v13143_v53, %v13141_v12  ;;  %v19342_v11 = vld [vmem:[#allocation86_spill] sm:$0xff]  ;;  %v19343_v37 = vld [vmem:[#allocation87_spill] sm:$0xff] }
 0x272   : > { %v9958_v27 = vpack.i.bf16 %v13606_v3, %v13604_v38  ;;  %v9059_v59 = vpack.c.bf16 %v13614_v1, %v13611_v42  ;;  %v13651_v28 = vsel %vm2332_vm6, %v2308_v21, %v9401_v33  ;;  %v13654_v50 = vsel %vm2332_vm6, %v2309_v34, %v9402_v13  ;;  %v13662_v57 = vpop.permute.xlu1 %9674  ;;  %v974_v34 = vld [vmem:[#allocation3 + $0xf0] sm:$0xff]  ;;  %v3011_v42 = vld [vmem:[#allocation4 + $0xca] sm:$0xff]  ;;  %v19370_v38 = vld [vmem:[#allocation68_spill] sm:$0xff] }
 0x273   : > { %9899 = vrot.lane.b32.xlu0 %v19337_v2, %s11874_s23  ;;  %9904 = vrot.lane.b32.xlu1 %v19338_v48, %s11868_s30  ;;  %v13656_v12 = vpop.permute.xlu0 %9709  ;;  %v9442_v53 = vunpack.i.h.bf16 %v19335_v55  ;;  %v9592_v14 = vunpack.i.h.bf16 %v13355_v7  ;;  %v9591_v46 = vunpack.i.l.bf16 %v13355_v7  ;;  %v9631_v45 = vunpack.i.l.bf16 %v13398_v39 }
 0x274   : > { %v13669_v52 = vsel %vm2332_vm6, %v2310_v41, %v9441_v26  ;;  %v9407_v56 = vunpack.i.h.bf16 %v19339_v19  ;;  %v9406_v51 = vunpack.i.l.bf16 %v19339_v19  ;;  %v9447_v15 = vunpack.i.h.bf16 %v19340_v36  ;;  %v975_v26 = vld [vmem:[#allocation3 + $0xf8] sm:$0xff]  ;;  %v11787_v41 = vld [vmem:[#allocation3 + $0x108] sm:$0xff]  ;;  %v966_v19 = vld [vmem:[#allocation3 + $0x90] sm:$0xff] }
 0x275   : > { %v19341_v7 = vpack.i.bf16 %v13196_v20, %v13194_v47  ;;  %v9632_v5 = vunpack.i.h.bf16 %v13398_v39  ;;  %v9597_v31 = vunpack.i.h.bf16 %v13408_v49  ;;  %v9596_v13 = vunpack.i.l.bf16 %v13408_v49 }
 0x276   : > { %v9636_v33 = vunpack.i.l.bf16 %v13433_v35  ;;  %v19344_v29 = vpack.i.bf16 %v19342_v11, %v19343_v37  ;;  %v9446_v21 = vunpack.i.l.bf16 %v19340_v36  ;;  %v9637_v47 = vunpack.i.h.bf16 %v13433_v35  ;;  %v9695_v11 = vpop.permute.xlu1 %9694  ;;  %v11789_v36 = vld [vmem:[#allocation3 + $0xb0] sm:$0xff] }
 0x277   : > { %9919 = vrot.lane.b32.xlu0 %v19341_v7, %s11868_s30  ;;  %v9641_v20 = vunpack.i.l.bf16 %v13501_v62  ;;  %v13689_v39 = vpop.permute.xlu0 %9714  ;;  %v9968_v49 = vpack.i.bf16 %v13666_v30, %v13664_v23  ;;  %v2288_v63 = vsel %vm426_vm1, %v975_v26, %v9592_v14  ;;  %v2287_v2 = vsel %vm426_vm1, %v974_v34, %v9591_v46  ;;  %v11788_v46 = vld [vmem:[#allocation3 + $0x110] sm:$0xff] }
 0x278   : > { %9909 = vrot.lane.b32.xlu1 %v19344_v29, %s11869_s12  ;;  %v2289_v48 = vsel %vm426_vm1, %v11787_v41, %v9631_v45  ;;  %v9642_v7 = vunpack.i.h.bf16 %v13501_v62  ;;  %v9682_v37 = vunpack.i.h.bf16 %v13535_v40  ;;  %v9681_v35 = vunpack.i.l.bf16 %v13535_v40  ;;  %v19346_v40 = vld [vmem:[#allocation89_spill] sm:$0xff]  ;;  %v19347_v41 = vld [vmem:[#allocation88_spill] sm:$0xff] }
 0x279   : > { %v9647_v29 = vunpack.i.h.bf16 %v13552_v58  ;;  %v9646_v43 = vunpack.i.l.bf16 %v13552_v58  ;;  %v19345_v14 = vpack.i.bf16 %v13223_v17, %v13204_v44  ;;  %v2290_v34 = vsel %vm426_vm1, %v11788_v46, %v9632_v5 }
 0x27a   : > { %v2320_v45 = vsel %vm2299_vm5, %v2287_v2, %v9596_v13  ;;  %v2321_v62 = vsel %vm2299_vm5, %v2288_v63, %v9597_v31  ;;  %v2322_v26 = vsel %vm2299_vm5, %v2289_v48, %v9636_v33  ;;  %v19348_v16 = vpack.i.bf16 %v19346_v40, %v19347_v41  ;;  %v9700_v2 = vpop.permute.xlu1 %9699 }
 0x27b   : > { %9924 = vrot.lane.b32.xlu0 %v19345_v14, %s11869_s12  ;;  %v2323_v58 = vsel %vm2299_vm5, %v2290_v34, %v9637_v47  ;;  %v2353_v25 = vsel %vm2332_vm6, %v2320_v45, %v9641_v20  ;;  %v9652_v44 = vunpack.i.h.bf16 %v13578_v24  ;;  %v9651_v17 = vunpack.i.l.bf16 %v13578_v24  ;;  %v9735_v5 = vpop.permute.xlu0 %9734  ;;  %v19350_v34 = vld [vmem:[#allocation96_spill] sm:$0xff] }
 0x27c   : > { %9914 = vrot.lane.b32.xlu1 %v19348_v16, %s11874_s23  ;;  %v2354_v13 = vsel %vm2332_vm6, %v2321_v62, %v9642_v7  ;;  %v9686_v31 = vunpack.i.l.bf16 %v13572_v22  ;;  %v9697_v63 = vunpack.i.h.bf16 %v9695_v11  ;;  %v9696_v33 = vunpack.i.l.bf16 %v9695_v11 }
 0x27d   : > { %v2355_v48 = vsel %vm2332_vm6, %v2322_v26, %v9681_v35  ;;  %v2356_v16 = vsel %vm2332_vm6, %v2323_v58, %v9682_v37  ;;  %v2386_v47 = vsel %vm2365_vm7, %v2353_v25, %v9646_v43  ;;  %v2387_v20 = vsel %vm2365_vm7, %v2354_v13, %v9647_v29  ;;  %v19351_v35 = vld [vmem:[#allocation95_spill] sm:$0xff] }
 0x27e   : > { %v19349_v24 = vpack.i.bf16 %v13225_v0, %v13206_v6  ;;  %v9687_v7 = vunpack.i.h.bf16 %v13572_v22  ;;  %v9691_v14 = vunpack.i.l.bf16 %v13597_v9  ;;  %v9702_v46 = vunpack.i.h.bf16 %v9700_v2  ;;  %v9705_v40 = vpop.permute.xlu1 %9704 }
 0x27f   : > { %v9701_v11 = vunpack.i.l.bf16 %v9700_v2  ;;  %v19352_v45 = vpack.i.bf16 %v19350_v34, %v19351_v35  ;;  %v2419_v43 = vsel %vm2398_vm8, %v2386_v47, %v9651_v17  ;;  %v2420_v25 = vsel %vm2398_vm8, %v2387_v20, %v9652_v44  ;;  %v9740_v6 = vpop.permute.xlu0 %9739  ;;  %v19353_v17 = vld [vmem:[#allocation102_spill] sm:$0xff]  ;;  %v19354_v47 = vld [vmem:[#allocation101_spill] sm:$0xff] }
 0x280   : > { %9929 = vrot.lane.b32.xlu0 %v19349_v24, %s11874_s23  ;;  %v9692_v37 = vunpack.i.h.bf16 %v13597_v9  ;;  %v9736_v29 = vunpack.i.l.bf16 %v9735_v5  ;;  %v2388_v0 = vsel %vm2365_vm7, %v2355_v48, %v9686_v31  ;;  %v2452_v22 = vsel %vm2431_vm9, %v2419_v43, %v9696_v33 }
 0x281   : > { %9934 = vrot.lane.b32.xlu1 %v19352_v45, %s11868_s30  ;;  %v2453_v62 = vsel %vm2431_vm9, %v2420_v25, %v9697_v63  ;;  %v9737_v26 = vunpack.i.h.bf16 %v9735_v5  ;;  %v9742_v41 = vunpack.i.h.bf16 %v9740_v6  ;;  %v9741_v58 = vunpack.i.l.bf16 %v9740_v6  ;;  %v19356_v5 = vld [vmem:[#allocation99_spill] sm:$0xff]  ;;  %v19357_v63 = vld [vmem:[#allocation97_spill] sm:$0xff]  ;;  %v19359_v25 = vld [vmem:[#allocation62_spill] sm:$0xff] }
 0x282   : > { %v9707_v13 = vunpack.i.h.bf16 %v9705_v40  ;;  %v9706_v2 = vunpack.i.l.bf16 %v9705_v40  ;;  %v19355_v44 = vpack.i.bf16 %v19353_v17, %v19354_v47  ;;  %v2389_v9 = vsel %vm2365_vm7, %v2356_v16, %v9687_v7  ;;  %v13756_v43 = vpop.permute.xlu1 %9719 }
 0x283   : > { %v2421_v20 = vsel %vm2398_vm8, %v2388_v0, %v9691_v14  ;;  %v2485_v31 = vsel %vm2464_vm10, %v2452_v22, %v9701_v11  ;;  %v2486_v33 = vsel %vm2464_vm10, %v2453_v62, %v9702_v46  ;;  %v19358_v48 = vpack.i.bf16 %v19356_v5, %v19357_v63  ;;  %v9745_v16 = vpop.permute.xlu0 %9744  ;;  %v19360_v22 = vld [vmem:[#allocation104_spill] sm:$0xff]  ;;  %v19361_v62 = vld [vmem:[#allocation103_spill] sm:$0xff]  ;;  %v19368_v5 = vld [vmem:[#allocation65_spill] sm:$0xff] }
 0x284   : > { %9949 = vrot.lane.b32.xlu0 %v19355_v44, %s11868_s30  ;;  %v2422_v24 = vsel %vm2398_vm8, %v2389_v9, %v9692_v37  ;;  %v2454_v34 = vsel %vm2431_vm9, %v2421_v20, %v9736_v29  ;;  %v2518_v35 = vsel %vm2497_vm11, %v2485_v31, %v9706_v2  ;;  %v2519_v45 = vsel %vm2497_vm11, %v2486_v33, %v9707_v13  ;;  %v19363_v13 = vld [vmem:[#allocation63_spill] sm:$0xff]  ;;  %v19364_v44 = vld [vmem:[#allocation100_spill] sm:$0xff]  ;;  %v19365_v9 = vld [vmem:[#allocation98_spill] sm:$0xff] }
 0x285   : > { %9939 = vrot.lane.b32.xlu1 %v19358_v48, %s11869_s12  ;;  %v2455_v7 = vsel %vm2431_vm9, %v2422_v24, %v9737_v26  ;;  %v9747_v14 = vunpack.i.h.bf16 %v9745_v16  ;;  %v9746_v11 = vunpack.i.l.bf16 %v9745_v16  ;;  %v9056_v46 = vpack.c.bf16 %v2519_v45, %v2518_v35  ;;  %v19369_v16 = vld [vmem:[#allocation66_spill] sm:$0xff] }
 0x286   : > { %v9412_v6 = vunpack.i.h.bf16 %v19359_v25  ;;  %v9411_v0 = vunpack.i.l.bf16 %v19359_v25  ;;  %v2487_v37 = vsel %vm2464_vm10, %v2454_v34, %v9741_v58  ;;  %v2488_v29 = vsel %vm2464_vm10, %v2455_v7, %v9742_v41  ;;  %v3010_v41 = vld [vmem:[#allocation4 + $0xc2] sm:$0xff]  ;;  %v19367_v58 = vld [vmem:[#allocation64_spill] sm:$0xff] }
 0x287   : > { %v19362_v40 = vpack.i.bf16 %v19360_v22, %v19361_v62  ;;  %v9452_v26 = vunpack.i.h.bf16 %v19363_v13  ;;  %v9451_v2 = vunpack.i.l.bf16 %v19363_v13  ;;  %v2520_v17 = vsel %vm2497_vm11, %v2487_v37, %v9746_v11  ;;  %9058 = vmatprep.subr.msk.bf16.mxu1 %vm13496_vm13, %v9056_v46  ;;  %v13779_v48 = vpop.permute.xlu0 %9759  ;;  %v11790_v11 = vld [vmem:[#allocation3 + $0xa8] sm:$0xff]  ;;  %v19371_v62 = vld [vmem:[#allocation67_spill] sm:$0xff]  ;;  %v19372_v13 = vld [vmem:[#allocation70_spill] sm:$0xff] }
 0x288   : > { %v2521_v47 = vsel %vm2497_vm11, %v2488_v29, %v9747_v14  ;;  %v19366_v20 = vpack.i.bf16 %v19364_v44, %v19365_v9  ;;  %v9432_v31 = vunpack.i.h.bf16 %v19367_v58  ;;  %v9431_v33 = vunpack.i.l.bf16 %v19367_v58  ;;  %9061 = vmatpush3.bf16.xpose.msk.msra.mxu1 %vm13496_vm13, %v9059_v59  ;;  %v13796_v14 = vpop.permute.xlu1 %9724  ;;  %v2983_v37 = vld [vmem:[#allocation4 + $0xf9] sm:$0xff]  ;;  %v2981_v29 = vld [vmem:[#allocation4 + $0xe1] sm:$0xff] }
 0x289   : > { %9954 = vrot.lane.b32.xlu0 %v19362_v40, %s11869_s12  ;;  %v9472_v63 = vunpack.i.h.bf16 %v19368_v5  ;;  %v9062_v24 = vpack.c.bf16 %v2521_v47, %v2520_v17  ;;  %v2344_v34 = vsel %vm2332_vm6, %v13636_v32, %v9442_v53  ;;  %v2374_v35 = vsel %vm2365_vm7, %v13651_v28, %v9406_v51  ;;  %v3012_v17 = vld [vmem:[#allocation4 + $0xda] sm:$0xff] }
 0x28a   : > { %9944 = vrot.lane.b32.xlu1 %v19366_v20, %s11874_s23  ;;  %v9471_v45 = vunpack.i.l.bf16 %v19368_v5  ;;  %v9436_v7 = vunpack.i.l.bf16 %v19369_v16  ;;  %v2375_v1 = vsel %vm2365_vm7, %v13654_v50, %v9407_v56  ;;  %v2376_v55 = vsel %vm2365_vm7, %v13669_v52, %v9446_v21  ;;  %v967_v56 = vld [vmem:[#allocation3 + $0x98] sm:$0xff]  ;;  %v19373_v44 = vld [vmem:[#allocation69_spill] sm:$0xff]  ;;  %v19374_v20 = vld [vmem:[#allocation72_spill] sm:$0xff] }
 0x28b   : > { %v9437_v32 = vunpack.i.h.bf16 %v19369_v16  ;;  %9064 = vmatprep.subr.msk.bf16.mxu1 %vm13496_vm13, %v9062_v24  ;;  %v9973_v59 = vpack.i.bf16 %v3011_v42, %v3010_v41  ;;  %v2377_v28 = vsel %vm2365_vm7, %v2344_v34, %v9447_v15  ;;  %v2407_v50 = vsel %vm2398_vm8, %v2374_v35, %v9411_v0  ;;  %v13827_v21 = vpop.permute.xlu0 %9764  ;;  %v2982_v0 = vld [vmem:[#allocation4 + $0xf1] sm:$0xff]  ;;  %v3013_v16 = vld [vmem:[#allocation4 + $0xe2] sm:$0xff] }
 0x28c   : > { %v2408_v53 = vsel %vm2398_vm8, %v2375_v1, %v9412_v6  ;;  %v2409_v52 = vsel %vm2398_vm8, %v2376_v55, %v9451_v2  ;;  %v2410_v23 = vsel %vm2398_vm8, %v2377_v28, %v9452_v26  ;;  %v2280_v30 = vsel %vm426_vm1, %v967_v56, %v9432_v31  ;;  %v13835_v6 = vpop.permute.xlu1 %9729  ;;  %v19376_v5 = vld [vmem:[#allocation71_spill] sm:$0xff] }
 0x28d   : > { %9969 = vrot.lane.b32.xlu0 %v9968_v49, %s11868_s30  ;;  %v2279_v51 = vsel %vm426_vm1, %v966_v19, %v9431_v33  ;;  %v2282_v15 = vsel %vm426_vm1, %v11789_v36, %v9472_v63  ;;  %v2980_v49 = vld [vmem:[#allocation4 + $0xd9] sm:$0xff]  ;;  %v2281_v46 = vsel %vm426_vm1, %v11790_v11, %v9471_v45  ;;  %v9457_v3 = vunpack.i.h.bf16 %v19370_v38 }
 0x28e   : > { %9959 = vrot.lane.b32.xlu1 %v9958_v27, %s11868_s30  ;;  %v13831_v25 = vsel %vm2299_vm5, %v2279_v51, %v9436_v7  ;;  %v9456_v27 = vunpack.i.l.bf16 %v19370_v38  ;;  %v13838_v22 = vsel %vm2299_vm5, %v2280_v30, %v9437_v32  ;;  %v9477_v40 = vunpack.i.h.bf16 %v19371_v62  ;;  %v3014_v1 = vld [vmem:[#allocation4 + $0xf2] sm:$0xff]  ;;  %v3015_v30 = vld [vmem:[#allocation4 + $0xfa] sm:$0xff] }
 0x28f   : > { %v9462_v26 = vunpack.i.h.bf16 %v19372_v13  ;;  %v9461_v2 = vunpack.i.l.bf16 %v19372_v13  ;;  %v9476_v47 = vunpack.i.l.bf16 %v19371_v62  ;;  %v9496_v9 = vunpack.i.l.bf16 %v19373_v44  ;;  %v13854_v24 = vpop.permute.xlu0 %9769 }
 0x290   : > { %v9467_v41 = vunpack.i.h.bf16 %v19374_v20  ;;  %v9466_v58 = vunpack.i.l.bf16 %v19374_v20  ;;  %v19375_v31 = vpack.i.bf16 %v13632_v61, %v13608_v4  ;;  %v9497_v33 = vunpack.i.h.bf16 %v19373_v44  ;;  %v13864_v42 = vpop.permute.xlu1 %9749  ;;  %v978_v44 = vld [vmem:[#allocation3 + $0x120] sm:$0xff] }
 0x291   : > { %9974 = vrot.lane.b32.xlu0 %v9973_v59, %s11869_s12  ;;  %v9501_v63 = vunpack.i.l.bf16 %v19376_v5  ;;  %v19377_v34 = vpack.c.bf16 %v13620_v18, %v13617_v10  ;;  %v9988_v35 = vpack.i.bf16 %v2983_v37, %v2982_v0  ;;  %v9978_v45 = vpack.i.bf16 %v2981_v29, %v2980_v49  ;;  %v19378_v18 = vld [vmem:[#allocation73_spill] sm:$0xff]  ;;  %v19379_v29 = vld [vmem:[#allocation74_spill] sm:$0xff] }
 0x292   : > { %9964 = vrot.lane.b32.xlu1 %v19375_v31, %s11869_s12  ;;  %v2440_v7 = vsel %vm2431_vm9, %v2407_v50, %v9456_v27  ;;  %v2441_v4 = vsel %vm2431_vm9, %v2408_v53, %v9457_v3  ;;  %v9502_v61 = vunpack.i.h.bf16 %v19376_v5  ;;  %v9983_v55 = vpack.i.bf16 %v3013_v16, %v3012_v17  ;;  %v19380_v17 = vld [vmem:[#allocation75_spill] sm:$0xff]  ;;  %v11791_v31 = vld [vmem:[#allocation3 + $0x138] sm:$0xff] }
 0x293   : > { %9067 = vmatpush3.bf16.xpose.msk.msra.mxu1 %vm13496_vm13, %v19377_v34  ;;  %v2473_v32 = vsel %vm2464_vm10, %v2440_v7, %v9461_v2  ;;  %v2474_v10 = vsel %vm2464_vm10, %v2441_v4, %v9462_v26  ;;  %v9507_v59 = vunpack.i.h.bf16 %v19378_v18  ;;  %v9506_v28 = vunpack.i.l.bf16 %v19378_v18  ;;  %v13887_v11 = vpop.permute.xlu0 %9789  ;;  %v11792_v16 = vld [vmem:[#allocation3 + $0x140] sm:$0xff] }
 0x294   : > { %v13872_v50 = vsel %vm2299_vm5, %v2281_v46, %v9476_v47  ;;  %v2442_v53 = vsel %vm2431_vm9, %v2409_v52, %v9496_v9  ;;  %v13876_v19 = vsel %vm2497_vm11, %v2473_v32, %v9466_v58  ;;  %v13879_v56 = vsel %vm2497_vm11, %v2474_v10, %v9467_v41  ;;  %v13893_v0 = vpop.permute.xlu1 %9754  ;;  %v979_v9 = vld [vmem:[#allocation3 + $0x128] sm:$0xff] }
 0x295   : > { %9989 = vrot.lane.b32.xlu0 %v9988_v35, %s11868_s30  ;;  %v13883_v51 = vsel %vm2299_vm5, %v2282_v15, %v9477_v40  ;;  %v2443_v36 = vsel %vm2431_vm9, %v2410_v23, %v9497_v33  ;;  %v2475_v49 = vsel %vm2464_vm10, %v2442_v53, %v9501_v63  ;;  %v9993_v46 = vpack.i.bf16 %v3015_v30, %v3014_v1 }
 0x296   : > { %9979 = vrot.lane.b32.xlu1 %v9978_v45, %s11868_s30  ;;  %v2476_v52 = vsel %vm2464_vm10, %v2443_v36, %v9502_v61  ;;  %v9672_v38 = vunpack.i.h.bf16 %v13622_v54  ;;  %v9671_v3 = vunpack.i.l.bf16 %v13622_v54  ;;  %v9711_v27 = vunpack.i.l.bf16 %v13656_v12 }
 0x297   : > { %v9071_v15 = vpack.c.bf16 %v13879_v56, %v13876_v19  ;;  %v13898_v23 = vsel %vm2497_vm11, %v2475_v49, %v9506_v28  ;;  %v13901_v37 = vsel %vm2497_vm11, %v2476_v52, %v9507_v59  ;;  %v9482_v62 = vunpack.i.h.bf16 %v19379_v29  ;;  %v13914_v58 = vpop.permute.xlu0 %9794 }
 0x298   : > { %v9712_v40 = vunpack.i.h.bf16 %v13656_v12  ;;  %v9677_v54 = vunpack.i.h.bf16 %v13662_v57  ;;  %v9676_v13 = vunpack.i.l.bf16 %v13662_v57  ;;  %v9716_v26 = vunpack.i.l.bf16 %v13689_v39  ;;  %v9775_v63 = vpop.permute.xlu1 %9774 }
 0x299   : > { %9994 = vrot.lane.b32.xlu0 %v9993_v46, %s11869_s12  ;;  %v9481_v2 = vunpack.i.l.bf16 %v19379_v29  ;;  %v9521_v47 = vunpack.i.l.bf16 %v19380_v17  ;;  %v9717_v20 = vunpack.i.h.bf16 %v13689_v39  ;;  %v9721_v41 = vunpack.i.l.bf16 %v13756_v43 }
 0x29a   : > { %9984 = vrot.lane.b32.xlu1 %v9983_v55, %s11869_s12  ;;  %v2292_v12 = vsel %vm426_vm1, %v979_v9, %v9672_v38  ;;  %v2291_v57 = vsel %vm426_vm1, %v978_v44, %v9671_v3  ;;  %v2293_v33 = vsel %vm426_vm1, %v11791_v31, %v9711_v27  ;;  %v9722_v5 = vunpack.i.h.bf16 %v13756_v43 }
 0x29b   : > { %v9762_v34 = vunpack.i.h.bf16 %v13779_v48  ;;  %v9761_v35 = vunpack.i.l.bf16 %v13779_v48  ;;  %v9727_v39 = vunpack.i.h.bf16 %v13796_v14  ;;  %v9726_v45 = vunpack.i.l.bf16 %v13796_v14  ;;  %v9815_v10 = vpop.permute.xlu0 %9814 }
 0x29c   : > { %v2294_v7 = vsel %vm426_vm1, %v11792_v16, %v9712_v40  ;;  %v2324_v4 = vsel %vm2299_vm5, %v2291_v57, %v9676_v13  ;;  %v2325_v61 = vsel %vm2299_vm5, %v2292_v12, %v9677_v54  ;;  %v2326_v1 = vsel %vm2299_vm5, %v2293_v33, %v9716_v26  ;;  %v9780_v53 = vpop.permute.xlu1 %9779 }
 0x29d   : > { %v2327_v43 = vsel %vm2299_vm5, %v2294_v7, %v9717_v20  ;;  %v2357_v55 = vsel %vm2332_vm6, %v2324_v4, %v9721_v41  ;;  %v9732_v32 = vunpack.i.h.bf16 %v13835_v6  ;;  %v9731_v48 = vunpack.i.l.bf16 %v13835_v6 }
 0x29e   : > { %v2358_v14 = vsel %vm2332_vm6, %v2325_v61, %v9722_v5  ;;  %v9766_v18 = vunpack.i.l.bf16 %v13827_v21  ;;  %v9777_v59 = vunpack.i.h.bf16 %v9775_v63  ;;  %v9776_v28 = vunpack.i.l.bf16 %v9775_v63 }
 0x29f   : > { %v2359_v30 = vsel %vm2332_vm6, %v2326_v1, %v9761_v35  ;;  %v2360_v36 = vsel %vm2332_vm6, %v2327_v43, %v9762_v34  ;;  %v2390_v49 = vsel %vm2365_vm7, %v2357_v55, %v9726_v45  ;;  %v2391_v46 = vsel %vm2365_vm7, %v2358_v14, %v9727_v39  ;;  %v9820_v26 = vpop.permute.xlu0 %9819 }
 0x2a0   : > { %v9767_v52 = vunpack.i.h.bf16 %v13827_v21  ;;  %v9771_v6 = vunpack.i.l.bf16 %v13854_v24  ;;  %v9782_v38 = vunpack.i.h.bf16 %v9780_v53  ;;  %v9781_v3 = vunpack.i.l.bf16 %v9780_v53  ;;  %v9785_v21 = vpop.permute.xlu1 %9784 }
 0x2a1   : > { %v2423_v27 = vsel %vm2398_vm8, %v2390_v49, %v9731_v48  ;;  %v2424_v40 = vsel %vm2398_vm8, %v2391_v46, %v9732_v32  ;;  %v9772_v54 = vunpack.i.h.bf16 %v13854_v24  ;;  %v9816_v13 = vunpack.i.l.bf16 %v9815_v10  ;;  %v19381_v32 = vld [vmem:[#allocation76_spill] sm:$0xff] }
 0x2a2   : > { %v2392_v44 = vsel %vm2365_vm7, %v2359_v30, %v9766_v18  ;;  %v2456_v9 = vsel %vm2431_vm9, %v2423_v27, %v9776_v28  ;;  %v2457_v20 = vsel %vm2431_vm9, %v2424_v40, %v9777_v59  ;;  %v9817_v41 = vunpack.i.h.bf16 %v9815_v10  ;;  %v19382_v59 = vld [vmem:[#allocation78_spill] sm:$0xff] }
 0x2a3   : > { %v9822_v12 = vunpack.i.h.bf16 %v9820_v26  ;;  %v9821_v57 = vunpack.i.l.bf16 %v9820_v26  ;;  %v9787_v31 = vunpack.i.h.bf16 %v9785_v21  ;;  %v9786_v33 = vunpack.i.l.bf16 %v9785_v21  ;;  %v9825_v7 = vpop.permute.xlu0 %9824 }
 0x2a4   : > { %v2393_v5 = vsel %vm2365_vm7, %v2360_v36, %v9767_v52  ;;  %v2425_v63 = vsel %vm2398_vm8, %v2392_v44, %v9771_v6  ;;  %v2489_v24 = vsel %vm2464_vm10, %v2456_v9, %v9781_v3  ;;  %v2490_v34 = vsel %vm2464_vm10, %v2457_v20, %v9782_v38  ;;  %v13955_v43 = vpop.permute.xlu1 %9799 }
 0x2a5   : > { %v2426_v35 = vsel %vm2398_vm8, %v2393_v5, %v9772_v54  ;;  %v2458_v39 = vsel %vm2431_vm9, %v2425_v63, %v9816_v13  ;;  %v2522_v45 = vsel %vm2497_vm11, %v2489_v24, %v9786_v33  ;;  %v2523_v16 = vsel %vm2497_vm11, %v2490_v34, %v9787_v31  ;;  %v19385_v54 = vld [vmem:[#allocation79_spill] sm:$0xff] }
 0x2a6   : > { %v2459_v4 = vsel %vm2431_vm9, %v2426_v35, %v9817_v41  ;;  %v9827_v61 = vunpack.i.h.bf16 %v9825_v7  ;;  %v9826_v1 = vunpack.i.l.bf16 %v9825_v7  ;;  %v9068_v55 = vpack.c.bf16 %v2523_v16, %v2522_v45  ;;  %v19386_v33 = vld [vmem:[#allocation91_spill] sm:$0xff]  ;;  %v11794_v45 = vld [vmem:[#allocation3 + $0x168] sm:$0xff] }
 0x2a7   : > { %v9487_v48 = vunpack.i.h.bf16 %v19381_v32  ;;  %v9486_v10 = vunpack.i.l.bf16 %v19381_v32  ;;  %v2491_v14 = vsel %vm2464_vm10, %v2458_v39, %v9821_v57  ;;  %v2492_v18 = vsel %vm2464_vm10, %v2459_v4, %v9822_v12  ;;  %v9830_v6 = vpop.permute.xlu0 %9829  ;;  %v11793_v39 = vld [vmem:[#allocation3 + $0x170] sm:$0xff] }
 0x2a8   : > { %v9492_v28 = vunpack.i.h.bf16 %v19382_v59  ;;  %v9491_v53 = vunpack.i.l.bf16 %v19382_v59  ;;  %v2524_v30 = vsel %vm2497_vm11, %v2491_v14, %v9826_v1  ;;  %v2525_v36 = vsel %vm2497_vm11, %v2492_v18, %v9827_v61  ;;  %9070 = vmatprep.subr.msk.bf16.mxu1 %vm13496_vm13, %v9068_v55  ;;  %v19387_v18 = vld [vmem:[#allocation93_spill] sm:$0xff] }
 0x2a9   : > { %v9077_v49 = vpack.c.bf16 %v13901_v37, %v13898_v23  ;;  %v2345_v46 = vsel %vm2332_vm6, %v13831_v25, %v9481_v2  ;;  %v2346_v52 = vsel %vm2332_vm6, %v13838_v22, %v9482_v62  ;;  %9073 = vmatpush3.bf16.xpose.msk.msra.mxu1 %vm13496_vm13, %v9071_v15  ;;  %v9074_v38 = vpack.c.bf16 %v2525_v36, %v2524_v30  ;;  %v19383_v37 = vld [vmem:[#allocation85_spill] sm:$0xff]  ;;  %v13991_v62 = vpop.permute.xlu1 %9804  ;;  %v983_v36 = vld [vmem:[#allocation3 + $0x158] sm:$0xff] }
 0x2aa   : > { %v9522_v23 = vunpack.i.h.bf16 %v19380_v17  ;;  %v13987_v25 = vsel %vm2332_vm6, %v13872_v50, %v9521_v47  ;;  %v9537_v29 = vunpack.i.h.bf16 %v19383_v37  ;;  %v9536_v22 = vunpack.i.l.bf16 %v19383_v37  ;;  %v19384_v15 = vld [vmem:[#allocation77_spill] sm:$0xff] }
 0x2ab   : > { %v2378_v19 = vsel %vm2365_vm7, %v2345_v46, %v9486_v10  ;;  %v2379_v56 = vsel %vm2365_vm7, %v2346_v52, %v9487_v48  ;;  %v9527_v2 = vunpack.i.h.bf16 %v19384_v15  ;;  %v9526_v3 = vunpack.i.l.bf16 %v19384_v15  ;;  %9076 = vmatprep.subr.msk.bf16.mxu1 %vm13496_vm13, %v9074_v38  ;;  %v9835_v20 = vpop.permute.xlu0 %9834  ;;  %v982_v30 = vld [vmem:[#allocation3 + $0x150] sm:$0xff] }
 0x2ac   : > { %v2411_v50 = vsel %vm2398_vm8, %v2378_v19, %v9491_v53  ;;  %v2412_v47 = vsel %vm2398_vm8, %v2379_v56, %v9492_v28  ;;  %v9792_v27 = vunpack.i.h.bf16 %v13887_v11  ;;  %v9791_v40 = vunpack.i.l.bf16 %v13887_v11 }
 0x2ad   : > { %v9532_v13 = vunpack.i.h.bf16 %v19385_v54  ;;  %v9531_v26 = vunpack.i.l.bf16 %v19385_v54  ;;  %v9797_v44 = vunpack.i.h.bf16 %v13914_v58  ;;  %v9796_v9 = vunpack.i.l.bf16 %v13914_v58  ;;  %v9810_v31 = vpop.permute.xlu1 %9809 }
 0x2ae   : > { %v2444_v41 = vsel %vm2431_vm9, %v2411_v50, %v9536_v22  ;;  %v2445_v21 = vsel %vm2431_vm9, %v2412_v47, %v9537_v29  ;;  %v9832_v12 = vunpack.i.h.bf16 %v9830_v6  ;;  %v9831_v57 = vunpack.i.l.bf16 %v9830_v6 }
 0x2af   : > { %v9542_v5 = vunpack.i.h.bf16 %v19386_v33  ;;  %v9541_v11 = vunpack.i.l.bf16 %v19386_v33  ;;  %v9837_v63 = vunpack.i.h.bf16 %v9835_v20  ;;  %v9836_v24 = vunpack.i.l.bf16 %v9835_v20  ;;  %v9840_v55 = vpop.permute.xlu0 %9839 }
 0x2b0   : > { %v9752_v34 = vunpack.i.h.bf16 %v13864_v42  ;;  %v9751_v35 = vunpack.i.l.bf16 %v13864_v42  ;;  %v2298_v58 = vsel %vm426_vm1, %v11793_v39, %v9792_v27  ;;  %v2297_v16 = vsel %vm426_vm1, %v11794_v45, %v9791_v40  ;;  %v19388_v40 = vld [vmem:[#allocation40_spill] sm:$0xff] }
 0x2b1   : > { %v9757_v7 = vunpack.i.h.bf16 %v13893_v0  ;;  %v9756_v4 = vunpack.i.l.bf16 %v13893_v0  ;;  %v2330_v61 = vsel %vm2299_vm5, %v2297_v16, %v9796_v9  ;;  %v2331_v1 = vsel %vm2299_vm5, %v2298_v58, %v9797_v44  ;;  %9079 = vmatpush3.bf16.xpose.msk.msra.mxu1 %vm13496_vm13, %v9077_v49  ;;  %v9845_v14 = vpop.permute.xlu1 %9844 }
 0x2b2   : > { %v2363_v42 = vsel %vm2332_vm6, %v2330_v61, %v9831_v57  ;;  %v2364_v32 = vsel %vm2332_vm6, %v2331_v1, %v9832_v12  ;;  %v9842_v48 = vunpack.i.h.bf16 %v9840_v55  ;;  %v9841_v10 = vunpack.i.l.bf16 %v9840_v55  ;;  %v19391_v61 = vld [vmem:[#allocation41_spill] sm:$0xff] }
 0x2b3   : > { %v9547_v59 = vunpack.i.h.bf16 %v19387_v18  ;;  %v9546_v28 = vunpack.i.l.bf16 %v19387_v18  ;;  %v2396_v0 = vsel %vm2365_vm7, %v2363_v42, %v9836_v24  ;;  %v2397_v53 = vsel %vm2365_vm7, %v2364_v32, %v9837_v63  ;;  %v2838_v19 = vpop.permute.xlu0 %2837 }
 0x2b4   : > { %v9802_v46 = vunpack.i.h.bf16 %v13955_v43  ;;  %v9801_v49 = vunpack.i.l.bf16 %v13955_v43  ;;  %v2429_v52 = vsel %vm2398_vm8, %v2396_v0, %v9841_v10  ;;  %v2430_v6 = vsel %vm2398_vm8, %v2397_v53, %v9842_v48  ;;  %2916 = vst.msk [vmem:[#allocation4 + $0x10a] sm:$0xff] %vm426_vm1, %v2838_v19 }
 0x2b5   : > { %v2296_v38 = vsel %vm426_vm1, %v983_v36, %v9752_v34  ;;  %v2295_v37 = vsel %vm426_vm1, %v982_v30, %v9751_v35  ;;  %v9807_v29 = vunpack.i.h.bf16 %v13991_v62  ;;  %v9806_v22 = vunpack.i.l.bf16 %v13991_v62  ;;  %v9850_v43 = vpop.permute.xlu1 %9849 }
 0x2b6   : > { %v2328_v56 = vsel %vm2299_vm5, %v2295_v37, %v9756_v4  ;;  %v2329_v50 = vsel %vm2299_vm5, %v2296_v38, %v9757_v7  ;;  %v9812_v47 = vunpack.i.h.bf16 %v9810_v31  ;;  %v9811_v27 = vunpack.i.l.bf16 %v9810_v31 }
 0x2b7   : > { %v19389_v44 = vunpack.i.l.bf16 %v19388_v40  ;;  %v19390_v20 = vunpack.i.h.bf16 %v19388_v40  ;;  %v9847_v57 = vunpack.i.h.bf16 %v9845_v14  ;;  %v9846_v62 = vunpack.i.l.bf16 %v9845_v14  ;;  %v2842_v45 = vpop.permute.xlu0 %2841 }
 0x2b8   : > { %v2361_v33 = vsel %vm2332_vm6, %v2328_v56, %v9801_v49  ;;  %v2362_v63 = vsel %vm2332_vm6, %v2329_v50, %v9802_v46  ;;  %v9852_v24 = vunpack.i.h.bf16 %v9850_v43  ;;  %v9851_v34 = vunpack.i.l.bf16 %v9850_v43  ;;  %2918 = vst.msk [vmem:[#allocation4 + $0x122] sm:$0xff] %vm426_vm1, %v2842_v45 }
 0x2b9   : > { %v2462_v9 = vsel %vm2431_vm9, %v2429_v52, %v19389_v44  ;;  %v2463_v12 = vsel %vm2431_vm9, %v2430_v6, %v19390_v20  ;;  %v2477_v31 = vsel %vm2464_vm10, %v2444_v41, %v9541_v11  ;;  %v2478_v35 = vsel %vm2464_vm10, %v2445_v21, %v9542_v5  ;;  %v9855_v4 = vpop.permute.xlu1 %9854 }
 0x2ba   : > { %v2394_v39 = vsel %vm2365_vm7, %v2361_v33, %v9806_v22  ;;  %v2395_v58 = vsel %vm2365_vm7, %v2362_v63, %v9807_v29  ;;  %v19392_v1 = vunpack.i.l.bf16 %v19391_v61  ;;  %v19393_v41 = vunpack.i.h.bf16 %v19391_v61  ;;  %v19397_v22 = vld [vmem:[#allocation92_spill] sm:$0xff] }
 0x2bb   : > { %v2427_v16 = vsel %vm2398_vm8, %v2394_v39, %v9811_v27  ;;  %v2428_v7 = vsel %vm2398_vm8, %v2395_v58, %v9812_v47  ;;  %v9857_v42 = vunpack.i.h.bf16 %v9855_v4  ;;  %v9856_v32 = vunpack.i.l.bf16 %v9855_v4  ;;  %v2846_v30 = vpop.permute.xlu0 %2845 }
 0x2bc   : > { %v2495_v55 = vsel %vm2464_vm10, %v2462_v9, %v19392_v1  ;;  %v2496_v21 = vsel %vm2464_vm10, %v2463_v12, %v19393_v41  ;;  %v2460_v5 = vsel %vm2431_vm9, %v2427_v16, %v9846_v62  ;;  %v2461_v11 = vsel %vm2431_vm9, %v2428_v7, %v9847_v57  ;;  %2920 = vst.msk [vmem:[#allocation4 + $0x13a] sm:$0xff] %vm426_vm1, %v2846_v30  ;;  %v2984_v12 = vld [vmem:[#allocation4 + $0x109] sm:$0xff]  ;;  %v3041_v30 = vld [vmem:[#allocation4 + $0xb3] sm:$0xff] }
 0x2bd   : > { %v2510_v48 = vsel %vm2497_vm11, %v2477_v31, %v9546_v28  ;;  %v2511_v10 = vsel %vm2497_vm11, %v2478_v35, %v9547_v59  ;;  %v2493_v14 = vsel %vm2464_vm10, %v2460_v5, %v9851_v34  ;;  %v2494_v18 = vsel %vm2464_vm10, %v2461_v11, %v9852_v24  ;;  %v19396_v28 = vld [vmem:[#allocation90_spill] sm:$0xff]  ;;  %v2840_v37 = vpop.permute.xlu1 %2839 }
 0x2be   : > { %v2526_v0 = vsel %vm2497_vm11, %v2493_v14, %v9856_v32  ;;  %v2527_v53 = vsel %vm2497_vm11, %v2494_v18, %v9857_v42  ;;  %v19394_v36 = vunpack.i.l.bf16 %v19312_v8  ;;  %v19395_v49 = vunpack.i.h.bf16 %v19312_v8  ;;  %2917 = vst.msk [vmem:[#allocation4 + $0x112] sm:$0xff] %vm426_vm1, %v2840_v37  ;;  %v3016_v31 = vld [vmem:[#allocation4 + $0x10a] sm:$0xff] }
 0x2bf   : > { %v2348_v59 = vsel %vm2332_vm6, %v13883_v51, %v9522_v23  ;;  %v9577_v6 = vunpack.i.h.bf16 %v19396_v28  ;;  %v9576_v38 = vunpack.i.l.bf16 %v19396_v28  ;;  %v9080_v29 = vpack.c.bf16 %v2527_v53, %v2526_v0  ;;  %v19398_v23 = vld [vmem:[#allocation94_spill] sm:$0xff]  ;;  %v2850_v43 = vpop.permute.xlu0 %2849  ;;  %v3039_v28 = vld [vmem:[#allocation4 + $0x9b] sm:$0xff] }
 0x2c0   : > { %v2528_v46 = vsel %vm2497_vm11, %v2495_v55, %v19394_v36  ;;  %v2529_v52 = vsel %vm2497_vm11, %v2496_v21, %v19395_v49  ;;  %v2380_v8 = vsel %vm2365_vm7, %v13987_v25, %v9526_v3  ;;  %v9582_v19 = vunpack.i.h.bf16 %v19397_v22  ;;  %2922 = vst.msk [vmem:[#allocation4 + $0x152] sm:$0xff] %vm426_vm1, %v2850_v43  ;;  %v2986_v35 = vld [vmem:[#allocation4 + $0x121] sm:$0xff]  ;;  %v3040_v18 = vld [vmem:[#allocation4 + $0xab] sm:$0xff] }
 0x2c1   : > { %v9581_v17 = vunpack.i.l.bf16 %v19397_v22  ;;  %v9083_v56 = vpack.c.bf16 %v2511_v10, %v2510_v48  ;;  %v2381_v51 = vsel %vm2365_vm7, %v2348_v59, %v9527_v2  ;;  %v9587_v50 = vunpack.i.h.bf16 %v19398_v23  ;;  %9082 = vmatprep.subr.msk.bf16.mxu1 %vm13496_vm13, %v9080_v29  ;;  %v2844_v40 = vpop.permute.xlu1 %2843  ;;  %v3018_v4 = vld [vmem:[#allocation4 + $0x122] sm:$0xff]  ;;  %v3043_v22 = vld [vmem:[#allocation4 + $0xcb] sm:$0xff] }
 0x2c2   : > { %v9586_v47 = vunpack.i.l.bf16 %v19398_v23  ;;  %v9086_v27 = vpack.c.bf16 %v2529_v52, %v2528_v46  ;;  %v2413_v25 = vsel %vm2398_vm8, %v2380_v8, %v9531_v26  ;;  %v2414_v3 = vsel %vm2398_vm8, %v2381_v51, %v9532_v13  ;;  %2919 = vst.msk [vmem:[#allocation4 + $0x12a] sm:$0xff] %vm426_vm1, %v2844_v40  ;;  %v11795_v21 = vld [vmem:[%s18676_s5] sm:$0xff]  ;;  %v3038_v52 = vld [vmem:[#allocation4 + $0x93] sm:$0xff] }
 0x2c3   : > { %9085 = vmatpush3.bf16.xpose.msk.msra.mxu1 %vm13496_vm13, %v9083_v56  ;;  %v2446_v15 = vsel %vm2431_vm9, %v2413_v25, %v9576_v38  ;;  %v2447_v2 = vsel %vm2431_vm9, %v2414_v3, %v9577_v6  ;;  %v2854_v9 = vpop.permute.xlu0 %2853  ;;  %v2988_v61 = vld [vmem:[#allocation4 + $0x139] sm:$0xff]  ;;  %v10043_v46 = vpack.i.bf16 %v3041_v30, %v3040_v18  ;;  %v10038_v38 = vpack.i.bf16 %v3039_v28, %v3038_v52  ;;  %v3042_v29 = vld [vmem:[#allocation4 + $0xc3] sm:$0xff]  ;;  %v3072_v28 = vld [vmem:[#allocation4 + $0xac] sm:$0xff] }
 0x2c4   : > { %9088 = vmatprep.subr.msk.bf16.mxu1 %vm13496_vm13, %v9086_v27  ;;  %v2479_v26 = vsel %vm2464_vm10, %v2446_v15, %v9581_v17  ;;  %v2480_v54 = vsel %vm2464_vm10, %v2447_v2, %v9582_v19  ;;  %2924 = vst.msk [vmem:[#allocation4 + $0x16a] sm:$0xff] %vm426_vm1, %v2854_v9  ;;  %v3020_v42 = vld [vmem:[#allocation4 + $0x13a] sm:$0xff]  ;;  %v10048_v17 = vpack.i.bf16 %v3043_v22, %v3042_v29 }
 0x2c5   : > { %v2512_v13 = vsel %vm2497_vm11, %v2479_v26, %v9586_v47  ;;  %v2513_v44 = vsel %vm2497_vm11, %v2480_v54, %v9587_v50  ;;  %v2848_v20 = vpop.permute.xlu1 %2847  ;;  %v2985_v57 = vld [vmem:[#allocation4 + $0x111] sm:$0xff]  ;;  %v3044_v23 = vld [vmem:[#allocation4 + $0xdb] sm:$0xff]  ;;  %v3045_v47 = vld [vmem:[#allocation4 + $0xe3] sm:$0xff] }
 0x2c6   : > { %v9089_v62 = vpack.c.bf16 %v2513_v44, %v2512_v13  ;;  %2921 = vst.msk [vmem:[#allocation4 + $0x142] sm:$0xff] %vm426_vm1, %v2848_v20  ;;  %v14114_v33 = vpack.i.bf16 %v2985_v57, %v2984_v12  ;;  %v3017_v63 = vld [vmem:[#allocation4 + $0x112] sm:$0xff]  ;;  %v3047_v50 = vld [vmem:[#allocation4 + $0xfb] sm:$0xff]  ;;  %v10063_v25 = vpack.i.bf16 %v3045_v47, %v3044_v23  ;;  %v3058_v12 = vld [vmem:[#allocation4 + $0x4] sm:$0xff] }
 0x2c7   : > { %v2858_v24 = vpop.permute.xlu0 %2857  ;;  %v10003_v58 = vpack.i.bf16 %v3017_v63, %v3016_v31  ;;  %v2990_v32 = vld [vmem:[#allocation4 + $0x151] sm:$0xff]  ;;  %v3071_v30 = vld [vmem:[#allocation4 + $0x9c] sm:$0xff]  ;;  %v3077_v23 = vld [vmem:[#allocation4 + $0xe4] sm:$0xff] }
 0x2c8   : > { %9999 = vrot.lane.b32.xlu1 %v14114_v33, %s11868_s30  ;;  %2926 = vst.msk [vmem:[#allocation4 + $0x182] sm:$0xff] %vm426_vm1, %v2858_v24  ;;  %v3022_v36 = vld [vmem:[#allocation4 + $0x152] sm:$0xff] }
 0x2c9   : > { %v2852_v34 = vpop.permute.xlu1 %2851  ;;  %v2987_v39 = vld [vmem:[#allocation4 + $0x129] sm:$0xff]  ;;  %v3046_v51 = vld [vmem:[#allocation4 + $0xf3] sm:$0xff] }
 0x2ca   : > { %2923 = vst.msk [vmem:[#allocation4 + $0x15a] sm:$0xff] %vm426_vm1, %v2852_v34  ;;  %v14122_v45 = vpack.i.bf16 %v2987_v39, %v2986_v35  ;;  %v3019_v16 = vld [vmem:[#allocation4 + $0x12a] sm:$0xff]  ;;  %v10068_v27 = vpack.i.bf16 %v3047_v50, %v3046_v51  ;;  %v3049_v2 = vld [vmem:[#allocation4 + $0x113] sm:$0xff]  ;;  %v3060_v39 = vld [vmem:[#allocation4 + $0x1c] sm:$0xff] }
 0x2cb   : > { %9091 = vmatpush3.bf16.xpose.msk.msra.mxu1 %vm13496_vm13, %v9089_v62  ;;  %v2862_v7 = vpop.permute.xlu0 %2861  ;;  %v10013_v55 = vpack.i.bf16 %v3019_v16, %v3018_v4  ;;  %v2992_v6 = vld [vmem:[#allocation4 + $0x169] sm:$0xff]  ;;  %v3063_v4 = vld [vmem:[#allocation4 + $0x3c] sm:$0xff]  ;;  %v3070_v18 = vld [vmem:[#allocation4 + $0x94] sm:$0xff]  ;;  %vm6106_vm13 = vcmask 490496  }
 0x2cc   : > { %10004 = vrot.lane.b32.xlu1 %v10003_v58, %s11869_s12  ;;  %10009 = vrot.lane.b32.xlu0 %v14122_v45, %s11868_s30  ;;  %2928 = vst.msk [vmem:[#allocation4 + $0x19a] sm:$0xff] %vm426_vm1, %v2862_v7  ;;  %v3024_v19 = vld [vmem:[#allocation4 + $0x16a] sm:$0xff]  ;;  %v3079_v51 = vld [vmem:[#allocation4 + $0xfc] sm:$0xff] }
 0x2cd   : > { %v2856_v60 = vpop.permute.xlu1 %2855  ;;  %v2989_v1 = vld [vmem:[#allocation4 + $0x141] sm:$0xff]  ;;  %v3048_v3 = vld [vmem:[#allocation4 + $0x10b] sm:$0xff] }
 0x2ce   : > { %2925 = vst.msk [vmem:[#allocation4 + $0x172] sm:$0xff] %vm426_vm1, %v2856_v60  ;;  %v14129_v41 = vpack.i.bf16 %v2989_v1, %v2988_v61  ;;  %v3021_v5 = vld [vmem:[#allocation4 + $0x142] sm:$0xff]  ;;  %v3051_v15 = vld [vmem:[#allocation4 + $0x12b] sm:$0xff]  ;;  %v10073_v54 = vpack.i.bf16 %v3049_v2, %v3048_v3  ;;  %v3062_v60 = vld [vmem:[#allocation4 + $0x34] sm:$0xff] }
 0x2cf   : > { %v10023_v10 = vpack.i.bf16 %v3021_v5, %v3020_v42  ;;  %v3050_v43 = vld [vmem:[#allocation4 + $0x123] sm:$0xff]  ;;  %v14156_v40 = vpop.permute.xlu0 %9859  ;;  %v3052_v13 = vld [vmem:[#allocation4 + $0x13b] sm:$0xff]  ;;  %v3059_v57 = vld [vmem:[#allocation4 + $0xc] sm:$0xff] }
 0x2d0   : > { %10014 = vrot.lane.b32.xlu0 %v10013_v55, %s11869_s12  ;;  %10019 = vrot.lane.b32.xlu1 %v14129_v41, %s11868_s30  ;;  %19399 = vst [vmem:[#allocation80_spill] sm:$0xff] %v14156_v40  ;;  %v10078_v26 = vpack.i.bf16 %v3051_v15, %v3050_v43  ;;  %v3053_v20 = vld [vmem:[#allocation4 + $0x143] sm:$0xff]  ;;  %v10098_v35 = vpack.i.bf16 %v3059_v57, %v3058_v12  ;;  %v3064_v5 = vld [vmem:[#allocation4 + $0x4c] sm:$0xff]  ;;  %v3081_v43 = vld [vmem:[#allocation4 + $0x114] sm:$0xff] }
 0x2d1   : > { %v2860_v11 = vpop.permute.xlu1 %2859  ;;  %v2991_v48 = vld [vmem:[#allocation4 + $0x159] sm:$0xff]  ;;  %v10083_v63 = vpack.i.bf16 %v3053_v20, %v3052_v13  ;;  %v3061_v58 = vld [vmem:[#allocation4 + $0x24] sm:$0xff]  ;;  %v10108_v55 = vpack.i.bf16 %v3063_v4, %v3062_v60  ;;  %v3083_v3 = vld [vmem:[#allocation4 + $0x12c] sm:$0xff] }
 0x2d2   : > { %8877 = vmatmul.mubr.msk.f32.vlgmr.msra.gmra.mrb[32].mxu1 %vm2537_vm12, %v11795_v21  ;;  %2927 = vst.msk [vmem:[#allocation4 + $0x18a] sm:$0xff] %vm426_vm1, %v2860_v11  ;;  %v14139_v14 = vpack.i.bf16 %v2991_v48, %v2990_v32  ;;  %v3023_v0 = vld [vmem:[#allocation4 + $0x15a] sm:$0xff]  ;;  %v10103_v61 = vpack.i.bf16 %v3061_v58, %v3060_v39  ;;  %v3066_v21 = vld [vmem:[#allocation4 + $0x64] sm:$0xff]  ;;  %v3067_v32 = vld [vmem:[#allocation4 + $0x6c] sm:$0xff] }
 0x2d3   : > { %v10033_v49 = vpack.i.bf16 %v3023_v0, %v3022_v36  ;;  %v3054_v44 = vld [vmem:[#allocation4 + $0x153] sm:$0xff]  ;;  %v3055_v9 = vld [vmem:[#allocation4 + $0x15b] sm:$0xff]  ;;  %v14160_v31 = vpop.permute.xlu0 %9869  ;;  %v10118_v48 = vpack.i.bf16 %v3067_v32, %v3066_v21  ;;  %v3069_v36 = vld [vmem:[#allocation4 + $0x84] sm:$0xff] }
 0x2d4   : > { %10024 = vrot.lane.b32.xlu1 %v10023_v10, %s11869_s12  ;;  %10029 = vrot.lane.b32.xlu0 %v14139_v14, %s11868_s30  ;;  %v10088_v62 = vpack.i.bf16 %v3055_v9, %v3054_v44  ;;  %19400 = vst [vmem:[#allocation83_spill] sm:$0xff] %v14160_v31  ;;  %v3065_v11 = vld [vmem:[#allocation4 + $0x54] sm:$0xff]  ;;  %v3068_v0 = vld [vmem:[#allocation4 + $0x7c] sm:$0xff]  ;;  %v3085_v20 = vld [vmem:[#allocation4 + $0x144] sm:$0xff] }
 0x2d5   : > { %v2864_v53 = vpop.permute.xlu1 %2863  ;;  %v2993_v59 = vld [vmem:[#allocation4 + $0x171] sm:$0xff]  ;;  %v10113_v10 = vpack.i.bf16 %v3065_v11, %v3064_v5  ;;  %v10123_v52 = vpack.i.bf16 %v3069_v36, %v3068_v0  ;;  %v3084_v13 = vld [vmem:[#allocation4 + $0x13c] sm:$0xff] }
 0x2d6   : > { %2929 = vst.msk [vmem:[#allocation4 + $0x1a2] sm:$0xff] %vm426_vm1, %v2864_v53  ;;  %v14147_v37 = vpack.i.bf16 %v2993_v59, %v2992_v6  ;;  %v3025_v8 = vld [vmem:[#allocation4 + $0x172] sm:$0xff]  ;;  %v3074_v59 = vld [vmem:[#allocation4 + $0xc4] sm:$0xff]  ;;  %v3087_v9 = vld [vmem:[#allocation4 + $0x15c] sm:$0xff] }
 0x2d7   : > { %v10058_v56 = vpack.i.bf16 %v3025_v8, %v3024_v19  ;;  %v3056_v24 = vld [vmem:[#allocation4 + $0x16b] sm:$0xff]  ;;  %v3057_v34 = vld [vmem:[#allocation4 + $0x173] sm:$0xff]  ;;  %v14168_v1 = vpop.permute.xlu0 %9879  ;;  %v2938_v5 = vld [vmem:[#allocation4 + $0x60] sm:$0xff] }
 0x2d8   : > { %10044 = vrot.lane.b32.xlu1 %v10043_v46, %s11874_s23  ;;  %10034 = vrot.lane.b32.xlu0 %v10033_v49, %s11869_s12  ;;  %v10093_v7 = vpack.i.bf16 %v3057_v34, %v3056_v24  ;;  %19402 = vst [vmem:[#allocation47_spill] sm:$0xff] %v14168_v1  ;;  %v10128_v49 = vpack.i.bf16 %v3071_v30, %v3070_v18  ;;  %v3075_v6 = vld [vmem:[#allocation4 + $0xcc] sm:$0xff]  ;;  %v3078_v19 = vld [vmem:[#allocation4 + $0xf4] sm:$0xff]  ;;  %v2933_v24 = vld [vmem:[#allocation4 + $0x20] sm:$0xff] }
 0x2d9   : > { %v14164_v16 = vpop.permute.xlu1 %9864  ;;  %v10138_v8 = vpack.i.bf16 %v3075_v6, %v3074_v59  ;;  %v10148_v50 = vpack.i.bf16 %v3079_v51, %v3078_v19  ;;  %v3086_v44 = vld [vmem:[#allocation4 + $0x154] sm:$0xff]  ;;  %v3088_v34 = vld [vmem:[#allocation4 + $0x16c] sm:$0xff]  ;;  %v2941_v0 = vld [vmem:[#allocation4 + $0x80] sm:$0xff] }
 0x2da   : > { %19401 = vst [vmem:[#allocation38_spill] sm:$0xff] %v14164_v16  ;;  %v2932_v12 = vld [vmem:[#allocation4 + $0x18] sm:$0xff]  ;;  %v2942_v36 = vld [vmem:[#allocation4 + $0x90] sm:$0xff]  ;;  %v3338_v16 = vld [vmem:[#allocation4 + $0x142] sm:$0xff] }
 0x2db   : > { %v10178_v58 = vpack.i.bf16 %v2933_v24, %v2932_v12  ;;  %v2935_v4 = vld [vmem:[#allocation4 + $0x38] sm:$0xff]  ;;  %v2945_v6 = vld [vmem:[#allocation4 + $0xb0] sm:$0xff]  ;;  %v3114_v12 = vld [vmem:[#allocation4 + $0x128] sm:$0xff] }
 0x2dc   : > { %10039 = vrot.lane.b32.xlu0 %v10038_v38, %s11874_s23  ;;  %10054 = vrot.lane.b32.xlu1 %v14147_v37, %s11868_s30  ;;  %v14174_v53 = vpop.permute.xlu0 %9889  ;;  %v3073_v38 = vld [vmem:[#allocation4 + $0xb4] sm:$0xff]  ;;  %v3113_v24 = vld [vmem:[#allocation4 + $0x120] sm:$0xff]  ;;  %v3344_v40 = vld [vmem:[#allocation4 + $0x18a] sm:$0xff] }
 0x2dd   : > { %v14170_v42 = vpop.permute.xlu1 %9874  ;;  %19404 = vst [vmem:[#allocation48_spill] sm:$0xff] %v14174_v53  ;;  %v10133_v22 = vpack.i.bf16 %v3073_v38, %v3072_v28  ;;  %v2940_v18 = vld [vmem:[#allocation4 + $0x78] sm:$0xff]  ;;  %v2944_v28 = vld [vmem:[#allocation4 + $0xa8] sm:$0xff] }
 0x2de   : > { %19403 = vst [vmem:[#allocation46_spill] sm:$0xff] %v14170_v42  ;;  %v2943_v59 = vld [vmem:[#allocation4 + $0x98] sm:$0xff]  ;;  %v3314_v1 = vld [vmem:[#allocation4 + $0x1a1] sm:$0xff] }
 0x2df   : > { %v10203_v19 = vpack.i.bf16 %v2943_v59, %v2942_v36  ;;  %v2948_v51 = vld [vmem:[#allocation4 + $0xd8] sm:$0xff]  ;;  %v3121_v36 = vld [vmem:[#allocation4 + $0x180] sm:$0xff]  ;;  %v3127_v59 = vld [vmem:[#allocation4 + $0x49] sm:$0xff] }
 0x2e0   : > { %10049 = vrot.lane.b32.xlu0 %v10048_v17, %s11874_s23  ;;  %10059 = vrot.lane.b32.xlu1 %v10058_v56, %s11869_s12  ;;  %v14182_v29 = vpop.permute.xlu0 %9894  ;;  %v3076_v17 = vld [vmem:[#allocation4 + $0xdc] sm:$0xff]  ;;  %v3315_v42 = vld [vmem:[#allocation4 + $0x32] sm:$0xff] }
 0x2e1   : > { %v14178_v46 = vpop.permute.xlu1 %9884  ;;  %19406 = vst [vmem:[#allocation42_spill] sm:$0xff] %v14182_v29  ;;  %v10143_v47 = vpack.i.bf16 %v3077_v23, %v3076_v17  ;;  %v2947_v17 = vld [vmem:[#allocation4 + $0xc8] sm:$0xff]  ;;  %v2949_v23 = vld [vmem:[#allocation4 + $0xe0] sm:$0xff]  ;;  %v3331_v31 = vld [vmem:[#allocation4 + $0xf2] sm:$0xff] }
 0x2e2   : > { %19405 = vst [vmem:[#allocation39_spill] sm:$0xff] %v14178_v46  ;;  %v3294_v46 = vld [vmem:[#allocation4 + $0xb1] sm:$0xff]  ;;  %v3312_v29 = vld [vmem:[#allocation4 + $0x189] sm:$0xff] }
 0x2e3   : > { %v3327_v53 = vld [vmem:[#allocation4 + $0xc2] sm:$0xff] }
 0x2e4   : > { %10069 = vrot.lane.b32.xlu0 %v10068_v27, %s11874_s23  ;;  %10064 = vrot.lane.b32.xlu1 %v10063_v25, %s11874_s23  ;;  %v3080_v27 = vld [vmem:[#allocation4 + $0x10c] sm:$0xff]  ;;  %v3082_v25 = vld [vmem:[#allocation4 + $0x124] sm:$0xff] }
 0x2e5   : > { %v14184_v56 = vpop.permute.xlu1 %9904  ;;  %v14188_v15 = vpop.permute.xlu0 %9899 }
 0x2e6   : > { %19407 = vst [vmem:[#allocation45_spill] sm:$0xff] %v14184_v56  ;;  %19408 = vst [vmem:[#allocation44_spill] sm:$0xff] %v14188_v15  ;;  %v3292_v56 = vld [vmem:[#allocation4 + $0x99] sm:$0xff]  ;;  %v3296_v15 = vld [vmem:[#allocation4 + $0xc9] sm:$0xff] }
 0x2e8   : > { %10079 = vrot.lane.b32.xlu0 %v10078_v26, %s11874_s23  ;;  %10074 = vrot.lane.b32.xlu1 %v10073_v54, %s11874_s23  ;;  %v10158_v26 = vpack.i.bf16 %v3083_v3, %v3082_v25  ;;  %v10153_v54 = vpack.i.bf16 %v3081_v43, %v3080_v27  ;;  %v10218_v27 = vpack.i.bf16 %v2949_v23, %v2948_v51  ;;  %v2950_v3 = vld [vmem:[#allocation4 + $0xf0] sm:$0xff]  ;;  %v2951_v43 = vld [vmem:[#allocation4 + $0xf8] sm:$0xff]  ;;  %v3129_v51 = vld [vmem:[#allocation4 + $0x61] sm:$0xff] }
 0x2e9   : > { %v14196_v57 = vpop.permute.xlu0 %9919  ;;  %v3131_v23 = vld [vmem:[#allocation4 + $0x79] sm:$0xff] }
 0x2ea   : > { %v14192_v2 = vpop.permute.xlu1 %9909  ;;  %19410 = vst [vmem:[#allocation50_spill] sm:$0xff] %v14196_v57  ;;  %v3282_v57 = vld [vmem:[#allocation4 + $0x1a0] sm:$0xff] }
 0x2eb   : > { %19409 = vst [vmem:[#allocation49_spill] sm:$0xff] %v14192_v2  ;;  %v3283_v2 = vld [vmem:[#allocation4 + $0x31] sm:$0xff] }
 0x2ec   : > { %10089 = vrot.lane.b32.xlu0 %v10088_v62, %s11874_s23  ;;  %10084 = vrot.lane.b32.xlu1 %v10083_v63, %s11874_s23  ;;  %v10168_v62 = vpack.i.bf16 %v3087_v9, %v3086_v44  ;;  %v10163_v63 = vpack.i.bf16 %v3085_v20, %v3084_v13  ;;  %v10223_v9 = vpack.i.bf16 %v2951_v43, %v2950_v3  ;;  %v3116_v20 = vld [vmem:[#allocation4 + $0x140] sm:$0xff] }
 0x2ed   : > { %v14202_v21 = vpop.permute.xlu0 %9924 }
 0x2ee   : > { %v14198_v39 = vpop.permute.xlu1 %9914  ;;  %19412 = vst [vmem:[#allocation82_spill] sm:$0xff] %v14202_v21  ;;  %v3280_v21 = vld [vmem:[#allocation4 + $0x188] sm:$0xff] }
 0x2ef   : > { %19411 = vst [vmem:[#allocation52_spill] sm:$0xff] %v14198_v39  ;;  %v3262_v39 = vld [vmem:[#allocation4 + $0xb0] sm:$0xff] }
 0x2f0   : > { %10099 = vrot.lane.b32.xlu0 %v10098_v35, %s11875_s24  ;;  %10094 = vrot.lane.b32.xlu1 %v10093_v7, %s11874_s23  ;;  %v3089_v35 = vld [vmem:[#allocation4 + $0x174] sm:$0xff] }
 0x2f1   : > { %v2934_v7 = vld [vmem:[#allocation4 + $0x30] sm:$0xff]  ;;  %v10173_v60 = vpack.i.bf16 %v3089_v35, %v3088_v34  ;;  %v10233_v35 = vpack.i.bf16 %v3114_v12, %v3113_v24  ;;  %v3134_v12 = vld [vmem:[#allocation4 + $0x99] sm:$0xff] }
 0x2f2   : > { %v14210_v30 = vpop.permute.xlu0 %9929 }
 0x2f3   : > { %v14206_v11 = vpop.permute.xlu1 %9934  ;;  %19413 = vst [vmem:[#allocation81_spill] sm:$0xff] %v14210_v30  ;;  %v3264_v30 = vld [vmem:[#allocation4 + $0xc8] sm:$0xff] }
 0x2f4   : > { %10109 = vrot.lane.b32.xlu0 %v10108_v55, %s11875_s24  ;;  %10104 = vrot.lane.b32.xlu1 %v10103_v61, %s11875_s24  ;;  %v2936_v61 = vld [vmem:[#allocation4 + $0x48] sm:$0xff]  ;;  %v2937_v55 = vld [vmem:[#allocation4 + $0x50] sm:$0xff] }
 0x2f5   : > { %v10188_v32 = vpack.i.bf16 %v2937_v55, %v2936_v61  ;;  %v3119_v61 = vld [vmem:[#allocation4 + $0x168] sm:$0xff]  ;;  %v3117_v55 = vld [vmem:[#allocation4 + $0x150] sm:$0xff] }
 0x2f7   : > { %v14212_v38 = vpop.permute.xlu1 %9939 }
 0x2f8   : > { %10119 = vrot.lane.b32.xlu0 %v10118_v48, %s11875_s24  ;;  %10114 = vrot.lane.b32.xlu1 %v10113_v10, %s11875_s24  ;;  %v10183_v48 = vpack.i.bf16 %v2935_v4, %v2934_v7  ;;  %v2939_v10 = vld [vmem:[#allocation4 + $0x68] sm:$0xff]  ;;  %v3118_v7 = vld [vmem:[#allocation4 + $0x158] sm:$0xff] }
 0x2f9   : > { %v3123_v4 = vld [vmem:[#allocation4 + $0x19] sm:$0xff] }
 0x2fc   : > { %10129 = vrot.lane.b32.xlu0 %v10128_v49, %s11875_s24  ;;  %10124 = vrot.lane.b32.xlu1 %v10123_v52, %s11875_s24  ;;  %v10198_v49 = vpack.i.bf16 %v2941_v0, %v2940_v18  ;;  %v10193_v52 = vpack.i.bf16 %v2939_v10, %v2938_v5  ;;  %v3124_v5 = vld [vmem:[#allocation4 + $0x21] sm:$0xff]  ;;  %v10243_v10 = vpack.i.bf16 %v3118_v7, %v3117_v55  ;;  %v3139_v7 = vld [vmem:[#allocation4 + $0xd9] sm:$0xff] }
 0x2fd   : > { %v3122_v18 = vld [vmem:[#allocation4 + $0x188] sm:$0xff]  ;;  %v10258_v0 = vpack.i.bf16 %v3124_v5, %v3123_v4 }
 0x2fe   : > { %v3140_v4 = vld [vmem:[#allocation4 + $0xe1] sm:$0xff] }
 0x300   : > { %10139 = vrot.lane.b32.xlu0 %v10138_v8, %s11875_s24  ;;  %10134 = vrot.lane.b32.xlu1 %v10133_v22, %s11875_s24  ;;  %v2946_v8 = vld [vmem:[#allocation4 + $0xc0] sm:$0xff]  ;;  %v10208_v22 = vpack.i.bf16 %v2945_v6, %v2944_v28  ;;  %v3128_v28 = vld [vmem:[#allocation4 + $0x51] sm:$0xff] }
 0x301   : > { %v10213_v25 = vpack.i.bf16 %v2947_v17, %v2946_v8  ;;  %v3125_v6 = vld [vmem:[#allocation4 + $0x31] sm:$0xff]  ;;  %v3126_v8 = vld [vmem:[#allocation4 + $0x39] sm:$0xff] }
 0x302   : > { %v10263_v17 = vpack.i.bf16 %v3126_v8, %v3125_v6  ;;  %v3155_v8 = vld [vmem:[#allocation4 + $0x1a] sm:$0xff] }
 0x304   : > { %10149 = vrot.lane.b32.xlu0 %v10148_v50, %s11875_s24  ;;  %10144 = vrot.lane.b32.xlu1 %v10143_v47, %s11875_s24  ;;  %v14216_v50 = vpop.permute.xlu0 %9949  ;;  %v14220_v47 = vpop.permute.xlu1 %9944 }
 0x308   : > { %10159 = vrot.lane.b32.xlu0 %v10158_v26, %s11875_s24  ;;  %10154 = vrot.lane.b32.xlu1 %v10153_v54, %s11875_s24  ;;  %v3112_v26 = vld [vmem:[#allocation4 + $0x110] sm:$0xff]  ;;  %v3111_v54 = vld [vmem:[#allocation4 + $0x108] sm:$0xff]  ;;  %v14224_v13 = vpop.permute.xlu0 %9954 }
 0x309   : > { %v10228_v44 = vpack.i.bf16 %v3112_v26, %v3111_v54 }
 0x30c   : > { %10169 = vrot.lane.b32.xlu0 %v10168_v62, %s11875_s24  ;;  %10164 = vrot.lane.b32.xlu1 %v10163_v63, %s11875_s24  ;;  %v14226_v62 = vpop.permute.xlu1 %9959  ;;  %v3115_v63 = vld [vmem:[#allocation4 + $0x138] sm:$0xff] }
 0x30d   : > { %v10238_v34 = vpack.i.bf16 %v3116_v20, %v3115_v63  ;;  %v3136_v20 = vld [vmem:[#allocation4 + $0xb1] sm:$0xff] }
 0x310   : > { %10179 = vrot.lane.b32.xlu0 %v10178_v58, %s11876_s25  ;;  %10174 = vrot.lane.b32.xlu1 %v10173_v60, %s11875_s24  ;;  %v3120_v58 = vld [vmem:[#allocation4 + $0x170] sm:$0xff]  ;;  %v14230_v60 = vpop.permute.xlu0 %9969 }
 0x311   : > { %19414 = vst [vmem:[#allocation53_spill] sm:$0xff] %v14230_v60  ;;  %v3246_v60 = vld [vmem:[#allocation4 + $0x15c] sm:$0xff] }
 0x314   : > { %10189 = vrot.lane.b32.xlu0 %v10188_v32, %s11876_s25  ;;  %10184 = vrot.lane.b32.xlu1 %v10183_v48, %s11876_s25  ;;  %v14234_v32 = vpop.permute.xlu1 %9964  ;;  %v10248_v48 = vpack.i.bf16 %v3120_v58, %v3119_v61  ;;  %v3137_v58 = vld [vmem:[#allocation4 + $0xc1] sm:$0xff]  ;;  %v3138_v61 = vld [vmem:[#allocation4 + $0xc9] sm:$0xff] }
 0x318   : > { %10199 = vrot.lane.b32.xlu0 %v10198_v49, %s11876_s25  ;;  %10194 = vrot.lane.b32.xlu1 %v10193_v52, %s11876_s25  ;;  %v14238_v49 = vpop.permute.xlu0 %9974  ;;  %v10253_v52 = vpack.i.bf16 %v3122_v18, %v3121_v36  ;;  %v3141_v18 = vld [vmem:[#allocation4 + $0xf1] sm:$0xff] }
 0x319   : > { %19415 = vst [vmem:[#allocation54_spill] sm:$0xff] %v14238_v49  ;;  %v3245_v49 = vld [vmem:[#allocation4 + $0x154] sm:$0xff] }
 0x31c   : > { %10209 = vrot.lane.b32.xlu0 %v10208_v22, %s11876_s25  ;;  %10204 = vrot.lane.b32.xlu1 %v10203_v19, %s11876_s25  ;;  %v14240_v22 = vpop.permute.xlu1 %9979  ;;  %v10268_v19 = vpack.i.bf16 %v3128_v28, %v3127_v59  ;;  %v14244_v3 = vpop.permute.xlu0 %9989 }
 0x31d   : > { %19416 = vst [vmem:[#allocation55_spill] sm:$0xff] %v14240_v22  ;;  %19417 = vst [vmem:[#allocation56_spill] sm:$0xff] %v14244_v3  ;;  %v3244_v22 = vld [vmem:[#allocation4 + $0x144] sm:$0xff] }
 0x320   : > { %10219 = vrot.lane.b32.xlu0 %v10218_v27, %s11876_s25  ;;  %10214 = vrot.lane.b32.xlu1 %v10213_v25, %s11876_s25  ;;  %v3132_v27 = vld [vmem:[#allocation4 + $0x81] sm:$0xff]  ;;  %v3130_v25 = vld [vmem:[#allocation4 + $0x69] sm:$0xff]  ;;  %v14248_v43 = vpop.permute.xlu1 %9984  ;;  %v14252_v63 = vpop.permute.xlu0 %9994 }
 0x321   : > { %19418 = vst [vmem:[#allocation57_spill] sm:$0xff] %v14248_v43  ;;  %v10278_v26 = vpack.i.bf16 %v3132_v27, %v3131_v23  ;;  %v10273_v54 = vpack.i.bf16 %v3130_v25, %v3129_v51  ;;  %19419 = vst [vmem:[#allocation51_spill] sm:$0xff] %v14252_v63  ;;  %v3154_v23 = vld [vmem:[#allocation4 + $0x189] sm:$0xff]  ;;  %v3153_v27 = vld [vmem:[#allocation4 + $0x181] sm:$0xff] }
 0x322   : > { %v3235_v43 = vld [vmem:[#allocation4 + $0xdc] sm:$0xff]  ;;  %v3237_v63 = vld [vmem:[#allocation4 + $0xf4] sm:$0xff] }
 0x324   : > { %10229 = vrot.lane.b32.xlu0 %v10228_v44, %s11876_s25  ;;  %10224 = vrot.lane.b32.xlu1 %v10223_v9, %s11876_s25  ;;  %v3133_v44 = vld [vmem:[#allocation4 + $0x91] sm:$0xff]  ;;  %v3135_v9 = vld [vmem:[#allocation4 + $0xa9] sm:$0xff] }
 0x328   : > { %10239 = vrot.lane.b32.xlu0 %v10238_v34, %s11876_s25  ;;  %10234 = vrot.lane.b32.xlu1 %v10233_v35, %s11876_s25  ;;  %v10288_v34 = vpack.i.bf16 %v3136_v20, %v3135_v9  ;;  %v10283_v35 = vpack.i.bf16 %v3134_v12, %v3133_v44  ;;  %v3157_v44 = vld [vmem:[#allocation4 + $0x32] sm:$0xff]  ;;  %v3158_v9 = vld [vmem:[#allocation4 + $0x3a] sm:$0xff] }
 0x329   : > { %v10343_v12 = vpack.i.bf16 %v3158_v9, %v3157_v44  ;;  %v3170_v44 = vld [vmem:[#allocation4 + $0xca] sm:$0xff] }
 0x32c   : > { %10249 = vrot.lane.b32.xlu0 %v10248_v48, %s11876_s25  ;;  %10244 = vrot.lane.b32.xlu1 %v10243_v10, %s11876_s25  ;;  %v10298_v48 = vpack.i.bf16 %v3140_v4, %v3139_v7  ;;  %v10293_v10 = vpack.i.bf16 %v3138_v61, %v3137_v58  ;;  %v3164_v58 = vld [vmem:[#allocation4 + $0x82] sm:$0xff]  ;;  %v3162_v7 = vld [vmem:[#allocation4 + $0x6a] sm:$0xff] }
 0x330   : > { %10259 = vrot.lane.b32.xlu0 %v10258_v0, %s11870_s15  ;;  %10254 = vrot.lane.b32.xlu1 %v10253_v52, %s11876_s25  ;;  %v3142_v0 = vld [vmem:[#allocation4 + $0xf9] sm:$0xff] }
 0x331   : > { %v10303_v59 = vpack.i.bf16 %v3142_v0, %v3141_v18  ;;  %v3167_v18 = vld [vmem:[#allocation4 + $0xaa] sm:$0xff]  ;;  %v3165_v0 = vld [vmem:[#allocation4 + $0x92] sm:$0xff] }
 0x334   : > { %10269 = vrot.lane.b32.xlu0 %v10268_v19, %s11870_s15  ;;  %10264 = vrot.lane.b32.xlu1 %v10263_v17, %s11870_s15  ;;  %v3156_v19 = vld [vmem:[#allocation4 + $0x22] sm:$0xff] }
 0x338   : > { %10279 = vrot.lane.b32.xlu0 %v10278_v26, %s11870_s15  ;;  %10274 = vrot.lane.b32.xlu1 %v10273_v54, %s11870_s15  ;;  %v3159_v26 = vld [vmem:[#allocation4 + $0x4a] sm:$0xff]  ;;  %v3160_v54 = vld [vmem:[#allocation4 + $0x52] sm:$0xff] }
 0x33a   : > { %v14254_v24 = vpop.permute.xlu1 %9999 }
 0x33b   : > { %19420 = vst [vmem:[#allocation58_spill] sm:$0xff] %v14254_v24  ;;  %v3221_v24 = vld [vmem:[#allocation4 + $0x34] sm:$0xff] }
 0x33c   : > { %10289 = vrot.lane.b32.xlu0 %v10288_v34, %s11870_s15  ;;  %10284 = vrot.lane.b32.xlu1 %v10283_v35, %s11870_s15  ;;  %v3163_v34 = vld [vmem:[#allocation4 + $0x7a] sm:$0xff]  ;;  %v3161_v35 = vld [vmem:[#allocation4 + $0x62] sm:$0xff] }
 0x33e   : > { %v14258_v55 = vpop.permute.xlu0 %10009  ;;  %v14260_v5 = vpop.permute.xlu1 %10004 }
 0x33f   : > { %19421 = vst [vmem:[#allocation59_spill] sm:$0xff] %v14258_v55  ;;  %19422 = vst [vmem:[#allocation84_spill] sm:$0xff] %v14260_v5  ;;  %v3210_v5 = vld [vmem:[#allocation4 + $0x12b] sm:$0xff]  ;;  %v3214_v55 = vld [vmem:[#allocation4 + $0x15b] sm:$0xff] }
 0x340   : > { %10299 = vrot.lane.b32.xlu0 %v10298_v48, %s11870_s15  ;;  %10294 = vrot.lane.b32.xlu1 %v10293_v10, %s11870_s15  ;;  %v10358_v48 = vpack.i.bf16 %v3164_v58, %v3163_v34  ;;  %v10353_v10 = vpack.i.bf16 %v3162_v7, %v3161_v35  ;;  %v3176_v35 = vld [vmem:[#allocation4 + $0x112] sm:$0xff]  ;;  %v3175_v7 = vld [vmem:[#allocation4 + $0x10a] sm:$0xff] }
 0x341   : > { %v3173_v58 = vld [vmem:[#allocation4 + $0xf2] sm:$0xff] }
 0x342   : > { %v14264_v36 = vpop.permute.xlu0 %10014  ;;  %v14266_v52 = vpop.permute.xlu1 %10019 }
 0x343   : > { %19423 = vst [vmem:[#allocation60_spill] sm:$0xff] %v14264_v36  ;;  %v3209_v36 = vld [vmem:[#allocation4 + $0x123] sm:$0xff] }
 0x344   : > { %10309 = vrot.lane.b32.xlu0 %v14114_v33, %s11870_s15  ;;  %10304 = vrot.lane.b32.xlu1 %v10303_v59, %s11870_s15  ;;  %v10338_v33 = vpack.i.bf16 %v3156_v19, %v3155_v8  ;;  %v3168_v59 = vld [vmem:[#allocation4 + $0xb2] sm:$0xff]  ;;  %v3166_v8 = vld [vmem:[#allocation4 + $0x9a] sm:$0xff] }
 0x346   : > { %v14271_v28 = vpop.permute.xlu0 %10029  ;;  %v14273_v6 = vpop.permute.xlu1 %10024 }
 0x348   : > { %10319 = vrot.lane.b32.xlu0 %v14129_v41, %s11870_s15  ;;  %10314 = vrot.lane.b32.xlu1 %v14122_v45, %s11870_s15  ;;  %v10333_v45 = vpack.i.bf16 %v3154_v23, %v3153_v27  ;;  %v10363_v27 = vpack.i.bf16 %v3166_v8, %v3165_v0  ;;  %v10388_v0 = vpack.i.bf16 %v3176_v35, %v3175_v7  ;;  %v3180_v8 = vld [vmem:[#allocation4 + $0x142] sm:$0xff]  ;;  %v3181_v35 = vld [vmem:[#allocation4 + $0x152] sm:$0xff] }
 0x349   : > { %v3187_v7 = vld [vmem:[#allocation4 + $0x1b] sm:$0xff] }
 0x34a   : > { %v14279_v17 = vpop.permute.xlu0 %10034  ;;  %v14281_v51 = vpop.permute.xlu1 %10044 }
 0x34c   : > { %10329 = vrot.lane.b32.xlu0 %v14147_v37, %s11870_s15  ;;  %10324 = vrot.lane.b32.xlu1 %v14139_v14, %s11870_s15  ;;  %v10348_v14 = vpack.i.bf16 %v3160_v54, %v3159_v26  ;;  %v3169_v26 = vld [vmem:[#allocation4 + $0xc2] sm:$0xff] }
 0x34d   : > { %v3172_v54 = vld [vmem:[#allocation4 + $0xe2] sm:$0xff]  ;;  %v10373_v34 = vpack.i.bf16 %v3170_v44, %v3169_v26 }
 0x34e   : > { %v14287_v25 = vpop.permute.xlu0 %10039  ;;  %v14289_v41 = vpop.permute.xlu1 %10054 }
 0x350   : > { %10339 = vrot.lane.b32.xlu0 %v10338_v33, %s11871_s16  ;;  %10334 = vrot.lane.b32.xlu1 %v10333_v45, %s11870_s15  ;;  %v10368_v33 = vpack.i.bf16 %v3168_v59, %v3167_v18  ;;  %v3171_v45 = vld [vmem:[#allocation4 + $0xda] sm:$0xff] }
 0x352   : > { %v14293_v20 = vpop.permute.xlu0 %10049  ;;  %v14295_v37 = vpop.permute.xlu1 %10059 }
 0x353   : > { %19424 = vst [vmem:[#allocation61_spill] sm:$0xff] %v14293_v20  ;;  %v3205_v20 = vld [vmem:[#allocation4 + $0xf3] sm:$0xff] }
 0x354   : > { %10349 = vrot.lane.b32.xlu0 %v10348_v14, %s11871_s16  ;;  %10344 = vrot.lane.b32.xlu1 %v10343_v12, %s11871_s16  ;;  %v10378_v12 = vpack.i.bf16 %v3172_v54, %v3171_v45  ;;  %v3177_v45 = vld [vmem:[#allocation4 + $0x122] sm:$0xff] }
 0x356   : > { %v14299_v4 = vpop.permute.xlu0 %10069  ;;  %v14301_v61 = vpop.permute.xlu1 %10064 }
 0x357   : > { %19425 = vst [vmem:[#allocation86_spill] sm:$0xff] %v14299_v4  ;;  %19426 = vst [vmem:[#allocation87_spill] sm:$0xff] %v14301_v61  ;;  %v3189_v61 = vld [vmem:[#allocation4 + $0x33] sm:$0xff]  ;;  %v3203_v4 = vld [vmem:[#allocation4 + $0xdb] sm:$0xff] }
 0x358   : > { %10359 = vrot.lane.b32.xlu0 %v10358_v48, %s11871_s16  ;;  %10354 = vrot.lane.b32.xlu1 %v10353_v10, %s11871_s16  ;;  %v3174_v48 = vld [vmem:[#allocation4 + $0xfa] sm:$0xff] }
 0x359   : > { %v10383_v59 = vpack.i.bf16 %v3174_v48, %v3173_v58  ;;  %v3183_v58 = vld [vmem:[#allocation4 + $0x16a] sm:$0xff] }
 0x35a   : > { %v14305_v19 = vpop.permute.xlu0 %10079  ;;  %v14307_v23 = vpop.permute.xlu1 %10074  ;;  %v3188_v48 = vld [vmem:[#allocation4 + $0x23] sm:$0xff] }
 0x35b   : > { %19427 = vst [vmem:[#allocation89_spill] sm:$0xff] %v14305_v19  ;;  %19428 = vst [vmem:[#allocation88_spill] sm:$0xff] %v14307_v23  ;;  %v3186_v19 = vld [vmem:[#allocation4 + $0x18a] sm:$0xff] }
 0x35c   : > { %10369 = vrot.lane.b32.xlu0 %v10368_v33, %s11871_s16  ;;  %10364 = vrot.lane.b32.xlu1 %v10363_v27, %s11871_s16  ;;  %v3178_v33 = vld [vmem:[#allocation4 + $0x12a] sm:$0xff]  ;;  %v3179_v27 = vld [vmem:[#allocation4 + $0x13a] sm:$0xff] }
 0x35d   : > { %v10398_v44 = vpack.i.bf16 %v3180_v8, %v3179_v27  ;;  %v10418_v8 = vpack.i.bf16 %v3188_v48, %v3187_v7  ;;  %v3194_v7 = vld [vmem:[#allocation4 + $0x6b] sm:$0xff] }
 0x35e   : > { %v14311_v9 = vpop.permute.xlu0 %10089  ;;  %v14313_v14 = vpop.permute.xlu1 %10084 }
 0x35f   : > { %19429 = vst [vmem:[#allocation96_spill] sm:$0xff] %v14313_v14  ;;  %v14727_v14 = vld [vmem:[#allocation4 + $0x12c] sm:$0xff] }
 0x360   : > { %10379 = vrot.lane.b32.xlu0 %v10378_v12, %s11871_s16  ;;  %10374 = vrot.lane.b32.xlu1 %v10373_v34, %s11871_s16  ;;  %v10393_v12 = vpack.i.bf16 %v3178_v33, %v3177_v45  ;;  %v3184_v34 = vld [vmem:[#allocation4 + $0x172] sm:$0xff]  ;;  %v3185_v33 = vld [vmem:[#allocation4 + $0x182] sm:$0xff] }
 0x361   : > { %v10408_v23 = vpack.i.bf16 %v3184_v34, %v3183_v58  ;;  %v3193_v58 = vld [vmem:[#allocation4 + $0x63] sm:$0xff] }
 0x362   : > { %v14317_v10 = vpop.permute.xlu0 %10099  ;;  %v14319_v18 = vpop.permute.xlu1 %10094 }
 0x363   : > { %19430 = vst [vmem:[#allocation95_spill] sm:$0xff] %v14317_v10  ;;  %19431 = vst [vmem:[#allocation102_spill] sm:$0xff] %v14319_v18  ;;  %v3182_v10 = vld [vmem:[#allocation4 + $0x15a] sm:$0xff] }
 0x364   : > { %10389 = vrot.lane.b32.xlu0 %v10388_v0, %s11871_s16  ;;  %10384 = vrot.lane.b32.xlu1 %v10383_v59, %s11871_s16  ;;  %v14705_v18 = vld [vmem:[#allocation4 + $0x173] sm:$0xff] }
 0x366   : > { %v14323_v26 = vpop.permute.xlu0 %10109  ;;  %v14325_v54 = vpop.permute.xlu1 %10104 }
 0x367   : > { %19432 = vst [vmem:[#allocation101_spill] sm:$0xff] %v14323_v26  ;;  %19433 = vst [vmem:[#allocation99_spill] sm:$0xff] %v14325_v54  ;;  %v10403_v26 = vpack.i.bf16 %v3182_v10, %v3181_v35  ;;  %v3192_v54 = vld [vmem:[#allocation4 + $0x53] sm:$0xff]  ;;  %v3195_v35 = vld [vmem:[#allocation4 + $0x7b] sm:$0xff] }
 0x368   : > { %10399 = vrot.lane.b32.xlu0 %v10398_v44, %s11871_s16  ;;  %10394 = vrot.lane.b32.xlu1 %v10393_v12, %s11871_s16  ;;  %v10413_v44 = vpack.i.bf16 %v3186_v19, %v3185_v33  ;;  %v3191_v12 = vld [vmem:[#allocation4 + $0x4b] sm:$0xff]  ;;  %v3196_v19 = vld [vmem:[#allocation4 + $0x83] sm:$0xff] }
 0x36a   : > { %v14329_v0 = vpop.permute.xlu0 %10119  ;;  %v14331_v59 = vpop.permute.xlu1 %10114 }
 0x36b   : > { %19434 = vst [vmem:[#allocation97_spill] sm:$0xff] %v14329_v0  ;;  %19435 = vst [vmem:[#allocation62_spill] sm:$0xff] %v14331_v59  ;;  %v3190_v0 = vld [vmem:[#allocation4 + $0x3b] sm:$0xff]  ;;  %v3199_v59 = vld [vmem:[#allocation4 + $0xab] sm:$0xff] }
 0x36c   : > { %10409 = vrot.lane.b32.xlu0 %v10408_v23, %s11871_s16  ;;  %10404 = vrot.lane.b32.xlu1 %v10403_v26, %s11871_s16  ;;  %v10428_v26 = vpack.i.bf16 %v3192_v54, %v3191_v12  ;;  %v10423_v34 = vpack.i.bf16 %v3190_v0, %v3189_v61  ;;  %v3200_v61 = vld [vmem:[#allocation4 + $0xb3] sm:$0xff]  ;;  %v3198_v54 = vld [vmem:[#allocation4 + $0x9b] sm:$0xff] }
 0x36e   : > { %v14335_v27 = vpop.permute.xlu0 %10129  ;;  %v14337_v45 = vpop.permute.xlu1 %10124 }
 0x36f   : > { %19436 = vst [vmem:[#allocation104_spill] sm:$0xff] %v14335_v27  ;;  %19437 = vst [vmem:[#allocation103_spill] sm:$0xff] %v14337_v45  ;;  %v14689_v45 = vld [vmem:[#allocation4 + $0x13b] sm:$0xff]  ;;  %v14703_v27 = vld [vmem:[#allocation4 + $0x16b] sm:$0xff] }
 0x370   : > { %10419 = vrot.lane.b32.xlu0 %v10418_v8, %s11872_s19  ;;  %10414 = vrot.lane.b32.xlu1 %v10413_v44, %s11871_s16  ;;  %v10438_v8 = vpack.i.bf16 %v3196_v19, %v3195_v35  ;;  %v10433_v44 = vpack.i.bf16 %v3194_v7, %v3193_v58  ;;  %v3204_v35 = vld [vmem:[#allocation4 + $0xe3] sm:$0xff]  ;;  %v3202_v58 = vld [vmem:[#allocation4 + $0xcb] sm:$0xff] }
 0x372   : > { %v14341_v10 = vpop.permute.xlu0 %10139  ;;  %v14343_v23 = vpop.permute.xlu1 %10134 }
 0x373   : > { %19438 = vst [vmem:[#allocation63_spill] sm:$0xff] %v14341_v10  ;;  %19439 = vst [vmem:[#allocation100_spill] sm:$0xff] %v14343_v23  ;;  %v3197_v10 = vld [vmem:[#allocation4 + $0x93] sm:$0xff] }
 0x374   : > { %10429 = vrot.lane.b32.xlu0 %v10428_v26, %s11872_s19  ;;  %10424 = vrot.lane.b32.xlu1 %v10423_v34, %s11872_s19  ;;  %v10448_v26 = vpack.i.bf16 %v3200_v61, %v3199_v59  ;;  %v10443_v34 = vpack.i.bf16 %v3198_v54, %v3197_v10  ;;  %v3206_v59 = vld [vmem:[#allocation4 + $0xfb] sm:$0xff] }
 0x376   : > { %v14347_v48 = vpop.permute.xlu0 %10149  ;;  %v14349_v33 = vpop.permute.xlu1 %10144 }
 0x377   : > { %19440 = vst [vmem:[#allocation98_spill] sm:$0xff] %v14347_v48  ;;  %19441 = vst [vmem:[#allocation64_spill] sm:$0xff] %v14349_v33  ;;  %v3201_v48 = vld [vmem:[#allocation4 + $0xc3] sm:$0xff]  ;;  %v3207_v33 = vld [vmem:[#allocation4 + $0x10b] sm:$0xff] }
 0x378   : > { %10439 = vrot.lane.b32.xlu0 %v10438_v8, %s11872_s19  ;;  %10434 = vrot.lane.b32.xlu1 %v10433_v44, %s11872_s19  ;;  %v10458_v8 = vpack.i.bf16 %v3204_v35, %v3203_v4  ;;  %v10453_v44 = vpack.i.bf16 %v3202_v58, %v3201_v48  ;;  %v10473_v58 = vpack.i.bf16 %v3210_v5, %v3209_v36 }
 0x37a   : > { %v14353_v0 = vpop.permute.xlu0 %10159  ;;  %v14355_v12 = vpop.permute.xlu1 %10154 }
 0x37b   : > { %19442 = vst [vmem:[#allocation65_spill] sm:$0xff] %v14353_v0  ;;  %19443 = vst [vmem:[#allocation66_spill] sm:$0xff] %v14355_v12  ;;  %v3208_v0 = vld [vmem:[#allocation4 + $0x113] sm:$0xff]  ;;  %v3212_v12 = vld [vmem:[#allocation4 + $0x143] sm:$0xff] }
 0x37c   : > { %10449 = vrot.lane.b32.xlu0 %v10448_v26, %s11872_s19  ;;  %10444 = vrot.lane.b32.xlu1 %v10443_v34, %s11872_s19  ;;  %v10468_v54 = vpack.i.bf16 %v3208_v0, %v3207_v33  ;;  %v10463_v26 = vpack.i.bf16 %v3206_v59, %v3205_v20  ;;  %v3211_v34 = vld [vmem:[#allocation4 + $0x13b] sm:$0xff]  ;;  %v3220_v33 = vld [vmem:[#allocation4 + $0x24] sm:$0xff] }
 0x37d   : > { %v10478_v35 = vpack.i.bf16 %v3212_v12, %v3211_v34  ;;  %v3219_v20 = vld [vmem:[#allocation4 + $0x1c] sm:$0xff] }
 0x37e   : > { %v14359_v19 = vpop.permute.xlu0 %10169  ;;  %v14361_v7 = vpop.permute.xlu1 %10164  ;;  %v10498_v5 = vpack.i.bf16 %v3220_v33, %v3219_v20  ;;  %v3227_v20 = vld [vmem:[#allocation4 + $0x7c] sm:$0xff]  ;;  %v3225_v33 = vld [vmem:[#allocation4 + $0x64] sm:$0xff] }
 0x37f   : > { %19444 = vst [vmem:[#allocation68_spill] sm:$0xff] %v14359_v19  ;;  %19445 = vst [vmem:[#allocation67_spill] sm:$0xff] %v14361_v7  ;;  %v14671_v7 = vld [vmem:[#allocation4 + $0xf8] sm:$0xff] }
 0x380   : > { %10459 = vrot.lane.b32.xlu0 %v10458_v8, %s11872_s19  ;;  %10454 = vrot.lane.b32.xlu1 %v10453_v44, %s11872_s19  ;;  %v3215_v8 = vld [vmem:[#allocation4 + $0x16b] sm:$0xff]  ;;  %v3216_v44 = vld [vmem:[#allocation4 + $0x173] sm:$0xff]  ;;  %19546 = vst [vmem:[#allocation184_spill] sm:$0xff] %v14671_v7  ;;  %v9942_v7 = vunpack.i.h.bf16 %v14212_v38 }
 0x382   : > { %v14365_v10 = vpop.permute.xlu0 %10179  ;;  %v14367_v61 = vpop.permute.xlu1 %10174 }
 0x383   : > { %19446 = vst [vmem:[#allocation70_spill] sm:$0xff] %v14365_v10  ;;  %19447 = vst [vmem:[#allocation69_spill] sm:$0xff] %v14367_v61  ;;  %v3213_v10 = vld [vmem:[#allocation4 + $0x153] sm:$0xff] }
 0x384   : > { %10469 = vrot.lane.b32.xlu0 %v10468_v54, %s11872_s19  ;;  %10464 = vrot.lane.b32.xlu1 %v10463_v26, %s11872_s19  ;;  %v10488_v54 = vpack.i.bf16 %v3216_v44, %v3215_v8  ;;  %v10483_v26 = vpack.i.bf16 %v3214_v55, %v3213_v10  ;;  %v14669_v61 = vld [vmem:[#allocation4 + $0xf0] sm:$0xff] }
 0x385   : > { %19545 = vst [vmem:[#allocation183_spill] sm:$0xff] %v14669_v61 }
 0x386   : > { %v14371_v4 = vpop.permute.xlu0 %10189  ;;  %v14373_v48 = vpop.permute.xlu1 %10184 }
 0x387   : > { %19448 = vst [vmem:[#allocation72_spill] sm:$0xff] %v14371_v4  ;;  %19449 = vst [vmem:[#allocation71_spill] sm:$0xff] %v14373_v48  ;;  %v3217_v4 = vld [vmem:[#allocation4 + $0x183] sm:$0xff]  ;;  %v3218_v48 = vld [vmem:[#allocation4 + $0x18b] sm:$0xff] }
 0x388   : > { %10479 = vrot.lane.b32.xlu0 %v10478_v35, %s11872_s19  ;;  %10474 = vrot.lane.b32.xlu1 %v10473_v58, %s11872_s19  ;;  %v10493_v34 = vpack.i.bf16 %v3218_v48, %v3217_v4  ;;  %v3223_v35 = vld [vmem:[#allocation4 + $0x4c] sm:$0xff]  ;;  %v3224_v58 = vld [vmem:[#allocation4 + $0x54] sm:$0xff]  ;;  %v3228_v4 = vld [vmem:[#allocation4 + $0x84] sm:$0xff] }
 0x389   : > { %v10508_v8 = vpack.i.bf16 %v3224_v58, %v3223_v35  ;;  %v3226_v48 = vld [vmem:[#allocation4 + $0x6c] sm:$0xff] }
 0x38a   : > { %v14377_v0 = vpop.permute.xlu0 %10199  ;;  %v14379_v59 = vpop.permute.xlu1 %10194 }
 0x38b   : > { %19450 = vst [vmem:[#allocation73_spill] sm:$0xff] %v14377_v0  ;;  %19451 = vst [vmem:[#allocation74_spill] sm:$0xff] %v14379_v59  ;;  %v3222_v0 = vld [vmem:[#allocation4 + $0x3c] sm:$0xff]  ;;  %v3231_v59 = vld [vmem:[#allocation4 + $0xac] sm:$0xff] }
 0x38c   : > { %10489 = vrot.lane.b32.xlu0 %v10488_v54, %s11872_s19  ;;  %10484 = vrot.lane.b32.xlu1 %v10483_v26, %s11872_s19  ;;  %v10503_v44 = vpack.i.bf16 %v3222_v0, %v3221_v24  ;;  %v3232_v24 = vld [vmem:[#allocation4 + $0xb4] sm:$0xff]  ;;  %v3230_v0 = vld [vmem:[#allocation4 + $0x9c] sm:$0xff] }
 0x38e   : > { %v14383_v36 = vpop.permute.xlu0 %10209  ;;  %v14385_v12 = vpop.permute.xlu1 %10204 }
 0x38f   : > { %19452 = vst [vmem:[#allocation75_spill] sm:$0xff] %v14383_v36  ;;  %19453 = vst [vmem:[#allocation76_spill] sm:$0xff] %v14385_v12  ;;  %v14665_v12 = vld [vmem:[#allocation4 + $0xcc] sm:$0xff]  ;;  %v14667_v36 = vld [vmem:[#allocation4 + $0xf4] sm:$0xff] }
 0x390   : > { %10499 = vrot.lane.b32.xlu0 %v10498_v5, %s11877_s21  ;;  %10494 = vrot.lane.b32.xlu1 %v10493_v34, %s11872_s19  ;;  %v10518_v5 = vpack.i.bf16 %v3228_v4, %v3227_v20  ;;  %v10513_v34 = vpack.i.bf16 %v3226_v48, %v3225_v33  ;;  %v3236_v20 = vld [vmem:[#allocation4 + $0xe4] sm:$0xff]  ;;  %v3234_v33 = vld [vmem:[#allocation4 + $0xcc] sm:$0xff] }
 0x392   : > { %v14389_v55 = vpop.permute.xlu0 %10219  ;;  %v14391_v10 = vpop.permute.xlu1 %10214 }
 0x393   : > { %19454 = vst [vmem:[#allocation78_spill] sm:$0xff] %v14389_v55  ;;  %19455 = vst [vmem:[#allocation85_spill] sm:$0xff] %v14391_v10  ;;  %v3229_v55 = vld [vmem:[#allocation4 + $0x94] sm:$0xff]  ;;  %v14681_v10 = vld [vmem:[#allocation4 + $0x10b] sm:$0xff] }
 0x394   : > { %10509 = vrot.lane.b32.xlu0 %v10508_v8, %s11877_s21  ;;  %10504 = vrot.lane.b32.xlu1 %v10503_v44, %s11877_s21  ;;  %v10528_v8 = vpack.i.bf16 %v3232_v24, %v3231_v59  ;;  %v10523_v44 = vpack.i.bf16 %v3230_v0, %v3229_v55  ;;  %v3238_v59 = vld [vmem:[#allocation4 + $0xfc] sm:$0xff] }
 0x396   : > { %v14395_v54 = vpop.permute.xlu0 %10229  ;;  %v14397_v26 = vpop.permute.xlu1 %10224 }
 0x397   : > { %19456 = vst [vmem:[#allocation77_spill] sm:$0xff] %v14395_v54  ;;  %19457 = vst [vmem:[#allocation79_spill] sm:$0xff] %v14397_v26  ;;  %v3233_v54 = vld [vmem:[#allocation4 + $0xc4] sm:$0xff]  ;;  %v3239_v26 = vld [vmem:[#allocation4 + $0x10c] sm:$0xff] }
 0x398   : > { %10519 = vrot.lane.b32.xlu0 %v10518_v5, %s11877_s21  ;;  %10514 = vrot.lane.b32.xlu1 %v10513_v34, %s11877_s21  ;;  %v10538_v5 = vpack.i.bf16 %v3236_v20, %v3235_v43  ;;  %v10533_v34 = vpack.i.bf16 %v3234_v33, %v3233_v54  ;;  %v3241_v43 = vld [vmem:[#allocation4 + $0x124] sm:$0xff]  ;;  %v3242_v54 = vld [vmem:[#allocation4 + $0x12c] sm:$0xff] }
 0x399   : > { %v19464_v20 = vld [vmem:[#allocation43_spill] sm:$0xff] }
 0x39a   : > { %v14401_v35 = vpop.permute.xlu0 %10239  ;;  %v14403_v58 = vpop.permute.xlu1 %10234 }
 0x39b   : > { %19458 = vst [vmem:[#allocation91_spill] sm:$0xff] %v14401_v35  ;;  %19459 = vst [vmem:[#allocation93_spill] sm:$0xff] %v14403_v58  ;;  %v3240_v35 = vld [vmem:[#allocation4 + $0x114] sm:$0xff] }
 0x39c   : > { %10529 = vrot.lane.b32.xlu0 %v10528_v8, %s11877_s21  ;;  %10524 = vrot.lane.b32.xlu1 %v10523_v44, %s11877_s21  ;;  %v10548_v0 = vpack.i.bf16 %v3240_v35, %v3239_v26  ;;  %v10543_v8 = vpack.i.bf16 %v3238_v59, %v3237_v63  ;;  %v3243_v44 = vld [vmem:[#allocation4 + $0x13c] sm:$0xff]  ;;  %v10553_v35 = vpack.i.bf16 %v3242_v54, %v3241_v43  ;;  %v3247_v59 = vld [vmem:[#allocation4 + $0x16c] sm:$0xff] }
 0x39d   : > { %v10558_v63 = vpack.i.bf16 %v3244_v22, %v3243_v44  ;;  %v3250_v22 = vld [vmem:[#allocation4 + $0x18c] sm:$0xff] }
 0x39e   : > { %v14407_v4 = vpop.permute.xlu0 %10249  ;;  %v14409_v48 = vpop.permute.xlu1 %10244 }
 0x39f   : > { %19460 = vst [vmem:[#allocation40_spill] sm:$0xff] %v14407_v4  ;;  %19461 = vst [vmem:[#allocation41_spill] sm:$0xff] %v14409_v48  ;;  %v14655_v48 = vld [vmem:[#allocation4 + $0xe0] sm:$0xff] }
 0x3a0   : > { %10539 = vrot.lane.b32.xlu0 %v10538_v5, %s11877_s21  ;;  %10534 = vrot.lane.b32.xlu1 %v10533_v34, %s11877_s21  ;;  %19544 = vst [vmem:[#allocation182_spill] sm:$0xff] %v14655_v48  ;;  %v14769_v48 = vld [vmem:[#allocation4 + $0x184] sm:$0xff] }
 0x3a2   : > { %v14413_v55 = vpop.permute.xlu0 %10259  ;;  %v14415_v24 = vpop.permute.xlu1 %10254 }
 0x3a3   : > { %19462 = vst [vmem:[#allocation90_spill] sm:$0xff] %v14413_v55  ;;  %19463 = vst [vmem:[#allocation92_spill] sm:$0xff] %v14415_v24  ;;  %v3248_v55 = vld [vmem:[#allocation4 + $0x174] sm:$0xff] }
 0x3a4   : > { %10549 = vrot.lane.b32.xlu0 %v10548_v0, %s11877_s21  ;;  %10544 = vrot.lane.b32.xlu1 %v10543_v8, %s11877_s21  ;;  %v10563_v8 = vpack.i.bf16 %v3246_v60, %v3245_v49  ;;  %v14653_v24 = vld [vmem:[#allocation4 + $0xd8] sm:$0xff] }
 0x3a5   : > { %v2703_v58 = vpop.f32.mrb[32].mxu1  ;;  %19543 = vst [vmem:[#allocation181_spill] sm:$0xff] %v14653_v24 }
 0x3a6   : > { %v2704_v33 = vadd.f32 %v2703_v58, %v19464_v20  ;;  %v2705_v3 = vpop.f32.mrb[33].mxu1  ;;  %v14422_v34 = vpop.permute.xlu0 %10269 }
 0x3a7   : > { %v2706_v5 = vadd.f32 %v2705_v3, %v19464_v20  ;;  %19465 = vst [vmem:[#allocation94_spill] sm:$0xff] %v14422_v34  ;;  %v14424_v26 = vpop.permute.xlu1 %10264  ;;  %v10568_v3 = vpack.i.bf16 %v3248_v55, %v3247_v59  ;;  %v3251_v20 = vld [vmem:[#allocation4 + $0x30] sm:$0xff]  ;;  %v3260_v34 = vld [vmem:[#allocation4 + $0x98] sm:$0xff] }
 0x3a8   : > { %8537 = vst [vmem:[%s12761_s29 + $0x10] sm:$0xff] %v2704_v33  ;;  %19466 = vst [vmem:[#allocation43_spill] sm:$0xff] %v14424_v26  ;;  %10559 = vrot.lane.b32.xlu0 %v10558_v63, %s11877_s21  ;;  %10554 = vrot.lane.b32.xlu1 %v10553_v35, %s11877_s21  ;;  %v3252_v33 = vld [vmem:[#allocation4 + $0x38] sm:$0xff]  ;;  %v3249_v26 = vld [vmem:[#allocation4 + $0x184] sm:$0xff] }
 0x3a9   : > { %8538 = vst [vmem:[%s12761_s29 + $0x18] sm:$0xff] %v2706_v5  ;;  %v10578_v54 = vpack.i.bf16 %v3252_v33, %v3251_v20  ;;  %v10573_v5 = vpack.i.bf16 %v3250_v22, %v3249_v26  ;;  %v3255_v63 = vld [vmem:[#allocation4 + $0x60] sm:$0xff]  ;;  %v3256_v35 = vld [vmem:[#allocation4 + $0x68] sm:$0xff] }
 0x3aa   : > { %v14429_v58 = vpop.permute.xlu0 %10279  ;;  %v10588_v55 = vpack.i.bf16 %v3256_v35, %v3255_v63  ;;  %v3258_v20 = vld [vmem:[#allocation4 + $0x80] sm:$0xff] }
 0x3ab   : > { %19467 = vst [vmem:[#allocation105_spill] sm:$0xff] %v14429_v58  ;;  %v14431_v0 = vpop.permute.xlu1 %10274  ;;  %v3253_v58 = vld [vmem:[#allocation4 + $0x48] sm:$0xff] }
 0x3ac   : > { %19468 = vst [vmem:[#allocation106_spill] sm:$0xff] %v14431_v0  ;;  %10569 = vrot.lane.b32.xlu0 %v10568_v3, %s11877_s21  ;;  %10564 = vrot.lane.b32.xlu1 %v10563_v8, %s11877_s21  ;;  %v3254_v0 = vld [vmem:[#allocation4 + $0x50] sm:$0xff]  ;;  %v3257_v3 = vld [vmem:[#allocation4 + $0x78] sm:$0xff] }
 0x3ad   : > { %v10583_v59 = vpack.i.bf16 %v3254_v0, %v3253_v58  ;;  %v3259_v8 = vld [vmem:[#allocation4 + $0x90] sm:$0xff] }
 0x3ae   : > { %v14435_v44 = vpop.permute.xlu0 %10289  ;;  %v10598_v22 = vpack.i.bf16 %v3260_v34, %v3259_v8 }
 0x3af   : > { %19469 = vst [vmem:[#allocation107_spill] sm:$0xff] %v14435_v44  ;;  %v14437_v43 = vpop.permute.xlu1 %10284  ;;  %v14651_v44 = vld [vmem:[#allocation4 + $0xdc] sm:$0xff] }
 0x3b0   : > { %19470 = vst [vmem:[#allocation108_spill] sm:$0xff] %v14437_v43  ;;  %10579 = vrot.lane.b32.xlu0 %v10578_v54, %s11878_s22  ;;  %10574 = vrot.lane.b32.xlu1 %v10573_v5, %s11877_s21  ;;  %v10593_v54 = vpack.i.bf16 %v3258_v20, %v3257_v3  ;;  %v3261_v5 = vld [vmem:[#allocation4 + $0xa8] sm:$0xff]  ;;  %v14649_v43 = vld [vmem:[#allocation4 + $0xb4] sm:$0xff] }
 0x3b1   : > { %v10603_v35 = vpack.i.bf16 %v3262_v39, %v3261_v5  ;;  %v3271_v39 = vld [vmem:[#allocation4 + $0x120] sm:$0xff] }
 0x3b2   : > { %v14441_v60 = vpop.permute.xlu0 %10299 }
 0x3b3   : > { %19471 = vst [vmem:[#allocation109_spill] sm:$0xff] %v14441_v60  ;;  %v14443_v49 = vpop.permute.xlu1 %10294  ;;  %v3263_v60 = vld [vmem:[#allocation4 + $0xc0] sm:$0xff] }
 0x3b4   : > { %19472 = vst [vmem:[#allocation110_spill] sm:$0xff] %v14443_v49  ;;  %10589 = vrot.lane.b32.xlu0 %v10588_v55, %s11878_s22  ;;  %10584 = vrot.lane.b32.xlu1 %v10583_v59, %s11878_s22  ;;  %v10608_v63 = vpack.i.bf16 %v3264_v30, %v3263_v60  ;;  %v3265_v55 = vld [vmem:[#allocation4 + $0xd8] sm:$0xff]  ;;  %v3267_v59 = vld [vmem:[#allocation4 + $0xf0] sm:$0xff]  ;;  %v3269_v30 = vld [vmem:[#allocation4 + $0x108] sm:$0xff] }
 0x3b5   : > { %v14647_v49 = vld [vmem:[#allocation4 + $0x9c] sm:$0xff] }
 0x3b6   : > { %v14447_v26 = vpop.permute.xlu0 %10309 }
 0x3b7   : > { %19473 = vst [vmem:[#allocation111_spill] sm:$0xff] %v14447_v26  ;;  %v14449_v33 = vpop.permute.xlu1 %10304  ;;  %v3268_v26 = vld [vmem:[#allocation4 + $0xf8] sm:$0xff] }
 0x3b8   : > { %19474 = vst [vmem:[#allocation112_spill] sm:$0xff] %v14449_v33  ;;  %10599 = vrot.lane.b32.xlu0 %v10598_v22, %s11878_s22  ;;  %10594 = vrot.lane.b32.xlu1 %v10593_v54, %s11878_s22  ;;  %v3266_v33 = vld [vmem:[#allocation4 + $0xe0] sm:$0xff]  ;;  %v10618_v8 = vpack.i.bf16 %v3268_v26, %v3267_v59  ;;  %v3272_v22 = vld [vmem:[#allocation4 + $0x128] sm:$0xff]  ;;  %v3270_v54 = vld [vmem:[#allocation4 + $0x110] sm:$0xff] }
 0x3b9   : > { %v10613_v20 = vpack.i.bf16 %v3266_v33, %v3265_v55  ;;  %v3275_v26 = vld [vmem:[#allocation4 + $0x150] sm:$0xff]  ;;  %v3273_v33 = vld [vmem:[#allocation4 + $0x138] sm:$0xff] }
 0x3ba   : > { %v14453_v58 = vpop.permute.xlu0 %10319 }
 0x3bb   : > { %19475 = vst [vmem:[#allocation113_spill] sm:$0xff] %v14453_v58  ;;  %v14455_v0 = vpop.permute.xlu1 %10314  ;;  %v3274_v58 = vld [vmem:[#allocation4 + $0x140] sm:$0xff] }
 0x3bc   : > { %19476 = vst [vmem:[#allocation114_spill] sm:$0xff] %v14455_v0  ;;  %10609 = vrot.lane.b32.xlu0 %v10608_v63, %s11878_s22  ;;  %10604 = vrot.lane.b32.xlu1 %v10603_v35, %s11878_s22  ;;  %v10628_v63 = vpack.i.bf16 %v3272_v22, %v3271_v39  ;;  %v10623_v35 = vpack.i.bf16 %v3270_v54, %v3269_v30  ;;  %v3276_v0 = vld [vmem:[#allocation4 + $0x158] sm:$0xff]  ;;  %v3279_v22 = vld [vmem:[#allocation4 + $0x180] sm:$0xff]  ;;  %v3277_v54 = vld [vmem:[#allocation4 + $0x168] sm:$0xff] }
 0x3be   : > { %v14459_v34 = vpop.permute.xlu0 %10329 }
 0x3bf   : > { %19477 = vst [vmem:[#allocation115_spill] sm:$0xff] %v14459_v34  ;;  %v14461_v3 = vpop.permute.xlu1 %10324  ;;  %v14645_v34 = vld [vmem:[#allocation4 + $0xdb] sm:$0xff] }
 0x3c0   : > { %19478 = vst [vmem:[#allocation116_spill] sm:$0xff] %v14461_v3  ;;  %10619 = vrot.lane.b32.xlu0 %v10618_v8, %s11878_s22  ;;  %10614 = vrot.lane.b32.xlu1 %v10613_v20, %s11878_s22  ;;  %v10638_v8 = vpack.i.bf16 %v3276_v0, %v3275_v26  ;;  %v10633_v20 = vpack.i.bf16 %v3274_v58, %v3273_v33  ;;  %v3281_v58 = vld [vmem:[#allocation4 + $0x198] sm:$0xff] }
 0x3c1   : > { %v14643_v3 = vld [vmem:[#allocation4 + $0xf3] sm:$0xff] }
 0x3c2   : > { %v14465_v60 = vpop.permute.xlu0 %10339 }
 0x3c3   : > { %19479 = vst [vmem:[#allocation117_spill] sm:$0xff] %v14465_v60  ;;  %v14467_v5 = vpop.permute.xlu1 %10334  ;;  %v3278_v60 = vld [vmem:[#allocation4 + $0x170] sm:$0xff] }
 0x3c4   : > { %19480 = vst [vmem:[#allocation118_spill] sm:$0xff] %v14467_v5  ;;  %10629 = vrot.lane.b32.xlu0 %v10628_v63, %s11878_s22  ;;  %10624 = vrot.lane.b32.xlu1 %v10623_v35, %s11878_s22  ;;  %v10648_v63 = vpack.i.bf16 %v3280_v21, %v3279_v22  ;;  %v10643_v35 = vpack.i.bf16 %v3278_v60, %v3277_v54  ;;  %v14627_v5 = vld [vmem:[#allocation4 + $0x90] sm:$0xff] }
 0x3c5   : > { %19537 = vst [vmem:[#allocation175_spill] sm:$0xff] %v14627_v5  ;;  %v14737_v5 = vld [vmem:[#allocation4 + $0x10c] sm:$0xff] }
 0x3c6   : > { %v14471_v55 = vpop.permute.xlu0 %10349 }
 0x3c7   : > { %19481 = vst [vmem:[#allocation119_spill] sm:$0xff] %v14471_v55  ;;  %v14473_v59 = vpop.permute.xlu1 %10344  ;;  %v3284_v55 = vld [vmem:[#allocation4 + $0x39] sm:$0xff] }
 0x3c8   : > { %19482 = vst [vmem:[#allocation120_spill] sm:$0xff] %v14473_v59  ;;  %10639 = vrot.lane.b32.xlu0 %v10638_v8, %s11878_s22  ;;  %10634 = vrot.lane.b32.xlu1 %v10633_v20, %s11878_s22  ;;  %v10658_v33 = vpack.i.bf16 %v3284_v55, %v3283_v2  ;;  %v10653_v8 = vpack.i.bf16 %v3282_v57, %v3281_v58  ;;  %v3287_v20 = vld [vmem:[#allocation4 + $0x61] sm:$0xff]  ;;  %v3285_v59 = vld [vmem:[#allocation4 + $0x49] sm:$0xff] }
 0x3c9   : > { %v3290_v2 = vld [vmem:[#allocation4 + $0x81] sm:$0xff] }
 0x3ca   : > { %v14477_v39 = vpop.permute.xlu0 %10359 }
 0x3cb   : > { %19483 = vst [vmem:[#allocation121_spill] sm:$0xff] %v14477_v39  ;;  %v14479_v30 = vpop.permute.xlu1 %10354  ;;  %v3288_v39 = vld [vmem:[#allocation4 + $0x69] sm:$0xff] }
 0x3cc   : > { %19484 = vst [vmem:[#allocation122_spill] sm:$0xff] %v14479_v30  ;;  %10649 = vrot.lane.b32.xlu0 %v10648_v63, %s11878_s22  ;;  %10644 = vrot.lane.b32.xlu1 %v10643_v35, %s11878_s22  ;;  %v3286_v30 = vld [vmem:[#allocation4 + $0x51] sm:$0xff]  ;;  %v10668_v22 = vpack.i.bf16 %v3288_v39, %v3287_v20  ;;  %v3289_v63 = vld [vmem:[#allocation4 + $0x79] sm:$0xff] }
 0x3cd   : > { %v10663_v54 = vpack.i.bf16 %v3286_v30, %v3285_v59  ;;  %v3291_v35 = vld [vmem:[#allocation4 + $0x91] sm:$0xff] }
 0x3ce   : > { %v14483_v0 = vpop.permute.xlu0 %10369  ;;  %v10678_v58 = vpack.i.bf16 %v3292_v56, %v3291_v35 }
 0x3cf   : > { %19485 = vst [vmem:[#allocation123_spill] sm:$0xff] %v14483_v0  ;;  %v14485_v26 = vpop.permute.xlu1 %10364  ;;  %v14639_v0 = vld [vmem:[#allocation4 + $0xc8] sm:$0xff] }
 0x3d0   : > { %19486 = vst [vmem:[#allocation124_spill] sm:$0xff] %v14485_v26  ;;  %10659 = vrot.lane.b32.xlu0 %v10658_v33, %s11879_s26  ;;  %10654 = vrot.lane.b32.xlu1 %v10653_v8, %s11878_s22  ;;  %v10673_v33 = vpack.i.bf16 %v3290_v2, %v3289_v63  ;;  %v3293_v8 = vld [vmem:[#allocation4 + $0xa9] sm:$0xff]  ;;  %v14637_v26 = vld [vmem:[#allocation4 + $0xc0] sm:$0xff]  ;;  %19542 = vst [vmem:[#allocation180_spill] sm:$0xff] %v14639_v0 }
 0x3d1   : > { %v10683_v20 = vpack.i.bf16 %v3294_v46, %v3293_v8  ;;  %v3303_v46 = vld [vmem:[#allocation4 + $0x121] sm:$0xff]  ;;  %19541 = vst [vmem:[#allocation179_spill] sm:$0xff] %v14637_v26 }
 0x3d2   : > { %v14489_v21 = vpop.permute.xlu0 %10379 }
 0x3d3   : > { %19487 = vst [vmem:[#allocation125_spill] sm:$0xff] %v14489_v21  ;;  %v14491_v60 = vpop.permute.xlu1 %10374  ;;  %v3295_v21 = vld [vmem:[#allocation4 + $0xc1] sm:$0xff] }
 0x3d4   : > { %19488 = vst [vmem:[#allocation126_spill] sm:$0xff] %v14491_v60  ;;  %10669 = vrot.lane.b32.xlu0 %v10668_v22, %s11879_s26  ;;  %10664 = vrot.lane.b32.xlu1 %v10663_v54, %s11879_s26  ;;  %v10688_v30 = vpack.i.bf16 %v3296_v15, %v3295_v21  ;;  %v3297_v22 = vld [vmem:[#allocation4 + $0xd9] sm:$0xff]  ;;  %v3299_v54 = vld [vmem:[#allocation4 + $0xf1] sm:$0xff]  ;;  %v3301_v15 = vld [vmem:[#allocation4 + $0x109] sm:$0xff] }
 0x3d5   : > { %v14625_v60 = vld [vmem:[#allocation4 + $0x68] sm:$0xff] }
 0x3d6   : > { %v14495_v57 = vpop.permute.xlu0 %10389  ;;  %19536 = vst [vmem:[#allocation174_spill] sm:$0xff] %v14625_v60  ;;  %v14805_v60 = vld [vmem:[#allocation4 + $0x110] sm:$0xff] }
 0x3d7   : > { %19489 = vst [vmem:[#allocation127_spill] sm:$0xff] %v14495_v57  ;;  %v14497_v55 = vpop.permute.xlu1 %10384  ;;  %v3300_v57 = vld [vmem:[#allocation4 + $0xf9] sm:$0xff] }
 0x3d8   : > { %19490 = vst [vmem:[#allocation128_spill] sm:$0xff] %v14497_v55  ;;  %10679 = vrot.lane.b32.xlu0 %v10678_v58, %s11879_s26  ;;  %10674 = vrot.lane.b32.xlu1 %v10673_v33, %s11879_s26  ;;  %v3298_v55 = vld [vmem:[#allocation4 + $0xe1] sm:$0xff]  ;;  %v10698_v35 = vpack.i.bf16 %v3300_v57, %v3299_v54  ;;  %v3304_v58 = vld [vmem:[#allocation4 + $0x129] sm:$0xff]  ;;  %v3302_v33 = vld [vmem:[#allocation4 + $0x111] sm:$0xff] }
 0x3d9   : > { %v10693_v2 = vpack.i.bf16 %v3298_v55, %v3297_v22  ;;  %v3307_v57 = vld [vmem:[#allocation4 + $0x151] sm:$0xff]  ;;  %v3305_v55 = vld [vmem:[#allocation4 + $0x139] sm:$0xff] }
 0x3da   : > { %v14501_v59 = vpop.permute.xlu0 %10399 }
 0x3db   : > { %19491 = vst [vmem:[#allocation129_spill] sm:$0xff] %v14501_v59  ;;  %v14503_v39 = vpop.permute.xlu1 %10394  ;;  %v3306_v59 = vld [vmem:[#allocation4 + $0x141] sm:$0xff] }
 0x3dc   : > { %19492 = vst [vmem:[#allocation130_spill] sm:$0xff] %v14503_v39  ;;  %10689 = vrot.lane.b32.xlu0 %v10688_v30, %s11879_s26  ;;  %10684 = vrot.lane.b32.xlu1 %v10683_v20, %s11879_s26  ;;  %v10708_v30 = vpack.i.bf16 %v3304_v58, %v3303_v46  ;;  %v10703_v20 = vpack.i.bf16 %v3302_v33, %v3301_v15  ;;  %v3308_v39 = vld [vmem:[#allocation4 + $0x159] sm:$0xff]  ;;  %v3311_v58 = vld [vmem:[#allocation4 + $0x181] sm:$0xff]  ;;  %v3309_v33 = vld [vmem:[#allocation4 + $0x169] sm:$0xff] }
 0x3de   : > { %v14507_v56 = vpop.permute.xlu0 %10409 }
 0x3df   : > { %19493 = vst [vmem:[#allocation131_spill] sm:$0xff] %v14507_v56  ;;  %v14509_v63 = vpop.permute.xlu1 %10404  ;;  %v3359_v56 = vld [vmem:[#allocation4 + $0xc3] sm:$0xff] }
 0x3e0   : > { %19494 = vst [vmem:[#allocation132_spill] sm:$0xff] %v14509_v63  ;;  %10699 = vrot.lane.b32.xlu0 %v10698_v35, %s11879_s26  ;;  %10694 = vrot.lane.b32.xlu1 %v10693_v2, %s11879_s26  ;;  %v10718_v35 = vpack.i.bf16 %v3308_v39, %v3307_v57  ;;  %v10713_v2 = vpack.i.bf16 %v3306_v59, %v3305_v55  ;;  %v3313_v59 = vld [vmem:[#allocation4 + $0x199] sm:$0xff] }
 0x3e2   : > { %v14513_v21 = vpop.permute.xlu0 %10419 }
 0x3e3   : > { %19495 = vst [vmem:[#allocation133_spill] sm:$0xff] %v14513_v21  ;;  %v14515_v8 = vpop.permute.xlu1 %10414  ;;  %v3310_v21 = vld [vmem:[#allocation4 + $0x171] sm:$0xff] }
 0x3e4   : > { %19496 = vst [vmem:[#allocation134_spill] sm:$0xff] %v14515_v8  ;;  %10709 = vrot.lane.b32.xlu0 %v10708_v30, %s11879_s26  ;;  %10704 = vrot.lane.b32.xlu1 %v10703_v20, %s11879_s26  ;;  %v10728_v30 = vpack.i.bf16 %v3312_v29, %v3311_v58  ;;  %v10723_v20 = vpack.i.bf16 %v3310_v21, %v3309_v33  ;;  %v3320_v29 = vld [vmem:[#allocation4 + $0x6a] sm:$0xff] }
 0x3e6   : > { %v14519_v22 = vpop.permute.xlu0 %10429 }
 0x3e7   : > { %19497 = vst [vmem:[#allocation135_spill] sm:$0xff] %v14519_v22  ;;  %v14521_v54 = vpop.permute.xlu1 %10424  ;;  %v3316_v22 = vld [vmem:[#allocation4 + $0x3a] sm:$0xff] }
 0x3e8   : > { %19498 = vst [vmem:[#allocation136_spill] sm:$0xff] %v14521_v54  ;;  %10719 = vrot.lane.b32.xlu0 %v10718_v35, %s11879_s26  ;;  %10714 = vrot.lane.b32.xlu1 %v10713_v2, %s11879_s26  ;;  %v10738_v55 = vpack.i.bf16 %v3316_v22, %v3315_v42  ;;  %v10733_v35 = vpack.i.bf16 %v3314_v1, %v3313_v59  ;;  %v3319_v2 = vld [vmem:[#allocation4 + $0x62] sm:$0xff]  ;;  %v3318_v54 = vld [vmem:[#allocation4 + $0x52] sm:$0xff]  ;;  %v3324_v1 = vld [vmem:[#allocation4 + $0x9a] sm:$0xff] }
 0x3e9   : > { %v10748_v33 = vpack.i.bf16 %v3320_v29, %v3319_v2  ;;  %v3322_v42 = vld [vmem:[#allocation4 + $0x82] sm:$0xff] }
 0x3ea   : > { %v14525_v46 = vpop.permute.xlu0 %10439 }
 0x3eb   : > { %19499 = vst [vmem:[#allocation137_spill] sm:$0xff] %v14525_v46  ;;  %v14527_v15 = vpop.permute.xlu1 %10434  ;;  %v3317_v46 = vld [vmem:[#allocation4 + $0x4a] sm:$0xff] }
 0x3ec   : > { %19500 = vst [vmem:[#allocation138_spill] sm:$0xff] %v14527_v15  ;;  %10729 = vrot.lane.b32.xlu0 %v10728_v30, %s11879_s26  ;;  %10724 = vrot.lane.b32.xlu1 %v10723_v20, %s11879_s26  ;;  %v10743_v30 = vpack.i.bf16 %v3318_v54, %v3317_v46  ;;  %v3323_v20 = vld [vmem:[#allocation4 + $0x92] sm:$0xff]  ;;  %v3321_v15 = vld [vmem:[#allocation4 + $0x7a] sm:$0xff]  ;;  %v3328_v54 = vld [vmem:[#allocation4 + $0xca] sm:$0xff] }
 0x3ed   : > { %v3326_v46 = vld [vmem:[#allocation4 + $0xb2] sm:$0xff] }
 0x3ee   : > { %v14531_v39 = vpop.permute.xlu0 %10449 }
 0x3ef   : > { %19501 = vst [vmem:[#allocation139_spill] sm:$0xff] %v14531_v39  ;;  %v14533_v57 = vpop.permute.xlu1 %10444  ;;  %v14623_v39 = vld [vmem:[#allocation4 + $0x60] sm:$0xff] }
 0x3f0   : > { %19502 = vst [vmem:[#allocation140_spill] sm:$0xff] %v14533_v57  ;;  %10739 = vrot.lane.b32.xlu0 %v10738_v55, %s11880_s27  ;;  %10734 = vrot.lane.b32.xlu1 %v10733_v35, %s11879_s26  ;;  %v10758_v55 = vpack.i.bf16 %v3324_v1, %v3323_v20  ;;  %v10753_v35 = vpack.i.bf16 %v3322_v42, %v3321_v15  ;;  %v3332_v15 = vld [vmem:[#allocation4 + $0xfa] sm:$0xff]  ;;  %v3330_v20 = vld [vmem:[#allocation4 + $0xe2] sm:$0xff]  ;;  %v14621_v57 = vld [vmem:[#allocation4 + $0xac] sm:$0xff] }
 0x3f1   : > { %19535 = vst [vmem:[#allocation173_spill] sm:$0xff] %v14623_v39  ;;  %v9951_v39 = vunpack.i.l.bf16 %v14216_v50 }
 0x3f2   : > { %v14537_v21 = vpop.permute.xlu0 %10459 }
 0x3f3   : > { %19503 = vst [vmem:[#allocation141_spill] sm:$0xff] %v14537_v21  ;;  %v14539_v58 = vpop.permute.xlu1 %10454  ;;  %v3325_v21 = vld [vmem:[#allocation4 + $0xaa] sm:$0xff] }
 0x3f4   : > { %19504 = vst [vmem:[#allocation142_spill] sm:$0xff] %v14539_v58  ;;  %10749 = vrot.lane.b32.xlu0 %v10748_v33, %s11880_s27  ;;  %10744 = vrot.lane.b32.xlu1 %v10743_v30, %s11880_s27  ;;  %v10768_v33 = vpack.i.bf16 %v3328_v54, %v3327_v53  ;;  %v10763_v30 = vpack.i.bf16 %v3326_v46, %v3325_v21  ;;  %v3335_v53 = vld [vmem:[#allocation4 + $0x122] sm:$0xff]  ;;  %v3333_v21 = vld [vmem:[#allocation4 + $0x10a] sm:$0xff] }
 0x3f5   : > { %v14615_v58 = vld [vmem:[#allocation4 + $0x6c] sm:$0xff] }
 0x3f6   : > { %v14543_v22 = vpop.permute.xlu0 %10469  ;;  %19533 = vst [vmem:[#allocation171_spill] sm:$0xff] %v14615_v58  ;;  %v3362_v58 = vld [vmem:[#allocation4 + $0xe3] sm:$0xff] }
 0x3f7   : > { %19505 = vst [vmem:[#allocation143_spill] sm:$0xff] %v14543_v22  ;;  %v14545_v59 = vpop.permute.xlu1 %10464  ;;  %v3329_v22 = vld [vmem:[#allocation4 + $0xda] sm:$0xff] }
 0x3f8   : > { %19506 = vst [vmem:[#allocation144_spill] sm:$0xff] %v14545_v59  ;;  %10759 = vrot.lane.b32.xlu0 %v10758_v55, %s11880_s27  ;;  %10754 = vrot.lane.b32.xlu1 %v10753_v35, %s11880_s27  ;;  %v10778_v55 = vpack.i.bf16 %v3332_v15, %v3331_v31  ;;  %v10773_v35 = vpack.i.bf16 %v3330_v20, %v3329_v22  ;;  %v3336_v59 = vld [vmem:[#allocation4 + $0x12a] sm:$0xff]  ;;  %v3339_v31 = vld [vmem:[#allocation4 + $0x152] sm:$0xff]  ;;  %v3337_v22 = vld [vmem:[#allocation4 + $0x13a] sm:$0xff] }
 0x3fa   : > { %v14549_v2 = vpop.permute.xlu0 %10479 }
 0x3fb   : > { %19507 = vst [vmem:[#allocation145_spill] sm:$0xff] %v14549_v2  ;;  %v14551_v29 = vpop.permute.xlu1 %10474  ;;  %v3334_v2 = vld [vmem:[#allocation4 + $0x112] sm:$0xff] }
 0x3fc   : > { %19508 = vst [vmem:[#allocation146_spill] sm:$0xff] %v14551_v29  ;;  %10769 = vrot.lane.b32.xlu0 %v10768_v33, %s11880_s27  ;;  %10764 = vrot.lane.b32.xlu1 %v10763_v30, %s11880_s27  ;;  %v10788_v33 = vpack.i.bf16 %v3336_v59, %v3335_v53  ;;  %v10783_v30 = vpack.i.bf16 %v3334_v2, %v3333_v21  ;;  %v3340_v29 = vld [vmem:[#allocation4 + $0x15a] sm:$0xff]  ;;  %v3343_v59 = vld [vmem:[#allocation4 + $0x182] sm:$0xff]  ;;  %v3341_v2 = vld [vmem:[#allocation4 + $0x16a] sm:$0xff] }
 0x3fe   : > { %v14555_v1 = vpop.permute.xlu0 %10489 }
 0x3ff   : > { %19509 = vst [vmem:[#allocation147_spill] sm:$0xff] %v14555_v1  ;;  %v14557_v42 = vpop.permute.xlu1 %10484  ;;  %v3354_v1 = vld [vmem:[#allocation4 + $0x83] sm:$0xff] }
 0x400   : > { %19510 = vst [vmem:[#allocation148_spill] sm:$0xff] %v14557_v42  ;;  %10779 = vrot.lane.b32.xlu0 %v10778_v55, %s11880_s27  ;;  %10774 = vrot.lane.b32.xlu1 %v10773_v35, %s11880_s27  ;;  %v10798_v55 = vpack.i.bf16 %v3340_v29, %v3339_v31  ;;  %v10793_v35 = vpack.i.bf16 %v3338_v16, %v3337_v22  ;;  %v3346_v42 = vld [vmem:[#allocation4 + $0x1a2] sm:$0xff]  ;;  %v3345_v16 = vld [vmem:[#allocation4 + $0x19a] sm:$0xff] }
 0x402   : > { %v14561_v54 = vpop.permute.xlu0 %10499 }
 0x403   : > { %19511 = vst [vmem:[#allocation149_spill] sm:$0xff] %v14561_v54  ;;  %v14563_v46 = vpop.permute.xlu1 %10494  ;;  %v3342_v54 = vld [vmem:[#allocation4 + $0x172] sm:$0xff] }
 0x404   : > { %19512 = vst [vmem:[#allocation150_spill] sm:$0xff] %v14563_v46  ;;  %10789 = vrot.lane.b32.xlu0 %v10788_v33, %s11880_s27  ;;  %10784 = vrot.lane.b32.xlu1 %v10783_v30, %s11880_s27  ;;  %v10808_v33 = vpack.i.bf16 %v3344_v40, %v3343_v59  ;;  %v10803_v30 = vpack.i.bf16 %v3342_v54, %v3341_v2  ;;  %v3347_v46 = vld [vmem:[#allocation4 + $0x33] sm:$0xff]  ;;  %v3352_v40 = vld [vmem:[#allocation4 + $0x6b] sm:$0xff] }
 0x406   : > { %v14567_v15 = vpop.permute.xlu0 %10509 }
 0x407   : > { %19513 = vst [vmem:[#allocation151_spill] sm:$0xff] %v14567_v15  ;;  %v14569_v20 = vpop.permute.xlu1 %10504  ;;  %v3348_v15 = vld [vmem:[#allocation4 + $0x3b] sm:$0xff] }
 0x408   : > { %19514 = vst [vmem:[#allocation152_spill] sm:$0xff] %v14569_v20  ;;  %10799 = vrot.lane.b32.xlu0 %v10798_v55, %s11880_s27  ;;  %10794 = vrot.lane.b32.xlu1 %v10793_v35, %s11880_s27  ;;  %v10818_v22 = vpack.i.bf16 %v3348_v15, %v3347_v46  ;;  %v10813_v55 = vpack.i.bf16 %v3346_v42, %v3345_v16  ;;  %v3351_v35 = vld [vmem:[#allocation4 + $0x63] sm:$0xff]  ;;  %v3350_v20 = vld [vmem:[#allocation4 + $0x53] sm:$0xff] }
 0x409   : > { %v10828_v2 = vpack.i.bf16 %v3352_v40, %v3351_v35  ;;  %v14591_v42 = vld [vmem:[#allocation4 + $0x34] sm:$0xff]  ;;  %v14593_v46 = vld [vmem:[#allocation4 + $0x3c] sm:$0xff]  ;;  %v14595_v15 = vld [vmem:[#allocation4 + $0x64] sm:$0xff] }
 0x40a   : > { %v14573_v53 = vpop.permute.xlu0 %10519  ;;  %19521 = vst [vmem:[#allocation159_spill] sm:$0xff] %v14591_v42  ;;  %19522 = vst [vmem:[#allocation160_spill] sm:$0xff] %v14593_v46  ;;  %v14597_v16 = vld [vmem:[#allocation4 + $0x4c] sm:$0xff]  ;;  %v14607_v40 = vld [vmem:[#allocation4 + $0x78] sm:$0xff] }
 0x40b   : > { %19515 = vst [vmem:[#allocation153_spill] sm:$0xff] %v14573_v53  ;;  %v14575_v21 = vpop.permute.xlu1 %10514  ;;  %v3349_v53 = vld [vmem:[#allocation4 + $0x4b] sm:$0xff]  ;;  %19523 = vst [vmem:[#allocation161_spill] sm:$0xff] %v14595_v15  ;;  %v3364_v15 = vld [vmem:[#allocation4 + $0xfb] sm:$0xff] }
 0x40c   : > { %19516 = vst [vmem:[#allocation154_spill] sm:$0xff] %v14575_v21  ;;  %10809 = vrot.lane.b32.xlu0 %v10808_v33, %s11880_s27  ;;  %10804 = vrot.lane.b32.xlu1 %v10803_v30, %s11880_s27  ;;  %v10823_v33 = vpack.i.bf16 %v3350_v20, %v3349_v53  ;;  %v3355_v30 = vld [vmem:[#allocation4 + $0x93] sm:$0xff]  ;;  %v3353_v21 = vld [vmem:[#allocation4 + $0x7b] sm:$0xff]  ;;  %19524 = vst [vmem:[#allocation162_spill] sm:$0xff] %v14597_v16 }
 0x40d   : > { %v3356_v20 = vld [vmem:[#allocation4 + $0x9b] sm:$0xff]  ;;  %v14603_v53 = vld [vmem:[#allocation4 + $0x48] sm:$0xff]  ;;  %v14605_v35 = vld [vmem:[#allocation4 + $0x50] sm:$0xff]  ;;  %19529 = vst [vmem:[#allocation167_spill] sm:$0xff] %v14607_v40  ;;  %v10833_v63 = vpack.i.bf16 %v3354_v1, %v3353_v21  ;;  %v10858_v40 = vpack.i.bf16 %v3364_v15, %v14643_v3 }
 0x40e   : > { %v14579_v29 = vpop.permute.xlu0 %10529  ;;  %19527 = vst [vmem:[#allocation165_spill] sm:$0xff] %v14603_v53  ;;  %19528 = vst [vmem:[#allocation166_spill] sm:$0xff] %v14605_v35  ;;  %v10838_v8 = vpack.i.bf16 %v3356_v20, %v3355_v30  ;;  %v3360_v30 = vld [vmem:[#allocation4 + $0xcb] sm:$0xff]  ;;  %v3358_v1 = vld [vmem:[#allocation4 + $0xb3] sm:$0xff]  ;;  %v9937_v35 = vunpack.i.h.bf16 %v14206_v11 }
 0x40f   : > { %19517 = vst [vmem:[#allocation155_spill] sm:$0xff] %v14579_v29  ;;  %v14581_v31 = vpop.permute.xlu1 %10524  ;;  %v14619_v29 = vld [vmem:[#allocation4 + $0x84] sm:$0xff]  ;;  %v10848_v23 = vpack.i.bf16 %v3360_v30, %v3359_v56  ;;  %v14707_v42 = vld [vmem:[#allocation4 + $0x19b] sm:$0xff]  ;;  %v9936_v30 = vunpack.i.l.bf16 %v14206_v11 }
 0x410   : > { %19518 = vst [vmem:[#allocation156_spill] sm:$0xff] %v14581_v31  ;;  %10819 = vrot.lane.b32.xlu0 %v10818_v22, %s11881_s28  ;;  %10814 = vrot.lane.b32.xlu1 %v10813_v55, %s11880_s27  ;;  %v14599_v22 = vld [vmem:[#allocation4 + $0x54] sm:$0xff]  ;;  %v14601_v55 = vld [vmem:[#allocation4 + $0x7c] sm:$0xff]  ;;  %19534 = vst [vmem:[#allocation172_spill] sm:$0xff] %v14619_v29 }
 0x411   : > { %19525 = vst [vmem:[#allocation163_spill] sm:$0xff] %v14599_v22  ;;  %19526 = vst [vmem:[#allocation164_spill] sm:$0xff] %v14601_v55  ;;  %v14617_v31 = vld [vmem:[#allocation4 + $0x94] sm:$0xff]  ;;  %v14631_v21 = vld [vmem:[#allocation4 + $0xc4] sm:$0xff] }
 0x412   : > { %v14585_v54 = vpop.permute.xlu0 %10539  ;;  %v14633_v20 = vld [vmem:[#allocation4 + $0xa8] sm:$0xff]  ;;  %v14683_v55 = vld [vmem:[#allocation4 + $0x113] sm:$0xff]  ;;  %v14687_v22 = vld [vmem:[#allocation4 + $0x15b] sm:$0xff] }
 0x413   : > { %19519 = vst [vmem:[#allocation157_spill] sm:$0xff] %v14585_v54  ;;  %v14587_v59 = vpop.permute.xlu1 %10534  ;;  %19539 = vst [vmem:[#allocation177_spill] sm:$0xff] %v14633_v20  ;;  %v14679_v16 = vld [vmem:[#allocation4 + $0x12b] sm:$0xff]  ;;  %v14685_v29 = vld [vmem:[#allocation4 + $0x153] sm:$0xff]  ;;  %v10863_v11 = vpack.i.bf16 %v14683_v55, %v14681_v10  ;;  %v9952_v55 = vunpack.i.h.bf16 %v14216_v50  ;;  %v9956_v50 = vunpack.i.l.bf16 %v14224_v13 }
 0x414   : > { %19520 = vst [vmem:[#allocation158_spill] sm:$0xff] %v14587_v59  ;;  %10829 = vrot.lane.b32.xlu0 %v10828_v2, %s11881_s28  ;;  %10824 = vrot.lane.b32.xlu1 %v10823_v33, %s11881_s28  ;;  %v14609_v2 = vld [vmem:[#allocation4 + $0x80] sm:$0xff]  ;;  %v3357_v59 = vld [vmem:[#allocation4 + $0xab] sm:$0xff]  ;;  %v14739_v46 = vld [vmem:[#allocation4 + $0x114] sm:$0xff]  ;;  %v10878_v24 = vpack.i.bf16 %v14687_v22, %v14685_v29 }
 0x415   : > { %19530 = vst [vmem:[#allocation168_spill] sm:$0xff] %v14609_v2  ;;  %v14693_v56 = vld [vmem:[#allocation4 + $0xe4] sm:$0xff]  ;;  %v14755_v15 = vld [vmem:[#allocation4 + $0x13c] sm:$0xff] }
 0x416   : > { %v14611_v33 = vpop.permute.xlu0 %10549  ;;  %v14721_v2 = vld [vmem:[#allocation4 + $0x1a3] sm:$0xff] }
 0x417   : > { %19531 = vst [vmem:[#allocation169_spill] sm:$0xff] %v14611_v33  ;;  %v14613_v54 = vpop.permute.xlu1 %10544  ;;  %v14629_v33 = vld [vmem:[#allocation4 + $0x98] sm:$0xff]  ;;  %v14725_v53 = vld [vmem:[#allocation4 + $0x124] sm:$0xff] }
 0x418   : > { %19532 = vst [vmem:[#allocation170_spill] sm:$0xff] %v14613_v54  ;;  %19538 = vst [vmem:[#allocation176_spill] sm:$0xff] %v14629_v33  ;;  %v14635_v54 = vld [vmem:[#allocation4 + $0xb0] sm:$0xff]  ;;  %10839 = vrot.lane.b32.xlu0 %v10838_v8, %s11881_s28  ;;  %10834 = vrot.lane.b32.xlu1 %v10833_v63, %s11881_s28  ;;  %v10843_v63 = vpack.i.bf16 %v3358_v1, %v3357_v59  ;;  %v14677_v8 = vld [vmem:[#allocation4 + $0x123] sm:$0xff] }
 0x419   : > { %19540 = vst [vmem:[#allocation178_spill] sm:$0xff] %v14635_v54  ;;  %v14699_v1 = vld [vmem:[#allocation4 + $0x183] sm:$0xff]  ;;  %v14741_v33 = vld [vmem:[#allocation4 + $0x154] sm:$0xff]  ;;  %v10868_v0 = vpack.i.bf16 %v14679_v16, %v14677_v8  ;;  %v9957_v8 = vunpack.i.h.bf16 %v14224_v13 }
 0x41a   : > { %v14673_v19 = vpop.permute.xlu0 %10559  ;;  %v14713_v59 = vld [vmem:[#allocation4 + $0xfc] sm:$0xff]  ;;  %v14788_v22 = vld [vmem:[#allocation4 + $0x1a4] sm:$0xff] }
 0x41b   : > { %19547 = vst [vmem:[#allocation185_spill] sm:$0xff] %v14673_v19  ;;  %v14675_v4 = vpop.permute.xlu1 %10554  ;;  %v14691_v19 = vld [vmem:[#allocation4 + $0x143] sm:$0xff]  ;;  %19552 = vst [vmem:[#allocation190_spill] sm:$0xff] %v14788_v22 }
 0x41c   : > { %19548 = vst [vmem:[#allocation186_spill] sm:$0xff] %v14675_v4  ;;  %v14701_v4 = vld [vmem:[#allocation4 + $0x18b] sm:$0xff]  ;;  %10849 = vrot.lane.b32.xlu0 %v10848_v23, %s11881_s28  ;;  %10844 = vrot.lane.b32.xlu1 %v10843_v63, %s11881_s28  ;;  %v10853_v23 = vpack.i.bf16 %v3362_v58, %v14645_v34  ;;  %v14753_v58 = vld [vmem:[#allocation4 + $0x15c] sm:$0xff]  ;;  %v10873_v34 = vpack.i.bf16 %v14691_v19, %v14689_v45  ;;  %v14784_v19 = vld [vmem:[#allocation4 + $0x174] sm:$0xff] }
 0x41d   : > { %v14757_v63 = vld [vmem:[#allocation4 + $0x144] sm:$0xff]  ;;  %v14786_v16 = vld [vmem:[#allocation4 + $0x19c] sm:$0xff] }
 0x41e   : > { %v14747_v26 = vpop.permute.xlu0 %10569  ;;  %19551 = vst [vmem:[#allocation189_spill] sm:$0xff] %v14786_v16  ;;  %v11796_v29 = vld [vmem:[#allocation4 + $0x80] sm:$0xff]  ;;  %v11797_v45 = vld [vmem:[#allocation4 + $0x78] sm:$0xff] }
 0x41f   : > { %19549 = vst [vmem:[#allocation187_spill] sm:$0xff] %v14747_v26  ;;  %v14749_v3 = vpop.permute.xlu1 %10564  ;;  %v14773_v26 = vld [vmem:[#allocation4 + $0x16c] sm:$0xff]  ;;  %v5664_v10 = vsel %vm426_vm1, %v11796_v29, %v9937_v35  ;;  %v5663_v61 = vsel %vm426_vm1, %v11797_v45, %v9936_v30 }
 0x420   : > { %19550 = vst [vmem:[#allocation188_spill] sm:$0xff] %v14749_v3  ;;  %v14771_v3 = vld [vmem:[#allocation4 + $0x18c] sm:$0xff]  ;;  %10859 = vrot.lane.b32.xlu0 %v10858_v40, %s11881_s28  ;;  %10854 = vrot.lane.b32.xlu1 %v10853_v23, %s11881_s28  ;;  %v9941_v40 = vunpack.i.l.bf16 %v14212_v38  ;;  %v11799_v23 = vld [vmem:[#allocation4 + $0x98] sm:$0xff]  ;;  %v5696_v13 = vsel %vm2299_vm5, %v5664_v10, %v9942_v7  ;;  %v10032_v10 = vunpack.i.h.bf16 %v14271_v28 }
 0x421   : > { %v11798_v29 = vld [vmem:[#allocation4 + $0x90] sm:$0xff]  ;;  %v14821_v35 = vld [vmem:[#allocation4 + $0x108] sm:$0xff]  ;;  %v5666_v30 = vsel %vm426_vm1, %v11799_v23, %v9952_v55  ;;  %v9967_v55 = vunpack.i.h.bf16 %v14234_v32  ;;  %v10031_v23 = vunpack.i.l.bf16 %v14271_v28 }
 0x422   : > { %v14799_v20 = vpop.permute.xlu0 %10579  ;;  %v5665_v45 = vsel %vm426_vm1, %v11798_v29, %v9951_v39  ;;  %v5695_v38 = vsel %vm2299_vm5, %v5663_v61, %v9941_v40  ;;  %v9947_v29 = vunpack.i.h.bf16 %v14220_v47  ;;  %v10022_v61 = vunpack.i.h.bf16 %v14266_v52 }
 0x423   : > { %19553 = vst [vmem:[#allocation191_spill] sm:$0xff] %v14799_v20  ;;  %v14801_v54 = vpop.permute.xlu1 %10574  ;;  %v9946_v20 = vunpack.i.l.bf16 %v14220_v47  ;;  %v10021_v40 = vunpack.i.l.bf16 %v14266_v52  ;;  %v5697_v7 = vsel %vm2299_vm5, %v5665_v45, %v9956_v50  ;;  %v5698_v47 = vsel %vm2299_vm5, %v5666_v30, %v9957_v8  ;;  %v11802_v45 = vld [vmem:[#allocation4 + $0x140] sm:$0xff] }
 0x424   : > { %19554 = vst [vmem:[#allocation192_spill] sm:$0xff] %v14801_v54  ;;  %10869 = vrot.lane.b32.xlu0 %v10868_v0, %s11881_s28  ;;  %10864 = vrot.lane.b32.xlu1 %v10863_v11, %s11881_s28  ;;  %v9961_v54 = vunpack.i.l.bf16 %v14226_v62  ;;  %v9962_v0 = vunpack.i.h.bf16 %v14226_v62  ;;  %v9966_v11 = vunpack.i.l.bf16 %v14234_v32  ;;  %v11800_v32 = vld [vmem:[#allocation4 + $0xa8] sm:$0xff]  ;;  %v10027_v52 = vunpack.i.h.bf16 %v14273_v6 }
 0x425   : > { %v14843_v62 = vsel %vm2332_vm6, %v5695_v38, %v9946_v20  ;;  %v10036_v50 = vunpack.i.l.bf16 %v14279_v17  ;;  %v14853_v8 = vsel %vm2332_vm6, %v5696_v13, %v9947_v29  ;;  %v11801_v20 = vld [vmem:[#allocation4 + $0xb0] sm:$0xff] }
 0x426   : > { %v14832_v16 = vpop.permute.xlu0 %10589  ;;  %v5667_v39 = vsel %vm426_vm1, %v11800_v32, %v9961_v54  ;;  %v5668_v30 = vsel %vm426_vm1, %v11801_v20, %v9962_v0  ;;  %v11803_v32 = vld [vmem:[#allocation4 + $0x138] sm:$0xff]  ;;  %v11804_v29 = vld [vmem:[#allocation4 + $0x150] sm:$0xff]  ;;  %v10042_v20 = vunpack.i.h.bf16 %v14287_v25 }
 0x427   : > { %19555 = vst [vmem:[#allocation193_spill] sm:$0xff] %v14832_v16  ;;  %v14834_v22 = vpop.permute.xlu1 %10584  ;;  %v5699_v28 = vsel %vm2299_vm5, %v5667_v39, %v9966_v11  ;;  %v5700_v54 = vsel %vm2299_vm5, %v5668_v30, %v9967_v55  ;;  %v5679_v13 = vsel %vm426_vm1, %v11803_v32, %v10021_v40  ;;  %v5681_v16 = vsel %vm426_vm1, %v11804_v29, %v10031_v23  ;;  %v11805_v0 = vld [vmem:[#allocation4 + $0x158] sm:$0xff]  ;;  %v19563_v29 = vld [vmem:[#allocation159_spill] sm:$0xff] }
 0x428   : > { %19556 = vst [vmem:[#allocation194_spill] sm:$0xff] %v14834_v22  ;;  %10879 = vrot.lane.b32.xlu0 %v10878_v24, %s11881_s28  ;;  %10874 = vrot.lane.b32.xlu1 %v10873_v34, %s11881_s28  ;;  %v10026_v22 = vunpack.i.l.bf16 %v14273_v6  ;;  %v10037_v24 = vunpack.i.h.bf16 %v14279_v17  ;;  %v5680_v6 = vsel %vm426_vm1, %v11802_v45, %v10022_v61  ;;  %v5682_v39 = vsel %vm426_vm1, %v11805_v0, %v10032_v10 }
 0x429   : > { %v10047_v17 = vunpack.i.h.bf16 %v14281_v51  ;;  %v10046_v11 = vunpack.i.l.bf16 %v14281_v51  ;;  %v19559_v55 = vpack.i.bf16 %v14701_v4, %v14699_v1  ;;  %v19560_v61 = vpack.i.bf16 %v14705_v18, %v14703_v27 }
 0x42a   : > { %v14858_v34 = vpop.permute.xlu0 %10599  ;;  %v5711_v40 = vsel %vm2299_vm5, %v5679_v13, %v10026_v22  ;;  %v5712_v23 = vsel %vm2299_vm5, %v5680_v6, %v10027_v52  ;;  %v5713_v10 = vsel %vm2299_vm5, %v5681_v16, %v10036_v50  ;;  %v10056_v51 = vunpack.i.l.bf16 %v14289_v41  ;;  %v19561_v52 = vld [vmem:[#allocation96_spill] sm:$0xff] }
 0x42b   : > { %19557 = vst [vmem:[#allocation195_spill] sm:$0xff] %v14858_v34  ;;  %v14860_v38 = vpop.permute.xlu1 %10594  ;;  %v5714_v30 = vsel %vm2299_vm5, %v5682_v39, %v10037_v24  ;;  %v10041_v45 = vunpack.i.l.bf16 %v14287_v25  ;;  %v10057_v4 = vunpack.i.h.bf16 %v14289_v41  ;;  %v10061_v1 = vunpack.i.l.bf16 %v14295_v37  ;;  %v19562_v13 = vld [vmem:[#allocation160_spill] sm:$0xff]  ;;  %v19566_v39 = vld [vmem:[#allocation102_spill] sm:$0xff] }
 0x42c   : > { %19558 = vst [vmem:[#allocation196_spill] sm:$0xff] %v14860_v38  ;;  %10889 = vrot.lane.b32.xlu0 %v19559_v55, %s11881_s28  ;;  %10884 = vrot.lane.b32.xlu1 %v19560_v61, %s11881_s28  ;;  %v10062_v27 = vunpack.i.h.bf16 %v14295_v37  ;;  %v10092_v22 = vunpack.i.h.bf16 %v14311_v9  ;;  %v10091_v16 = vunpack.i.l.bf16 %v14311_v9  ;;  %v10086_v50 = vunpack.i.l.bf16 %v19561_v52  ;;  %v11806_v9 = vld [vmem:[#allocation4 + $0x168] sm:$0xff]  ;;  %v11807_v55 = vld [vmem:[#allocation4 + $0x170] sm:$0xff]  ;;  %v19683_v38 = vld [vmem:[#allocation12_spill] sm:$0xff] }
 0x42d   : > { %v5731_v24 = vsel %vm2332_vm6, %v5699_v28, %v10046_v11  ;;  %v5732_v25 = vsel %vm2332_vm6, %v5700_v54, %v10047_v17  ;;  %v5730_v41 = vsel %vm2332_vm6, %v5698_v47, %v10042_v20  ;;  %v10087_v6 = vunpack.i.h.bf16 %v19561_v52  ;;  %v19567_v17 = vld [vmem:[#allocation104_spill] sm:$0xff] }
 0x42e   : > { %v14886_v32 = vpop.permute.xlu0 %10609  ;;  %v19564_v0 = vpack.i.bf16 %v19562_v13, %v19563_v29  ;;  %v19565_v37 = vpack.i.bf16 %v14721_v2, %v14707_v42  ;;  %v5683_v28 = vsel %vm426_vm1, %v11806_v9, %v10056_v51  ;;  %v10097_v54 = vunpack.i.h.bf16 %v19566_v39  ;;  %v19570_v9 = vld [vmem:[#allocation100_spill] sm:$0xff] }
 0x42f   : > { %v14888_v18 = vpop.permute.xlu1 %10604  ;;  %v10096_v47 = vunpack.i.l.bf16 %v19566_v39  ;;  %v10131_v11 = vunpack.i.l.bf16 %v19567_v17  ;;  %v5729_v20 = vsel %vm2332_vm6, %v5697_v7, %v10041_v45  ;;  %v5684_v61 = vsel %vm426_vm1, %v11807_v55, %v10057_v4  ;;  %v19569_v45 = vld [vmem:[#allocation103_spill] sm:$0xff] }
 0x430   : > { %10899 = vrot.lane.b32.xlu0 %v19564_v0, %s11882_s18  ;;  %10894 = vrot.lane.b32.xlu1 %v19565_v37, %s11881_s28  ;;  %v5715_v52 = vsel %vm2299_vm5, %v5683_v28, %v10061_v1  ;;  %v10132_v13 = vunpack.i.h.bf16 %v19567_v17  ;;  %v5716_v51 = vsel %vm2299_vm5, %v5684_v61, %v10062_v27  ;;  %v5745_v29 = vsel %vm2332_vm6, %v5713_v10, %v10091_v16  ;;  %v19571_v39 = vld [vmem:[#allocation171_spill] sm:$0xff]  ;;  %v19572_v17 = vld [vmem:[#allocation161_spill] sm:$0xff]  ;;  %v19575_v10 = vld [vmem:[#allocation162_spill] sm:$0xff] }
 0x431   : > { %v5746_v0 = vsel %vm2332_vm6, %v5714_v30, %v10092_v22  ;;  %v5743_v37 = vsel %vm2332_vm6, %v5711_v40, %v10086_v50  ;;  %v5744_v7 = vsel %vm2332_vm6, %v5712_v23, %v10087_v6  ;;  %v10127_v4 = vunpack.i.h.bf16 %v19569_v45  ;;  %v19574_v27 = vld [vmem:[#allocation163_spill] sm:$0xff]  ;;  %v19577_v6 = vld [vmem:[#allocation68_spill] sm:$0xff] }
 0x432   : > { %v14914_v42 = vpop.permute.xlu0 %10619  ;;  %v10126_v1 = vunpack.i.l.bf16 %v19569_v45  ;;  %v10136_v28 = vunpack.i.l.bf16 %v19570_v9  ;;  %v19573_v55 = vpack.i.bf16 %v19571_v39, %v19572_v17  ;;  %v19576_v16 = vpack.i.bf16 %v19574_v27, %v19575_v10  ;;  %v19578_v39 = vld [vmem:[#allocation67_spill] sm:$0xff] }
 0x433   : > { %19568 = vst [vmem:[#allocation96_spill] sm:$0xff] %v14914_v42  ;;  %v14916_v2 = vpop.permute.xlu1 %10614  ;;  %v5747_v40 = vsel %vm2332_vm6, %v5715_v52, %v10096_v47  ;;  %v5748_v23 = vsel %vm2332_vm6, %v5716_v51, %v10097_v54  ;;  %v5761_v30 = vsel %vm2365_vm7, %v5729_v20, %v10131_v11  ;;  %v10137_v22 = vunpack.i.h.bf16 %v19570_v9  ;;  %v19581_v52 = vld [vmem:[#allocation69_spill] sm:$0xff]  ;;  %v19582_v20 = vld [vmem:[#allocation75_spill] sm:$0xff] }
 0x434   : > { %10909 = vrot.lane.b32.xlu0 %v19573_v55, %s11882_s18  ;;  %10904 = vrot.lane.b32.xlu1 %v19576_v16, %s11882_s18  ;;  %v5762_v50 = vsel %vm2365_vm7, %v5730_v41, %v10132_v13  ;;  %v10172_v61 = vunpack.i.h.bf16 %v19577_v6  ;;  %v10171_v45 = vunpack.i.l.bf16 %v19577_v6  ;;  %v10166_v17 = vunpack.i.l.bf16 %v19578_v39  ;;  %v19584_v6 = vld [vmem:[#allocation172_spill] sm:$0xff] }
 0x435   : > { %v10167_v47 = vunpack.i.h.bf16 %v19578_v39  ;;  %v10177_v54 = vunpack.i.h.bf16 %v19581_v52  ;;  %v10176_v11 = vunpack.i.l.bf16 %v19581_v52  ;;  %v10211_v51 = vunpack.i.l.bf16 %v19582_v20  ;;  %v19585_v39 = vld [vmem:[#allocation164_spill] sm:$0xff] }
 0x436   : > { %v14942_v55 = vpop.permute.xlu0 %10629  ;;  %v5759_v41 = vsel %vm2365_vm7, %v14843_v62, %v10126_v1  ;;  %v5760_v13 = vsel %vm2365_vm7, %v14853_v8, %v10127_v4  ;;  %v5763_v9 = vsel %vm2365_vm7, %v5731_v24, %v10136_v28  ;;  %v10212_v10 = vunpack.i.h.bf16 %v19582_v20  ;;  %v19587_v62 = vld [vmem:[#allocation76_spill] sm:$0xff]  ;;  %v19588_v4 = vld [vmem:[#allocation85_spill] sm:$0xff] }
 0x437   : > { %19579 = vst [vmem:[#allocation160_spill] sm:$0xff] %v14942_v55  ;;  %v14944_v27 = vpop.permute.xlu1 %10624  ;;  %v19583_v16 = vpack.i.bf16 %v14647_v49, %v14617_v31  ;;  %v19586_v52 = vpack.i.bf16 %v19584_v6, %v19585_v39  ;;  %v5764_v34 = vsel %vm2365_vm7, %v5732_v25, %v10137_v22  ;;  %v10207_v1 = vunpack.i.h.bf16 %v19587_v62  ;;  %v7929_v55 = vld [vmem:[#allocation2 + $0xf1] sm:$0xff]  ;;  %v7930_v42 = vld [vmem:[#allocation2 + $0xf9] sm:$0xff] }
 0x438   : > { %19580 = vst [vmem:[#allocation159_spill] sm:$0xff] %v14944_v27  ;;  %v10206_v8 = vunpack.i.l.bf16 %v19587_v62  ;;  %v10216_v24 = vunpack.i.l.bf16 %v19588_v4  ;;  %v5777_v28 = vsel %vm2365_vm7, %v5745_v29, %v10171_v45  ;;  %v5778_v20 = vsel %vm2365_vm7, %v5746_v0, %v10172_v61  ;;  %v19591_v45 = vld [vmem:[#allocation40_spill] sm:$0xff]  ;;  %v19592_v61 = vld [vmem:[#allocation41_spill] sm:$0xff] }
 0x439   : > { %10919 = vrot.lane.b32.xlu0 %v19583_v16, %s11882_s18  ;;  %10914 = vrot.lane.b32.xlu1 %v19586_v52, %s11882_s18  ;;  %v5775_v49 = vsel %vm2365_vm7, %v5743_v37, %v10166_v17  ;;  %v10217_v31 = vunpack.i.h.bf16 %v19588_v4  ;;  %v5776_v25 = vsel %vm2365_vm7, %v5744_v7, %v10167_v47  ;;  %v5779_v22 = vsel %vm2365_vm7, %v5747_v40, %v10176_v11 }
 0x43a   : > { %v14972_v16 = vpop.permute.xlu0 %10639  ;;  %v5780_v39 = vsel %vm2365_vm7, %v5748_v23, %v10177_v54  ;;  %v5793_v52 = vsel %vm2398_vm8, %v5761_v30, %v10211_v51  ;;  %v5794_v29 = vsel %vm2398_vm8, %v5762_v50, %v10212_v10  ;;  %v10252_v0 = vunpack.i.h.bf16 %v19591_v45  ;;  %v19595_v54 = vld [vmem:[#allocation92_spill] sm:$0xff] }
 0x43b   : > { %19589 = vst [vmem:[#allocation102_spill] sm:$0xff] %v14972_v16  ;;  %v14974_v6 = vpop.permute.xlu1 %10634  ;;  %v10251_v37 = vunpack.i.l.bf16 %v19591_v45  ;;  %v10246_v17 = vunpack.i.l.bf16 %v19592_v61  ;;  %v19593_v62 = vpack.i.bf16 %v14665_v12, %v14631_v21  ;;  %v19594_v7 = vpack.i.bf16 %v14649_v43, %v14621_v57  ;;  %v19596_v21 = vld [vmem:[#allocation107_spill] sm:$0xff] }
 0x43c   : > { %19590 = vst [vmem:[#allocation104_spill] sm:$0xff] %v14974_v6  ;;  %v5791_v40 = vsel %vm2398_vm8, %v5759_v41, %v10206_v8  ;;  %v5792_v23 = vsel %vm2398_vm8, %v5760_v13, %v10207_v1  ;;  %v5795_v30 = vsel %vm2398_vm8, %v5763_v9, %v10216_v24  ;;  %v10247_v50 = vunpack.i.h.bf16 %v19592_v61  ;;  %v19597_v41 = vld [vmem:[#allocation108_spill] sm:$0xff]  ;;  %v19598_v1 = vld [vmem:[#allocation110_spill] sm:$0xff] }
 0x43d   : > { %10929 = vrot.lane.b32.xlu0 %v19593_v62, %s11882_s18  ;;  %10924 = vrot.lane.b32.xlu1 %v19594_v7, %s11882_s18  ;;  %v5796_v47 = vsel %vm2398_vm8, %v5764_v34, %v10217_v31  ;;  %v10257_v11 = vunpack.i.h.bf16 %v19595_v54  ;;  %v10256_v12 = vunpack.i.l.bf16 %v19595_v54  ;;  %v10292_v51 = vunpack.i.h.bf16 %v19596_v21  ;;  %v19603_v7 = vld [vmem:[#allocation123_spill] sm:$0xff] }
 0x43e   : > { %v15000_v10 = vpop.permute.xlu0 %10649  ;;  %v10291_v57 = vunpack.i.l.bf16 %v19596_v21  ;;  %v10287_v13 = vunpack.i.h.bf16 %v19597_v41  ;;  %v10286_v9 = vunpack.i.l.bf16 %v19597_v41  ;;  %v10296_v8 = vunpack.i.l.bf16 %v19598_v1  ;;  %v7913_v6 = vld [vmem:[#allocation2 + $0x31] sm:$0xff] }
 0x43f   : > { %v15002_v43 = vpop.permute.xlu1 %10644  ;;  %v5810_v34 = vsel %vm2398_vm8, %v5778_v20, %v10252_v0  ;;  %v5809_v4 = vsel %vm2398_vm8, %v5777_v28, %v10251_v37  ;;  %v5807_v24 = vsel %vm2398_vm8, %v5775_v49, %v10246_v17  ;;  %v10297_v31 = vunpack.i.h.bf16 %v19598_v1  ;;  %v19601_v20 = vld [vmem:[#allocation115_spill] sm:$0xff]  ;;  %v19602_v49 = vld [vmem:[#allocation116_spill] sm:$0xff] }
 0x440   : > { %v19599_v45 = vpack.i.bf16 %v14713_v59, %v14667_v36  ;;  %v19600_v61 = vpack.i.bf16 %v14693_v56, %v14651_v44  ;;  %v15021_v62 = vsel %vm2398_vm8, %v5776_v25, %v10247_v50  ;;  %v10332_v0 = vunpack.i.h.bf16 %v19601_v20 }
 0x441   : > { %v10331_v28 = vunpack.i.l.bf16 %v19601_v20  ;;  %v10326_v37 = vunpack.i.l.bf16 %v19602_v49  ;;  %v15027_v17 = vsel %vm2398_vm8, %v5779_v22, %v10256_v12  ;;  %v15030_v36 = vsel %vm2398_vm8, %v5780_v39, %v10257_v11  ;;  %v19605_v11 = vld [vmem:[#allocation124_spill] sm:$0xff] }
 0x442   : > { %10939 = vrot.lane.b32.xlu0 %v19599_v45, %s11882_s18  ;;  %10934 = vrot.lane.b32.xlu1 %v19600_v61, %s11882_s18  ;;  %v5826_v59 = vsel %vm2431_vm9, %v5794_v29, %v10292_v51  ;;  %v10371_v44 = vunpack.i.l.bf16 %v19603_v7  ;;  %v15034_v56 = vpop.permute.xlu0 %10659  ;;  %v5825_v50 = vsel %vm2431_vm9, %v5793_v52, %v10291_v57  ;;  %v5823_v54 = vsel %vm2431_vm9, %v5791_v40, %v10286_v9  ;;  %v19608_v57 = vld [vmem:[#allocation118_spill] sm:$0xff] }
 0x443   : > { %19604 = vst [vmem:[#allocation103_spill] sm:$0xff] %v15034_v56  ;;  %v15036_v25 = vpop.permute.xlu1 %10654  ;;  %v5824_v21 = vsel %vm2431_vm9, %v5792_v23, %v10287_v13  ;;  %v5827_v22 = vsel %vm2431_vm9, %v5795_v30, %v10296_v8  ;;  %v5828_v12 = vsel %vm2431_vm9, %v5796_v47, %v10297_v31  ;;  %v10372_v39 = vunpack.i.h.bf16 %v19603_v7  ;;  %v19609_v13 = vld [vmem:[#allocation126_spill] sm:$0xff]  ;;  %v19612_v8 = vld [vmem:[#allocation139_spill] sm:$0xff]  ;;  %v19613_v31 = vld [vmem:[#allocation140_spill] sm:$0xff] }
 0x444   : > { %v10367_v29 = vunpack.i.h.bf16 %v19605_v11  ;;  %v10366_v51 = vunpack.i.l.bf16 %v19605_v11  ;;  %v19606_v41 = vpack.i.bf16 %v14727_v14, %v14725_v53  ;;  %v19607_v52 = vpack.i.bf16 %v14739_v46, %v14737_v5  ;;  %v3515_v56 = vld [vmem:[#allocation4 + $0x9b] sm:$0xff] }
 0x445   : > { %v15055_v40 = vsel %vm2431_vm9, %v5809_v4, %v10331_v28  ;;  %v15058_v23 = vsel %vm2431_vm9, %v5810_v34, %v10332_v0  ;;  %v10327_v30 = vunpack.i.h.bf16 %v19602_v49  ;;  %v15062_v47 = vsel %vm2431_vm9, %v5807_v24, %v10326_v37 }
 0x446   : > { %10949 = vrot.lane.b32.xlu0 %v19606_v41, %s11882_s18  ;;  %10944 = vrot.lane.b32.xlu1 %v19607_v52, %s11882_s18  ;;  %v10337_v14 = vunpack.i.h.bf16 %v19608_v57  ;;  %v5857_v53 = vsel %vm2464_vm10, %v5825_v50, %v10371_v44  ;;  %v10377_v9 = vunpack.i.h.bf16 %v19609_v13  ;;  %v10376_v5 = vunpack.i.l.bf16 %v19609_v13  ;;  %v15068_v46 = vpop.permute.xlu0 %10669  ;;  %v19616_v44 = vld [vmem:[#allocation155_spill] sm:$0xff] }
 0x447   : > { %19610 = vst [vmem:[#allocation100_spill] sm:$0xff] %v15068_v46  ;;  %v15070_v1 = vpop.permute.xlu1 %10664  ;;  %v10452_v34 = vunpack.i.h.bf16 %v19612_v8  ;;  %v10451_v4 = vunpack.i.l.bf16 %v19612_v8  ;;  %v10447_v24 = vunpack.i.h.bf16 %v19613_v31  ;;  %v10446_v45 = vunpack.i.l.bf16 %v19613_v31  ;;  %v19620_v8 = vld [vmem:[#allocation142_spill] sm:$0xff]  ;;  %v3514_v46 = vld [vmem:[#allocation4 + $0x93] sm:$0xff] }
 0x448   : > { %19611 = vst [vmem:[#allocation171_spill] sm:$0xff] %v15070_v1  ;;  %v10336_v61 = vunpack.i.l.bf16 %v19608_v57  ;;  %v5858_v20 = vsel %vm2464_vm10, %v5826_v59, %v10372_v39  ;;  %v5855_v0 = vsel %vm2464_vm10, %v5823_v54, %v10366_v51  ;;  %v5856_v28 = vsel %vm2464_vm10, %v5824_v21, %v10367_v29  ;;  %v19617_v59 = vld [vmem:[#allocation156_spill] sm:$0xff]  ;;  %v3516_v1 = vld [vmem:[#allocation4 + $0xab] sm:$0xff] }
 0x449   : > { %v19614_v37 = vpack.i.bf16 %v14753_v58, %v14741_v33  ;;  %v19615_v7 = vpack.i.bf16 %v14757_v63, %v14755_v15  ;;  %v10532_v50 = vunpack.i.h.bf16 %v19616_v44  ;;  %v10531_v11 = vunpack.i.l.bf16 %v19616_v44 }
 0x44a   : > { %v10527_v39 = vunpack.i.h.bf16 %v19617_v59  ;;  %v10526_v54 = vunpack.i.l.bf16 %v19617_v59  ;;  %v5859_v21 = vsel %vm2464_vm10, %v5827_v22, %v10376_v5  ;;  %v5860_v29 = vsel %vm2464_vm10, %v5828_v12, %v10377_v9  ;;  %v15096_v51 = vpop.permute.xlu0 %10679 }
 0x44b   : > { %10959 = vrot.lane.b32.xlu0 %v19614_v37, %s11882_s18  ;;  %10954 = vrot.lane.b32.xlu1 %v19615_v7, %s11882_s18  ;;  %v10612_v33 = vunpack.i.h.bf16 %v14886_v32  ;;  %v10611_v58 = vunpack.i.l.bf16 %v14886_v32  ;;  %19618 = vst [vmem:[#allocation161_spill] sm:$0xff] %v15096_v51  ;;  %v15098_v63 = vpop.permute.xlu1 %10674  ;;  %v5889_v15 = vsel %vm2497_vm11, %v5857_v53, %v10451_v4  ;;  %v5890_v41 = vsel %vm2497_vm11, %v5858_v20, %v10452_v34 }
 0x44c   : > { %19619 = vst [vmem:[#allocation163_spill] sm:$0xff] %v15098_v63  ;;  %v5887_v52 = vsel %vm2497_vm11, %v5855_v0, %v10446_v45  ;;  %v5888_v13 = vsel %vm2497_vm11, %v5856_v28, %v10447_v24  ;;  %v10457_v22 = vunpack.i.h.bf16 %v19620_v8  ;;  %v10456_v12 = vunpack.i.l.bf16 %v19620_v8  ;;  %v19623_v45 = vld [vmem:[#allocation158_spill] sm:$0xff]  ;;  %v7911_v63 = vld [vmem:[#allocation2 + $0x19] sm:$0xff] }
 0x44d   : > { %v10607_v9 = vunpack.i.h.bf16 %v14888_v18  ;;  %v10606_v32 = vunpack.i.l.bf16 %v14888_v18  ;;  %v19621_v5 = vpack.i.bf16 %v14771_v3, %v14769_v48  ;;  %v19622_v53 = vpack.i.bf16 %v14784_v19, %v14773_v26 }
 0x44e   : > { %v5921_v34 = vsel %vm2537_vm12, %v5889_v15, %v10531_v11  ;;  %v5922_v4 = vsel %vm2537_vm12, %v5890_v41, %v10532_v50  ;;  %v5919_v31 = vsel %vm2537_vm12, %v5887_v52, %v10526_v54  ;;  %v5920_v24 = vsel %vm2537_vm12, %v5888_v13, %v10527_v39  ;;  %v10690_v0 = vpop.permute.xlu0 %10689  ;;  %v19624_v39 = vld [vmem:[#allocation166_spill] sm:$0xff]  ;;  %v19625_v54 = vld [vmem:[#allocation165_spill] sm:$0xff] }
 0x44f   : > { %10969 = vrot.lane.b32.xlu0 %v19621_v5, %s11882_s18  ;;  %10964 = vrot.lane.b32.xlu1 %v19622_v53, %s11882_s18  ;;  %v10537_v18 = vunpack.i.h.bf16 %v19623_v45  ;;  %v10536_v20 = vunpack.i.l.bf16 %v19623_v45  ;;  %v5954_v48 = vsel %vm5941_vm14, %v5921_v34, %v10611_v58  ;;  %v5955_v3 = vsel %vm5941_vm14, %v5922_v4, %v10612_v33  ;;  %v10685_v28 = vpop.permute.xlu1 %10684  ;;  %v19627_v33 = vld [vmem:[#allocation190_spill] sm:$0xff]  ;;  %v19628_v15 = vld [vmem:[#allocation189_spill] sm:$0xff] }
 0x450   : > { %v10692_v26 = vunpack.i.h.bf16 %v10690_v0  ;;  %v10691_v19 = vunpack.i.l.bf16 %v10690_v0  ;;  %v10687_v37 = vunpack.i.h.bf16 %v10685_v28  ;;  %v10686_v7 = vunpack.i.l.bf16 %v10685_v28  ;;  %v19632_v0 = vld [vmem:[#allocation132_spill] sm:$0xff] }
 0x451   : > { %v5952_v44 = vsel %vm5941_vm14, %v5919_v31, %v10606_v32  ;;  %v5953_v50 = vsel %vm5941_vm14, %v5920_v24, %v10607_v9  ;;  %v10617_v11 = vunpack.i.h.bf16 %v14916_v2  ;;  %v10616_v59 = vunpack.i.l.bf16 %v14916_v2  ;;  %v19630_v9 = vld [vmem:[#allocation131_spill] sm:$0xff] }
 0x452   : > { %v19626_v58 = vpack.i.bf16 %v19624_v39, %v19625_v54  ;;  %v19629_v41 = vpack.i.bf16 %v19627_v33, %v19628_v15  ;;  %v15137_v52 = vsel %vm5974_vm15, %v5955_v3, %v10692_v26  ;;  %v15140_v13 = vsel %vm5974_vm15, %v5954_v48, %v10691_v19  ;;  %v15152_v4 = vpop.permute.xlu0 %10699  ;;  %v19643_v15 = vld [vmem:[#allocation148_spill] sm:$0xff] }
 0x453   : > { %v15143_v8 = vsel %vm5974_vm15, %v5952_v44, %v10686_v7  ;;  %v15146_v2 = vsel %vm5974_vm15, %v5953_v50, %v10687_v37  ;;  %v10412_v32 = vunpack.i.h.bf16 %v19630_v9  ;;  %v10411_v5 = vunpack.i.l.bf16 %v19630_v9  ;;  %19631 = vst [vmem:[#allocation162_spill] sm:$0xff] %v15152_v4  ;;  %v10695_v31 = vpop.permute.xlu1 %10694  ;;  %v19644_v9 = vld [vmem:[#allocation178_spill] sm:$0xff] }
 0x454   : > { %10979 = vrot.lane.b32.xlu0 %v19626_v58, %s11883_s13  ;;  %10974 = vrot.lane.b32.xlu1 %v19629_v41, %s11882_s18  ;;  %v5891_v53 = vsel %vm2497_vm11, %v5859_v21, %v10456_v12  ;;  %v5892_v34 = vsel %vm2497_vm11, %v5860_v29, %v10457_v22  ;;  %v10697_v48 = vunpack.i.h.bf16 %v10695_v31  ;;  %v10696_v3 = vunpack.i.l.bf16 %v10695_v31  ;;  %v19633_v21 = vld [vmem:[#allocation168_spill] sm:$0xff]  ;;  %v19634_v29 = vld [vmem:[#allocation167_spill] sm:$0xff]  ;;  %v19636_v12 = vld [vmem:[#allocation174_spill] sm:$0xff] }
 0x455   : > { %v5923_v24 = vsel %vm2537_vm12, %v5891_v53, %v10536_v20  ;;  %v5924_v45 = vsel %vm2537_vm12, %v5892_v34, %v10537_v18  ;;  %v10407_v28 = vunpack.i.h.bf16 %v19632_v0  ;;  %v10406_v26 = vunpack.i.l.bf16 %v19632_v0  ;;  %v19637_v20 = vld [vmem:[#allocation173_spill] sm:$0xff]  ;;  %v19647_v34 = vld [vmem:[#allocation176_spill] sm:$0xff]  ;;  %v19648_v31 = vld [vmem:[#allocation175_spill] sm:$0xff] }
 0x456   : > { %v5956_v19 = vsel %vm5941_vm14, %v5923_v24, %v10616_v59  ;;  %v5957_v37 = vsel %vm5941_vm14, %v5924_v45, %v10617_v11  ;;  %v19635_v22 = vpack.i.bf16 %v19633_v21, %v19634_v29  ;;  %v19638_v7 = vpack.i.bf16 %v19636_v12, %v19637_v20  ;;  %v15190_v54 = vpop.permute.xlu0 %10709  ;;  %v19650_v45 = vld [vmem:[#allocation187_spill] sm:$0xff] }
 0x457   : > { %v5840_v18 = vsel %vm2431_vm9, %v15021_v62, %v10327_v30  ;;  %v5843_v44 = vsel %vm2431_vm9, %v15027_v17, %v10336_v61  ;;  %v15177_v50 = vsel %vm5974_vm15, %v5956_v19, %v10696_v3  ;;  %v15180_v11 = vsel %vm5974_vm15, %v5957_v37, %v10697_v48  ;;  %v19639_v62 = vld [vmem:[#allocation134_spill] sm:$0xff]  ;;  %19640 = vst [vmem:[#allocation68_spill] sm:$0xff] %v15190_v54  ;;  %v15192_v17 = vpop.permute.xlu1 %10704  ;;  %v19642_v61 = vld [vmem:[#allocation147_spill] sm:$0xff] }
 0x458   : > { %10989 = vrot.lane.b32.xlu0 %v19635_v22, %s11883_s13  ;;  %10984 = vrot.lane.b32.xlu1 %v19638_v7, %s11883_s13  ;;  %v5844_v59 = vsel %vm2431_vm9, %v15030_v36, %v10337_v14  ;;  %v5873_v49 = vsel %vm2464_vm10, %v15055_v40, %v10411_v5  ;;  %v10417_v30 = vunpack.i.h.bf16 %v19639_v62  ;;  %v10416_v39 = vunpack.i.l.bf16 %v19639_v62  ;;  %19641 = vst [vmem:[#allocation67_spill] sm:$0xff] %v15192_v17  ;;  %v19645_v5 = vld [vmem:[#allocation177_spill] sm:$0xff]  ;;  %v19654_v7 = vld [vmem:[#allocation150_spill] sm:$0xff] }
 0x459   : > { %v10492_v58 = vunpack.i.h.bf16 %v19642_v61  ;;  %v10491_v33 = vunpack.i.l.bf16 %v19642_v61  ;;  %v10487_v57 = vunpack.i.h.bf16 %v19643_v15  ;;  %v10486_v41 = vunpack.i.l.bf16 %v19643_v15  ;;  %v19655_v62 = vld [vmem:[#allocation182_spill] sm:$0xff]  ;;  %v19659_v61 = vld [vmem:[#allocation179_spill] sm:$0xff] }
 0x45a   : > { %v5874_v36 = vsel %vm2464_vm10, %v15058_v23, %v10412_v32  ;;  %v5871_v40 = vsel %vm2464_vm10, %v15062_v47, %v10406_v26  ;;  %v5872_v14 = vsel %vm2464_vm10, %v5840_v18, %v10407_v28  ;;  %v19646_v53 = vpack.i.bf16 %v19644_v9, %v19645_v5  ;;  %v19651_v23 = vld [vmem:[#allocation188_spill] sm:$0xff]  ;;  %v15219_v37 = vpop.permute.xlu0 %10719  ;;  %v7925_v17 = vld [vmem:[#allocation2 + $0xc1] sm:$0xff] }
 0x45b   : > { %v19649_v24 = vpack.i.bf16 %v19647_v34, %v19648_v31  ;;  %v10572_v48 = vunpack.i.h.bf16 %v19650_v45  ;;  %v10571_v3 = vunpack.i.l.bf16 %v19650_v45  ;;  %v10567_v32 = vunpack.i.h.bf16 %v19651_v23  ;;  %19652 = vst [vmem:[#allocation69_spill] sm:$0xff] %v15219_v37  ;;  %v15221_v21 = vpop.permute.xlu1 %10714  ;;  %v19692_v54 = vld [vmem:[#allocation18_spill] sm:$0xff] }
 0x45c   : > { %10999 = vrot.lane.b32.xlu0 %v19646_v53, %s11883_s13  ;;  %v10566_v47 = vunpack.i.l.bf16 %v19651_v23  ;;  %v5875_v0 = vsel %vm2464_vm10, %v5843_v44, %v10416_v39  ;;  %v5876_v28 = vsel %vm2464_vm10, %v5844_v59, %v10417_v30  ;;  %v10652_v26 = vunpack.i.h.bf16 %v15000_v10  ;;  %19653 = vst [vmem:[#allocation75_spill] sm:$0xff] %v15221_v21  ;;  %v19656_v30 = vld [vmem:[#allocation181_spill] sm:$0xff] }
 0x45d   : > { %10994 = vrot.lane.b32.xlu1 %v19649_v24, %s11883_s13  ;;  %v10651_v19 = vunpack.i.l.bf16 %v15000_v10  ;;  %v5905_v29 = vsel %vm2497_vm11, %v5873_v49, %v10491_v33  ;;  %v5906_v22 = vsel %vm2497_vm11, %v5874_v36, %v10492_v58  ;;  %v5903_v12 = vsel %vm2497_vm11, %v5871_v40, %v10486_v41  ;;  %v19658_v49 = vld [vmem:[#allocation180_spill] sm:$0xff] }
 0x45e   : > { %v5904_v20 = vsel %vm2497_vm11, %v5872_v14, %v10487_v57  ;;  %v10497_v18 = vunpack.i.h.bf16 %v19654_v7  ;;  %v10496_v44 = vunpack.i.l.bf16 %v19654_v7  ;;  %v10647_v59 = vunpack.i.h.bf16 %v15002_v43  ;;  %v19661_v36 = vld [vmem:[#allocation192_spill] sm:$0xff]  ;;  %v10730_v5 = vpop.permute.xlu0 %10729 }
 0x45f   : > { %v10646_v10 = vunpack.i.l.bf16 %v15002_v43  ;;  %v19657_v39 = vpack.i.bf16 %v19655_v62, %v19656_v30  ;;  %v19660_v58 = vpack.i.bf16 %v19658_v49, %v19659_v61  ;;  %v5937_v33 = vsel %vm2537_vm12, %v5905_v29, %v10571_v3  ;;  %v10725_v53 = vpop.permute.xlu1 %10724  ;;  %v3433_v3 = vld [vmem:[#allocation4 + $0x140] sm:$0xff] }
 0x460   : > { %v5938_v15 = vsel %vm2537_vm12, %v5906_v22, %v10572_v48  ;;  %v5935_v57 = vsel %vm2537_vm12, %v5903_v12, %v10566_v47  ;;  %v5936_v41 = vsel %vm2537_vm12, %v5904_v20, %v10567_v32  ;;  %v10577_v43 = vunpack.i.h.bf16 %v19661_v36  ;;  %v3431_v48 = vld [vmem:[#allocation4 + $0x128] sm:$0xff]  ;;  %v19664_v22 = vld [vmem:[#allocation183_spill] sm:$0xff] }
 0x461   : > { %11009 = vrot.lane.b32.xlu0 %v19657_v39, %s11883_s13  ;;  %11004 = vrot.lane.b32.xlu1 %v19660_v58, %s11883_s13  ;;  %v10576_v40 = vunpack.i.l.bf16 %v19661_v36  ;;  %v5971_v14 = vsel %vm5941_vm14, %v5938_v15, %v10652_v26  ;;  %v5970_v9 = vsel %vm5941_vm14, %v5937_v33, %v10651_v19  ;;  %v10732_v34 = vunpack.i.h.bf16 %v10730_v5  ;;  %v19663_v19 = vld [vmem:[#allocation184_spill] sm:$0xff] }
 0x462   : > { %v10731_v31 = vunpack.i.l.bf16 %v10730_v5  ;;  %v10727_v24 = vunpack.i.h.bf16 %v10725_v53  ;;  %v10726_v45 = vunpack.i.l.bf16 %v10725_v53  ;;  %v5968_v23 = vsel %vm5941_vm14, %v5935_v57, %v10646_v10  ;;  %v3432_v10 = vld [vmem:[#allocation4 + $0x138] sm:$0xff]  ;;  %v15273_v30 = vpop.permute.xlu0 %10739 }
 0x463   : > { %v5969_v32 = vsel %vm5941_vm14, %v5936_v41, %v10647_v59  ;;  %v10657_v47 = vunpack.i.h.bf16 %v15036_v25  ;;  %v10656_v29 = vunpack.i.l.bf16 %v15036_v25  ;;  %v19662_v26 = vpack.i.bf16 %v14805_v60, %v14821_v35  ;;  %v3430_v60 = vld [vmem:[#allocation4 + $0x120] sm:$0xff]  ;;  %19666 = vst [vmem:[#allocation172_spill] sm:$0xff] %v15273_v30  ;;  %v10735_v39 = vpop.permute.xlu1 %10734  ;;  %v3437_v41 = vld [vmem:[#allocation4 + $0x170] sm:$0xff]  ;;  %v3435_v36 = vld [vmem:[#allocation4 + $0x158] sm:$0xff] }
 0x464   : > { %v19665_v12 = vpack.i.bf16 %v19663_v19, %v19664_v22  ;;  %v15260_v20 = vsel %vm5974_vm15, %v5970_v9, %v10731_v31  ;;  %v15263_v7 = vsel %vm5974_vm15, %v5971_v14, %v10732_v34  ;;  %v15266_v59 = vsel %vm5974_vm15, %v5968_v23, %v10726_v45  ;;  %v3441_v34 = vld [vmem:[#allocation4 + $0x1a0] sm:$0xff]  ;;  %v3439_v31 = vld [vmem:[#allocation4 + $0x188] sm:$0xff]  ;;  %v3477_v19 = vld [vmem:[#allocation4 + $0x52] sm:$0xff] }
 0x465   : > { %11019 = vrot.lane.b32.xlu0 %v19662_v26, %s11883_s13  ;;  %v15269_v25 = vsel %vm5974_vm15, %v5969_v32, %v10727_v24  ;;  %v5907_v35 = vsel %vm2497_vm11, %v5875_v0, %v10496_v44  ;;  %v5908_v62 = vsel %vm2497_vm11, %v5876_v28, %v10497_v18  ;;  %v11028_v49 = vpack.i.bf16 %v3433_v3, %v3432_v10  ;;  %v3436_v44 = vld [vmem:[#allocation4 + $0x168] sm:$0xff]  ;;  %v3440_v24 = vld [vmem:[#allocation4 + $0x198] sm:$0xff]  ;;  %v3438_v45 = vld [vmem:[#allocation4 + $0x180] sm:$0xff] }
 0x466   : > { %11014 = vrot.lane.b32.xlu1 %v19665_v12, %s11883_s13  ;;  %v15275_v61 = vpack.i.bf16 %v3431_v48, %v3430_v60  ;;  %v5939_v58 = vsel %vm2537_vm12, %v5907_v35, %v10576_v40  ;;  %v5940_v33 = vsel %vm2537_vm12, %v5908_v62, %v10577_v43  ;;  %v10737_v15 = vunpack.i.h.bf16 %v10735_v39  ;;  %v3434_v43 = vld [vmem:[#allocation4 + $0x150] sm:$0xff]  ;;  %v15290_v40 = vpop.permute.xlu0 %10749  ;;  %v3443_v48 = vld [vmem:[#allocation4 + $0x1b8] sm:$0xff]  ;;  %v8044_v30 = vld [vmem:[#allocation2 + $0x68] sm:$0xff] }
 0x467   : > { %v10736_v57 = vunpack.i.l.bf16 %v10735_v39  ;;  %v5972_v14 = vsel %vm5941_vm14, %v5939_v58, %v10656_v29  ;;  %v5973_v0 = vsel %vm5941_vm14, %v5940_v33, %v10657_v47  ;;  %19667 = vst [vmem:[#allocation164_spill] sm:$0xff] %v15290_v40  ;;  %v15292_v9 = vpop.permute.xlu1 %10744  ;;  %v11038_v5 = vpack.i.bf16 %v3437_v41, %v3436_v44  ;;  %v3442_v3 = vld [vmem:[#allocation4 + $0x1b0] sm:$0xff]  ;;  %v3480_v58 = vld [vmem:[#allocation4 + $0x7a] sm:$0xff]  ;;  %v3478_v33 = vld [vmem:[#allocation4 + $0x62] sm:$0xff] }
 0x468   : > { %v15288_v18 = vsel %vm5974_vm15, %v5973_v0, %v10737_v15  ;;  %19668 = vst [vmem:[#allocation76_spill] sm:$0xff] %v15292_v9  ;;  %v11033_v53 = vpack.i.bf16 %v3435_v36, %v3434_v43  ;;  %v11048_v47 = vpack.i.bf16 %v3441_v34, %v3440_v24  ;;  %v11043_v29 = vpack.i.bf16 %v3439_v31, %v3438_v45  ;;  %v3476_v26 = vld [vmem:[#allocation4 + $0x4a] sm:$0xff]  ;;  %v3482_v31 = vld [vmem:[#allocation4 + $0x92] sm:$0xff]  ;;  %v3483_v45 = vld [vmem:[#allocation4 + $0x9a] sm:$0xff] }
 0x469   : > { %11029 = vrot.lane.b32.xlu0 %v11028_v49, %s11883_s13  ;;  %v15285_v28 = vsel %vm5974_vm15, %v5972_v14, %v10736_v57  ;;  %v11053_v22 = vpack.i.bf16 %v3443_v48, %v3442_v3  ;;  %v11058_v60 = vpack.i.bf16 %v3477_v19, %v3476_v26  ;;  %v3481_v14 = vld [vmem:[#allocation4 + $0x82] sm:$0xff]  ;;  %v3479_v0 = vld [vmem:[#allocation4 + $0x6a] sm:$0xff]  ;;  %v3485_v24 = vld [vmem:[#allocation4 + $0xb2] sm:$0xff]  ;;  %v11073_v26 = vpack.i.bf16 %v3483_v45, %v3482_v31 }
 0x46a   : > { %11024 = vrot.lane.b32.xlu1 %v15275_v61, %s11883_s13  ;;  %v15296_v23 = vpop.permute.xlu0 %10759  ;;  %v7846_v3 = vld [vmem:[#allocation2 + $0x8] sm:$0xff]  ;;  %v3488_v19 = vld [vmem:[#allocation4 + $0xda] sm:$0xff] }
 0x46b   : > { %19669 = vst [vmem:[#allocation85_spill] sm:$0xff] %v15296_v23  ;;  %v15298_v32 = vpop.permute.xlu1 %10754  ;;  %v19679_v31 = vld [vmem:[#allocation8_spill] sm:$0xff]  ;;  %v7912_v45 = vld [vmem:[#allocation2 + $0x21] sm:$0xff]  ;;  %v3503_v9 = vld [vmem:[#allocation4 + $0x18a] sm:$0xff] }
 0x46c   : > { %19670 = vst [vmem:[#allocation40_spill] sm:$0xff] %v15298_v32  ;;  %v3497_v32 = vld [vmem:[#allocation4 + $0x142] sm:$0xff] }
 0x46d   : > { %11039 = vrot.lane.b32.xlu0 %v11038_v5, %s11883_s13  ;;  %v11068_v5 = vpack.i.bf16 %v3481_v14, %v3480_v58  ;;  %v15346_v14 = vld [vmem:[#allocation2 + $0x20] sm:$0xff] }
 0x46e   : > { %11034 = vrot.lane.b32.xlu1 %v11033_v53, %s11883_s13  ;;  %v10770_v12 = vpop.permute.xlu0 %10769  ;;  %v3505_v40 = vld [vmem:[#allocation4 + $0x1a2] sm:$0xff] }
 0x46f   : > { %v10765_v10 = vpop.permute.xlu1 %10764  ;;  %v10772_v35 = vunpack.i.h.bf16 %v10770_v12  ;;  %v10771_v62 = vunpack.i.l.bf16 %v10770_v12  ;;  %v19675_v12 = vld [vmem:[#allocation6_spill] sm:$0xff] }
 0x470   : > { %v10767_v39 = vunpack.i.h.bf16 %v10765_v10  ;;  %v10766_v49 = vunpack.i.l.bf16 %v10765_v10  ;;  %v7878_v10 = vmax.f32 %v19675_v12, %v7846_v3  ;;  %v15363_v12 = vld [vmem:[#allocation2 + $0xa] sm:$0xff] }
 0x471   : > { %11049 = vrot.lane.b32.xlu0 %v11048_v47, %s11883_s13  ;;  %v15306_v15 = vsel %vm6007_vm0, %v15140_v13, %v10771_v62  ;;  %v15310_v57 = vsel %vm6007_vm0, %v15137_v52, %v10772_v35  ;;  %v15322_v13 = vpack.i.bf16 %v3479_v0, %v3478_v33  ;;  %v3484_v52 = vld [vmem:[#allocation4 + $0xaa] sm:$0xff]  ;;  %v7909_v33 = vld [vmem:[#allocation2 + $0x1] sm:$0xff]  ;;  %v3493_v0 = vld [vmem:[#allocation4 + $0x112] sm:$0xff] }
 0x472   : > { %11044 = vrot.lane.b32.xlu1 %v11043_v29, %s11883_s13  ;;  %v15314_v41 = vsel %vm6007_vm0, %v15143_v8, %v10766_v49  ;;  %v15318_v36 = vsel %vm6007_vm0, %v15146_v2, %v10767_v39  ;;  %v15320_v44 = vpop.permute.xlu0 %10779  ;;  %v11078_v29 = vpack.i.bf16 %v3485_v24, %v3484_v52  ;;  %v7910_v35 = vld [vmem:[#allocation2 + $0x9] sm:$0xff]  ;;  %v7880_v24 = vmax.f32 %v19679_v31, %v15346_v14 }
 0x473   : > { %19671 = vst [vmem:[#allocation41_spill] sm:$0xff] %v15320_v44  ;;  %v10775_v43 = vpop.permute.xlu1 %10774  ;;  %19672 = vst [vmem:[#allocation92_spill] sm:$0xff] %v15322_v13  ;;  %v15351_v52 = vld [vmem:[#allocation2 + $0x30] sm:$0xff]  ;;  %v15357_v3 = vmax.f32 %v7878_v10, %v7910_v35 }
 0x474   : > { %v10777_v53 = vunpack.i.h.bf16 %v10775_v43  ;;  %v10776_v34 = vunpack.i.l.bf16 %v10775_v43  ;;  %v3490_v43 = vld [vmem:[#allocation4 + $0xf2] sm:$0xff] }
 0x475   : > { %11059 = vrot.lane.b32.xlu0 %v11058_v60, %s11868_s30  ;;  %v3487_v60 = vld [vmem:[#allocation4 + $0xca] sm:$0xff] }
 0x476   : > { %11054 = vrot.lane.b32.xlu1 %v11053_v22, %s11883_s13  ;;  %v15329_v8 = vsel %vm6007_vm0, %v15177_v50, %v10776_v34  ;;  %v15333_v2 = vsel %vm6007_vm0, %v15180_v11, %v10777_v53  ;;  %v15335_v48 = vpop.permute.xlu0 %10789  ;;  %v3486_v22 = vld [vmem:[#allocation4 + $0xc2] sm:$0xff]  ;;  %v15349_v34 = vld [vmem:[#allocation2 + $0x18] sm:$0xff] }
 0x477   : > { %19673 = vst [vmem:[#allocation107_spill] sm:$0xff] %v15335_v48  ;;  %v15337_v47 = vpop.permute.xlu1 %10784  ;;  %v7845_v50 = vld [vmem:[#allocation2] sm:$0xff]  ;;  %v11083_v58 = vpack.i.bf16 %v3487_v60, %v3486_v22  ;;  %v3492_v22 = vld [vmem:[#allocation4 + $0x10a] sm:$0xff] }
 0x478   : > { %19674 = vst [vmem:[#allocation108_spill] sm:$0xff] %v15337_v47  ;;  %v3489_v11 = vld [vmem:[#allocation4 + $0xe2] sm:$0xff]  ;;  %v11098_v35 = vpack.i.bf16 %v3493_v0, %v3492_v22  ;;  %v7975_v47 = vld [vmem:[#allocation2 + $0x1a] sm:$0xff] }
 0x479   : > { %11069 = vrot.lane.b32.xlu0 %v11068_v5, %s11868_s30  ;;  %v11088_v49 = vpack.i.bf16 %v3489_v11, %v3488_v19  ;;  %v19678_v5 = vld [vmem:[#allocation5_spill] sm:$0xff]  ;;  %v15361_v19 = vld [vmem:[#allocation2 + $0x38] sm:$0xff] }
 0x47a   : > { %11064 = vrot.lane.b32.xlu1 %v15322_v13, %s11868_s30  ;;  %v15342_v62 = vpop.permute.xlu0 %10799  ;;  %v7877_v53 = vmax.f32 %v19678_v5, %v7845_v50  ;;  %v3491_v50 = vld [vmem:[#allocation4 + $0xfa] sm:$0xff]  ;;  %v15367_v5 = vld [vmem:[#allocation2 + $0x48] sm:$0xff] }
 0x47b   : > { %19676 = vst [vmem:[#allocation110_spill] sm:$0xff] %v15342_v62  ;;  %v15344_v39 = vpop.permute.xlu1 %10794  ;;  %v19681_v11 = vld [vmem:[#allocation9_spill] sm:$0xff]  ;;  %v11093_v23 = vpack.i.bf16 %v3491_v50, %v3490_v43  ;;  %v7883_v48 = vmax.f32 %v19683_v38, %v15367_v5 }
 0x47c   : > { %19677 = vst [vmem:[#allocation115_spill] sm:$0xff] %v15344_v39  ;;  %v7881_v60 = vmax.f32 %v19681_v11, %v15351_v52  ;;  %v7914_v62 = vld [vmem:[#allocation2 + $0x39] sm:$0xff]  ;;  %v3495_v39 = vld [vmem:[#allocation4 + $0x12a] sm:$0xff]  ;;  %v15371_v21 = vmax.f32 %v7877_v53, %v7909_v33  ;;  %v7944_v11 = vmax.f32 %v7880_v24, %v7912_v45  ;;  %v3494_v24 = vld [vmem:[#allocation4 + $0x122] sm:$0xff] }
 0x47d   : > { %11079 = vrot.lane.b32.xlu0 %v11078_v29, %s11868_s30  ;;  %v19680_v29 = vld [vmem:[#allocation7_spill] sm:$0xff]  ;;  %v3496_v38 = vld [vmem:[#allocation4 + $0x13a] sm:$0xff]  ;;  %v15393_v45 = vld [vmem:[#allocation2 + $0x2] sm:$0xff] }
 0x47e   : > { %11074 = vrot.lane.b32.xlu1 %v11073_v26, %s11868_s30  ;;  %v7879_v26 = vmax.f32 %v19680_v29, %v15349_v34  ;;  %v15816_v13 = vld [vmem:[#allocation4 + $0xd9] sm:$0xff] }
 0x47f   : > { %v10805_v10 = vpop.permute.xlu1 %10804  ;;  %19793 = vst [vmem:[#allocation217_spill] sm:$0xff] %v15816_v13  ;;  %v15896_v13 = vld [vmem:[#allocation4 + $0xf0] sm:$0xff] }
 0x480   : > { %v10807_v51 = vunpack.i.h.bf16 %v10805_v10  ;;  %v10806_v16 = vunpack.i.l.bf16 %v10805_v10  ;;  %19810 = vst [vmem:[#allocation234_spill] sm:$0xff] %v15896_v13  ;;  %v19823_v13 = vld [vmem:[#allocation48_spill] sm:$0xff] }
 0x481   : > { %11089 = vrot.lane.b32.xlu0 %v11088_v49, %s11868_s30  ;;  %v19682_v49 = vld [vmem:[#allocation10_spill] sm:$0xff] }
 0x482   : > { %11084 = vrot.lane.b32.xlu1 %v11083_v58, %s11868_s30  ;;  %v7882_v31 = vmax.f32 %v19682_v49, %v15361_v19  ;;  %v10810_v58 = vpop.permute.xlu0 %10809  ;;  %v15387_v33 = vsel %vm6007_vm0, %v15266_v59, %v10806_v16  ;;  %v15391_v53 = vsel %vm6007_vm0, %v15269_v25, %v10807_v51  ;;  %v15401_v16 = vpack.i.bf16 %v3497_v32, %v3496_v38  ;;  %v8042_v49 = vld [vmem:[#allocation2 + $0x50] sm:$0xff] }
 0x483   : > { %v10812_v29 = vunpack.i.h.bf16 %v10810_v58  ;;  %v10811_v37 = vunpack.i.l.bf16 %v10810_v58  ;;  %v10815_v50 = vpop.permute.xlu1 %10814  ;;  %v15403_v59 = vpack.i.bf16 %v3495_v39, %v3494_v24  ;;  %v7943_v51 = vmax.f32 %v7879_v26, %v7911_v63  ;;  %v7916_v32 = vld [vmem:[#allocation2 + $0x51] sm:$0xff] }
 0x484   : > { %19686 = vst [vmem:[#allocation124_spill] sm:$0xff] %v15401_v16  ;;  %v7945_v25 = vmax.f32 %v7881_v60, %v7913_v6  ;;  %v10817_v58 = vunpack.i.h.bf16 %v10815_v50  ;;  %v10816_v10 = vunpack.i.l.bf16 %v10815_v50  ;;  %v3500_v60 = vld [vmem:[#allocation4 + $0x16a] sm:$0xff]  ;;  %v3498_v38 = vld [vmem:[#allocation4 + $0x152] sm:$0xff] }
 0x485   : > { %11099 = vrot.lane.b32.xlu0 %v11098_v35, %s11868_s30  ;;  %v15379_v0 = vsel %vm6007_vm0, %v15260_v20, %v10811_v37  ;;  %v15383_v43 = vsel %vm6007_vm0, %v15263_v7, %v10812_v29  ;;  %v8006_v37 = vmax.f32 %v15357_v3, %v15363_v12  ;;  %v15397_v20 = vld [vmem:[#allocation2 + $0x22] sm:$0xff]  ;;  %v3501_v35 = vld [vmem:[#allocation4 + $0x172] sm:$0xff]  ;;  %v3499_v29 = vld [vmem:[#allocation4 + $0x15a] sm:$0xff] }
 0x486   : > { %11094 = vrot.lane.b32.xlu1 %v11093_v23, %s11868_s30  ;;  %19684 = vst [vmem:[#allocation116_spill] sm:$0xff] %v15397_v20  ;;  %v7946_v23 = vmax.f32 %v7882_v31, %v7914_v62  ;;  %v7915_v7 = vld [vmem:[#allocation2 + $0x49] sm:$0xff]  ;;  %v15399_v22 = vpop.permute.xlu0 %10819  ;;  %v15405_v3 = vld [vmem:[#allocation2 + $0x3a] sm:$0xff]  ;;  %v7977_v12 = vld [vmem:[#allocation2 + $0x32] sm:$0xff]  ;;  %v8008_v63 = vmax.f32 %v7944_v11, %v15397_v20  ;;  %v15415_v39 = vsel %vm6007_vm0, %v15285_v28, %v10816_v10 }
 0x487   : > { %19685 = vst [vmem:[#allocation123_spill] sm:$0xff] %v15399_v22  ;;  %19687 = vst [vmem:[#allocation118_spill] sm:$0xff] %v15405_v3  ;;  %v19688_v62 = vld [vmem:[#allocation13_spill] sm:$0xff]  ;;  %v7947_v6 = vmax.f32 %v7883_v48, %v7915_v7  ;;  %v15419_v26 = vsel %vm6007_vm0, %v15288_v18, %v10817_v58  ;;  %v7979_v50 = vld [vmem:[#allocation2 + $0x4a] sm:$0xff]  ;;  %v15424_v44 = vpop.permute.xlu1 %10824  ;;  %v11118_v48 = vpack.i.bf16 %v3501_v35, %v3500_v60 }
 0x488   : > { %v7884_v31 = vmax.f32 %v19688_v62, %v8042_v49  ;;  %v8010_v24 = vmax.f32 %v7946_v23, %v15405_v3  ;;  %v7861_v62 = vld [vmem:[#allocation2 + $0xc0] sm:$0xff]  ;;  %19690 = vst [vmem:[#allocation139_spill] sm:$0xff] %v15424_v44  ;;  %v11113_v11 = vpack.i.bf16 %v3499_v29, %v3498_v38  ;;  %v8005_v28 = vmax.f32 %v15371_v21, %v15393_v45  ;;  %v19695_v45 = vld [vmem:[#allocation16_spill] sm:$0xff]  ;;  %v7926_v60 = vld [vmem:[#allocation2 + $0xc9] sm:$0xff] }
 0x489   : > { %11109 = vrot.lane.b32.xlu0 %v15401_v16, %s11868_s30  ;;  %v15429_v7 = vmax.f32 %v8006_v37, %v15346_v14  ;;  %v8007_v18 = vmax.f32 %v7943_v51, %v7975_v47  ;;  %v8009_v58 = vmax.f32 %v7945_v25, %v7977_v12  ;;  %v8043_v10 = vld [vmem:[#allocation2 + $0x60] sm:$0xff]  ;;  %v15435_v21 = vmax.f32 %v8008_v63, %v15361_v19  ;;  %v15437_v14 = vld [vmem:[#allocation2 + $0x52] sm:$0xff]  ;;  %v11808_v51 = vld [vmem:[#allocation2 + $0xc8] sm:$0xff] }
 0x48a   : > { %11104 = vrot.lane.b32.xlu1 %v15403_v59, %s11868_s30  ;;  %v15422_v22 = vpop.permute.xlu0 %10829  ;;  %v7948_v23 = vmax.f32 %v7884_v31, %v7916_v32  ;;  %v3504_v35 = vld [vmem:[#allocation4 + $0x19a] sm:$0xff]  ;;  %19694 = vst [vmem:[#allocation156_spill] sm:$0xff] %v15437_v14  ;;  %v8011_v47 = vmax.f32 %v7947_v6, %v7979_v50  ;;  %v7893_v37 = vmax.f32 %v19695_v45, %v7861_v62  ;;  %v3502_v12 = vld [vmem:[#allocation4 + $0x182] sm:$0xff]  ;;  %v3506_v31 = vld [vmem:[#allocation4 + $0x1b2] sm:$0xff] }
 0x48b   : > { %19689 = vst [vmem:[#allocation126_spill] sm:$0xff] %v15422_v22  ;;  %19691 = vst [vmem:[#allocation140_spill] sm:$0xff] %v15429_v7  ;;  %v7885_v22 = vmax.f32 %v19692_v54, %v8043_v10  ;;  %v19696_v25 = vld [vmem:[#allocation17_spill] sm:$0xff]  ;;  %v15441_v54 = vmax.f32 %v8010_v24, %v8042_v49  ;;  %v7918_v44 = vld [vmem:[#allocation2 + $0x69] sm:$0xff]  ;;  %v15446_v63 = vpop.permute.xlu1 %10834  ;;  %v11128_v6 = vpack.i.bf16 %v3505_v40, %v3504_v35 }
 0x48c   : > { %19693 = vst [vmem:[#allocation155_spill] sm:$0xff] %v15435_v21  ;;  %v7894_v29 = vmax.f32 %v19696_v25, %v11808_v51  ;;  %v3507_v32 = vld [vmem:[#allocation4 + $0x1ba] sm:$0xff]  ;;  %19700 = vst [vmem:[#allocation166_spill] sm:$0xff] %v15446_v63  ;;  %v11123_v50 = vpack.i.bf16 %v3503_v9, %v3502_v12  ;;  %v15449_v62 = vmax.f32 %v8005_v28, %v15349_v34  ;;  %v3508_v25 = vld [vmem:[#allocation4 + $0x4b] sm:$0xff] }
 0x48d   : > { %11119 = vrot.lane.b32.xlu0 %v11118_v48, %s11868_s30  ;;  %19697 = vst [vmem:[#allocation142_spill] sm:$0xff] %v15441_v54  ;;  %v7917_v38 = vld [vmem:[#allocation2 + $0x61] sm:$0xff]  ;;  %v19698_v48 = vld [vmem:[#allocation19_spill] sm:$0xff]  ;;  %v15454_v49 = vmax.f32 %v8007_v18, %v15351_v52  ;;  %v15457_v24 = vmax.f32 %v8009_v58, %v15367_v5  ;;  %v11133_v34 = vpack.i.bf16 %v3507_v32, %v3506_v31 }
 0x48e   : > { %11114 = vrot.lane.b32.xlu1 %v11113_v11, %s11868_s30  ;;  %v7886_v11 = vmax.f32 %v19698_v48, %v8044_v30  ;;  %v15444_v19 = vpop.permute.xlu0 %10839  ;;  %19701 = vst [vmem:[#allocation165_spill] sm:$0xff] %v15449_v62  ;;  %v15459_v51 = vld [vmem:[#allocation2 + $0x80] sm:$0xff]  ;;  %v3509_v48 = vld [vmem:[#allocation4 + $0x53] sm:$0xff]  ;;  %v15468_v28 = vmax.f32 %v8011_v47, %v8043_v10  ;;  %v15470_v5 = vmax.f32 %v7893_v37, %v7925_v17  ;;  %v15488_v45 = vld [vmem:[#allocation2 + $0xca] sm:$0xff] }
 0x48f   : > { %19699 = vst [vmem:[#allocation158_spill] sm:$0xff] %v15444_v19  ;;  %19702 = vst [vmem:[#allocation190_spill] sm:$0xff] %v15454_v49  ;;  %v8012_v19 = vmax.f32 %v7948_v23, %v15437_v14  ;;  %v19704_v40 = vld [vmem:[#allocation25_spill] sm:$0xff]  ;;  %v15472_v18 = vmax.f32 %v7894_v29, %v7926_v60  ;;  %v15478_v12 = vmax.f32 %v7885_v22, %v7917_v38  ;;  %v10845_v32 = vpop.permute.xlu1 %10844  ;;  %v15486_v23 = vld [vmem:[#allocation2 + $0x6a] sm:$0xff] }
 0x490   : > { %19703 = vst [vmem:[#allocation189_spill] sm:$0xff] %v15457_v24  ;;  %v7888_v9 = vmax.f32 %v19704_v40, %v15459_v51  ;;  %19705 = vst [vmem:[#allocation131_spill] sm:$0xff] %v15468_v28  ;;  %v7920_v58 = vld [vmem:[#allocation2 + $0x81] sm:$0xff]  ;;  %v15482_v40 = vld [vmem:[#allocation2 + $0x78] sm:$0xff]  ;;  %v10847_v47 = vunpack.i.h.bf16 %v10845_v32  ;;  %v10846_v37 = vunpack.i.l.bf16 %v10845_v32 }
 0x491   : > { %11129 = vrot.lane.b32.xlu0 %v11128_v6, %s11868_s30  ;;  %v15476_v35 = vld [vmem:[#allocation2 + $0xc2] sm:$0xff]  ;;  %v15480_v6 = vmax.f32 %v7886_v11, %v7918_v44  ;;  %v15484_v52 = vmax.f32 %v8012_v19, %v8044_v30  ;;  %19707 = vst [vmem:[#allocation168_spill] sm:$0xff] %v15486_v23  ;;  %v15490_v22 = vld [vmem:[#allocation2 + $0xd8] sm:$0xff]  ;;  %v3511_v32 = vld [vmem:[#allocation4 + $0x6b] sm:$0xff] }
 0x492   : > { %11124 = vrot.lane.b32.xlu1 %v11123_v50, %s11868_s30  ;;  %v10850_v31 = vpop.permute.xlu0 %10849  ;;  %v11138_v50 = vpack.i.bf16 %v3509_v48, %v3508_v25  ;;  %v3512_v29 = vld [vmem:[#allocation4 + $0x7b] sm:$0xff]  ;;  %v3510_v60 = vld [vmem:[#allocation4 + $0x63] sm:$0xff]  ;;  %v15496_v25 = vmax.f32 %v7888_v9, %v7920_v58  ;;  %v15512_v9 = vsel %vm6040_vm2, %v15314_v41, %v10846_v37  ;;  %v15516_v58 = vsel %vm6040_vm2, %v15318_v36, %v10847_v47  ;;  %v15708_v21 = vld [vmem:[#allocation4 + $0x91] sm:$0xff] }
 0x493   : > { %v10852_v10 = vunpack.i.h.bf16 %v10850_v31  ;;  %v10851_v17 = vunpack.i.l.bf16 %v10850_v31  ;;  %19706 = vst [vmem:[#allocation132_spill] sm:$0xff] %v15484_v52  ;;  %v15492_v44 = vld [vmem:[#allocation2 + $0x62] sm:$0xff]  ;;  %v19708_v38 = vld [vmem:[#allocation24_spill] sm:$0xff]  ;;  %v10855_v41 = vpop.permute.xlu1 %10854  ;;  %v15530_v36 = vpack.i.bf16 %v3511_v32, %v3510_v60  ;;  %v8022_v47 = vmax.f32 %v15472_v18, %v15488_v45  ;;  %v7868_v18 = vld [vmem:[#allocation2 + $0x110] sm:$0xff] }
 0x494   : > { %v7887_v11 = vmax.f32 %v19708_v38, %v15482_v40  ;;  %v15500_v30 = vld [vmem:[#allocation2 + $0xe0] sm:$0xff]  ;;  %v10857_v4 = vunpack.i.h.bf16 %v10855_v41  ;;  %v7867_v45 = vld [vmem:[#allocation2 + $0x108] sm:$0xff] }
 0x495   : > { %11139 = vrot.lane.b32.xlu0 %v11138_v50, %s11869_s12  ;;  %v7919_v19 = vld [vmem:[#allocation2 + $0x79] sm:$0xff]  ;;  %v15504_v48 = vsel %vm6040_vm2, %v15306_v15, %v10851_v17  ;;  %v15508_v31 = vsel %vm6040_vm2, %v15310_v57, %v10852_v10  ;;  %v8021_v50 = vmax.f32 %v15470_v5, %v15476_v35  ;;  %v15520_v38 = vld [vmem:[#allocation2 + $0x82] sm:$0xff]  ;;  %v15524_v10 = vld [vmem:[#allocation2 + $0xf0] sm:$0xff]  ;;  %19713 = vst [vmem:[#allocation134_spill] sm:$0xff] %v15530_v36 }
 0x496   : > { %11134 = vrot.lane.b32.xlu1 %v11133_v34, %s11868_s30  ;;  %v3513_v34 = vld [vmem:[#allocation4 + $0x83] sm:$0xff]  ;;  %19709 = vst [vmem:[#allocation167_spill] sm:$0xff] %v15520_v38  ;;  %v19710_v15 = vld [vmem:[#allocation20_spill] sm:$0xff]  ;;  %v15526_v63 = vpop.permute.xlu0 %10859  ;;  %v8014_v5 = vmax.f32 %v15480_v6, %v15486_v23  ;;  %v15542_v60 = vmax.f32 %v7887_v11, %v7919_v19  ;;  %v15560_v19 = vsel %vm6040_vm2, %v15333_v2, %v10857_v4 }
 0x497   : > { %v7895_v17 = vmax.f32 %v19710_v15, %v15490_v22  ;;  %v7927_v57 = vld [vmem:[#allocation2 + $0xd9] sm:$0xff]  ;;  %19711 = vst [vmem:[#allocation174_spill] sm:$0xff] %v15526_v63  ;;  %v15528_v37 = vpack.i.bf16 %v3513_v34, %v3512_v29  ;;  %v10856_v15 = vunpack.i.l.bf16 %v10855_v41  ;;  %v8013_v63 = vmax.f32 %v15478_v12, %v15492_v44  ;;  %v7928_v41 = vld [vmem:[#allocation2 + $0xe1] sm:$0xff]  ;;  %v8047_v12 = vld [vmem:[#allocation2 + $0x90] sm:$0xff] }
 0x498   : > { %v15536_v35 = vld [vmem:[#allocation2 + $0xf8] sm:$0xff]  ;;  %v19714_v29 = vld [vmem:[#allocation21_spill] sm:$0xff]  ;;  %v8016_v44 = vmax.f32 %v15496_v25, %v15520_v38  ;;  %v15567_v25 = vpop.permute.xlu1 %10864  ;;  %v19720_v4 = vld [vmem:[#allocation22_spill] sm:$0xff]  ;;  %19758 = vst [vmem:[#allocation20_spill] sm:$0xff] %v15708_v21 }
 0x499   : > { %19712 = vst [vmem:[#allocation173_spill] sm:$0xff] %v15528_v37  ;;  %v7896_v34 = vmax.f32 %v19714_v29, %v15500_v30  ;;  %v15544_v32 = vld [vmem:[#allocation2 + $0x7a] sm:$0xff]  ;;  %11149 = vrot.lane.b32.xlu0 %v15528_v37, %s11869_s12  ;;  %v15556_v11 = vsel %vm6040_vm2, %v15329_v8, %v10856_v15  ;;  %v15562_v27 = vmax.f32 %v7895_v17, %v7927_v57  ;;  %19718 = vst [vmem:[#allocation178_spill] sm:$0xff] %v15567_v25  ;;  %v19721_v17 = vld [vmem:[#allocation23_spill] sm:$0xff] }
 0x49a   : > { %11144 = vrot.lane.b32.xlu1 %v15530_v36, %s11869_s12  ;;  %v3517_v29 = vld [vmem:[#allocation4 + $0xb3] sm:$0xff]  ;;  %v7869_v6 = vld [vmem:[#allocation2 + $0x120] sm:$0xff]  ;;  %v15565_v28 = vpop.permute.xlu0 %10869  ;;  %v11153_v8 = vpack.i.bf16 %v3515_v56, %v3514_v46  ;;  %v15570_v15 = vmax.f32 %v8014_v5, %v15459_v51  ;;  %v7897_v2 = vmax.f32 %v19720_v4, %v15524_v10  ;;  %v7898_v57 = vmax.f32 %v19721_v17, %v15536_v35  ;;  %v19722_v54 = vld [vmem:[#allocation26_spill] sm:$0xff] }
 0x49b   : > { %19715 = vst [vmem:[#allocation147_spill] sm:$0xff] %v15562_v27  ;;  %v19716_v23 = vld [vmem:[#allocation32_spill] sm:$0xff]  ;;  %19717 = vst [vmem:[#allocation148_spill] sm:$0xff] %v15565_v28  ;;  %v11158_v14 = vpack.i.bf16 %v3517_v29, %v3516_v1  ;;  %v7899_v24 = vmax.f32 %v19722_v54, %v7867_v45  ;;  %v15578_v28 = vmax.f32 %v8021_v50, %v15490_v22  ;;  %v19724_v46 = vld [vmem:[#allocation27_spill] sm:$0xff] }
 0x49c   : > { %v7889_v52 = vmax.f32 %v19716_v23, %v8047_v12  ;;  %19719 = vst [vmem:[#allocation177_spill] sm:$0xff] %v15570_v15  ;;  %v7921_v37 = vld [vmem:[#allocation2 + $0x91] sm:$0xff]  ;;  %v3520_v3 = vld [vmem:[#allocation4 + $0xdb] sm:$0xff]  ;;  %v3518_v23 = vld [vmem:[#allocation4 + $0xc3] sm:$0xff]  ;;  %v8015_v56 = vmax.f32 %v15542_v60, %v15544_v32  ;;  %v7900_v1 = vmax.f32 %v19724_v46, %v7868_v18  ;;  %v15588_v54 = vmax.f32 %v8022_v47, %v15500_v30  ;;  %v15610_v47 = vpop.permute.xlu1 %10874 }
 0x49d   : > { %19723 = vst [vmem:[#allocation176_spill] sm:$0xff] %v15578_v28  ;;  %v7931_v51 = vld [vmem:[#allocation2 + $0x109] sm:$0xff]  ;;  %v7932_v5 = vld [vmem:[#allocation2 + $0x111] sm:$0xff]  ;;  %11159 = vrot.lane.b32.xlu0 %v11158_v14, %s11869_s12  ;;  %v15591_v10 = vmax.f32 %v8013_v63, %v15482_v40  ;;  %v7933_v32 = vld [vmem:[#allocation2 + $0x121] sm:$0xff]  ;;  %v15598_v17 = vmax.f32 %v7896_v34, %v7928_v41  ;;  %v15616_v34 = vmax.f32 %v7898_v57, %v7930_v42 }
 0x49e   : > { %v15583_v29 = vld [vmem:[#allocation2 + $0x128] sm:$0xff]  ;;  %11154 = vrot.lane.b32.xlu1 %v11153_v8, %s11869_s12  ;;  %19725 = vst [vmem:[#allocation175_spill] sm:$0xff] %v15588_v54  ;;  %v11809_v22 = vld [vmem:[#allocation2 + $0x98] sm:$0xff]  ;;  %v15602_v8 = vld [vmem:[#allocation2 + $0x140] sm:$0xff]  ;;  %v15604_v30 = vmax.f32 %v7889_v52, %v7921_v37  ;;  %v15608_v40 = vpop.permute.xlu0 %10879  ;;  %v15618_v41 = vmax.f32 %v7899_v24, %v7931_v51  ;;  %v15620_v25 = vmax.f32 %v8015_v56, %v8047_v12 }
 0x49f   : > { %19726 = vst [vmem:[#allocation187_spill] sm:$0xff] %v15591_v10  ;;  %v15593_v50 = vmax.f32 %v8016_v44, %v11809_v22  ;;  %v19728_v35 = vld [vmem:[#allocation28_spill] sm:$0xff]  ;;  %v3521_v18 = vld [vmem:[#allocation4 + $0xe3] sm:$0xff]  ;;  %v3519_v4 = vld [vmem:[#allocation4 + $0xcb] sm:$0xff]  ;;  %v15614_v22 = vmax.f32 %v7897_v2, %v7929_v55  ;;  %v15622_v10 = vmax.f32 %v7900_v1, %v7932_v5 }
 0x4a0   : > { %v7901_v60 = vmax.f32 %v19728_v35, %v7869_v6  ;;  %v15596_v45 = vld [vmem:[#allocation2 + $0x92] sm:$0xff]  ;;  %19729 = vst [vmem:[#allocation150_spill] sm:$0xff] %v15598_v17  ;;  %19730 = vst [vmem:[#allocation182_spill] sm:$0xff] %v15608_v40  ;;  %v11168_v6 = vpack.i.bf16 %v3521_v18, %v3520_v3  ;;  %v11163_v44 = vpack.i.bf16 %v3519_v4, %v3518_v23  ;;  %v19737_v40 = vld [vmem:[#allocation29_spill] sm:$0xff]  ;;  %v10885_v55 = vpop.permute.xlu1 %10884 }
 0x4a1   : > { %19727 = vst [vmem:[#allocation188_spill] sm:$0xff] %v15593_v50  ;;  %v15600_v14 = vld [vmem:[#allocation2 + $0x138] sm:$0xff]  ;;  %v15606_v63 = vld [vmem:[#allocation2 + $0x150] sm:$0xff]  ;;  %19731 = vst [vmem:[#allocation181_spill] sm:$0xff] %v15610_v47  ;;  %v7902_v3 = vmax.f32 %v19737_v40, %v15583_v29  ;;  %v8017_v40 = vmax.f32 %v15604_v30, %v15596_v45  ;;  %v10887_v50 = vunpack.i.h.bf16 %v10885_v55 }
 0x4a2   : > { %19732 = vst [vmem:[#allocation180_spill] sm:$0xff] %v15614_v22  ;;  %19733 = vst [vmem:[#allocation179_spill] sm:$0xff] %v15616_v34  ;;  %v3524_v35 = vld [vmem:[#allocation4 + $0x10b] sm:$0xff]  ;;  %v3525_v52 = vld [vmem:[#allocation4 + $0x113] sm:$0xff]  ;;  %11169 = vrot.lane.b32.xlu0 %v11168_v6, %s11869_s12  ;;  %11164 = vrot.lane.b32.xlu1 %v11163_v44, %s11869_s12  ;;  %v15634_v2 = vmax.f32 %v7901_v60, %v7933_v32  ;;  %v10890_v44 = vpop.permute.xlu0 %10889 }
 0x4a3   : > { %19734 = vst [vmem:[#allocation192_spill] sm:$0xff] %v15618_v41  ;;  %v3522_v37 = vld [vmem:[#allocation4 + $0xf3] sm:$0xff]  ;;  %19735 = vst [vmem:[#allocation184_spill] sm:$0xff] %v15620_v25  ;;  %v7934_v24 = vld [vmem:[#allocation2 + $0x129] sm:$0xff]  ;;  %v10892_v47 = vunpack.i.h.bf16 %v10890_v44  ;;  %v10886_v25 = vunpack.i.l.bf16 %v10885_v55 }
 0x4a4   : > { %19736 = vst [vmem:[#allocation183_spill] sm:$0xff] %v15622_v10  ;;  %v15626_v23 = vld [vmem:[#allocation2 + $0x158] sm:$0xff]  ;;  %19739 = vst [vmem:[#allocation5_spill] sm:$0xff] %v15634_v2  ;;  %v19740_v12 = vld [vmem:[#allocation30_spill] sm:$0xff] }
 0x4a5   : > { %v15630_v42 = vld [vmem:[#allocation2 + $0x9a] sm:$0xff]  ;;  %v7903_v57 = vmax.f32 %v19740_v12, %v15600_v14  ;;  %v19741_v56 = vld [vmem:[#allocation31_spill] sm:$0xff]  ;;  %v15640_v5 = vld [vmem:[#allocation2 + $0x168] sm:$0xff]  ;;  %v11178_v14 = vpack.i.bf16 %v3525_v52, %v3524_v35 }
 0x4a6   : > { %19738 = vst [vmem:[#allocation6_spill] sm:$0xff] %v15630_v42  ;;  %v7904_v1 = vmax.f32 %v19741_v56, %v15602_v8  ;;  %v7935_v51 = vld [vmem:[#allocation2 + $0x139] sm:$0xff]  ;;  %v15642_v29 = vld [vmem:[#allocation2 + $0x170] sm:$0xff]  ;;  %v7936_v4 = vld [vmem:[#allocation2 + $0x141] sm:$0xff]  ;;  %v10891_v42 = vunpack.i.l.bf16 %v10890_v44 }
 0x4a7   : > { %v3523_v18 = vld [vmem:[#allocation4 + $0xfb] sm:$0xff]  ;;  %v8049_v6 = vld [vmem:[#allocation2 + $0xa8] sm:$0xff]  ;;  %v7937_v8 = vld [vmem:[#allocation2 + $0x151] sm:$0xff]  ;;  %11179 = vrot.lane.b32.xlu0 %v11178_v14, %s11869_s12 }
 0x4a8   : > { %v19742_v60 = vld [vmem:[#allocation33_spill] sm:$0xff]  ;;  %v11173_v12 = vpack.i.bf16 %v3523_v18, %v3522_v37  ;;  %v3527_v2 = vld [vmem:[#allocation4 + $0x12b] sm:$0xff]  ;;  %v15660_v55 = vsel %vm6040_vm2, %v15379_v0, %v10891_v42  ;;  %v15678_v0 = vmax.f32 %v7903_v57, %v7935_v51  ;;  %v15680_v42 = vpop.permute.xlu0 %10899  ;;  %v3546_v22 = vld [vmem:[#allocation4 + $0x94] sm:$0xff] }
 0x4a9   : > { %v7905_v32 = vmax.f32 %v19742_v60, %v15606_v63  ;;  %v3528_v46 = vld [vmem:[#allocation4 + $0x13b] sm:$0xff]  ;;  %v3529_v38 = vld [vmem:[#allocation4 + $0x143] sm:$0xff]  ;;  %v19744_v10 = vld [vmem:[#allocation35_spill] sm:$0xff]  ;;  %19748 = vst [vmem:[#allocation9_spill] sm:$0xff] %v15680_v42 }
 0x4aa   : > { %v7938_v56 = vld [vmem:[#allocation2 + $0x159] sm:$0xff]  ;;  %v3526_v15 = vld [vmem:[#allocation4 + $0x123] sm:$0xff]  ;;  %v7907_v63 = vmax.f32 %v19744_v10, %v15640_v5  ;;  %v7940_v37 = vld [vmem:[#allocation2 + $0x171] sm:$0xff]  ;;  %11174 = vrot.lane.b32.xlu1 %v11173_v12, %s11869_s12  ;;  %v15668_v10 = vsel %vm6040_vm2, %v15387_v33, %v10886_v25  ;;  %v15672_v5 = vsel %vm6040_vm2, %v15391_v53, %v10887_v50  ;;  %v15676_v12 = vmax.f32 %v7902_v3, %v7934_v24 }
 0x4ab   : > { %v19743_v45 = vld [vmem:[#allocation34_spill] sm:$0xff]  ;;  %v19745_v60 = vld [vmem:[#allocation36_spill] sm:$0xff]  ;;  %19747 = vst [vmem:[#allocation7_spill] sm:$0xff] %v15678_v0  ;;  %v15688_v25 = vld [vmem:[#allocation4 + $0x60] sm:$0xff]  ;;  %v15714_v17 = vmax.f32 %v7905_v32, %v7937_v8 }
 0x4ac   : > { %v7906_v30 = vmax.f32 %v19743_v45, %v15626_v23  ;;  %v7908_v35 = vmax.f32 %v19745_v60, %v15642_v29  ;;  %v7939_v52 = vld [vmem:[#allocation2 + $0x169] sm:$0xff]  ;;  %v15664_v23 = vsel %vm6040_vm2, %v15383_v43, %v10892_v47  ;;  %v15674_v29 = vld [vmem:[#allocation4 + $0x54] sm:$0xff]  ;;  %v3544_v44 = vld [vmem:[#allocation4 + $0x7c] sm:$0xff]  ;;  %19746 = vst [vmem:[#allocation8_spill] sm:$0xff] %v15676_v12  ;;  %v10895_v43 = vpop.permute.xlu1 %10894  ;;  %v15682_v47 = vpack.i.bf16 %v3529_v38, %v3528_v46 }
 0x4ad   : > { %v15656_v18 = vld [vmem:[#allocation4 + $0x4c] sm:$0xff]  ;;  %v3542_v14 = vld [vmem:[#allocation4 + $0x64] sm:$0xff]  ;;  %v15684_v45 = vpack.i.bf16 %v3527_v2, %v3526_v15  ;;  %v15696_v3 = vld [vmem:[#allocation4 + $0x78] sm:$0xff]  ;;  %v15704_v15 = vmax.f32 %v7904_v1, %v7936_v4  ;;  %v15706_v46 = vmax.f32 %v8017_v40, %v8049_v6  ;;  %v10897_v2 = vunpack.i.h.bf16 %v10895_v43  ;;  %19761 = vst [vmem:[#allocation22_spill] sm:$0xff] %v15714_v17 }
 0x4ae   : > { %19749 = vst [vmem:[#allocation10_spill] sm:$0xff] %v15682_v47  ;;  %v15686_v33 = vld [vmem:[#allocation4 + $0x16b] sm:$0xff]  ;;  %v15692_v50 = vld [vmem:[#allocation4 + $0x61] sm:$0xff]  ;;  %19752 = vst [vmem:[#allocation18_spill] sm:$0xff] %v15696_v3  ;;  %v10896_v51 = vunpack.i.l.bf16 %v10895_v43  ;;  %v15716_v1 = vmax.f32 %v7906_v30, %v7938_v56  ;;  %v15718_v4 = vmax.f32 %v7907_v63, %v7939_v52  ;;  %11189 = vrot.lane.b32.xlu0 %v15682_v47, %s11869_s12 }
 0x4af   : > { %19750 = vst [vmem:[#allocation12_spill] sm:$0xff] %v15684_v45  ;;  %v15690_v53 = vld [vmem:[#allocation4 + $0x68] sm:$0xff]  ;;  %19751 = vst [vmem:[#allocation13_spill] sm:$0xff] %v15692_v50  ;;  %v15698_v24 = vld [vmem:[#allocation4 + $0x80] sm:$0xff]  ;;  %11184 = vrot.lane.b32.xlu1 %v15684_v45, %s11869_s12  ;;  %v15734_v8 = vmax.f32 %v7908_v35, %v7940_v37  ;;  %v15742_v30 = vsel %vm6040_vm2, %v15419_v26, %v10897_v2  ;;  %v15754_v37 = vpop.permute.xlu0 %10909 }
 0x4b0   : > { %v15694_v60 = vld [vmem:[#allocation4 + $0x69] sm:$0xff]  ;;  %19753 = vst [vmem:[#allocation16_spill] sm:$0xff] %v15698_v24  ;;  %v15700_v57 = vld [vmem:[#allocation4 + $0x79] sm:$0xff]  ;;  %v15702_v38 = vld [vmem:[#allocation4 + $0x81] sm:$0xff]  ;;  %v15738_v56 = vsel %vm6040_vm2, %v15415_v39, %v10896_v51  ;;  %v15756_v39 = vpop.permute.xlu1 %10904 }
 0x4b1   : > { %19754 = vst [vmem:[#allocation17_spill] sm:$0xff] %v15700_v57  ;;  %19755 = vst [vmem:[#allocation19_spill] sm:$0xff] %v15702_v38  ;;  %v3533_v42 = vld [vmem:[#allocation4 + $0x173] sm:$0xff]  ;;  %v3531_v12 = vld [vmem:[#allocation4 + $0x15b] sm:$0xff] }
 0x4b2   : > { %19756 = vst [vmem:[#allocation25_spill] sm:$0xff] %v15704_v15  ;;  %19757 = vst [vmem:[#allocation24_spill] sm:$0xff] %v15706_v46  ;;  %v3530_v0 = vld [vmem:[#allocation4 + $0x153] sm:$0xff]  ;;  %v3545_v41 = vld [vmem:[#allocation4 + $0x84] sm:$0xff]  ;;  %v11198_v51 = vpack.i.bf16 %v3533_v42, %v15686_v33 }
 0x4b3   : > { %v3543_v34 = vld [vmem:[#allocation4 + $0x6c] sm:$0xff]  ;;  %v15710_v49 = vld [vmem:[#allocation4 + $0x99] sm:$0xff]  ;;  %19762 = vst [vmem:[#allocation23_spill] sm:$0xff] %v15716_v1  ;;  %19763 = vst [vmem:[#allocation26_spill] sm:$0xff] %v15718_v4  ;;  %v15759_v26 = vpack.i.bf16 %v3531_v12, %v3530_v0 }
 0x4b4   : > { %19759 = vst [vmem:[#allocation21_spill] sm:$0xff] %v15710_v49  ;;  %v15712_v16 = vld [vmem:[#allocation4 + $0x7a] sm:$0xff]  ;;  %v3548_v40 = vld [vmem:[#allocation4 + $0xac] sm:$0xff]  ;;  %19769 = vst [vmem:[#allocation33_spill] sm:$0xff] %v15734_v8  ;;  %v15761_v8 = vpack.i.bf16 %v3545_v41, %v3544_v44  ;;  %v15763_v63 = vpack.i.bf16 %v3543_v34, %v3542_v14  ;;  %11199 = vrot.lane.b32.xlu0 %v11198_v51, %s11869_s12 }
 0x4b5   : > { %19760 = vst [vmem:[#allocation32_spill] sm:$0xff] %v15712_v16  ;;  %v15724_v6 = vld [vmem:[#allocation4 + $0xa9] sm:$0xff]  ;;  %v15726_v43 = vld [vmem:[#allocation4 + $0xb1] sm:$0xff]  ;;  %v3547_v52 = vld [vmem:[#allocation4 + $0x9c] sm:$0xff]  ;;  %11194 = vrot.lane.b32.xlu1 %v15759_v26, %s11869_s12  ;;  %v15826_v16 = vpop.permute.xlu0 %10919 }
 0x4b6   : > { %19764 = vst [vmem:[#allocation27_spill] sm:$0xff] %v15724_v6  ;;  %19765 = vst [vmem:[#allocation28_spill] sm:$0xff] %v15726_v43  ;;  %v15728_v46 = vld [vmem:[#allocation4 + $0x90] sm:$0xff]  ;;  %v15730_v15 = vld [vmem:[#allocation4 + $0x98] sm:$0xff]  ;;  %v15796_v41 = vpack.i.bf16 %v3547_v52, %v3546_v22 }
 0x4b7   : > { %19766 = vst [vmem:[#allocation29_spill] sm:$0xff] %v15728_v46  ;;  %19767 = vst [vmem:[#allocation30_spill] sm:$0xff] %v15730_v15  ;;  %v15732_v32 = vld [vmem:[#allocation4 + $0x92] sm:$0xff]  ;;  %v15746_v4 = vld [vmem:[#allocation4 + $0x82] sm:$0xff] }
 0x4b8   : > { %19768 = vst [vmem:[#allocation31_spill] sm:$0xff] %v15732_v32  ;;  %19770 = vst [vmem:[#allocation34_spill] sm:$0xff] %v15746_v4  ;;  %v15748_v1 = vld [vmem:[#allocation4 + $0x93] sm:$0xff]  ;;  %v15750_v17 = vld [vmem:[#allocation4 + $0xa8] sm:$0xff]  ;;  %v15828_v4 = vpop.permute.xlu1 %10914 }
 0x4b9   : > { %19771 = vst [vmem:[#allocation35_spill] sm:$0xff] %v15748_v1  ;;  %19772 = vst [vmem:[#allocation36_spill] sm:$0xff] %v15750_v17  ;;  %v15752_v35 = vld [vmem:[#allocation4 + $0xb0] sm:$0xff]  ;;  %v3536_v2 = vld [vmem:[#allocation4 + $0x19b] sm:$0xff] }
 0x4ba   : > { %19773 = vst [vmem:[#allocation197_spill] sm:$0xff] %v15752_v35  ;;  %19774 = vst [vmem:[#allocation198_spill] sm:$0xff] %v15754_v37  ;;  %v3549_v47 = vld [vmem:[#allocation4 + $0xb4] sm:$0xff]  ;;  %v15765_v27 = vld [vmem:[#allocation4 + $0xc4] sm:$0xff] }
 0x4bb   : > { %19775 = vst [vmem:[#allocation199_spill] sm:$0xff] %v15756_v39  ;;  %19776 = vst [vmem:[#allocation200_spill] sm:$0xff] %v15759_v26  ;;  %v15767_v20 = vld [vmem:[#allocation4 + $0xc1] sm:$0xff]  ;;  %v15769_v7 = vld [vmem:[#allocation4 + $0xc9] sm:$0xff]  ;;  %v15814_v26 = vpack.i.bf16 %v3549_v47, %v3548_v40 }
 0x4bc   : > { %19777 = vst [vmem:[#allocation201_spill] sm:$0xff] %v15761_v8  ;;  %19778 = vst [vmem:[#allocation202_spill] sm:$0xff] %v15767_v20  ;;  %v15771_v62 = vld [vmem:[#allocation4 + $0x9a] sm:$0xff]  ;;  %v15773_v37 = vld [vmem:[#allocation4 + $0xaa] sm:$0xff] }
 0x4bd   : > { %19779 = vst [vmem:[#allocation203_spill] sm:$0xff] %v15769_v7  ;;  %19780 = vst [vmem:[#allocation204_spill] sm:$0xff] %v15771_v62  ;;  %v15775_v39 = vld [vmem:[#allocation4 + $0xab] sm:$0xff]  ;;  %v3537_v12 = vld [vmem:[#allocation4 + $0x1a3] sm:$0xff] }
 0x4be   : > { %19781 = vst [vmem:[#allocation205_spill] sm:$0xff] %v15773_v37  ;;  %19782 = vst [vmem:[#allocation206_spill] sm:$0xff] %v15775_v39  ;;  %v3534_v0 = vld [vmem:[#allocation4 + $0x183] sm:$0xff]  ;;  %v3535_v42 = vld [vmem:[#allocation4 + $0x18b] sm:$0xff]  ;;  %v11208_v45 = vpack.i.bf16 %v3537_v12, %v3536_v2  ;;  %v10930_v12 = vpop.permute.xlu0 %10929 }
 0x4bf   : > { %v15785_v33 = vld [vmem:[#allocation4 + $0x9b] sm:$0xff]  ;;  %v15789_v54 = vld [vmem:[#allocation4 + $0xc8] sm:$0xff]  ;;  %19787 = vst [vmem:[#allocation211_spill] sm:$0xff] %v15796_v41  ;;  %v15806_v38 = vld [vmem:[#allocation4 + $0xb2] sm:$0xff]  ;;  %v11203_v47 = vpack.i.bf16 %v3535_v42, %v3534_v0 }
 0x4c0   : > { %19783 = vst [vmem:[#allocation207_spill] sm:$0xff] %v15785_v33  ;;  %v15787_v36 = vld [vmem:[#allocation4 + $0xc0] sm:$0xff]  ;;  %19785 = vst [vmem:[#allocation209_spill] sm:$0xff] %v15789_v54  ;;  %v15800_v44 = vld [vmem:[#allocation4 + $0xcc] sm:$0xff]  ;;  %11209 = vrot.lane.b32.xlu0 %v11208_v45, %s11869_s12 }
 0x4c1   : > { %19784 = vst [vmem:[#allocation208_spill] sm:$0xff] %v15787_v36  ;;  %v15791_v28 = vld [vmem:[#allocation4 + $0xc2] sm:$0xff]  ;;  %19788 = vst [vmem:[#allocation212_spill] sm:$0xff] %v15806_v38  ;;  %v15808_v3 = vld [vmem:[#allocation4 + $0xb3] sm:$0xff]  ;;  %11204 = vrot.lane.b32.xlu1 %v11203_v47, %s11869_s12  ;;  %v19815_v47 = vpack.i.bf16 %v15674_v29, %v15656_v18 }
 0x4c2   : > { %19786 = vst [vmem:[#allocation210_spill] sm:$0xff] %v15791_v28  ;;  %v15798_v34 = vld [vmem:[#allocation4 + $0xdc] sm:$0xff]  ;;  %19789 = vst [vmem:[#allocation213_spill] sm:$0xff] %v15808_v3  ;;  %v15812_v24 = vld [vmem:[#allocation4 + $0xc4] sm:$0xff]  ;;  %v10925_v28 = vpop.permute.xlu1 %10924 }
 0x4c3   : > { %v15810_v51 = vld [vmem:[#allocation4 + $0xc3] sm:$0xff]  ;;  %19791 = vst [vmem:[#allocation215_spill] sm:$0xff] %v15812_v24  ;;  %v3538_v22 = vld [vmem:[#allocation4 + $0x1b3] sm:$0xff]  ;;  %v3539_v52 = vld [vmem:[#allocation4 + $0x1bb] sm:$0xff]  ;;  %v10931_v24 = vunpack.i.l.bf16 %v10930_v12 }
 0x4c4   : > { %19790 = vst [vmem:[#allocation214_spill] sm:$0xff] %v15810_v51  ;;  %19792 = vst [vmem:[#allocation216_spill] sm:$0xff] %v15814_v26  ;;  %v15824_v49 = vld [vmem:[#allocation4 + $0xca] sm:$0xff]  ;;  %v15830_v40 = vld [vmem:[#allocation4 + $0xe1] sm:$0xff]  ;;  %v11213_v2 = vpack.i.bf16 %v3539_v52, %v3538_v22  ;;  %v10926_v51 = vunpack.i.l.bf16 %v10925_v28  ;;  %11219 = vrot.lane.b32.xlu0 %v19815_v47, %s11874_s23 }
 0x4c5   : > { %19794 = vst [vmem:[#allocation218_spill] sm:$0xff] %v15824_v49  ;;  %19795 = vst [vmem:[#allocation219_spill] sm:$0xff] %v15826_v16  ;;  %v15836_v57 = vld [vmem:[#allocation4 + $0xcb] sm:$0xff]  ;;  %v15840_v21 = vld [vmem:[#allocation4 + $0xd8] sm:$0xff] }
 0x4c6   : > { %19796 = vst [vmem:[#allocation220_spill] sm:$0xff] %v15828_v4  ;;  %19797 = vst [vmem:[#allocation221_spill] sm:$0xff] %v15830_v40  ;;  %v15838_v32 = vld [vmem:[#allocation4 + $0xcc] sm:$0xff]  ;;  %v15842_v6 = vld [vmem:[#allocation4 + $0xe0] sm:$0xff]  ;;  %v10932_v40 = vunpack.i.h.bf16 %v10930_v12  ;;  %11214 = vrot.lane.b32.xlu1 %v11213_v2, %s11869_s12  ;;  %v15915_v12 = vsel %vm6073_vm4, %v15504_v48, %v10931_v24 }
 0x4c7   : > { %19798 = vst [vmem:[#allocation222_spill] sm:$0xff] %v15836_v57  ;;  %19799 = vst [vmem:[#allocation223_spill] sm:$0xff] %v15838_v32  ;;  %v15852_v14 = vld [vmem:[#allocation4 + $0xda] sm:$0xff]  ;;  %v15860_v4 = vld [vmem:[#allocation4 + $0xe4] sm:$0xff]  ;;  %v10927_v32 = vunpack.i.h.bf16 %v10925_v28  ;;  %v15935_v28 = vpop.permute.xlu0 %10939 }
 0x4c8   : > { %19800 = vst [vmem:[#allocation224_spill] sm:$0xff] %v15840_v21  ;;  %19801 = vst [vmem:[#allocation225_spill] sm:$0xff] %v15842_v6  ;;  %v15854_v50 = vld [vmem:[#allocation4 + $0xdb] sm:$0xff]  ;;  %v15868_v20 = vld [vmem:[#allocation4 + $0xe3] sm:$0xff]  ;;  %v15919_v52 = vsel %vm6073_vm4, %v15508_v31, %v10932_v40  ;;  %v10935_v31 = vpop.permute.xlu1 %10934  ;;  %11229 = vrot.lane.b32.xlu0 %v15761_v8, %s11874_s23 }
 0x4c9   : > { %19802 = vst [vmem:[#allocation226_spill] sm:$0xff] %v15852_v14  ;;  %19803 = vst [vmem:[#allocation227_spill] sm:$0xff] %v15854_v50  ;;  %v15856_v16 = vld [vmem:[#allocation4 + $0xdc] sm:$0xff]  ;;  %v15872_v39 = vld [vmem:[#allocation4 + $0xf4] sm:$0xff]  ;;  %v15927_v18 = vsel %vm6073_vm4, %v15516_v58, %v10927_v32  ;;  %v10937_v50 = vunpack.i.h.bf16 %v10935_v31 }
 0x4ca   : > { %19804 = vst [vmem:[#allocation228_spill] sm:$0xff] %v15856_v16  ;;  %v15866_v42 = vld [vmem:[#allocation4 + $0xe2] sm:$0xff]  ;;  %19806 = vst [vmem:[#allocation230_spill] sm:$0xff] %v15868_v20  ;;  %v15884_v49 = vld [vmem:[#allocation4 + $0xf1] sm:$0xff]  ;;  %v10936_v20 = vunpack.i.l.bf16 %v10935_v31  ;;  %11224 = vrot.lane.b32.xlu1 %v15763_v63, %s11874_s23 }
 0x4cb   : > { %19805 = vst [vmem:[#allocation229_spill] sm:$0xff] %v15866_v42  ;;  %v15874_v45 = vld [vmem:[#allocation4 + $0xfc] sm:$0xff]  ;;  %v15882_v0 = vld [vmem:[#allocation4 + $0xe4] sm:$0xff]  ;;  %19808 = vst [vmem:[#allocation232_spill] sm:$0xff] %v15884_v49 }
 0x4cc   : > { %19807 = vst [vmem:[#allocation231_spill] sm:$0xff] %v15882_v0  ;;  %v15886_v7 = vld [vmem:[#allocation4 + $0xf9] sm:$0xff]  ;;  %v2931_v24 = vld [vmem:[#allocation4 + $0x8] sm:$0xff]  ;;  %19819 = vst [vmem:[#allocation240_spill] sm:$0xff] %v15935_v28  ;;  %v15962_v58 = vsel %vm6073_vm4, %v15556_v11, %v10936_v20  ;;  %11239 = vrot.lane.b32.xlu0 %v15814_v26, %s11874_s23 }
 0x4cd   : > { %19809 = vst [vmem:[#allocation233_spill] sm:$0xff] %v15886_v7  ;;  %v15898_v57 = vld [vmem:[#allocation4 + $0xf8] sm:$0xff]  ;;  %v2930_v48 = vld [vmem:[#allocation4] sm:$0xff]  ;;  %v19822_v42 = vld [vmem:[#allocation83_spill] sm:$0xff] }
 0x4ce   : > { %19811 = vst [vmem:[#allocation235_spill] sm:$0xff] %v15898_v57  ;;  %v15900_v54 = vld [vmem:[#allocation4 + $0xf2] sm:$0xff]  ;;  %v15929_v29 = vld [vmem:[#allocation4 + $0xfa] sm:$0xff]  ;;  %v9872_v6 = vunpack.i.h.bf16 %v19822_v42  ;;  %v9871_v40 = vunpack.i.l.bf16 %v19822_v42  ;;  %v15966_v42 = vsel %vm6073_vm4, %v15560_v19, %v10937_v50  ;;  %v9892_v19 = vunpack.i.h.bf16 %v19823_v13  ;;  %v19828_v50 = vld [vmem:[#allocation42_spill] sm:$0xff]  ;;  %11234 = vrot.lane.b32.xlu1 %v15796_v41, %s11874_s23 }
 0x4cf   : > { %19812 = vst [vmem:[#allocation236_spill] sm:$0xff] %v15900_v54  ;;  %v15902_v36 = vld [vmem:[#allocation4 + $0xf3] sm:$0xff]  ;;  %v15931_v2 = vld [vmem:[#allocation4 + $0xfb] sm:$0xff] }
 0x4d0   : > { %19813 = vst [vmem:[#allocation237_spill] sm:$0xff] %v15902_v36  ;;  %v19814_v21 = vld [vmem:[#allocation80_spill] sm:$0xff]  ;;  %19817 = vst [vmem:[#allocation238_spill] sm:$0xff] %v15931_v2  ;;  %v19824_v36 = vld [vmem:[#allocation47_spill] sm:$0xff] }
 0x4d1   : > { %v9862_v22 = vunpack.i.h.bf16 %v19814_v21  ;;  %v9861_v14 = vunpack.i.l.bf16 %v19814_v21  ;;  %v15923_v21 = vsel %vm6073_vm4, %v15512_v9, %v10926_v51  ;;  %19816 = vst [vmem:[#allocation80_spill] sm:$0xff] %v15929_v29  ;;  %v15933_v47 = vld [vmem:[#allocation4 + $0xf4] sm:$0xff]  ;;  %v19820_v51 = vld [vmem:[#allocation38_spill] sm:$0xff]  ;;  %v15947_v28 = vld [vmem:[#allocation4 + $0xfc] sm:$0xff]  ;;  %v9891_v9 = vunpack.i.l.bf16 %v19823_v13 }
 0x4d2   : > { %19818 = vst [vmem:[#allocation239_spill] sm:$0xff] %v15933_v47  ;;  %v9867_v16 = vunpack.i.h.bf16 %v19820_v51  ;;  %v9866_v0 = vunpack.i.l.bf16 %v19820_v51  ;;  %19821 = vst [vmem:[#allocation38_spill] sm:$0xff] %v15947_v28  ;;  %v9882_v2 = vunpack.i.h.bf16 %v19824_v36  ;;  %v9881_v54 = vunpack.i.l.bf16 %v19824_v36  ;;  %v19825_v29 = vld [vmem:[#allocation46_spill] sm:$0xff]  ;;  %v15972_v47 = vpop.permute.xlu0 %10949  ;;  %v11812_v11 = vld [vmem:[#allocation4 + $0x18] sm:$0xff] }
 0x4d3   : > { %v5654_v51 = vsel %vm426_vm1, %v2931_v24, %v9862_v22  ;;  %v5653_v31 = vsel %vm426_vm1, %v2930_v48, %v9861_v14  ;;  %v9877_v49 = vunpack.i.h.bf16 %v19825_v29  ;;  %v9876_v32 = vunpack.i.l.bf16 %v19825_v29  ;;  %19826 = vst [vmem:[#allocation83_spill] sm:$0xff] %v15972_v47  ;;  %v15974_v22 = vpop.permute.xlu1 %10944  ;;  %v11811_v14 = vld [vmem:[#allocation4 + $0x20] sm:$0xff]  ;;  %v11813_v7 = vld [vmem:[#allocation4 + $0x30] sm:$0xff]  ;;  %v11814_v26 = vld [vmem:[#allocation4 + $0x38] sm:$0xff] }
 0x4d4   : > { %19827 = vst [vmem:[#allocation48_spill] sm:$0xff] %v15974_v22  ;;  %v5656_v20 = vsel %vm426_vm1, %v11811_v14, %v9867_v16  ;;  %v5655_v48 = vsel %vm426_vm1, %v11812_v11, %v9866_v0  ;;  %v9896_v24 = vunpack.i.l.bf16 %v19828_v50  ;;  %v5685_v36 = vsel %vm2299_vm5, %v5653_v31, %v9871_v40  ;;  %v19829_v16 = vld [vmem:[#allocation39_spill] sm:$0xff]  ;;  %v19830_v14 = vld [vmem:[#allocation44_spill] sm:$0xff]  ;;  %v19854_v38 = vld [vmem:[#allocation57_spill] sm:$0xff] }
 0x4d5   : > { %v5686_v28 = vsel %vm2299_vm5, %v5654_v51, %v9872_v6  ;;  %v5657_v29 = vsel %vm426_vm1, %v11813_v7, %v9891_v9  ;;  %v9897_v47 = vunpack.i.h.bf16 %v19828_v50  ;;  %v9887_v0 = vunpack.i.h.bf16 %v19829_v16  ;;  %v19831_v9 = vld [vmem:[#allocation45_spill] sm:$0xff]  ;;  %v11821_v41 = vld [vmem:[#allocation4 + $0xf0] sm:$0xff]  ;;  %v11822_v1 = vld [vmem:[#allocation4 + $0xf8] sm:$0xff] }
 0x4d6   : > { %v9886_v13 = vunpack.i.l.bf16 %v19829_v16  ;;  %v9902_v11 = vunpack.i.h.bf16 %v19830_v14  ;;  %v9901_v40 = vunpack.i.l.bf16 %v19830_v14  ;;  %v5687_v6 = vsel %vm2299_vm5, %v5655_v48, %v9876_v32  ;;  %v15996_v50 = vpop.permute.xlu0 %10959  ;;  %v16145_v35 = vld [vmem:[#allocation4 + $0x159] sm:$0xff]  ;;  %v16157_v33 = vld [vmem:[#allocation4 + $0x171] sm:$0xff] }
 0x4d7   : > { %v5688_v7 = vsel %vm2299_vm5, %v5656_v20, %v9877_v49  ;;  %v9907_v51 = vunpack.i.h.bf16 %v19831_v9  ;;  %v9906_v31 = vunpack.i.l.bf16 %v19831_v9  ;;  %19832 = vst [vmem:[#allocation47_spill] sm:$0xff] %v15996_v50  ;;  %v15998_v22 = vpop.permute.xlu1 %10954  ;;  %v16001_v57 = vsel %vm2332_vm6, %v5685_v36, %v9881_v54  ;;  %v3556_v49 = vld [vmem:[#allocation4 + $0x10c] sm:$0xff]  ;;  %v3557_v20 = vld [vmem:[#allocation4 + $0x114] sm:$0xff]  ;;  %19862 = vst [vmem:[#allocation57_spill] sm:$0xff] %v16157_v33 }
 0x4d8   : > { %19833 = vst [vmem:[#allocation46_spill] sm:$0xff] %v15998_v22  ;;  %v16004_v16 = vsel %vm2332_vm6, %v5686_v28, %v9882_v2  ;;  %v5658_v14 = vsel %vm426_vm1, %v11814_v26, %v9892_v19  ;;  %v5689_v32 = vsel %vm2299_vm5, %v5657_v29, %v9896_v24  ;;  %v19834_v9 = vld [vmem:[#allocation50_spill] sm:$0xff]  ;;  %v19835_v22 = vld [vmem:[#allocation49_spill] sm:$0xff]  ;;  %v19836_v54 = vpack.i.bf16 %v15860_v4, %v15798_v34  ;;  %v11815_v24 = vld [vmem:[#allocation4 + $0x50] sm:$0xff] }
 0x4d9   : > { %v5690_v48 = vsel %vm2299_vm5, %v5658_v14, %v9897_v47  ;;  %v9922_v3 = vunpack.i.h.bf16 %v19834_v9  ;;  %v9921_v50 = vunpack.i.l.bf16 %v19834_v9  ;;  %v9911_v37 = vunpack.i.l.bf16 %v19835_v22  ;;  %v11816_v34 = vld [vmem:[#allocation4 + $0x48] sm:$0xff]  ;;  %v11824_v46 = vld [vmem:[#allocation4 + $0xd8] sm:$0xff] }
 0x4da   : > { %11249 = vrot.lane.b32.xlu0 %v19836_v54, %s11874_s23  ;;  %v19837_v26 = vpack.i.bf16 %v15800_v44, %v15765_v27  ;;  %v16021_v28 = vsel %vm2332_vm6, %v5687_v6, %v9886_v13  ;;  %v16024_v2 = vsel %vm2332_vm6, %v5688_v7, %v9887_v0  ;;  %v16027_v47 = vsel %vm2332_vm6, %v5689_v32, %v9901_v40  ;;  %v10970_v44 = vpop.permute.xlu0 %10969  ;;  %v3560_v6 = vld [vmem:[#allocation4 + $0x13c] sm:$0xff]  ;;  %v3561_v32 = vld [vmem:[#allocation4 + $0x144] sm:$0xff]  ;;  %v16203_v15 = vld [vmem:[#allocation4 + $0x172] sm:$0xff] }
 0x4db   : > { %v16030_v19 = vsel %vm2332_vm6, %v5690_v48, %v9902_v11  ;;  %v5660_v4 = vsel %vm426_vm1, %v11815_v24, %v9907_v51  ;;  %v5659_v36 = vsel %vm426_vm1, %v11816_v34, %v9906_v31  ;;  %v9912_v27 = vunpack.i.h.bf16 %v19835_v22  ;;  %v10965_v29 = vpop.permute.xlu1 %10964  ;;  %v3558_v9 = vld [vmem:[#allocation4 + $0x124] sm:$0xff]  ;;  %v3559_v11 = vld [vmem:[#allocation4 + $0x12c] sm:$0xff]  ;;  %19868 = vst [vmem:[#allocation246_spill] sm:$0xff] %v16203_v15 }
 0x4dc   : > { %11244 = vrot.lane.b32.xlu1 %v19837_v26, %s11874_s23  ;;  %v11258_v13 = vpack.i.bf16 %v3557_v20, %v3556_v49  ;;  %v10972_v0 = vunpack.i.h.bf16 %v10970_v44  ;;  %v10971_v7 = vunpack.i.l.bf16 %v10970_v44  ;;  %v10967_v14 = vunpack.i.h.bf16 %v10965_v29  ;;  %v11817_v48 = vld [vmem:[#allocation4 + $0x68] sm:$0xff]  ;;  %v11818_v51 = vld [vmem:[#allocation4 + $0x60] sm:$0xff] }
 0x4dd   : > { %v10966_v40 = vunpack.i.l.bf16 %v10965_v29  ;;  %v5662_v54 = vsel %vm426_vm1, %v11817_v48, %v9922_v3  ;;  %v5661_v26 = vsel %vm426_vm1, %v11818_v51, %v9921_v50  ;;  %v5691_v31 = vsel %vm2299_vm5, %v5659_v36, %v9911_v37  ;;  %v19838_v22 = vld [vmem:[#allocation82_spill] sm:$0xff]  ;;  %v19842_v51 = vld [vmem:[#allocation81_spill] sm:$0xff] }
 0x4de   : > { %v9926_v24 = vunpack.i.l.bf16 %v19838_v22  ;;  %11259 = vrot.lane.b32.xlu0 %v11258_v13, %s11874_s23  ;;  %v19839_v49 = vpack.i.bf16 %v15874_v45, %v15872_v39  ;;  %v16046_v20 = vsel %vm6073_vm4, %v15660_v55, %v10971_v7  ;;  %v16050_v3 = vsel %vm6073_vm4, %v15664_v23, %v10972_v0  ;;  %v19840_v39 = vld [vmem:[#allocation52_spill] sm:$0xff]  ;;  %v16062_v36 = vpop.permute.xlu0 %10979  ;;  %v3564_v23 = vld [vmem:[#allocation4 + $0x16c] sm:$0xff]  ;;  %v16230_v33 = vld [vmem:[#allocation4 + $0x183] sm:$0xff] }
 0x4df   : > { %v16054_v37 = vsel %vm6073_vm4, %v15668_v10, %v10966_v40  ;;  %v16058_v50 = vsel %vm6073_vm4, %v15672_v5, %v10967_v14  ;;  %v9927_v34 = vunpack.i.h.bf16 %v19838_v22  ;;  %v9916_v45 = vunpack.i.l.bf16 %v19840_v39  ;;  %19841 = vst [vmem:[#allocation42_spill] sm:$0xff] %v16062_v36  ;;  %v10975_v55 = vpop.permute.xlu1 %10974  ;;  %v3565_v5 = vld [vmem:[#allocation4 + $0x174] sm:$0xff]  ;;  %v3563_v40 = vld [vmem:[#allocation4 + $0x15c] sm:$0xff]  ;;  %19877 = vst [vmem:[#allocation254_spill] sm:$0xff] %v16230_v33 }
 0x4e0   : > { %11254 = vrot.lane.b32.xlu1 %v19839_v49, %s11874_s23  ;;  %v16064_v44 = vpack.i.bf16 %v3561_v32, %v3560_v6  ;;  %v16066_v29 = vpack.i.bf16 %v3559_v11, %v3558_v9  ;;  %v5692_v13 = vsel %vm2299_vm5, %v5660_v4, %v9912_v27  ;;  %v9917_v10 = vunpack.i.h.bf16 %v19840_v39  ;;  %v3562_v14 = vld [vmem:[#allocation4 + $0x154] sm:$0xff]  ;;  %v19843_v6 = vld [vmem:[#allocation53_spill] sm:$0xff]  ;;  %v19844_v27 = vld [vmem:[#allocation54_spill] sm:$0xff] }
 0x4e1   : > { %v10977_v0 = vunpack.i.h.bf16 %v10975_v55  ;;  %v10976_v7 = vunpack.i.l.bf16 %v10975_v55  ;;  %v5693_v48 = vsel %vm2299_vm5, %v5661_v26, %v9926_v24  ;;  %v9932_v22 = vunpack.i.h.bf16 %v19842_v51  ;;  %v16316_v33 = vld [vmem:[#allocation4 + $0x113] sm:$0xff] }
 0x4e2   : > { %v9931_v49 = vunpack.i.l.bf16 %v19842_v51  ;;  %v9971_v32 = vunpack.i.l.bf16 %v19843_v6  ;;  %11269 = vrot.lane.b32.xlu0 %v16064_v44, %s11874_s23  ;;  %v9972_v4 = vunpack.i.h.bf16 %v19843_v6  ;;  %v9976_v9 = vunpack.i.l.bf16 %v19844_v27  ;;  %v16092_v55 = vpop.permute.xlu0 %10989  ;;  %19903 = vst [vmem:[#allocation275_spill] sm:$0xff] %v16316_v33  ;;  %v16367_v33 = vld [vmem:[#allocation2 + $0xf8] sm:$0xff] }
 0x4e3   : > { %v16082_v11 = vsel %vm6073_vm4, %v15738_v56, %v10976_v7  ;;  %v16086_v26 = vsel %vm6073_vm4, %v15742_v30, %v10977_v0  ;;  %v5694_v24 = vsel %vm2299_vm5, %v5662_v54, %v9927_v34  ;;  %v16090_v39 = vsel %vm2332_vm6, %v5691_v31, %v9916_v45  ;;  %19846 = vst [vmem:[#allocation44_spill] sm:$0xff] %v16092_v55  ;;  %v16094_v51 = vpop.permute.xlu1 %10984  ;;  %v19851_v30 = vld [vmem:[#allocation56_spill] sm:$0xff]  ;;  %v3566_v34 = vld [vmem:[#allocation4 + $0x184] sm:$0xff]  ;;  %v3567_v31 = vld [vmem:[#allocation4 + $0x18c] sm:$0xff] }
 0x4e4   : > { %11264 = vrot.lane.b32.xlu1 %v16066_v29, %s11874_s23  ;;  %19845 = vst [vmem:[#allocation39_spill] sm:$0xff] %v16090_v39  ;;  %19847 = vst [vmem:[#allocation45_spill] sm:$0xff] %v16094_v51  ;;  %v16096_v6 = vpack.i.bf16 %v3565_v5, %v3564_v23  ;;  %v16098_v36 = vpack.i.bf16 %v3563_v40, %v3562_v14  ;;  %v16101_v56 = vsel %vm2332_vm6, %v5692_v13, %v9917_v10  ;;  %v11819_v55 = vld [vmem:[#allocation4 + $0xc0] sm:$0xff]  ;;  %v19852_v5 = vld [vmem:[#allocation55_spill] sm:$0xff] }
 0x4e5   : > { %19850 = vst [vmem:[#allocation82_spill] sm:$0xff] %v16101_v56  ;;  %v9977_v7 = vunpack.i.h.bf16 %v19844_v27  ;;  %v9992_v0 = vunpack.i.h.bf16 %v19851_v30  ;;  %v9991_v54 = vunpack.i.l.bf16 %v19851_v30  ;;  %v16107_v45 = vsel %vm2332_vm6, %v5693_v48, %v9931_v49  ;;  %v16116_v13 = vld [vmem:[#allocation4 + $0x129] sm:$0xff]  ;;  %v3621_v30 = vld [vmem:[#allocation4 + $0x121] sm:$0xff]  ;;  %19859 = vst [vmem:[#allocation56_spill] sm:$0xff] %v16145_v35 }
 0x4e6   : > { %19848 = vst [vmem:[#allocation50_spill] sm:$0xff] %v16096_v6  ;;  %19849 = vst [vmem:[#allocation49_spill] sm:$0xff] %v16098_v36  ;;  %v5669_v23 = vsel %vm426_vm1, %v11819_v55, %v9971_v32  ;;  %v9982_v14 = vunpack.i.h.bf16 %v19852_v5  ;;  %v9981_v40 = vunpack.i.l.bf16 %v19852_v5  ;;  %11279 = vrot.lane.b32.xlu0 %v16096_v6, %s11874_s23  ;;  %v16119_v10 = vsel %vm2332_vm6, %v5694_v24, %v9932_v22  ;;  %v11820_v48 = vld [vmem:[#allocation4 + $0xc8] sm:$0xff]  ;;  %v19853_v27 = vld [vmem:[#allocation51_spill] sm:$0xff]  ;;  %v16133_v24 = vpop.permute.xlu0 %10999 }
 0x4e7   : > { %v5670_v49 = vsel %vm426_vm1, %v11820_v48, %v9972_v4  ;;  %v16123_v32 = vsel %vm2299_vm5, %v5669_v23, %v9976_v9  ;;  %v9996_v55 = vunpack.i.l.bf16 %v19853_v27  ;;  %v16126_v5 = vld [vmem:[#allocation4 + $0x138] sm:$0xff]  ;;  %v16128_v51 = vld [vmem:[#allocation4 + $0x140] sm:$0xff]  ;;  %v9997_v6 = vunpack.i.h.bf16 %v19853_v27  ;;  %19855 = vst [vmem:[#allocation52_spill] sm:$0xff] %v16133_v24  ;;  %v16135_v17 = vpop.permute.xlu1 %10994  ;;  %v16232_v56 = vld [vmem:[#allocation4 + $0x18b] sm:$0xff] }
 0x4e8   : > { %11274 = vrot.lane.b32.xlu1 %v16098_v36, %s11874_s23  ;;  %v9987_v43 = vunpack.i.h.bf16 %v19854_v38  ;;  %v9986_v22 = vunpack.i.l.bf16 %v19854_v38  ;;  %19856 = vst [vmem:[#allocation81_spill] sm:$0xff] %v16135_v17  ;;  %v16137_v4 = vpack.i.bf16 %v3567_v31, %v3566_v34  ;;  %v16139_v9 = vld [vmem:[#allocation4 + $0x139] sm:$0xff]  ;;  %v16141_v23 = vld [vmem:[#allocation4 + $0x141] sm:$0xff]  ;;  %v16148_v27 = vsel %vm2299_vm5, %v5670_v49, %v9977_v7  ;;  %v16153_v31 = vld [vmem:[#allocation4 + $0x150] sm:$0xff] }
 0x4e9   : > { %v16143_v48 = vld [vmem:[#allocation4 + $0x158] sm:$0xff]  ;;  %v5673_v38 = vsel %vm426_vm1, %v11821_v41, %v9991_v54  ;;  %v5674_v24 = vsel %vm426_vm1, %v11822_v1, %v9992_v0  ;;  %v11298_v34 = vpack.i.bf16 %v16116_v13, %v3621_v30  ;;  %19860 = vst [vmem:[#allocation55_spill] sm:$0xff] %v16153_v31  ;;  %v11823_v36 = vld [vmem:[#allocation4 + $0xe0] sm:$0xff]  ;;  %v5671_v7 = vsel %vm426_vm1, %v11824_v46, %v9981_v40  ;;  %v16167_v41 = vld [vmem:[#allocation4 + $0x169] sm:$0xff] }
 0x4ea   : > { %19857 = vst [vmem:[#allocation53_spill] sm:$0xff] %v16137_v4  ;;  %19858 = vst [vmem:[#allocation54_spill] sm:$0xff] %v16143_v48  ;;  %v16155_v17 = vld [vmem:[#allocation4 + $0x151] sm:$0xff]  ;;  %v5672_v62 = vsel %vm426_vm1, %v11823_v36, %v9982_v14  ;;  %11289 = vrot.lane.b32.xlu0 %v15275_v61, %s11875_s24  ;;  %v16169_v0 = vld [vmem:[#allocation4 + $0x15a] sm:$0xff]  ;;  %v16174_v36 = vsel %vm2299_vm5, %v5673_v38, %v9996_v55  ;;  %v16193_v55 = vsel %vm2299_vm5, %v5674_v24, %v9997_v6  ;;  %v11010_v14 = vpop.permute.xlu0 %11009 }
 0x4eb   : > { %19861 = vst [vmem:[#allocation51_spill] sm:$0xff] %v16155_v17  ;;  %19863 = vst [vmem:[#allocation241_spill] sm:$0xff] %v16167_v41  ;;  %v16171_v54 = vld [vmem:[#allocation4 + $0x1a1] sm:$0xff]  ;;  %v16182_v40 = vld [vmem:[#allocation4 + $0x152] sm:$0xff]  ;;  %v16196_v38 = vsel %vm2299_vm5, %v5671_v7, %v9986_v22  ;;  %v16199_v61 = vsel %vm2299_vm5, %v5672_v62, %v9987_v43  ;;  %v11005_v46 = vpop.permute.xlu1 %11004  ;;  %v11012_v8 = vunpack.i.h.bf16 %v11010_v14  ;;  %v11011_v6 = vunpack.i.l.bf16 %v11010_v14 }
 0x4ec   : > { %11284 = vrot.lane.b32.xlu1 %v16137_v4, %s11874_s23  ;;  %19864 = vst [vmem:[#allocation242_spill] sm:$0xff] %v16171_v54  ;;  %v16184_v13 = vld [vmem:[#allocation4 + $0x199] sm:$0xff]  ;;  %v16186_v49 = vld [vmem:[#allocation4 + $0x181] sm:$0xff]  ;;  %v16188_v30 = vld [vmem:[#allocation4 + $0x189] sm:$0xff]  ;;  %v11007_v24 = vunpack.i.h.bf16 %v11005_v46  ;;  %v11006_v31 = vunpack.i.l.bf16 %v11005_v46  ;;  %v19875_v4 = vpack.i.bf16 %v15690_v53, %v15688_v25  ;;  %v19922_v15 = vpack.i.bf16 %v16128_v51, %v16126_v5 }
 0x4ed   : > { %19865 = vst [vmem:[#allocation243_spill] sm:$0xff] %v16184_v13  ;;  %19866 = vst [vmem:[#allocation244_spill] sm:$0xff] %v16186_v49  ;;  %v16190_v1 = vld [vmem:[#allocation4 + $0x170] sm:$0xff]  ;;  %v16209_v22 = vld [vmem:[#allocation4 + $0x168] sm:$0xff]  ;;  %v16240_v25 = vsel %vm6106_vm13, %v15915_v12, %v11011_v6  ;;  %v16244_v53 = vsel %vm6106_vm13, %v15919_v52, %v11012_v8 }
 0x4ee   : > { %19867 = vst [vmem:[#allocation245_spill] sm:$0xff] %v16188_v30  ;;  %v16205_v17 = vld [vmem:[#allocation4 + $0x16b] sm:$0xff]  ;;  %v16207_v35 = vld [vmem:[#allocation4 + $0x173] sm:$0xff]  ;;  %v16213_v62 = vld [vmem:[#allocation4 + $0x180] sm:$0xff]  ;;  %11299 = vrot.lane.b32.xlu0 %v11298_v34, %s11876_s25  ;;  %v16252_v14 = vsel %vm6106_vm13, %v15927_v18, %v11007_v24  ;;  %v16262_v6 = vpop.permute.xlu0 %11019 }
 0x4ef   : > { %19869 = vst [vmem:[#allocation247_spill] sm:$0xff] %v16205_v17  ;;  %19870 = vst [vmem:[#allocation248_spill] sm:$0xff] %v16207_v35  ;;  %v16211_v7 = vld [vmem:[#allocation4 + $0x16a] sm:$0xff]  ;;  %v16228_v41 = vld [vmem:[#allocation4 + $0x182] sm:$0xff]  ;;  %v11015_v8 = vpop.permute.xlu1 %11014 }
 0x4f0   : > { %19871 = vst [vmem:[#allocation249_spill] sm:$0xff] %v16211_v7  ;;  %19872 = vst [vmem:[#allocation250_spill] sm:$0xff] %v16213_v62  ;;  %v16215_v43 = vld [vmem:[#allocation4 + $0x188] sm:$0xff]  ;;  %11294 = vrot.lane.b32.xlu1 %v19875_v4, %s11875_s24  ;;  %v16234_v39 = vld [vmem:[#allocation4 + $0x1a0] sm:$0xff]  ;;  %v16248_v4 = vsel %vm6106_vm13, %v15923_v21, %v11006_v31 }
 0x4f1   : > { %19873 = vst [vmem:[#allocation251_spill] sm:$0xff] %v16215_v43  ;;  %v16217_v48 = vld [vmem:[#allocation4 + $0x18a] sm:$0xff]  ;;  %19876 = vst [vmem:[#allocation253_spill] sm:$0xff] %v16228_v41  ;;  %v16254_v46 = vld [vmem:[#allocation4 + $0x198] sm:$0xff] }
 0x4f2   : > { %19874 = vst [vmem:[#allocation252_spill] sm:$0xff] %v16217_v48  ;;  %19878 = vst [vmem:[#allocation255_spill] sm:$0xff] %v16232_v56  ;;  %v16256_v49 = vld [vmem:[#allocation4 + $0x1a2] sm:$0xff]  ;;  %v16272_v24 = vld [vmem:[#allocation4 + $0x19a] sm:$0xff]  ;;  %11309 = vrot.lane.b32.xlu0 %v15403_v59, %s11870_s15 }
 0x4f3   : > { %19879 = vst [vmem:[#allocation256_spill] sm:$0xff] %v16234_v39  ;;  %19880 = vst [vmem:[#allocation257_spill] sm:$0xff] %v16240_v25  ;;  %v16258_v34 = vld [vmem:[#allocation4 + $0x19b] sm:$0xff]  ;;  %v16260_v12 = vld [vmem:[#allocation4 + $0x1a3] sm:$0xff] }
 0x4f4   : > { %19881 = vst [vmem:[#allocation258_spill] sm:$0xff] %v16244_v53  ;;  %19882 = vst [vmem:[#allocation259_spill] sm:$0xff] %v16248_v4  ;;  %v3727_v25 = vld [vmem:[#allocation4 + $0x19c] sm:$0xff]  ;;  %v3728_v53 = vld [vmem:[#allocation4 + $0x1a4] sm:$0xff]  ;;  %v11016_v4 = vunpack.i.l.bf16 %v11015_v8 }
 0x4f5   : > { %19883 = vst [vmem:[#allocation260_spill] sm:$0xff] %v16252_v14  ;;  %19884 = vst [vmem:[#allocation261_spill] sm:$0xff] %v16254_v46  ;;  %v11017_v14 = vunpack.i.h.bf16 %v11015_v8  ;;  %v16278_v13 = vld [vmem:[#allocation4 + $0x108] sm:$0xff]  ;;  %v16280_v21 = vld [vmem:[#allocation4 + $0x110] sm:$0xff] }
 0x4f6   : > { %19885 = vst [vmem:[#allocation262_spill] sm:$0xff] %v16256_v49  ;;  %19886 = vst [vmem:[#allocation263_spill] sm:$0xff] %v16258_v34  ;;  %v16282_v18 = vld [vmem:[#allocation4 + $0x111] sm:$0xff]  ;;  %v19894_v31 = vld [vmem:[#allocation58_spill] sm:$0xff] }
 0x4f7   : > { %19887 = vst [vmem:[#allocation264_spill] sm:$0xff] %v16260_v12  ;;  %19888 = vst [vmem:[#allocation265_spill] sm:$0xff] %v16262_v6  ;;  %v16284_v54 = vld [vmem:[#allocation4 + $0x112] sm:$0xff]  ;;  %v10002_v30 = vunpack.i.h.bf16 %v19894_v31  ;;  %v19895_v8 = vld [vmem:[#allocation13_spill] sm:$0xff]  ;;  %v10001_v59 = vunpack.i.l.bf16 %v19894_v31  ;;  %v16325_v31 = vpop.permute.xlu1 %11024 }
 0x4f8   : > { %19889 = vst [vmem:[#allocation266_spill] sm:$0xff] %v16272_v24  ;;  %19890 = vst [vmem:[#allocation267_spill] sm:$0xff] %v16278_v13  ;;  %v19896_v6 = vpack.i.bf16 %v15694_v60, %v19895_v8  ;;  %v16299_v41 = vld [vmem:[#allocation4 + $0x109] sm:$0xff]  ;;  %v16308_v60 = vsel %vm6106_vm13, %v15962_v58, %v11016_v4  ;;  %v16314_v8 = vpack.i.bf16 %v3728_v53, %v3727_v25  ;;  %v16320_v52 = vld [vmem:[#allocation4 + $0x114] sm:$0xff]  ;;  %v16323_v24 = vpop.permute.xlu0 %11029 }
 0x4f9   : > { %19891 = vst [vmem:[#allocation268_spill] sm:$0xff] %v16280_v21  ;;  %19892 = vst [vmem:[#allocation269_spill] sm:$0xff] %v16282_v18  ;;  %v16301_v48 = vld [vmem:[#allocation4 + $0x10a] sm:$0xff]  ;;  %v19909_v53 = vld [vmem:[#allocation84_spill] sm:$0xff] }
 0x4fa   : > { %19893 = vst [vmem:[#allocation270_spill] sm:$0xff] %v16284_v54  ;;  %11304 = vrot.lane.b32.xlu1 %v19896_v6, %s11876_s25  ;;  %19897 = vst [vmem:[#allocation58_spill] sm:$0xff] %v16299_v41  ;;  %v16303_v62 = vld [vmem:[#allocation4 + $0x10b] sm:$0xff]  ;;  %v16312_v6 = vsel %vm6106_vm13, %v15966_v42, %v11017_v14  ;;  %v10007_v4 = vunpack.i.h.bf16 %v19909_v53  ;;  %v19911_v58 = vld [vmem:[#allocation12_spill] sm:$0xff] }
 0x4fb   : > { %19898 = vst [vmem:[#allocation13_spill] sm:$0xff] %v16301_v48  ;;  %19899 = vst [vmem:[#allocation271_spill] sm:$0xff] %v16303_v62  ;;  %v16318_v56 = vld [vmem:[#allocation4 + $0x10c] sm:$0xff]  ;;  %11319 = vrot.lane.b32.xlu0 %v19911_v58, %s11871_s16  ;;  %v19912_v42 = vld [vmem:[#allocation92_spill] sm:$0xff] }
 0x4fc   : > { %19900 = vst [vmem:[#allocation272_spill] sm:$0xff] %v16308_v60  ;;  %19901 = vst [vmem:[#allocation273_spill] sm:$0xff] %v16312_v6  ;;  %v19906_v34 = vld [vmem:[#allocation59_spill] sm:$0xff]  ;;  %v10006_v6 = vunpack.i.l.bf16 %v19909_v53  ;;  %v19910_v60 = vld [vmem:[#allocation60_spill] sm:$0xff] }
 0x4fd   : > { %19902 = vst [vmem:[#allocation274_spill] sm:$0xff] %v16314_v8  ;;  %19904 = vst [vmem:[#allocation276_spill] sm:$0xff] %v16318_v56  ;;  %v10011_v12 = vunpack.i.l.bf16 %v19906_v34  ;;  %v10012_v25 = vunpack.i.h.bf16 %v19906_v34  ;;  %v10016_v8 = vunpack.i.l.bf16 %v19910_v60  ;;  %v10017_v49 = vunpack.i.h.bf16 %v19910_v60  ;;  %v11826_v53 = vld [vmem:[#allocation4 + $0x108] sm:$0xff]  ;;  %v19913_v54 = vld [vmem:[#allocation61_spill] sm:$0xff]  ;;  %v16359_v56 = vpop.permute.xlu0 %11039 }
 0x4fe   : > { %19905 = vst [vmem:[#allocation277_spill] sm:$0xff] %v16320_v52  ;;  %19907 = vst [vmem:[#allocation59_spill] sm:$0xff] %v16323_v24  ;;  %v11825_v24 = vld [vmem:[#allocation4 + $0x110] sm:$0xff]  ;;  %11314 = vrot.lane.b32.xlu1 %v19912_v42, %s11870_s15  ;;  %v5675_v48 = vsel %vm426_vm1, %v11826_v53, %v10001_v59  ;;  %v10052_v41 = vunpack.i.h.bf16 %v19913_v54  ;;  %v16351_v18 = vld [vmem:[#allocation2 + $0xda] sm:$0xff]  ;;  %v16361_v59 = vpop.permute.xlu1 %11034 }
 0x4ff   : > { %19908 = vst [vmem:[#allocation278_spill] sm:$0xff] %v16325_v31  ;;  %v5676_v31 = vsel %vm426_vm1, %v11825_v24, %v10002_v30  ;;  %v10051_v30 = vunpack.i.l.bf16 %v19913_v54  ;;  %v19914_v24 = vld [vmem:[#allocation86_spill] sm:$0xff]  ;;  %v16355_v42 = vld [vmem:[#allocation2 + $0xf0] sm:$0xff]  ;;  %v11827_v13 = vld [vmem:[#allocation4 + $0x120] sm:$0xff]  ;;  %v16371_v39 = vsel %vm2299_vm5, %v5675_v48, %v10006_v6  ;;  %11329 = vrot.lane.b32.xlu0 %v16066_v29, %s11872_s19 }
 0x500   : > { %v10072_v60 = vunpack.i.h.bf16 %v19914_v24  ;;  %v16353_v58 = vld [vmem:[#allocation2 + $0xe2] sm:$0xff]  ;;  %v5677_v34 = vsel %vm426_vm1, %v11827_v13, %v10011_v12  ;;  %v10071_v14 = vunpack.i.l.bf16 %v19914_v24  ;;  %19915 = vst [vmem:[#allocation84_spill] sm:$0xff] %v16359_v56  ;;  %19916 = vst [vmem:[#allocation60_spill] sm:$0xff] %v16361_v59  ;;  %v19917_v53 = vld [vmem:[#allocation176_spill] sm:$0xff]  ;;  %v16374_v13 = vsel %vm2299_vm5, %v5676_v31, %v10007_v4 }
 0x501   : > { %v8149_v54 = vmax.f32 %v19917_v53, %v16351_v18  ;;  %v19918_v52 = vld [vmem:[#allocation175_spill] sm:$0xff]  ;;  %v11828_v21 = vld [vmem:[#allocation4 + $0x128] sm:$0xff]  ;;  %v16377_v12 = vsel %vm2299_vm5, %v5677_v34, %v10016_v8  ;;  %v8247_v56 = vld [vmem:[#allocation2 + $0xf9] sm:$0xff]  ;;  %v16390_v8 = vsel %vm2332_vm6, %v16148_v27, %v10052_v41  ;;  %v16394_v31 = vsel %vm2332_vm6, %v16123_v32, %v10051_v30  ;;  %v11050_v27 = vpop.permute.xlu0 %11049 }
 0x502   : > { %v8150_v62 = vmax.f32 %v19918_v52, %v16353_v58  ;;  %v5678_v46 = vsel %vm426_vm1, %v11828_v21, %v10012_v25  ;;  %v8246_v24 = vld [vmem:[#allocation2 + $0xf1] sm:$0xff]  ;;  %v19919_v52 = vld [vmem:[#allocation134_spill] sm:$0xff]  ;;  %v8101_v6 = vld [vmem:[#allocation2 + $0x1a] sm:$0xff]  ;;  %v16407_v34 = vsel %vm2332_vm6, %v16174_v36, %v10071_v14  ;;  %v11045_v41 = vpop.permute.xlu1 %11044  ;;  %v11052_v59 = vunpack.i.h.bf16 %v11050_v27 }
 0x503   : > { %v16380_v53 = vsel %vm2299_vm5, %v5678_v46, %v10017_v49  ;;  %11324 = vrot.lane.b32.xlu1 %v19919_v52, %s11871_s16  ;;  %v8214_v48 = vmax.f32 %v8149_v54, %v16355_v42  ;;  %v16398_v49 = vsel %vm2332_vm6, %v16193_v55, %v10072_v60  ;;  %v19920_v29 = vld [vmem:[#allocation87_spill] sm:$0xff]  ;;  %v16403_v4 = vld [vmem:[#allocation2 + $0xfa] sm:$0xff]  ;;  %v11051_v55 = vunpack.i.l.bf16 %v11050_v27  ;;  %11339 = vrot.lane.b32.xlu0 %v19922_v15, %s11875_s24 }
 0x504   : > { %v8215_v21 = vmax.f32 %v8150_v62, %v16367_v33  ;;  %v10066_v46 = vunpack.i.l.bf16 %v19920_v29  ;;  %v16401_v25 = vld [vmem:[#allocation2 + $0xf2] sm:$0xff]  ;;  %v19921_v30 = vld [vmem:[#allocation165_spill] sm:$0xff]  ;;  %v11047_v60 = vunpack.i.h.bf16 %v11045_v41  ;;  %v11046_v43 = vunpack.i.l.bf16 %v11045_v41 }
 0x505   : > { %v8166_v62 = vld [vmem:[#allocation2 + $0x30] sm:$0xff]  ;;  %v8278_v54 = vmax.f32 %v8214_v48, %v8246_v24  ;;  %v8133_v52 = vmax.f32 %v19921_v30, %v8101_v6  ;;  %v8167_v17 = vld [vmem:[#allocation2 + $0x38] sm:$0xff]  ;;  %v10067_v7 = vunpack.i.h.bf16 %v19920_v29  ;;  %v16421_v24 = vsel %vm6106_vm13, %v16050_v3, %v11052_v59  ;;  %v16441_v3 = vpop.permute.xlu0 %11059  ;;  %v19930_v27 = vld [vmem:[#allocation89_spill] sm:$0xff] }
 0x506   : > { %v8279_v32 = vmax.f32 %v8215_v21, %v8247_v56  ;;  %v8230_v35 = vld [vmem:[#allocation2 + $0x31] sm:$0xff]  ;;  %19923 = vst [vmem:[#allocation12_spill] sm:$0xff] %v16421_v24  ;;  %v16425_v48 = vsel %vm6106_vm13, %v16046_v20, %v11051_v55  ;;  %v16429_v51 = vsel %vm6106_vm13, %v16054_v37, %v11046_v43  ;;  %v16433_v15 = vsel %vm6106_vm13, %v16058_v50, %v11047_v60  ;;  %v11055_v59 = vpop.permute.xlu1 %11054  ;;  %v8295_v30 = vld [vmem:[#allocation2 + $0x3a] sm:$0xff] }
 0x507   : > { %11334 = vrot.lane.b32.xlu1 %v15763_v63, %s11872_s19  ;;  %v8342_v56 = vmax.f32 %v8278_v54, %v16401_v25  ;;  %v8198_v14 = vmax.f32 %v8133_v52, %v8166_v62  ;;  %19924 = vst [vmem:[#allocation92_spill] sm:$0xff] %v16425_v48  ;;  %19925 = vst [vmem:[#allocation61_spill] sm:$0xff] %v16429_v51  ;;  %v8231_v63 = vld [vmem:[#allocation2 + $0x39] sm:$0xff]  ;;  %v16439_v21 = vsel %vm2332_vm6, %v16196_v38, %v10066_v46  ;;  %v19933_v52 = vld [vmem:[#allocation18_spill] sm:$0xff] }
 0x508   : > { %v8343_v36 = vmax.f32 %v8279_v32, %v16403_v4  ;;  %19926 = vst [vmem:[#allocation86_spill] sm:$0xff] %v16433_v15  ;;  %v16435_v5 = vld [vmem:[#allocation2 + $0x32] sm:$0xff]  ;;  %v10082_v41 = vunpack.i.h.bf16 %v19930_v27  ;;  %v10081_v50 = vunpack.i.l.bf16 %v19930_v27  ;;  %v11057_v54 = vunpack.i.h.bf16 %v11055_v59  ;;  %v8234_v24 = vld [vmem:[#allocation2 + $0x61] sm:$0xff]  ;;  %v8235_v15 = vld [vmem:[#allocation2 + $0x69] sm:$0xff] }
 0x509   : > { %v19927_v6 = vld [vmem:[#allocation140_spill] sm:$0xff]  ;;  %v8262_v43 = vmax.f32 %v8198_v14, %v8230_v35  ;;  %v11056_v32 = vunpack.i.l.bf16 %v11055_v59  ;;  %v19931_v38 = vpack.i.bf16 %v16141_v23, %v16139_v9  ;;  %v19935_v35 = vld [vmem:[#allocation147_spill] sm:$0xff] }
 0x50a   : > { %v9140_v20 = vpack.c.bf16 %v8343_v36, %v8342_v56  ;;  %v19928_v29 = vld [vmem:[#allocation116_spill] sm:$0xff]  ;;  %v8023_v56 = vmax.f32 %v19935_v35, %v16351_v18  ;;  %v16467_v9 = vsel %vm6106_vm13, %v16086_v26, %v11057_v54  ;;  %v16475_v18 = vpop.permute.xlu0 %11069  ;;  %v16484_v26 = vsel %vm2332_vm6, %v16380_v53, %v10082_v41  ;;  %v16492_v54 = vld [vmem:[#allocation2 + $0x108] sm:$0xff]  ;;  %v16512_v35 = vld [vmem:[#allocation2 + $0x110] sm:$0xff] }
 0x50b   : > { %v19929_v62 = vmax.f32 %v19927_v6, %v19928_v29  ;;  %11349 = vrot.lane.b32.xlu0 %v19931_v38, %s11876_s25  ;;  %v19932_v46 = vld [vmem:[#allocation16_spill] sm:$0xff]  ;;  %v16463_v6 = vsel %vm6106_vm13, %v16082_v11, %v11056_v32  ;;  %19938 = vst [vmem:[#allocation175_spill] sm:$0xff] %v16467_v9  ;;  %v16477_v29 = vpop.permute.xlu1 %11064  ;;  %v8169_v32 = vld [vmem:[#allocation2 + $0x50] sm:$0xff] }
 0x50c   : > { %v19934_v55 = vpack.i.bf16 %v19932_v46, %v19933_v52  ;;  %v19936_v36 = vld [vmem:[#allocation88_spill] sm:$0xff]  ;;  %19937 = vst [vmem:[#allocation176_spill] sm:$0xff] %v16463_v6  ;;  %9142 = vmatprep.subr.msk.bf16.mxu1 %vm12269_vm3, %v9140_v20  ;;  %v16488_v20 = vsel %vm2332_vm6, %v16377_v12, %v10081_v50  ;;  %v19946_v52 = vld [vmem:[#allocation101_spill] sm:$0xff]  ;;  %v19962_v6 = vld [vmem:[#allocation63_spill] sm:$0xff] }
 0x50d   : > { %v8199_v37 = vmax.f32 %v19929_v62, %v8167_v17  ;;  %v8326_v17 = vmax.f32 %v8262_v43, %v16435_v5  ;;  %v10077_v14 = vunpack.i.h.bf16 %v19936_v36  ;;  %v10076_v59 = vunpack.i.l.bf16 %v19936_v36  ;;  %v16556_v9 = vld [vmem:[#allocation2 + $0x112] sm:$0xff] }
 0x50e   : > { %11344 = vrot.lane.b32.xlu1 %v19934_v55, %s11875_s24  ;;  %v8087_v43 = vmax.f32 %v8023_v56, %v16355_v42  ;;  %v19944_v42 = vld [vmem:[#allocation17_spill] sm:$0xff]  ;;  %v10112_v55 = vunpack.i.h.bf16 %v19946_v52  ;;  %v8248_v56 = vld [vmem:[#allocation2 + $0x109] sm:$0xff]  ;;  %v16514_v36 = vpop.permute.xlu0 %11079  ;;  %v10141_v48 = vunpack.i.l.bf16 %v19962_v6  ;;  %v20201_v23 = vld [vmem:[#allocation160_spill] sm:$0xff] }
 0x50f   : > { %v8263_v60 = vmax.f32 %v8199_v37, %v8231_v63  ;;  %v16473_v63 = vsel %vm2332_vm6, %v16199_v61, %v10067_v7  ;;  %v19940_v37 = vld [vmem:[#allocation150_spill] sm:$0xff]  ;;  %v19941_v61 = vld [vmem:[#allocation95_spill] sm:$0xff]  ;;  %v16504_v50 = vsel %vm2332_vm6, %v16371_v39, %v10076_v59  ;;  %v16508_v46 = vsel %vm2332_vm6, %v16374_v13, %v10077_v14  ;;  %19947 = vst [vmem:[#allocation134_spill] sm:$0xff] %v16514_v36 }
 0x510   : > { %v8024_v11 = vmax.f32 %v19940_v37, %v16353_v58  ;;  %v10102_v7 = vunpack.i.h.bf16 %v19941_v61  ;;  %v10101_v27 = vunpack.i.l.bf16 %v19941_v61  ;;  %v19943_v58 = vld [vmem:[#allocation19_spill] sm:$0xff]  ;;  %v8151_v12 = vmax.f32 %v8087_v43, %v16401_v25  ;;  %v19949_v59 = vld [vmem:[#allocation190_spill] sm:$0xff] }
 0x511   : > { %v8327_v62 = vmax.f32 %v8263_v60, %v8295_v30  ;;  %v19942_v30 = vld [vmem:[#allocation124_spill] sm:$0xff]  ;;  %v19945_v38 = vpack.i.bf16 %v19943_v58, %v19944_v42  ;;  %v10111_v60 = vunpack.i.l.bf16 %v19946_v52  ;;  %v19950_v37 = vld [vmem:[#allocation155_spill] sm:$0xff]  ;;  %v19954_v52 = vld [vmem:[#allocation10_spill] sm:$0xff] }
 0x512   : > { %11359 = vrot.lane.b32.xlu0 %v19942_v30, %s11870_s15  ;;  %v8088_v41 = vmax.f32 %v8024_v11, %v16367_v33  ;;  %v16516_v33 = vpop.permute.xlu1 %11074  ;;  %v8216_v13 = vmax.f32 %v8151_v12, %v16492_v54  ;;  %v8249_v14 = vld [vmem:[#allocation2 + $0x111] sm:$0xff]  ;;  %v19951_v11 = vld [vmem:[#allocation118_spill] sm:$0xff]  ;;  %v16529_v30 = vsel %vm2365_vm7, %v16004_v16, %v10102_v7  ;;  %v16533_v58 = vsel %vm2365_vm7, %v16001_v57, %v10101_v27 }
 0x513   : > { %11354 = vrot.lane.b32.xlu1 %v19945_v38, %s11876_s25  ;;  %v9143_v53 = vpack.c.bf16 %v8327_v62, %v8326_v17  ;;  %v8168_v17 = vld [vmem:[#allocation2 + $0x48] sm:$0xff]  ;;  %19948 = vst [vmem:[#allocation87_spill] sm:$0xff] %v16516_v33  ;;  %v8135_v62 = vmax.f32 %v19949_v59, %v16435_v5  ;;  %v19952_v43 = vmax.f32 %v19950_v37, %v19951_v11  ;;  %v19953_v42 = vld [vmem:[#allocation99_spill] sm:$0xff]  ;;  %v19956_v59 = vld [vmem:[#allocation32_spill] sm:$0xff] }
 0x514   : > { %v8152_v39 = vmax.f32 %v8088_v41, %v16403_v4  ;;  %v10107_v38 = vunpack.i.h.bf16 %v19953_v42  ;;  %v16537_v41 = vld [vmem:[#allocation2 + $0x10a] sm:$0xff]  ;;  %v8280_v57 = vmax.f32 %v8216_v13, %v8248_v56  ;;  %v16548_v37 = vsel %vm2365_vm7, %v16030_v19, %v10112_v55 }
 0x515   : > { %9145 = vmatpush3.bf16.xpose.msk.msra.mxu1 %vm12269_vm3, %v9143_v53  ;;  %v8201_v61 = vmax.f32 %v19952_v43, %v8169_v32  ;;  %v10106_v53 = vunpack.i.l.bf16 %v19953_v42  ;;  %v8232_v12 = vld [vmem:[#allocation2 + $0x49] sm:$0xff]  ;;  %v8233_v5 = vld [vmem:[#allocation2 + $0x51] sm:$0xff]  ;;  %v8200_v27 = vmax.f32 %v8135_v62, %v8168_v17  ;;  %v16552_v11 = vsel %vm2365_vm7, %v16027_v47, %v10111_v60  ;;  %v19958_v43 = vld [vmem:[#allocation97_spill] sm:$0xff] }
 0x516   : > { %11369 = vrot.lane.b32.xlu0 %v19954_v52, %s11871_s16  ;;  %v19955_v32 = vld [vmem:[#allocation34_spill] sm:$0xff]  ;;  %v8217_v7 = vmax.f32 %v8152_v39, %v16512_v35  ;;  %v10122_v42 = vunpack.i.h.bf16 %v19958_v43  ;;  %v10121_v52 = vunpack.i.l.bf16 %v19958_v43  ;;  %v16560_v39 = vpop.permute.xlu0 %11089  ;;  %v16562_v56 = vpop.permute.xlu1 %11084  ;;  %v8344_v19 = vmax.f32 %v8280_v57, %v16537_v41  ;;  %v20095_v33 = vld [vmem:[#allocation119_spill] sm:$0xff] }
 0x517   : > { %v19957_v16 = vpack.i.bf16 %v19955_v32, %v19956_v59  ;;  %v16558_v32 = vld [vmem:[#allocation2 + $0x4a] sm:$0xff]  ;;  %v8297_v59 = vld [vmem:[#allocation2 + $0x52] sm:$0xff]  ;;  %19959 = vst [vmem:[#allocation165_spill] sm:$0xff] %v16560_v39  ;;  %19960 = vst [vmem:[#allocation140_spill] sm:$0xff] %v16562_v56  ;;  %v8264_v55 = vmax.f32 %v8200_v27, %v8232_v12  ;;  %v8265_v13 = vmax.f32 %v8201_v61, %v8233_v5 }
 0x518   : > { %v8281_v17 = vmax.f32 %v8217_v7, %v8249_v14  ;;  %v16567_v47 = vsel %vm2365_vm7, %v16021_v28, %v10106_v53  ;;  %v16571_v60 = vsel %vm2365_vm7, %v16024_v2, %v10107_v38  ;;  %v19961_v62 = vld [vmem:[#allocation62_spill] sm:$0xff]  ;;  %v19963_v14 = vld [vmem:[#allocation173_spill] sm:$0xff]  ;;  %v16584_v2 = vsel %vm2365_vm7, %v16119_v10, %v10122_v42  ;;  %v19967_v42 = vld [vmem:[#allocation39_spill] sm:$0xff] }
 0x519   : > { %11364 = vrot.lane.b32.xlu1 %v19957_v16, %s11870_s15  ;;  %v10117_v16 = vunpack.i.h.bf16 %v19961_v62  ;;  %v10116_v43 = vunpack.i.l.bf16 %v19961_v62  ;;  %v8328_v28 = vmax.f32 %v8264_v55, %v16558_v32  ;;  %v8329_v53 = vmax.f32 %v8265_v13, %v8297_v59  ;;  %v19964_v12 = vld [vmem:[#allocation98_spill] sm:$0xff]  ;;  %v19966_v55 = vld [vmem:[#allocation180_spill] sm:$0xff]  ;;  %v19991_v56 = vld [vmem:[#allocation71_spill] sm:$0xff] }
 0x51a   : > { %11379 = vrot.lane.b32.xlu0 %v16064_v44, %s11872_s19  ;;  %v8345_v61 = vmax.f32 %v8281_v17, %v16556_v9  ;;  %v10142_v38 = vunpack.i.h.bf16 %v19962_v6  ;;  %v10152_v5 = vunpack.i.h.bf16 %v19964_v12  ;;  %v10151_v7 = vunpack.i.l.bf16 %v19964_v12  ;;  %v16593_v57 = vpop.permute.xlu0 %11099  ;;  %v16595_v27 = vpop.permute.xlu1 %11094  ;;  %v19968_v13 = vld [vmem:[#allocation82_spill] sm:$0xff] }
 0x51b   : > { %v16591_v44 = vsel %vm2365_vm7, %v16107_v45, %v10121_v52  ;;  %19965 = vst [vmem:[#allocation116_spill] sm:$0xff] %v16595_v27  ;;  %v9149_v59 = vpack.c.bf16 %v8329_v53, %v8328_v28  ;;  %v8025_v10 = vmax.f32 %v19966_v55, %v16401_v25  ;;  %v16601_v6 = vsel %vm2365_vm7, %v19967_v42, %v10116_v43  ;;  %v8171_v12 = vld [vmem:[#allocation2 + $0x68] sm:$0xff]  ;;  %v19971_v25 = vld [vmem:[#allocation55_spill] sm:$0xff]  ;;  %v19973_v43 = vld [vmem:[#allocation201_spill] sm:$0xff] }
 0x51c   : > { %v9146_v17 = vpack.c.bf16 %v8345_v61, %v8344_v19  ;;  %v16605_v62 = vsel %vm2365_vm7, %v19968_v13, %v10117_v16  ;;  %v16611_v19 = vsel %vm2365_vm7, %v16394_v31, %v10141_v48  ;;  %v19970_v61 = vld [vmem:[#allocation54_spill] sm:$0xff]  ;;  %v19974_v16 = vld [vmem:[#allocation179_spill] sm:$0xff]  ;;  %v16624_v42 = vsel %vm2365_vm7, %v16390_v8, %v10142_v38  ;;  %v19975_v13 = vld [vmem:[#allocation65_spill] sm:$0xff] }
 0x51d   : > { %11374 = vrot.lane.b32.xlu1 %v19963_v14, %s11871_s16  ;;  %v19969_v14 = vld [vmem:[#allocation64_spill] sm:$0xff]  ;;  %v19972_v28 = vpack.i.bf16 %v19970_v61, %v19971_v25  ;;  %v8026_v53 = vmax.f32 %v19974_v16, %v16403_v4  ;;  %v8089_v55 = vmax.f32 %v8025_v10, %v16492_v54  ;;  %v16628_v31 = vsel %vm2365_vm7, %v16407_v34, %v10151_v7  ;;  %v16637_v4 = vld [vmem:[#allocation2 + $0x120] sm:$0xff]  ;;  %v16647_v38 = vld [vmem:[#allocation2 + $0x128] sm:$0xff] }
 0x51e   : > { %v10147_v45 = vunpack.i.h.bf16 %v19969_v14  ;;  %v10146_v52 = vunpack.i.l.bf16 %v19969_v14  ;;  %v16632_v48 = vsel %vm2365_vm7, %v16398_v49, %v10152_v5  ;;  %v10161_v14 = vunpack.i.l.bf16 %v19975_v13  ;;  %9148 = vmatprep.subr.msk.bf16.mxu1 %vm12269_vm3, %v9146_v17  ;;  %v8170_v54 = vld [vmem:[#allocation2 + $0x60] sm:$0xff]  ;;  %v16639_v10 = vpop.permute.xlu0 %11109  ;;  %v16641_v8 = vpop.permute.xlu1 %11104  ;;  %v19977_v17 = vld [vmem:[#allocation142_spill] sm:$0xff]  ;;  %v19978_v61 = vld [vmem:[#allocation156_spill] sm:$0xff] }
 0x51f   : > { %11389 = vrot.lane.b32.xlu0 %v19972_v28, %s11875_s24  ;;  %9151 = vmatpush3.bf16.xpose.msk.msra.mxu1 %vm12269_vm3, %v9149_v59  ;;  %v8090_v34 = vmax.f32 %v8026_v53, %v16512_v35  ;;  %v8153_v49 = vmax.f32 %v8089_v55, %v16537_v41  ;;  %v19976_v5 = vld [vmem:[#allocation189_spill] sm:$0xff]  ;;  %v19979_v25 = vmax.f32 %v19977_v17, %v19978_v61  ;;  %v10162_v35 = vunpack.i.h.bf16 %v19975_v13  ;;  %v19980_v16 = vld [vmem:[#allocation66_spill] sm:$0xff] }
 0x520   : > { %v8137_v7 = vmax.f32 %v19976_v5, %v16558_v32  ;;  %v16660_v59 = vsel %vm2365_vm7, %v16473_v63, %v10147_v45  ;;  %v10156_v53 = vunpack.i.l.bf16 %v19980_v16  ;;  %v8250_v55 = vld [vmem:[#allocation2 + $0x121] sm:$0xff]  ;;  %v10157_v32 = vunpack.i.h.bf16 %v19980_v16  ;;  %v19981_v5 = vld [vmem:[#allocation56_spill] sm:$0xff] }
 0x521   : > { %11384 = vrot.lane.b32.xlu1 %v19973_v43, %s11872_s19  ;;  %v8203_v28 = vmax.f32 %v19979_v25, %v8171_v12  ;;  %v16656_v43 = vsel %vm2365_vm7, %v16439_v21, %v10146_v52  ;;  %v19982_v12 = vld [vmem:[#allocation51_spill] sm:$0xff]  ;;  %v19984_v21 = vld [vmem:[#allocation30_spill] sm:$0xff]  ;;  %v19985_v52 = vld [vmem:[#allocation29_spill] sm:$0xff]  ;;  %v8154_v63 = vmax.f32 %v8090_v34, %v16556_v9  ;;  %v8218_v45 = vmax.f32 %v8153_v49, %v16637_v4 }
 0x522   : > { %v19983_v17 = vpack.i.bf16 %v19981_v5, %v19982_v12  ;;  %v19986_v61 = vpack.i.bf16 %v19984_v21, %v19985_v52  ;;  %v8202_v13 = vmax.f32 %v8137_v7, %v8170_v54  ;;  %v16677_v25 = vsel %vm2365_vm7, %v16488_v20, %v10161_v14  ;;  %v19987_v16 = vld [vmem:[#allocation70_spill] sm:$0xff]  ;;  %v19988_v5 = vld [vmem:[#allocation72_spill] sm:$0xff]  ;;  %v16686_v52 = vpop.permute.xlu0 %11119  ;;  %v16688_v34 = vpop.permute.xlu1 %11114 }
 0x523   : > { %v10182_v51 = vunpack.i.h.bf16 %v19987_v16  ;;  %v10181_v27 = vunpack.i.l.bf16 %v19987_v16  ;;  %v10191_v12 = vunpack.i.l.bf16 %v19988_v5  ;;  %v16682_v39 = vld [vmem:[#allocation2 + $0x122] sm:$0xff]  ;;  %19989 = vst [vmem:[#allocation89_spill] sm:$0xff] %v16686_v52  ;;  %19990 = vst [vmem:[#allocation16_spill] sm:$0xff] %v16688_v34  ;;  %v8219_v54 = vmax.f32 %v8154_v63, %v16647_v38  ;;  %v16701_v52 = vld [vmem:[#allocation2 + $0x12a] sm:$0xff] }
 0x524   : > { %11399 = vrot.lane.b32.xlu0 %v19983_v17, %s11876_s25  ;;  %v8251_v17 = vld [vmem:[#allocation2 + $0x129] sm:$0xff]  ;;  %v8282_v49 = vmax.f32 %v8218_v45, %v8250_v55  ;;  %v8266_v20 = vmax.f32 %v8202_v13, %v8234_v24  ;;  %v8267_v14 = vmax.f32 %v8203_v28, %v8235_v15  ;;  %v16693_v7 = vsel %vm2365_vm7, %v16484_v26, %v10162_v35  ;;  %v19993_v15 = vld [vmem:[#allocation21_spill] sm:$0xff]  ;;  %v19994_v26 = vld [vmem:[#allocation20_spill] sm:$0xff] }
 0x525   : > { %11394 = vrot.lane.b32.xlu1 %v19986_v61, %s11875_s24  ;;  %v16684_v21 = vld [vmem:[#allocation2 + $0x62] sm:$0xff]  ;;  %v16697_v61 = vsel %vm2365_vm7, %v16504_v50, %v10156_v53  ;;  %v10192_v16 = vunpack.i.h.bf16 %v19988_v5  ;;  %v10186_v36 = vunpack.i.l.bf16 %v19991_v56  ;;  %v8299_v34 = vld [vmem:[#allocation2 + $0x6a] sm:$0xff]  ;;  %v19992_v24 = vpack.i.bf16 %v16169_v0, %v16182_v40 }
 0x526   : > { %v19995_v28 = vpack.i.bf16 %v19993_v15, %v19994_v26  ;;  %v8283_v35 = vmax.f32 %v8219_v54, %v8251_v17  ;;  %v8346_v50 = vmax.f32 %v8282_v49, %v16682_v39  ;;  %v8330_v53 = vmax.f32 %v8266_v20, %v16684_v21  ;;  %v16730_v13 = vpop.permute.xlu0 %11129  ;;  %v16732_v5 = vpop.permute.xlu1 %11124  ;;  %v8173_v17 = vld [vmem:[#allocation2 + $0x80] sm:$0xff]  ;;  %v20000_v54 = vld [vmem:[#allocation200_spill] sm:$0xff]  ;;  %v20002_v49 = vld [vmem:[#allocation31_spill] sm:$0xff] }
 0x527   : > { %v16715_v55 = vsel %vm2365_vm7, %v16508_v46, %v10157_v32  ;;  %v16719_v63 = vsel %vm2398_vm8, %v16533_v58, %v10181_v27  ;;  %v16723_v0 = vsel %vm2398_vm8, %v16529_v30, %v10182_v51  ;;  %v10187_v40 = vunpack.i.h.bf16 %v19991_v56  ;;  %19996 = vst [vmem:[#allocation18_spill] sm:$0xff] %v16730_v13  ;;  %19997 = vst [vmem:[#allocation147_spill] sm:$0xff] %v16732_v5  ;;  %v19998_v58 = vld [vmem:[#allocation192_spill] sm:$0xff]  ;;  %v20006_v26 = vld [vmem:[#allocation78_spill] sm:$0xff] }
 0x528   : > { %11409 = vrot.lane.b32.xlu0 %v19992_v24, %s11870_s15  ;;  %v16728_v45 = vsel %vm2398_vm8, %v16552_v11, %v10191_v12  ;;  %v8347_v46 = vmax.f32 %v8283_v35, %v16701_v52  ;;  %v8331_v32 = vmax.f32 %v8267_v14, %v8299_v34  ;;  %v8027_v27 = vmax.f32 %v19998_v58, %v16537_v41  ;;  %v19999_v11 = vld [vmem:[#allocation73_spill] sm:$0xff]  ;;  %v20001_v34 = vld [vmem:[#allocation204_spill] sm:$0xff]  ;;  %v20004_v14 = vld [vmem:[#allocation183_spill] sm:$0xff] }
 0x529   : > { %11404 = vrot.lane.b32.xlu1 %v19995_v28, %s11876_s25  ;;  %v16739_v51 = vsel %vm2398_vm8, %v16548_v37, %v10192_v16  ;;  %v16743_v30 = vsel %vm2398_vm8, %v16567_v47, %v10186_v36  ;;  %v10202_v56 = vunpack.i.h.bf16 %v19999_v11  ;;  %v10201_v12 = vunpack.i.l.bf16 %v19999_v11  ;;  %v20005_v47 = vld [vmem:[#allocation74_spill] sm:$0xff]  ;;  %v8172_v35 = vld [vmem:[#allocation2 + $0x78] sm:$0xff] }
 0x52a   : > { %v20003_v41 = vpack.i.bf16 %v20001_v34, %v20002_v49  ;;  %v9152_v20 = vpack.c.bf16 %v8347_v46, %v8346_v50  ;;  %v9155_v37 = vpack.c.bf16 %v8331_v32, %v8330_v53  ;;  %v8028_v16 = vmax.f32 %v20004_v14, %v16556_v9  ;;  %v16762_v58 = vpop.permute.xlu0 %11139  ;;  %v16764_v11 = vpop.permute.xlu1 %11134  ;;  %v20008_v53 = vld [vmem:[#allocation131_spill] sm:$0xff]  ;;  %v20009_v46 = vld [vmem:[#allocation132_spill] sm:$0xff]  ;;  %v8237_v14 = vld [vmem:[#allocation2 + $0x81] sm:$0xff] }
 0x52b   : > { %v16757_v36 = vsel %vm2398_vm8, %v16571_v60, %v10187_v40  ;;  %v10197_v24 = vunpack.i.h.bf16 %v20005_v47  ;;  %v10196_v15 = vunpack.i.l.bf16 %v20005_v47  ;;  %v10221_v28 = vunpack.i.l.bf16 %v20006_v26  ;;  %20007 = vst [vmem:[#allocation88_spill] sm:$0xff] %v16764_v11  ;;  %v16770_v60 = vld [vmem:[#allocation2 + $0x138] sm:$0xff] }
 0x52c   : > { %11419 = vrot.lane.b32.xlu0 %v20000_v54, %s11871_s16  ;;  %9154 = vmatprep.subr.msk.bf16.mxu1 %vm12269_vm3, %v9152_v20  ;;  %v8091_v9 = vmax.f32 %v8027_v27, %v16637_v4  ;;  %v8092_v50 = vmax.f32 %v8028_v16, %v16647_v38  ;;  %v8139_v40 = vmax.f32 %v20008_v53, %v16684_v21  ;;  %v20010_v32 = vld [vmem:[#allocation168_spill] sm:$0xff]  ;;  %v10222_v4 = vunpack.i.h.bf16 %v20006_v26  ;;  %v20012_v38 = vld [vmem:[#allocation77_spill] sm:$0xff] }
 0x52d   : > { %11414 = vrot.lane.b32.xlu1 %v20003_v41, %s11870_s15  ;;  %v20011_v54 = vmax.f32 %v20009_v46, %v20010_v32  ;;  %v16779_v49 = vsel %vm2398_vm8, %v16591_v44, %v10201_v12  ;;  %v16783_v41 = vsel %vm2398_vm8, %v16584_v2, %v10202_v56  ;;  %v10231_v27 = vunpack.i.l.bf16 %v20012_v38  ;;  %9157 = vmatpush3.bf16.xpose.msk.msra.mxu1 %vm12269_vm3, %v9155_v37  ;;  %v8189_v21 = vld [vmem:[#allocation2 + $0x140] sm:$0xff]  ;;  %v20014_v44 = vld [vmem:[#allocation207_spill] sm:$0xff] }
 0x52e   : > { %v8236_v20 = vld [vmem:[#allocation2 + $0x79] sm:$0xff]  ;;  %v20015_v12 = vld [vmem:[#allocation35_spill] sm:$0xff]  ;;  %v8155_v2 = vmax.f32 %v8091_v9, %v16682_v39  ;;  %v8156_v56 = vmax.f32 %v8092_v50, %v16701_v52  ;;  %v8204_v47 = vmax.f32 %v8139_v40, %v8172_v35  ;;  %v16799_v26 = vsel %vm2398_vm8, %v16601_v6, %v10196_v15  ;;  %v16812_v50 = vpop.permute.xlu0 %11149  ;;  %v16814_v35 = vpop.permute.xlu1 %11144 }
 0x52f   : > { %v8205_v34 = vmax.f32 %v20011_v54, %v8173_v17  ;;  %v20013_v17 = vld [vmem:[#allocation49_spill] sm:$0xff]  ;;  %v20016_v16 = vpack.i.bf16 %v20014_v44, %v20015_v12  ;;  %v16803_v37 = vsel %vm2398_vm8, %v16605_v62, %v10197_v24  ;;  %v16807_v53 = vsel %vm2398_vm8, %v16611_v19, %v10221_v28  ;;  %20017 = vst [vmem:[#allocation11_spill] sm:$0xff] %v16812_v50  ;;  %v20019_v28 = vld [vmem:[#allocation79_spill] sm:$0xff] }
 0x530   : > { %11429 = vrot.lane.b32.xlu0 %v20013_v17, %s11872_s19  ;;  %v10232_v46 = vunpack.i.h.bf16 %v20012_v38  ;;  %v8252_v32 = vld [vmem:[#allocation2 + $0x139] sm:$0xff]  ;;  %v8253_v54 = vld [vmem:[#allocation2 + $0x141] sm:$0xff]  ;;  %20018 = vst [vmem:[#allocation150_spill] sm:$0xff] %v16814_v35  ;;  %v8220_v6 = vmax.f32 %v8155_v2, %v16770_v60  ;;  %v8221_v15 = vmax.f32 %v8156_v56, %v8189_v21  ;;  %v8268_v40 = vmax.f32 %v8204_v47, %v8236_v20 }
 0x531   : > { %11424 = vrot.lane.b32.xlu1 %v20016_v16, %s11871_s16  ;;  %v16810_v9 = vld [vmem:[#allocation2 + $0x7a] sm:$0xff]  ;;  %v8269_v62 = vmax.f32 %v8205_v34, %v8237_v14  ;;  %v16819_v24 = vsel %vm2398_vm8, %v16624_v42, %v10222_v4  ;;  %v16823_v19 = vsel %vm2398_vm8, %v16628_v31, %v10231_v27  ;;  %v10227_v38 = vunpack.i.h.bf16 %v20019_v28  ;;  %v16829_v12 = vld [vmem:[#allocation2 + $0x142] sm:$0xff]  ;;  %v20021_v42 = vld [vmem:[#allocation211_spill] sm:$0xff] }
 0x532   : > { %v10226_v17 = vunpack.i.l.bf16 %v20019_v28  ;;  %v16827_v44 = vld [vmem:[#allocation2 + $0x13a] sm:$0xff]  ;;  %v8301_v16 = vld [vmem:[#allocation2 + $0x82] sm:$0xff]  ;;  %v20020_v34 = vpack.i.bf16 %v16190_v1, %v16209_v22  ;;  %v8284_v4 = vmax.f32 %v8220_v6, %v8252_v32  ;;  %v8285_v31 = vmax.f32 %v8221_v15, %v8253_v54  ;;  %v20022_v14 = vld [vmem:[#allocation91_spill] sm:$0xff]  ;;  %v16845_v11 = vpop.permute.xlu0 %11159  ;;  %v16847_v1 = vpop.permute.xlu1 %11154 }
 0x533   : > { %v8332_v27 = vmax.f32 %v8268_v40, %v16810_v9  ;;  %v16840_v20 = vsel %vm2398_vm8, %v16632_v48, %v10232_v46  ;;  %v10242_v2 = vunpack.i.h.bf16 %v20022_v14  ;;  %v10241_v56 = vunpack.i.l.bf16 %v20022_v14  ;;  %v20023_v47 = vld [vmem:[#allocation93_spill] sm:$0xff]  ;;  %20024 = vst [vmem:[#allocation95_spill] sm:$0xff] %v16845_v11  ;;  %20025 = vst [vmem:[#allocation124_spill] sm:$0xff] %v16847_v1  ;;  %v8175_v14 = vld [vmem:[#allocation2 + $0x98] sm:$0xff] }
 0x534   : > { %11439 = vrot.lane.b32.xlu0 %v20020_v34, %s11875_s24  ;;  %v10236_v28 = vunpack.i.l.bf16 %v20023_v47  ;;  %v8348_v22 = vmax.f32 %v8284_v4, %v16827_v44  ;;  %v8349_v32 = vmax.f32 %v8285_v31, %v16829_v12  ;;  %v8333_v54 = vmax.f32 %v8269_v62, %v8301_v16  ;;  %v20026_v6 = vld [vmem:[#allocation5_spill] sm:$0xff]  ;;  %v20027_v34 = vld [vmem:[#allocation90_spill] sm:$0xff]  ;;  %v20032_v16 = vld [vmem:[#allocation36_spill] sm:$0xff] }
 0x535   : > { %11434 = vrot.lane.b32.xlu1 %v20021_v42, %s11872_s19  ;;  %v8029_v15 = vmax.f32 %v20026_v6, %v16682_v39  ;;  %v16855_v48 = vsel %vm2398_vm8, %v16656_v43, %v10226_v17  ;;  %v16859_v46 = vsel %vm2398_vm8, %v16660_v59, %v10227_v38  ;;  %v10237_v40 = vunpack.i.h.bf16 %v20023_v47  ;;  %v20028_v4 = vld [vmem:[#allocation57_spill] sm:$0xff]  ;;  %v20034_v59 = vld [vmem:[#allocation8_spill] sm:$0xff] }
 0x536   : > { %v10262_v42 = vunpack.i.h.bf16 %v20027_v34  ;;  %v20029_v31 = vld [vmem:[#allocation241_spill] sm:$0xff]  ;;  %v9158_v43 = vpack.c.bf16 %v8349_v32, %v8348_v22  ;;  %v9161_v17 = vpack.c.bf16 %v8333_v54, %v8332_v27  ;;  %v8030_v38 = vmax.f32 %v20034_v59, %v16701_v52  ;;  %v16886_v22 = vpop.permute.xlu0 %11169  ;;  %v16888_v27 = vpop.permute.xlu1 %11164 }
 0x537   : > { %v20030_v62 = vpack.i.bf16 %v20028_v4, %v20029_v31  ;;  %v20031_v39 = vld [vmem:[#allocation197_spill] sm:$0xff]  ;;  %v16875_v47 = vsel %vm2398_vm8, %v16677_v25, %v10241_v56  ;;  %v16879_v13 = vsel %vm2398_vm8, %v16693_v7, %v10242_v2  ;;  %v16883_v4 = vsel %vm2398_vm8, %v16697_v61, %v10236_v28  ;;  %20036 = vst [vmem:[#allocation17_spill] sm:$0xff] %v16886_v22  ;;  %v16893_v56 = vld [vmem:[#allocation2 + $0x150] sm:$0xff] }
 0x538   : > { %v20033_v6 = vpack.i.bf16 %v20031_v39, %v20032_v16  ;;  %20035 = vst [vmem:[#allocation19_spill] sm:$0xff] %v16875_v47  ;;  %v10261_v31 = vunpack.i.l.bf16 %v20027_v34  ;;  %20037 = vst [vmem:[#allocation101_spill] sm:$0xff] %v16888_v27  ;;  %9160 = vmatprep.subr.msk.bf16.mxu1 %vm12269_vm3, %v9158_v43  ;;  %v8093_v25 = vmax.f32 %v8029_v15, %v16770_v60  ;;  %v20038_v7 = vld [vmem:[#allocation187_spill] sm:$0xff]  ;;  %v20039_v61 = vld [vmem:[#allocation177_spill] sm:$0xff] }
 0x539   : > { %11449 = vrot.lane.b32.xlu0 %v20030_v62, %s11876_s25  ;;  %v8174_v62 = vld [vmem:[#allocation2 + $0x90] sm:$0xff]  ;;  %v8094_v52 = vmax.f32 %v8030_v38, %v8189_v21  ;;  %v8141_v2 = vmax.f32 %v20038_v7, %v16810_v9  ;;  %v16902_v34 = vsel %vm2398_vm8, %v16715_v55, %v10237_v40  ;;  %v16906_v39 = vsel %vm2431_vm9, %v16723_v0, %v10262_v42  ;;  %v20042_v16 = vld [vmem:[#allocation94_spill] sm:$0xff]  ;;  %v16912_v9 = vld [vmem:[#allocation2 + $0x158] sm:$0xff] }
 0x53a   : > { %11444 = vrot.lane.b32.xlu1 %v20033_v6, %s11875_s24  ;;  %v20040_v28 = vld [vmem:[#allocation167_spill] sm:$0xff]  ;;  %v10272_v60 = vunpack.i.h.bf16 %v20042_v16  ;;  %v10271_v21 = vunpack.i.l.bf16 %v20042_v16  ;;  %9163 = vmatpush3.bf16.xpose.msk.msra.mxu1 %vm12269_vm3, %v9161_v17  ;;  %v8239_v6 = vld [vmem:[#allocation2 + $0x99] sm:$0xff]  ;;  %v8157_v59 = vmax.f32 %v8093_v25, %v16827_v44  ;;  %v16926_v17 = vsel %vm2431_vm9, %v16719_v63, %v10261_v31  ;;  %v16935_v25 = vpop.permute.xlu1 %11174 }
 0x53b   : > { %v20041_v32 = vmax.f32 %v20039_v61, %v20040_v28  ;;  %v8238_v15 = vld [vmem:[#allocation2 + $0x91] sm:$0xff]  ;;  %v20044_v43 = vld [vmem:[#allocation249_spill] sm:$0xff]  ;;  %v8158_v38 = vmax.f32 %v8094_v52, %v16829_v12  ;;  %v8206_v7 = vmax.f32 %v8141_v2, %v8174_v62  ;;  %20052 = vst [vmem:[#allocation155_spill] sm:$0xff] %v16935_v25 }
 0x53c   : > { %v20046_v40 = vld [vmem:[#allocation28_spill] sm:$0xff]  ;;  %v20047_v0 = vld [vmem:[#allocation27_spill] sm:$0xff]  ;;  %v20050_v16 = vld [vmem:[#allocation105_spill] sm:$0xff]  ;;  %v8222_v62 = vmax.f32 %v8157_v59, %v16893_v56  ;;  %v16941_v2 = vsel %vm2431_vm9, %v16739_v51, %v10272_v60 }
 0x53d   : > { %v8207_v54 = vmax.f32 %v20041_v32, %v8175_v14  ;;  %v20043_v14 = vld [vmem:[#allocation246_spill] sm:$0xff]  ;;  %v20048_v42 = vpack.i.bf16 %v20046_v40, %v20047_v0  ;;  %v20049_v61 = vld [vmem:[#allocation43_spill] sm:$0xff]  ;;  %v16933_v40 = vpop.permute.xlu0 %11179  ;;  %v8223_v52 = vmax.f32 %v8158_v38, %v16912_v9  ;;  %v8270_v63 = vmax.f32 %v8206_v7, %v8238_v15  ;;  %v16951_v25 = vld [vmem:[#allocation2 + $0x15a] sm:$0xff] }
 0x53e   : > { %v20045_v55 = vpack.i.bf16 %v20043_v14, %v20044_v43  ;;  %v10267_v28 = vunpack.i.h.bf16 %v20049_v61  ;;  %v10266_v32 = vunpack.i.l.bf16 %v20049_v61  ;;  %v10282_v14 = vunpack.i.h.bf16 %v20050_v16  ;;  %v8254_v43 = vld [vmem:[#allocation2 + $0x151] sm:$0xff]  ;;  %20051 = vst [vmem:[#allocation190_spill] sm:$0xff] %v16933_v40  ;;  %v20053_v61 = vld [vmem:[#allocation106_spill] sm:$0xff]  ;;  %v8303_v59 = vld [vmem:[#allocation2 + $0x9a] sm:$0xff] }
 0x53f   : > { %11454 = vrot.lane.b32.xlu1 %v20048_v42, %s11876_s25  ;;  %v16931_v47 = vld [vmem:[#allocation2 + $0x92] sm:$0xff]  ;;  %v8271_v31 = vmax.f32 %v8207_v54, %v8239_v6  ;;  %v16945_v0 = vsel %vm2431_vm9, %v16728_v45, %v10271_v21  ;;  %v10281_v42 = vunpack.i.l.bf16 %v20050_v16  ;;  %v10276_v22 = vunpack.i.l.bf16 %v20053_v61  ;;  %v20058_v60 = vld [vmem:[#allocation205_spill] sm:$0xff] }
 0x540   : > { %11459 = vrot.lane.b32.xlu0 %v20045_v55, %s11870_s15  ;;  %v8255_v55 = vld [vmem:[#allocation2 + $0x159] sm:$0xff]  ;;  %v20055_v54 = vld [vmem:[#allocation247_spill] sm:$0xff]  ;;  %v8286_v45 = vmax.f32 %v8222_v62, %v8254_v43  ;;  %v8334_v7 = vmax.f32 %v8270_v63, %v16931_v47  ;;  %v16964_v16 = vsel %vm2431_vm9, %v16743_v30, %v10266_v32  ;;  %v16968_v5 = vsel %vm2431_vm9, %v16757_v36, %v10267_v28  ;;  %v16977_v43 = vpop.permute.xlu1 %11184 }
 0x541   : > { %v16949_v27 = vld [vmem:[#allocation2 + $0x152] sm:$0xff]  ;;  %v8287_v21 = vmax.f32 %v8223_v52, %v8255_v55  ;;  %20062 = vst [vmem:[#allocation10_spill] sm:$0xff] %v16977_v43  ;;  %v8335_v30 = vmax.f32 %v8271_v31, %v8303_v59  ;;  %v16985_v36 = vsel %vm2431_vm9, %v16779_v49, %v10281_v42  ;;  %v20065_v28 = vld [vmem:[#allocation109_spill] sm:$0xff]  ;;  %v10352_v43 = vunpack.i.h.bf16 %v20095_v33 }
 0x542   : > { %v20054_v15 = vld [vmem:[#allocation248_spill] sm:$0xff]  ;;  %v8350_v55 = vmax.f32 %v8286_v45, %v16949_v27  ;;  %v20063_v32 = vld [vmem:[#allocation7_spill] sm:$0xff]  ;;  %20064 = vst [vmem:[#allocation34_spill] sm:$0xff] %v16985_v36  ;;  %v10301_v63 = vunpack.i.l.bf16 %v20065_v28  ;;  %v20067_v31 = vld [vmem:[#allocation213_spill] sm:$0xff] }
 0x543   : > { %v20056_v6 = vpack.i.bf16 %v20054_v15, %v20055_v54  ;;  %v20057_v51 = vld [vmem:[#allocation212_spill] sm:$0xff]  ;;  %v16972_v15 = vsel %vm2431_vm9, %v16783_v41, %v10282_v14  ;;  %v10277_v54 = vunpack.i.h.bf16 %v20053_v61  ;;  %v8351_v62 = vmax.f32 %v8287_v21, %v16951_v25  ;;  %v16993_v61 = vld [vmem:[#allocation2 + $0xb0] sm:$0xff] }
 0x544   : > { %v20059_v38 = vpack.i.bf16 %v20057_v51, %v20058_v60  ;;  %20060 = vst [vmem:[#allocation118_spill] sm:$0xff] %v16972_v15  ;;  %v8031_v52 = vmax.f32 %v20063_v32, %v16827_v44  ;;  %v16989_v41 = vsel %vm2431_vm9, %v16799_v26, %v10276_v22  ;;  %v10302_v14 = vunpack.i.h.bf16 %v20065_v28  ;;  %v20066_v51 = vld [vmem:[#allocation50_spill] sm:$0xff]  ;;  %v20070_v60 = vld [vmem:[#allocation25_spill] sm:$0xff]  ;;  %v20071_v22 = vld [vmem:[#allocation111_spill] sm:$0xff] }
 0x545   : > { %11469 = vrot.lane.b32.xlu0 %v20056_v6, %s11871_s16  ;;  %v16975_v6 = vpop.permute.xlu0 %11189  ;;  %v20068_v44 = vld [vmem:[#allocation206_spill] sm:$0xff]  ;;  %v9164_v49 = vpack.c.bf16 %v8351_v62, %v8350_v55  ;;  %v9167_v42 = vpack.c.bf16 %v8335_v30, %v8334_v7  ;;  %v8032_v26 = vmax.f32 %v20070_v60, %v16829_v12  ;;  %v10311_v45 = vunpack.i.l.bf16 %v20071_v22  ;;  %v20072_v21 = vld [vmem:[#allocation112_spill] sm:$0xff]  ;;  %v17016_v7 = vpop.permute.xlu1 %11194 }
 0x546   : > { %11464 = vrot.lane.b32.xlu1 %v20059_v38, %s11870_s15  ;;  %20061 = vst [vmem:[#allocation99_spill] sm:$0xff] %v16975_v6  ;;  %v20069_v59 = vpack.i.bf16 %v20067_v31, %v20068_v44  ;;  %v10312_v38 = vunpack.i.h.bf16 %v20071_v22  ;;  %v10307_v32 = vunpack.i.h.bf16 %v20072_v21  ;;  %v10306_v28 = vunpack.i.l.bf16 %v20072_v21  ;;  %v17007_v15 = vld [vmem:[#allocation2 + $0xa8] sm:$0xff]  ;;  %20074 = vst [vmem:[#allocation97_spill] sm:$0xff] %v17016_v7  ;;  %v20075_v31 = vld [vmem:[#allocation184_spill] sm:$0xff] }
 0x547   : > { %9166 = vmatprep.subr.msk.bf16.mxu1 %vm12269_vm3, %v9164_v49  ;;  %v8095_v12 = vmax.f32 %v8031_v52, %v16893_v56  ;;  %v8096_v62 = vmax.f32 %v8032_v26, %v16912_v9  ;;  %v17022_v30 = vld [vmem:[#allocation2 + $0x168] sm:$0xff]  ;;  %v8143_v44 = vmax.f32 %v20075_v31, %v16931_v47  ;;  %v17032_v36 = vsel %vm2431_vm9, %v16803_v37, %v10277_v54  ;;  %v20079_v9 = vld [vmem:[#allocation113_spill] sm:$0xff]  ;;  %v17045_v47 = vld [vmem:[#allocation2 + $0x170] sm:$0xff] }
 0x548   : > { %v20077_v60 = vld [vmem:[#allocation6_spill] sm:$0xff]  ;;  %v17036_v49 = vsel %vm2431_vm9, %v16819_v24, %v10302_v14  ;;  %v17040_v56 = vsel %vm2431_vm9, %v16807_v53, %v10301_v63  ;;  %v10322_v52 = vunpack.i.h.bf16 %v20079_v9  ;;  %9169 = vmatpush3.bf16.xpose.msk.msra.mxu1 %vm12269_vm3, %v9167_v42  ;;  %v17049_v31 = vld [vmem:[#allocation2 + $0xb1] sm:$0xff]  ;;  %v10351_v6 = vunpack.i.l.bf16 %v20095_v33 }
 0x549   : > { %11479 = vrot.lane.b32.xlu0 %v20066_v51, %s11872_s19  ;;  %v17012_v51 = vld [vmem:[%s18680_s9] sm:$0xff]  ;;  %v17014_v55 = vpop.permute.xlu0 %11199  ;;  %v17047_v26 = vld [vmem:[#allocation2 + $0xa9] sm:$0xff]  ;;  %v20083_v53 = vld [vmem:[#allocation216_spill] sm:$0xff]  ;;  %v8159_v14 = vmax.f32 %v8095_v12, %v16949_v27  ;;  %v8160_v63 = vmax.f32 %v8096_v62, %v16951_v25  ;;  %v8208_v42 = vmax.f32 %v8143_v44, %v17007_v15 }
 0x54a   : > { %11474 = vrot.lane.b32.xlu1 %v20069_v59, %s11871_s16  ;;  %20073 = vst [vmem:[#allocation32_spill] sm:$0xff] %v17014_v55  ;;  %v20076_v59 = vld [vmem:[#allocation188_spill] sm:$0xff]  ;;  %8944 = vmatprep.mubr.msk.f32.mxu1 %vm426_vm1, %v17012_v51  ;;  %v20080_v37 = vld [vmem:[#allocation251_spill] sm:$0xff]  ;;  %v20081_v24 = vld [vmem:[#allocation250_spill] sm:$0xff] }
 0x54b   : > { %v20078_v22 = vmax.f32 %v20076_v59, %v20077_v60  ;;  %v20082_v54 = vpack.i.bf16 %v20080_v37, %v20081_v24  ;;  %v17064_v59 = vsel %vm2431_vm9, %v16840_v20, %v10312_v38  ;;  %v17068_v60 = vsel %vm2431_vm9, %v16823_v19, %v10311_v45  ;;  %v8256_v12 = vld [vmem:[#allocation2 + $0x169] sm:$0xff]  ;;  %v8257_v62 = vld [vmem:[#allocation2 + $0x171] sm:$0xff]  ;;  %v17082_v20 = vpop.permute.xlu1 %11204 }
 0x54c   : > { %v17076_v37 = vsel %vm2431_vm9, %v16859_v46, %v10307_v32  ;;  %v17078_v24 = vld [vmem:[#allocation2 + $0xaa] sm:$0xff]  ;;  %20085 = vst [vmem:[#allocation63_spill] sm:$0xff] %v17082_v20  ;;  %v8224_v38 = vmax.f32 %v8159_v14, %v17022_v30  ;;  %v8225_v19 = vmax.f32 %v8160_v63, %v17045_v47  ;;  %v8272_v45 = vmax.f32 %v8208_v42, %v17047_v26  ;;  %v17097_v20 = vld [vmem:[#allocation2 + $0x172] sm:$0xff]  ;;  %v20089_v63 = vld [vmem:[#allocation245_spill] sm:$0xff] }
 0x54d   : > { %v8209_v21 = vmax.f32 %v20078_v22, %v16993_v61  ;;  %11489 = vrot.lane.b32.xlu0 %v20082_v54, %s11875_s24  ;;  %v17072_v22 = vsel %vm2431_vm9, %v16855_v48, %v10306_v28  ;;  %v17080_v44 = vpop.permute.xlu0 %11209  ;;  %v17090_v46 = vsel %vm2431_vm9, %v16879_v13, %v10322_v52  ;;  %v20087_v32 = vld [vmem:[#allocation114_spill] sm:$0xff]  ;;  %v17099_v14 = vld [vmem:[#allocation2 + $0xb2] sm:$0xff]  ;;  %v20092_v13 = vld [vmem:[#allocation209_spill] sm:$0xff] }
 0x54e   : > { %11484 = vrot.lane.b32.xlu1 %v20083_v53, %s11872_s19  ;;  %20084 = vst [vmem:[#allocation62_spill] sm:$0xff] %v17080_v44  ;;  %20086 = vst [vmem:[#allocation173_spill] sm:$0xff] %v17090_v46  ;;  %v10317_v28 = vunpack.i.h.bf16 %v20087_v32  ;;  %v10316_v54 = vunpack.i.l.bf16 %v20087_v32  ;;  %v20088_v53 = vld [vmem:[#allocation117_spill] sm:$0xff]  ;;  %v17095_v55 = vld [vmem:[#allocation2 + $0x16a] sm:$0xff]  ;;  %v8288_v11 = vmax.f32 %v8224_v38, %v8256_v12  ;;  %v8289_v32 = vmax.f32 %v8225_v19, %v8257_v62 }
 0x54f   : > { %v8273_v48 = vmax.f32 %v8209_v21, %v17049_v31  ;;  %v10341_v44 = vunpack.i.l.bf16 %v20088_v53  ;;  %v20090_v42 = vld [vmem:[#allocation244_spill] sm:$0xff]  ;;  %v8336_v7 = vmax.f32 %v8272_v45, %v17078_v24  ;;  %v10342_v1 = vunpack.i.h.bf16 %v20088_v53  ;;  %v20098_v62 = vld [vmem:[#allocation22_spill] sm:$0xff] }
 0x550   : > { %v20091_v21 = vpack.i.bf16 %v20089_v63, %v20090_v42  ;;  %v20093_v52 = vld [vmem:[#allocation208_spill] sm:$0xff]  ;;  %v17116_v63 = vpop.permute.xlu1 %11214  ;;  %v8352_v42 = vmax.f32 %v8288_v11, %v17095_v55  ;;  %v8033_v38 = vmax.f32 %v20098_v62, %v16949_v27  ;;  %v17125_v19 = vsel %vm2431_vm9, %v16883_v4, %v10316_v54  ;;  %v8243_v53 = vld [vmem:[#allocation2 + $0xc9] sm:$0xff]  ;;  %v20102_v27 = vld [vmem:[#allocation253_spill] sm:$0xff] }
 0x551   : > { %v20094_v46 = vpack.i.bf16 %v20092_v13, %v20093_v52  ;;  %v20096_v40 = vld [vmem:[#allocation120_spill] sm:$0xff]  ;;  %v17114_v50 = vpop.permute.xlu0 %11219  ;;  %20097 = vst [vmem:[#allocation98_spill] sm:$0xff] %v17116_v63  ;;  %v8337_v12 = vmax.f32 %v8273_v48, %v17099_v14  ;;  %20099 = vst [vmem:[#allocation180_spill] sm:$0xff] %v17125_v19  ;;  %v17129_v33 = vsel %vm2431_vm9, %v16902_v34, %v10317_v28  ;;  %v20104_v4 = vld [vmem:[#allocation203_spill] sm:$0xff] }
 0x552   : > { %11499 = vrot.lane.b32.xlu0 %v20091_v21, %s11876_s25  ;;  %v10346_v35 = vunpack.i.l.bf16 %v20096_v40  ;;  %20100 = vst [vmem:[#allocation39_spill] sm:$0xff] %v17129_v33  ;;  %v17133_v45 = vsel %vm2464_vm10, %v16926_v17, %v10341_v44  ;;  %v10347_v11 = vunpack.i.h.bf16 %v20096_v40  ;;  %v20101_v21 = vld [vmem:[#allocation252_spill] sm:$0xff]  ;;  %v20105_v54 = vld [vmem:[#allocation202_spill] sm:$0xff]  ;;  %v20107_v17 = vld [vmem:[#allocation23_spill] sm:$0xff]  ;;  %v17149_v40 = vsel %vm2464_vm10, %v16906_v39, %v10342_v1 }
 0x553   : > { %11494 = vrot.lane.b32.xlu1 %v20094_v46, %s11875_s24  ;;  %v8353_v46 = vmax.f32 %v8289_v32, %v17097_v20  ;;  %v20103_v13 = vpack.i.bf16 %v20101_v21, %v20102_v27  ;;  %v20106_v52 = vpack.i.bf16 %v20104_v4, %v20105_v54  ;;  %v9173_v28 = vpack.c.bf16 %v8337_v12, %v8336_v7  ;;  %v17163_v7 = vld [vmem:[#allocation2 + $0xc0] sm:$0xff]  ;;  %v20119_v48 = vld [vmem:[#allocation127_spill] sm:$0xff]  ;;  %v20120_v33 = vld [vmem:[#allocation128_spill] sm:$0xff] }
 0x554   : > { %v8034_v44 = vmax.f32 %v20107_v17, %v16951_v25  ;;  %v17153_v32 = vsel %vm2464_vm10, %v16945_v0, %v10351_v6  ;;  %v17157_v62 = vsel %vm2464_vm10, %v16941_v2, %v10352_v43  ;;  %v17161_v21 = vsel %vm2464_vm10, %v16964_v16, %v10346_v35  ;;  %v17167_v25 = vpop.permute.xlu1 %11224  ;;  %v8194_v0 = vld [vmem:[#allocation2 + $0x180] sm:$0xff]  ;;  %v20108_v2 = vld [vmem:[#allocation24_spill] sm:$0xff]  ;;  %v20117_v17 = vld [vmem:[#allocation210_spill] sm:$0xff] }
 0x555   : > { %v9170_v34 = vpack.c.bf16 %v8353_v46, %v8352_v42  ;;  %v17165_v42 = vpop.permute.xlu0 %11229  ;;  %v8097_v1 = vmax.f32 %v8033_v38, %v17022_v30  ;;  %v8145_v6 = vmax.f32 %v20108_v2, %v17078_v24  ;;  %v20109_v43 = vld [vmem:[#allocation37_spill] sm:$0xff]  ;;  %v17178_v16 = vsel %vm2464_vm10, %v16968_v5, %v10347_v11  ;;  %v20110_v46 = vld [vmem:[#allocation122_spill] sm:$0xff] }
 0x556   : > { %11509 = vrot.lane.b32.xlu0 %v20103_v13, %s11870_s15  ;;  %v8098_v39 = vmax.f32 %v8034_v44, %v17045_v47  ;;  %v8275_v35 = vmax.f32 %v20109_v43, %v8243_v53  ;;  %v10357_v12 = vunpack.i.h.bf16 %v20110_v46  ;;  %v10356_v27 = vunpack.i.l.bf16 %v20110_v46  ;;  %v20111_v13 = vld [vmem:[#allocation125_spill] sm:$0xff]  ;;  %v8195_v30 = vld [vmem:[#allocation2 + $0x188] sm:$0xff]  ;;  %v20113_v53 = vld [vmem:[#allocation255_spill] sm:$0xff] }
 0x557   : > { %11504 = vrot.lane.b32.xlu1 %v20106_v52, %s11876_s25  ;;  %9172 = vmatprep.subr.msk.bf16.mxu1 %vm12269_vm3, %v9170_v34  ;;  %v10381_v4 = vunpack.i.l.bf16 %v20111_v13  ;;  %v8242_v47 = vld [vmem:[#allocation2 + $0xc1] sm:$0xff]  ;;  %v17185_v38 = vld [vmem:[#allocation2 + $0xca] sm:$0xff]  ;;  %v8161_v2 = vmax.f32 %v8097_v1, %v17095_v55  ;;  %v8210_v43 = vmax.f32 %v8145_v6, %v17163_v7  ;;  %v10382_v46 = vunpack.i.h.bf16 %v20111_v13 }
 0x558   : > { %9175 = vmatpush3.bf16.xpose.msk.msra.mxu1 %vm12269_vm3, %v9173_v28  ;;  %v20114_v34 = vld [vmem:[#allocation254_spill] sm:$0xff]  ;;  %v8162_v28 = vmax.f32 %v8098_v39, %v17097_v20  ;;  %v10392_v52 = vunpack.i.h.bf16 %v20119_v48  ;;  %v10391_v9 = vunpack.i.l.bf16 %v20119_v48  ;;  %v8339_v6 = vmax.f32 %v8275_v35, %v17185_v38  ;;  %v20125_v35 = vld [vmem:[#allocation53_spill] sm:$0xff] }
 0x559   : > { %v20115_v5 = vpack.i.bf16 %v20113_v53, %v20114_v34  ;;  %v20116_v11 = vld [vmem:[#allocation218_spill] sm:$0xff]  ;;  %v10386_v53 = vunpack.i.l.bf16 %v20120_v33  ;;  %v8226_v1 = vmax.f32 %v8161_v2, %v8194_v0  ;;  %v17212_v13 = vsel %vm2464_vm10, %v16989_v41, %v10356_v27 }
 0x55a   : > { %v20118_v44 = vpack.i.bf16 %v20116_v11, %v20117_v17  ;;  %v8258_v34 = vld [vmem:[#allocation2 + $0x181] sm:$0xff]  ;;  %v17205_v11 = vpop.permute.xlu0 %11239  ;;  %v17207_v17 = vpop.permute.xlu1 %11234  ;;  %v8227_v39 = vmax.f32 %v8162_v28, %v8195_v30  ;;  %20123 = vst [vmem:[#allocation54_spill] sm:$0xff] %v17212_v13  ;;  %v17216_v48 = vsel %vm2464_vm10, %v17032_v36, %v10357_v12  ;;  %v17220_v63 = vsel %vm2464_vm10, %v17040_v56, %v10381_v4  ;;  %v8323_v2 = vld [vmem:[#allocation2 + $0x18a] sm:$0xff] }
 0x55b   : > { %11519 = vrot.lane.b32.xlu0 %v20115_v5, %s11871_s16  ;;  %v8259_v5 = vld [vmem:[#allocation2 + $0x189] sm:$0xff]  ;;  %20121 = vst [vmem:[#allocation82_spill] sm:$0xff] %v17205_v11  ;;  %20122 = vst [vmem:[#allocation64_spill] sm:$0xff] %v17207_v17  ;;  %v10387_v11 = vunpack.i.h.bf16 %v20120_v33  ;;  %v8290_v36 = vmax.f32 %v8226_v1, %v8258_v34  ;;  %v5862_v56 = vsel %vm2464_vm10, %v17036_v49, %v10382_v46 }
 0x55c   : > { %11514 = vrot.lane.b32.xlu1 %v20118_v44, %s11870_s15  ;;  %v17203_v19 = vld [vmem:[#allocation2 + $0xc2] sm:$0xff]  ;;  %v8274_v44 = vmax.f32 %v8210_v43, %v8242_v47  ;;  %20124 = vst [vmem:[#allocation55_spill] sm:$0xff] %v17216_v48  ;;  %v8291_v12 = vmax.f32 %v8227_v39, %v8259_v5  ;;  %v17235_v33 = vsel %vm2464_vm10, %v17068_v60, %v10391_v9  ;;  %v20142_v47 = vld [vmem:[#allocation135_spill] sm:$0xff] }
 0x55d   : > { %v8322_v17 = vld [vmem:[#allocation2 + $0x182] sm:$0xff]  ;;  %v17239_v4 = vsel %vm2464_vm10, %v17064_v59, %v10392_v52  ;;  %v17253_v9 = vsel %vm2464_vm10, %v17076_v37, %v10387_v11  ;;  %v10432_v54 = vunpack.i.h.bf16 %v20142_v47 }
 0x55e   : > { %v20126_v41 = vld [vmem:[#allocation222_spill] sm:$0xff]  ;;  %v8338_v43 = vmax.f32 %v8274_v44, %v17203_v19  ;;  %v17247_v34 = vpop.permute.xlu1 %11244  ;;  %v8354_v5 = vmax.f32 %v8290_v36, %v8322_v17  ;;  %v8355_v1 = vmax.f32 %v8291_v12, %v8323_v2  ;;  %v20133_v52 = vld [vmem:[#allocation133_spill] sm:$0xff] }
 0x55f   : > { %11529 = vrot.lane.b32.xlu0 %v20125_v35, %s11872_s19  ;;  %v20127_v27 = vld [vmem:[#allocation214_spill] sm:$0xff]  ;;  %v17243_v35 = vsel %vm2464_vm10, %v17072_v22, %v10386_v53  ;;  %20130 = vst [vmem:[#allocation179_spill] sm:$0xff] %v17247_v34  ;;  %v10422_v44 = vunpack.i.h.bf16 %v20133_v52  ;;  %v10421_v22 = vunpack.i.l.bf16 %v20133_v52  ;;  %v20136_v36 = vld [vmem:[#allocation261_spill] sm:$0xff]  ;;  %v10431_v52 = vunpack.i.l.bf16 %v20142_v47 }
 0x560   : > { %v20128_v28 = vpack.i.bf16 %v20126_v41, %v20127_v27  ;;  %v17245_v41 = vpop.permute.xlu0 %11249  ;;  %v9179_v39 = vpack.c.bf16 %v8339_v6, %v8338_v43  ;;  %v20131_v49 = vld [vmem:[#allocation26_spill] sm:$0xff]  ;;  %v20138_v6 = vld [vmem:[#allocation223_spill] sm:$0xff]  ;;  %v9176_v37 = vpack.c.bf16 %v8355_v1, %v8354_v5  ;;  %v20141_v11 = vld [vmem:[#allocation33_spill] sm:$0xff] }
 0x561   : > { %20129 = vst [vmem:[#allocation201_spill] sm:$0xff] %v17245_v41  ;;  %v8035_v46 = vmax.f32 %v20131_v49, %v17095_v55  ;;  %v20139_v55 = vld [vmem:[#allocation215_spill] sm:$0xff]  ;;  %v8036_v49 = vmax.f32 %v20141_v11, %v17097_v20  ;;  %v20143_v27 = vld [vmem:[#allocation136_spill] sm:$0xff]  ;;  %v20145_v20 = vld [vmem:[#allocation14_spill] sm:$0xff] }
 0x562   : > { %11524 = vrot.lane.b32.xlu1 %v20128_v28, %s11871_s16  ;;  %v20135_v28 = vld [vmem:[#allocation256_spill] sm:$0xff]  ;;  %v20140_v43 = vpack.i.bf16 %v20138_v6, %v20139_v55  ;;  %v10427_v59 = vunpack.i.h.bf16 %v20143_v27  ;;  %v10426_v48 = vunpack.i.l.bf16 %v20143_v27  ;;  %9178 = vmatprep.subr.msk.bf16.mxu1 %vm12269_vm3, %v9176_v37  ;;  %v5877_v6 = vsel %vm2497_vm11, %v17133_v45, %v10421_v22  ;;  %v20147_v55 = vld [vmem:[#allocation141_spill] sm:$0xff] }
 0x563   : > { %v20137_v12 = vpack.i.bf16 %v20135_v28, %v20136_v36  ;;  %v8099_v60 = vmax.f32 %v8035_v46, %v8194_v0  ;;  %v8196_v28 = vld [vmem:[#allocation2 + $0x198] sm:$0xff]  ;;  %v8100_v5 = vmax.f32 %v8036_v49, %v8195_v30  ;;  %v7891_v0 = vmax.f32 %v20145_v20, %v17007_v15  ;;  %v20146_v46 = vld [vmem:[#allocation15_spill] sm:$0xff]  ;;  %9181 = vmatpush3.bf16.xpose.msk.msra.mxu1 %vm12269_vm3, %v9179_v39  ;;  %v8197_v30 = vld [vmem:[#allocation2 + $0x1a0] sm:$0xff] }
 0x564   : > { %v17273_v36 = vpop.permute.xlu0 %11259  ;;  %v7892_v47 = vmax.f32 %v20146_v46, %v16993_v61  ;;  %v5878_v27 = vsel %vm2497_vm11, %v17149_v40, %v10422_v44  ;;  %v10461_v11 = vunpack.i.l.bf16 %v20147_v55  ;;  %v20149_v61 = vld [vmem:[#allocation243_spill] sm:$0xff]  ;;  %v20151_v45 = vld [vmem:[#allocation225_spill] sm:$0xff]  ;;  %v20152_v22 = vld [vmem:[#allocation224_spill] sm:$0xff]  ;;  %v5881_v39 = vsel %vm2497_vm11, %v17153_v32, %v10431_v52 }
 0x565   : > { %11539 = vrot.lane.b32.xlu0 %v20137_v12, %s11875_s24  ;;  %v17275_v12 = vpop.permute.xlu1 %11254  ;;  %v8163_v1 = vmax.f32 %v8099_v60, %v8322_v17  ;;  %v8260_v17 = vld [vmem:[#allocation2 + $0x199] sm:$0xff]  ;;  %v20148_v60 = vld [vmem:[#allocation242_spill] sm:$0xff]  ;;  %v20153_v40 = vpack.i.bf16 %v20151_v45, %v20152_v22  ;;  %v8164_v44 = vmax.f32 %v8100_v5, %v8323_v2  ;;  %v7955_v20 = vmax.f32 %v7891_v0, %v17047_v26 }
 0x566   : > { %11534 = vrot.lane.b32.xlu1 %v20140_v43, %s11872_s19  ;;  %20144 = vst [vmem:[#allocation65_spill] sm:$0xff] %v17275_v12  ;;  %v10462_v43 = vunpack.i.h.bf16 %v20147_v55  ;;  %v20150_v37 = vpack.i.bf16 %v20148_v60, %v20149_v61  ;;  %v5882_v46 = vsel %vm2497_vm11, %v17157_v62, %v10432_v54  ;;  %v5879_v55 = vsel %vm2497_vm11, %v17161_v21, %v10426_v48  ;;  %v8261_v61 = vld [vmem:[#allocation2 + $0x1a1] sm:$0xff]  ;;  %v20168_v15 = vld [vmem:[#allocation264_spill] sm:$0xff] }
 0x567   : > { %v8228_v49 = vmax.f32 %v8163_v1, %v8196_v28  ;;  %v5880_v60 = vsel %vm2497_vm11, %v17178_v16, %v10427_v59  ;;  %v8229_v28 = vmax.f32 %v8164_v44, %v8197_v30  ;;  %v7956_v5 = vmax.f32 %v7892_v47, %v17049_v31  ;;  %v20154_v16 = vld [vmem:[#allocation143_spill] sm:$0xff]  ;;  %v8325_v59 = vld [vmem:[#allocation2 + $0x1a2] sm:$0xff]  ;;  %v20155_v1 = vld [vmem:[#allocation144_spill] sm:$0xff] }
 0x568   : > { %v17309_v45 = vpop.permute.xlu0 %11269  ;;  %v8019_v32 = vmax.f32 %v7955_v20, %v17078_v24  ;;  %v17317_v62 = vsel %vm2497_vm11, %v17220_v63, %v10461_v11  ;;  %v17320_v21 = vsel %vm2497_vm11, %v5862_v56, %v10462_v43  ;;  %v10472_v54 = vunpack.i.h.bf16 %v20154_v16  ;;  %v8052_v52 = vld [vmem:[#allocation2 + $0xc8] sm:$0xff]  ;;  %v20159_v24 = vld [vmem:[#allocation221_spill] sm:$0xff]  ;;  %v20163_v20 = vld [vmem:[#allocation151_spill] sm:$0xff] }
 0x569   : > { %11549 = vrot.lane.b32.xlu0 %v20150_v37, %s11876_s25  ;;  %v8324_v37 = vld [vmem:[#allocation2 + $0x19a] sm:$0xff]  ;;  %v17311_v2 = vpop.permute.xlu1 %11264  ;;  %v8292_v26 = vmax.f32 %v8228_v49, %v8260_v17  ;;  %v10471_v48 = vunpack.i.l.bf16 %v20154_v16  ;;  %v10467_v0 = vunpack.i.h.bf16 %v20155_v1  ;;  %v20156_v30 = vld [vmem:[#allocation262_spill] sm:$0xff]  ;;  %v8293_v56 = vmax.f32 %v8229_v28, %v8261_v61 }
 0x56a   : > { %11544 = vrot.lane.b32.xlu1 %v20153_v40, %s11875_s24  ;;  %v20157_v31 = vld [vmem:[#allocation266_spill] sm:$0xff]  ;;  %v20160_v63 = vld [vmem:[#allocation217_spill] sm:$0xff]  ;;  %v8020_v17 = vmax.f32 %v7956_v5, %v17099_v14  ;;  %v10466_v22 = vunpack.i.l.bf16 %v20155_v1  ;;  %v10512_v16 = vunpack.i.h.bf16 %v20163_v20  ;;  %v8083_v61 = vmax.f32 %v8019_v32, %v17163_v7 }
 0x56b   : > { %v20158_v47 = vpack.i.bf16 %v20156_v30, %v20157_v31  ;;  %v20161_v11 = vpack.i.bf16 %v20159_v24, %v20160_v63  ;;  %v8356_v43 = vmax.f32 %v8292_v26, %v8324_v37  ;;  %v20162_v40 = vld [vmem:[#allocation149_spill] sm:$0xff]  ;;  %v10511_v30 = vunpack.i.l.bf16 %v20163_v20  ;;  %v20166_v26 = vld [vmem:[#allocation152_spill] sm:$0xff]  ;;  %v20172_v32 = vld [vmem:[#allocation226_spill] sm:$0xff] }
 0x56c   : > { %v10502_v44 = vunpack.i.h.bf16 %v20162_v40  ;;  %v10501_v49 = vunpack.i.l.bf16 %v20162_v40  ;;  %v17339_v31 = vpop.permute.xlu0 %11279  ;;  %v8357_v24 = vmax.f32 %v8293_v56, %v8325_v59  ;;  %v8084_v37 = vmax.f32 %v8020_v17, %v8052_v52  ;;  %v8180_v63 = vld [vmem:[#allocation2 + $0xd8] sm:$0xff]  ;;  %v20169_v59 = vld [vmem:[#allocation263_spill] sm:$0xff]  ;;  %v20171_v7 = vld [vmem:[#allocation229_spill] sm:$0xff] }
 0x56d   : > { %11559 = vrot.lane.b32.xlu0 %v20158_v47, %s11870_s15  ;;  %20164 = vst [vmem:[#allocation189_spill] sm:$0xff] %v17339_v31  ;;  %v17341_v47 = vpop.permute.xlu1 %11274  ;;  %v5897_v14 = vsel %vm2497_vm11, %v17235_v33, %v10471_v48  ;;  %v5898_v28 = vsel %vm2497_vm11, %v17239_v4, %v10472_v54  ;;  %v10507_v5 = vunpack.i.h.bf16 %v20166_v26  ;;  %v10506_v1 = vunpack.i.l.bf16 %v20166_v26  ;;  %v11832_v34 = vld [vmem:[#allocation4 + $0x61] sm:$0xff] }
 0x56e   : > { %11554 = vrot.lane.b32.xlu1 %v20161_v11, %s11876_s25  ;;  %20165 = vst [vmem:[#allocation142_spill] sm:$0xff] %v17341_v47  ;;  %v8181_v11 = vld [vmem:[#allocation2 + $0xe0] sm:$0xff]  ;;  %v20170_v56 = vpack.i.bf16 %v20168_v15, %v20169_v59  ;;  %v20173_v33 = vpack.i.bf16 %v20171_v7, %v20172_v32  ;;  %v9182_v48 = vpack.c.bf16 %v8357_v24, %v8356_v43  ;;  %v20182_v32 = vld [vmem:[#allocation191_spill] sm:$0xff]  ;;  %v11112_v12 = vunpack.i.h.bf16 %v16639_v10  ;;  %v20211_v47 = vld [vmem:[#allocation236_spill] sm:$0xff] }
 0x56f   : > { %v8147_v4 = vmax.f32 %v8083_v61, %v17203_v19  ;;  %v8148_v54 = vmax.f32 %v8084_v37, %v17185_v38  ;;  %v5895_v52 = vsel %vm2497_vm11, %v17243_v35, %v10466_v22  ;;  %v5896_v17 = vsel %vm2497_vm11, %v17253_v9, %v10467_v0  ;;  %v8244_v59 = vld [vmem:[#allocation2 + $0xd9] sm:$0xff]  ;;  %v20178_v61 = vld [vmem:[#allocation230_spill] sm:$0xff]  ;;  %v20179_v37 = vld [vmem:[#allocation227_spill] sm:$0xff] }
 0x570   : > { %v5909_v26 = vsel %vm2537_vm12, %v5877_v6, %v10501_v49  ;;  %v5910_v15 = vsel %vm2537_vm12, %v5878_v27, %v10502_v44  ;;  %v5913_v7 = vsel %vm2537_vm12, %v5881_v39, %v10511_v30  ;;  %v5914_v43 = vsel %vm2537_vm12, %v5882_v46, %v10512_v16  ;;  %v17369_v24 = vpop.permute.xlu0 %11289  ;;  %9184 = vmatprep.subr.msk.bf16.mxu1 %vm12269_vm3, %v9182_v48  ;;  %v20175_v27 = vld [vmem:[#allocation157_spill] sm:$0xff]  ;;  %v20177_v30 = vld [vmem:[#allocation274_spill] sm:$0xff] }
 0x571   : > { %11569 = vrot.lane.b32.xlu0 %v20170_v56, %s11871_s16  ;;  %v8245_v56 = vld [vmem:[#allocation2 + $0xe1] sm:$0xff]  ;;  %v17371_v19 = vpop.permute.xlu1 %11284  ;;  %v8212_v38 = vmax.f32 %v8147_v4, %v8180_v63  ;;  %v8213_v35 = vmax.f32 %v8148_v54, %v8181_v11  ;;  %v5911_v9 = vsel %vm2537_vm12, %v5879_v55, %v10506_v1  ;;  %v5912_v6 = vsel %vm2537_vm12, %v5880_v60, %v10507_v5  ;;  %v3601_v4 = vld [vmem:[#allocation4 + $0x1b0] sm:$0xff]  ;;  %v3602_v54 = vld [vmem:[#allocation4 + $0x1b8] sm:$0xff] }
 0x572   : > { %11564 = vrot.lane.b32.xlu1 %v20173_v33, %s11870_s15  ;;  %20174 = vst [vmem:[#allocation156_spill] sm:$0xff] %v17371_v19  ;;  %v10542_v0 = vunpack.i.h.bf16 %v20175_v27  ;;  %v10541_v22 = vunpack.i.l.bf16 %v20175_v27  ;;  %v8308_v39 = vld [vmem:[#allocation2 + $0xda] sm:$0xff]  ;;  %v8309_v44 = vld [vmem:[#allocation2 + $0xe2] sm:$0xff]  ;;  %v20180_v63 = vpack.i.bf16 %v20178_v61, %v20179_v37  ;;  %v10582_v33 = vunpack.i.h.bf16 %v20182_v32  ;;  %v3461_v19 = vld [vmem:[#allocation4 + $0x111] sm:$0xff] }
 0x573   : > { %v20176_v46 = vld [vmem:[#allocation169_spill] sm:$0xff]  ;;  %v8276_v55 = vmax.f32 %v8212_v38, %v8244_v59  ;;  %v8277_v60 = vmax.f32 %v8213_v35, %v8245_v56  ;;  %v20181_v5 = vld [vmem:[#allocation170_spill] sm:$0xff]  ;;  %v10581_v48 = vunpack.i.l.bf16 %v20182_v32 }
 0x574   : > { %v10552_v49 = vunpack.i.h.bf16 %v20176_v46  ;;  %v10551_v16 = vunpack.i.l.bf16 %v20176_v46  ;;  %v10547_v1 = vunpack.i.h.bf16 %v20181_v5  ;;  %v10546_v11 = vunpack.i.l.bf16 %v20181_v5  ;;  %v20183_v27 = vld [vmem:[#allocation193_spill] sm:$0xff]  ;;  %v17393_v13 = vpop.permute.xlu0 %11299  ;;  %v20184_v35 = vld [vmem:[#allocation194_spill] sm:$0xff]  ;;  %v20185_v5 = vld [vmem:[#allocation96_spill] sm:$0xff] }
 0x575   : > { %11579 = vrot.lane.b32.xlu0 %v20177_v30, %s11872_s19  ;;  %v10592_v46 = vunpack.i.h.bf16 %v20183_v27  ;;  %v10591_v20 = vunpack.i.l.bf16 %v20183_v27  ;;  %v17395_v61 = vpop.permute.xlu1 %11294  ;;  %v8340_v59 = vmax.f32 %v8276_v55, %v8308_v39  ;;  %v8341_v56 = vmax.f32 %v8277_v60, %v8309_v44  ;;  %v20186_v39 = vld [vmem:[#allocation231_spill] sm:$0xff]  ;;  %v20187_v44 = vld [vmem:[#allocation228_spill] sm:$0xff] }
 0x576   : > { %11574 = vrot.lane.b32.xlu1 %v20180_v63, %s11871_s16  ;;  %v5925_v38 = vsel %vm2537_vm12, %v17317_v62, %v10541_v22  ;;  %v10587_v37 = vunpack.i.h.bf16 %v20184_v35  ;;  %v10586_v63 = vunpack.i.l.bf16 %v20184_v35  ;;  %v10621_v32 = vunpack.i.l.bf16 %v20185_v5 }
 0x577   : > { %v5926_v40 = vsel %vm2537_vm12, %v17320_v21, %v10542_v0  ;;  %v10622_v27 = vunpack.i.h.bf16 %v20185_v5  ;;  %v20188_v55 = vpack.i.bf16 %v20186_v39, %v20187_v44  ;;  %v11593_v62 = vpack.i.bf16 %v3602_v54, %v3601_v4  ;;  %v20203_v54 = vld [vmem:[#allocation234_spill] sm:$0xff]  ;;  %v3445_v44 = vld [vmem:[#allocation4 + $0x51] sm:$0xff] }
 0x578   : > { %v9185_v22 = vpack.c.bf16 %v8341_v56, %v8340_v59  ;;  %v17412_v60 = vsel %vm2537_vm12, %v5897_v14, %v10551_v16  ;;  %v17415_v35 = vsel %vm2537_vm12, %v5898_v28, %v10552_v49  ;;  %v17418_v21 = vsel %vm2537_vm12, %v5895_v52, %v10546_v11  ;;  %v3475_v28 = vld [vmem:[#allocation4 + $0x1b9] sm:$0xff]  ;;  %v17435_v49 = vpop.permute.xlu0 %11309 }
 0x579   : > { %11589 = vrot.lane.b32.xlu0 %v20177_v30, %s11874_s23  ;;  %20189 = vst [vmem:[#allocation66_spill] sm:$0xff] %v17412_v60  ;;  %20190 = vst [vmem:[#allocation56_spill] sm:$0xff] %v17415_v35  ;;  %v17421_v0 = vsel %vm2537_vm12, %v5896_v17, %v10547_v1  ;;  %v3474_v30 = vld [vmem:[#allocation4 + $0x1b1] sm:$0xff]  ;;  %v17424_v5 = vsel %vm5941_vm14, %v5909_v26, %v10581_v48  ;;  %v17427_v39 = vsel %vm5941_vm14, %v5910_v15, %v10582_v33  ;;  %v17437_v52 = vpop.permute.xlu1 %11304  ;;  %v17441_v16 = vld [vmem:[#allocation4 + $0x1ba] sm:$0xff] }
 0x57a   : > { %11584 = vrot.lane.b32.xlu1 %v20188_v55, %s11872_s19  ;;  %20191 = vst [vmem:[#allocation51_spill] sm:$0xff] %v17418_v21  ;;  %20192 = vst [vmem:[#allocation30_spill] sm:$0xff] %v17421_v0  ;;  %v17430_v4 = vsel %vm5941_vm14, %v5913_v7, %v10591_v20  ;;  %v17433_v14 = vsel %vm5941_vm14, %v5914_v43, %v10592_v46  ;;  %v17439_v17 = vld [vmem:[#allocation4 + $0x1b2] sm:$0xff]  ;;  %9187 = vmatpush3.bf16.xpose.msk.msra.mxu1 %vm12269_vm3, %v9185_v22  ;;  %v11062_v7 = vunpack.i.h.bf16 %v16441_v3  ;;  %v17457_v1 = vld [vmem:[#allocation4 + $0x1bb] sm:$0xff]  ;;  %vm7547_vm3 = vcmask 523264  }
 0x57b   : > { %20193 = vst [vmem:[#allocation29_spill] sm:$0xff] %v17424_v5  ;;  %20194 = vst [vmem:[#allocation70_spill] sm:$0xff] %v17427_v39  ;;  %v17446_v26 = vsel %vm5941_vm14, %v5911_v9, %v10586_v63  ;;  %v17449_v20 = vsel %vm5941_vm14, %v5912_v6, %v10587_v37  ;;  %v17452_v15 = vsel %vm5941_vm14, %v5925_v38, %v10621_v32  ;;  %v17455_v43 = vld [vmem:[#allocation4 + $0x1b3] sm:$0xff]  ;;  %v11061_v9 = vunpack.i.l.bf16 %v16441_v3  ;;  %v3730_v56 = vld [vmem:[#allocation4 + $0x1bc] sm:$0xff] }
 0x57c   : > { %20195 = vst [vmem:[#allocation72_spill] sm:$0xff] %v17430_v4  ;;  %20196 = vst [vmem:[#allocation71_spill] sm:$0xff] %v17433_v14  ;;  %v3729_v11 = vld [vmem:[#allocation4 + $0x1b4] sm:$0xff]  ;;  %v17460_v33 = vsel %vm5941_vm14, %v5926_v40, %v10622_v27  ;;  %v11603_v59 = vpack.i.bf16 %v3475_v28, %v3474_v30  ;;  %v17469_v38 = vld [vmem:[#allocation4 + $0x1c8] sm:$0xff]  ;;  %v11072_v3 = vunpack.i.h.bf16 %v16475_v18  ;;  %v11071_v55 = vunpack.i.l.bf16 %v16475_v18  ;;  %v17480_v30 = vpop.permute.xlu0 %11319 }
 0x57d   : > { %20197 = vst [vmem:[#allocation21_spill] sm:$0xff] %v17446_v26  ;;  %20198 = vst [vmem:[#allocation20_spill] sm:$0xff] %v17449_v20  ;;  %v20202_v6 = vld [vmem:[#allocation235_spill] sm:$0xff]  ;;  %v11067_v22 = vunpack.i.h.bf16 %v16477_v29  ;;  %v17482_v28 = vpop.permute.xlu1 %11314  ;;  %v7164_v27 = vsel %vm426_vm1, %v3445_v44, %v11062_v7  ;;  %v17493_v48 = vpack.i.bf16 %v3730_v56, %v3729_v11  ;;  %v20206_v7 = vld [vmem:[#allocation233_spill] sm:$0xff]  ;;  %v11107_v18 = vunpack.i.h.bf16 %v16641_v8 }
 0x57e   : > { %20199 = vst [vmem:[#allocation192_spill] sm:$0xff] %v17452_v15  ;;  %20200 = vst [vmem:[#allocation73_spill] sm:$0xff] %v17460_v33  ;;  %v20204_v46 = vpack.i.bf16 %v20202_v6, %v20203_v54  ;;  %11594 = vrot.lane.b32.xlu1 %v11593_v62, %s11875_s24  ;;  %v17471_v37 = vld [vmem:[#allocation4 + $0x1d0] sm:$0xff]  ;;  %v11066_v62 = vunpack.i.l.bf16 %v16477_v29  ;;  %v11613_v6 = vpack.i.bf16 %v17441_v16, %v17439_v17  ;;  %v11102_v17 = vunpack.i.h.bf16 %v16593_v57  ;;  %v20207_v44 = vld [vmem:[#allocation232_spill] sm:$0xff] }
 0x57f   : > { %v17486_v54 = vld [vmem:[#allocation4 + $0x1c9] sm:$0xff]  ;;  %v11101_v16 = vunpack.i.l.bf16 %v16593_v57  ;;  %v20208_v41 = vpack.i.bf16 %v20206_v7, %v20207_v44  ;;  %v17508_v11 = vld [vmem:[#allocation4 + $0x1d2] sm:$0xff]  ;;  %v11111_v57 = vunpack.i.l.bf16 %v16639_v10  ;;  %v11106_v10 = vunpack.i.l.bf16 %v16641_v8 }
 0x580   : > { %11599 = vrot.lane.b32.xlu0 %v20204_v46, %s11875_s24  ;;  %v17488_v46 = vld [vmem:[#allocation4 + $0x1d1] sm:$0xff]  ;;  %v3444_v32 = vld [vmem:[#allocation4 + $0x49] sm:$0xff]  ;;  %v7165_v31 = vsel %vm426_vm1, %v11832_v34, %v11066_v62  ;;  %v11142_v33 = vunpack.i.h.bf16 %v16762_v58  ;;  %v7180_v8 = vsel %vm426_vm1, %v3461_v19, %v11102_v17 }
 0x581   : > { %v17497_v40 = vld [vmem:[#allocation4 + $0x1ca] sm:$0xff]  ;;  %v7163_v53 = vsel %vm426_vm1, %v3444_v32, %v11061_v9  ;;  %v17512_v29 = vld [vmem:[#allocation4 + $0x1d3] sm:$0xff]  ;;  %v11829_v9 = vld [vmem:[#allocation4 + $0x81] sm:$0xff]  ;;  %8945 = vmatmul.mubr.msk.f32.vlgmr.msra.gmra.mrb[34].mxu1 %vm426_vm1, %v17012_v51  ;;  %v17527_v15 = vpop.permute.xlu1 %11324  ;;  %v11141_v51 = vunpack.i.l.bf16 %v16762_v58 }
 0x582   : > { %11604 = vrot.lane.b32.xlu1 %v11603_v59, %s11876_s25  ;;  %v17510_v56 = vld [vmem:[#allocation4 + $0x1cb] sm:$0xff]  ;;  %v7168_v32 = vsel %vm426_vm1, %v11829_v9, %v11072_v3  ;;  %v17525_v9 = vpop.permute.xlu0 %11329  ;;  %v17537_v34 = vld [vmem:[#allocation4 + $0x1d4] sm:$0xff] }
 0x583   : > { %v11831_v7 = vld [vmem:[#allocation4 + $0x69] sm:$0xff]  ;;  %v20210_v58 = vld [vmem:[#allocation80_spill] sm:$0xff] }
 0x584   : > { %11609 = vrot.lane.b32.xlu0 %v20208_v41, %s11876_s25  ;;  %v11830_v41 = vld [vmem:[#allocation4 + $0x79] sm:$0xff]  ;;  %v7166_v44 = vsel %vm426_vm1, %v11831_v7, %v11067_v22  ;;  %v3460_v3 = vld [vmem:[#allocation4 + $0x109] sm:$0xff]  ;;  %v11833_v7 = vld [vmem:[#allocation4 + $0x141] sm:$0xff] }
 0x585   : > { %v7167_v59 = vsel %vm426_vm1, %v11830_v41, %v11071_v55  ;;  %v17535_v41 = vld [vmem:[#allocation4 + $0x1cc] sm:$0xff]  ;;  %v7179_v62 = vsel %vm426_vm1, %v3460_v3, %v11101_v16  ;;  %v7184_v20 = vsel %vm426_vm1, %v11833_v7, %v11112_v12  ;;  %v20212_v55 = vpack.i.bf16 %v20210_v58, %v20211_v47  ;;  %v11834_v22 = vld [vmem:[#allocation4 + $0x139] sm:$0xff]  ;;  %v11836_v12 = vld [vmem:[#allocation4 + $0x121] sm:$0xff] }
 0x586   : > { %v20209_v26 = vld [vmem:[#allocation11_spill] sm:$0xff]  ;;  %11614 = vrot.lane.b32.xlu1 %v11613_v6, %s11870_s15  ;;  %v7183_v14 = vsel %vm426_vm1, %v11834_v22, %v11111_v57  ;;  %v20213_v16 = vld [vmem:[#allocation150_spill] sm:$0xff]  ;;  %v7181_v7 = vsel %vm426_vm1, %v11836_v12, %v11106_v10  ;;  %v17557_v6 = vpop.permute.xlu1 %11334  ;;  %v20218_v57 = vld [vmem:[#allocation237_spill] sm:$0xff] }
 0x587   : > { %v11151_v4 = vunpack.i.l.bf16 %v20209_v26  ;;  %v11835_v5 = vld [vmem:[#allocation4 + $0x129] sm:$0xff]  ;;  %v11152_v17 = vunpack.i.h.bf16 %v20209_v26  ;;  %v11146_v3 = vunpack.i.l.bf16 %v20213_v16  ;;  %v11147_v39 = vunpack.i.h.bf16 %v20213_v16 }
 0x588   : > { %11619 = vrot.lane.b32.xlu0 %v20212_v55, %s11870_s15  ;;  %v7182_v19 = vsel %vm426_vm1, %v11835_v5, %v11107_v18  ;;  %v20214_v0 = vld [vmem:[#allocation190_spill] sm:$0xff]  ;;  %v17555_v55 = vpop.permute.xlu0 %11339  ;;  %v7195_v5 = vsel %vm2299_vm5, %v7163_v53, %v11141_v51  ;;  %v7196_v26 = vsel %vm2299_vm5, %v7164_v27, %v11142_v33  ;;  %v20215_v22 = vld [vmem:[#allocation99_spill] sm:$0xff]  ;;  %v20220_v53 = vpack.i.bf16 %v17457_v1, %v17455_v43 }
 0x589   : > { %v11181_v47 = vunpack.i.l.bf16 %v20214_v0  ;;  %v11182_v18 = vunpack.i.h.bf16 %v20214_v0  ;;  %v11191_v58 = vunpack.i.l.bf16 %v20215_v22  ;;  %v17566_v10 = vsel %vm2299_vm5, %v7167_v59, %v11151_v4  ;;  %v20216_v12 = vld [vmem:[#allocation10_spill] sm:$0xff] }
 0x58a   : > { %v11192_v16 = vunpack.i.h.bf16 %v20215_v22  ;;  %v11187_v21 = vunpack.i.h.bf16 %v20216_v12  ;;  %v11186_v63 = vunpack.i.l.bf16 %v20216_v12  ;;  %v20217_v35 = vld [vmem:[#allocation238_spill] sm:$0xff]  ;;  %11624 = vrot.lane.b32.xlu1 %v20220_v53, %s11871_s16  ;;  %v17580_v0 = vsel %vm2299_vm5, %v7168_v32, %v11152_v17  ;;  %v17591_v43 = vpop.permute.xlu1 %11344 }
 0x58b   : > { %v20219_v60 = vpack.i.bf16 %v20217_v35, %v20218_v57  ;;  %v7197_v4 = vsel %vm2299_vm5, %v7165_v31, %v11146_v3  ;;  %v11222_v33 = vunpack.i.h.bf16 %v17114_v50  ;;  %v11221_v27 = vunpack.i.l.bf16 %v17114_v50  ;;  %v20223_v3 = vld [vmem:[#allocation239_spill] sm:$0xff] }
 0x58c   : > { %v7198_v59 = vsel %vm2299_vm5, %v7166_v44, %v11147_v39  ;;  %v7211_v51 = vsel %vm2299_vm5, %v7179_v62, %v11181_v47  ;;  %v11226_v35 = vunpack.i.l.bf16 %v17167_v25  ;;  %v17589_v57 = vpop.permute.xlu0 %11349  ;;  %v7212_v1 = vsel %vm2299_vm5, %v7180_v8, %v11182_v18  ;;  %v20221_v39 = vld [vmem:[#allocation103_spill] sm:$0xff]  ;;  %v20222_v8 = vld [vmem:[#allocation38_spill] sm:$0xff] }
 0x58d   : > { %11629 = vrot.lane.b32.xlu0 %v20219_v60, %s11871_s16  ;;  %v11227_v60 = vunpack.i.h.bf16 %v17167_v25  ;;  %v17595_v31 = vsel %vm2299_vm5, %v7183_v14, %v11191_v58  ;;  %v11262_v32 = vunpack.i.h.bf16 %v17273_v36  ;;  %v11261_v50 = vunpack.i.l.bf16 %v17273_v36 }
 0x58e   : > { %v10662_v44 = vunpack.i.h.bf16 %v20221_v39  ;;  %v17601_v62 = vsel %vm2299_vm5, %v7184_v20, %v11192_v16  ;;  %v17604_v25 = vsel %vm2299_vm5, %v7181_v7, %v11186_v63  ;;  %v17607_v17 = vsel %vm2299_vm5, %v7182_v19, %v11187_v21  ;;  %11634 = vrot.lane.b32.xlu1 %v17493_v48, %s11872_s19  ;;  %v17629_v58 = vpop.permute.xlu1 %11354 }
 0x58f   : > { %v20224_v14 = vpack.i.bf16 %v20222_v8, %v20223_v3  ;;  %v7227_v36 = vsel %vm2332_vm6, %v7195_v5, %v11221_v27  ;;  %v7228_v47 = vsel %vm2332_vm6, %v7196_v26, %v11222_v33  ;;  %v11232_v20 = vunpack.i.h.bf16 %v17165_v42 }
 0x590   : > { %v11231_v63 = vunpack.i.l.bf16 %v17165_v42  ;;  %v17620_v7 = vsel %vm2332_vm6, %v7197_v4, %v11226_v35  ;;  %v17623_v21 = vsel %vm2332_vm6, %v7198_v59, %v11227_v60  ;;  %v11292_v19 = vunpack.i.h.bf16 %v17369_v24  ;;  %v17627_v22 = vpop.permute.xlu0 %11359 }
 0x591   : > { %11639 = vrot.lane.b32.xlu0 %v20224_v14, %s11872_s19  ;;  %v11291_v18 = vunpack.i.l.bf16 %v17369_v24  ;;  %v7243_v5 = vsel %vm2332_vm6, %v7211_v51, %v11261_v50  ;;  %v7244_v26 = vsel %vm2332_vm6, %v7212_v1, %v11262_v32  ;;  %v11302_v16 = vunpack.i.h.bf16 %v17393_v13 }
 0x592   : > { %v11301_v12 = vunpack.i.l.bf16 %v17393_v13  ;;  %v11272_v53 = vunpack.i.h.bf16 %v17309_v45  ;;  %v11271_v4 = vunpack.i.l.bf16 %v17309_v45  ;;  %v11297_v33 = vunpack.i.h.bf16 %v17395_v61  ;;  %11644 = vrot.lane.b32.xlu1 %v17493_v48, %s11874_s23  ;;  %v17655_v32 = vpop.permute.xlu1 %11364 }
 0x593   : > { %v11296_v24 = vunpack.i.l.bf16 %v17395_v61  ;;  %v20225_v27 = vpack.i.bf16 %v17471_v37, %v17469_v38  ;;  %v11267_v59 = vunpack.i.h.bf16 %v17311_v2  ;;  %v11266_v13 = vunpack.i.l.bf16 %v17311_v2 }
 0x594   : > { %v11312_v51 = vunpack.i.h.bf16 %v17435_v49  ;;  %v11311_v60 = vunpack.i.l.bf16 %v17435_v49  ;;  %v7275_v35 = vsel %vm2365_vm7, %v7243_v5, %v11291_v18  ;;  %v7276_v61 = vsel %vm2365_vm7, %v7244_v26, %v11292_v19  ;;  %v17653_v37 = vpop.permute.xlu0 %11369  ;;  %v20227_v18 = vld [vmem:[#allocation268_spill] sm:$0xff]  ;;  %v20228_v5 = vld [vmem:[#allocation267_spill] sm:$0xff] }
 0x595   : > { %11649 = vrot.lane.b32.xlu0 %v20225_v27, %s11875_s24  ;;  %v11307_v1 = vunpack.i.h.bf16 %v17437_v52  ;;  %v11306_v38 = vunpack.i.l.bf16 %v17437_v52  ;;  %v7307_v48 = vsel %vm2398_vm8, %v7275_v35, %v11301_v12  ;;  %v7308_v2 = vsel %vm2398_vm8, %v7276_v61, %v11302_v16 }
 0x596   : > { %v11322_v50 = vunpack.i.h.bf16 %v17480_v30  ;;  %v11321_v49 = vunpack.i.l.bf16 %v17480_v30  ;;  %v7260_v8 = vsel %vm2365_vm7, %v7228_v47, %v11297_v33  ;;  %v7259_v3 = vsel %vm2365_vm7, %v7227_v36, %v11296_v24  ;;  %v17683_v24 = vpop.permute.xlu1 %11374 }
 0x597   : > { %v11332_v14 = vunpack.i.h.bf16 %v17525_v9  ;;  %v11331_v52 = vunpack.i.l.bf16 %v17525_v9  ;;  %v20226_v19 = vpack.i.bf16 %v17488_v46, %v17486_v54  ;;  %v20229_v26 = vpack.i.bf16 %v20227_v18, %v20228_v5 }
 0x598   : > { %v7339_v30 = vsel %vm2431_vm9, %v7307_v48, %v11311_v60  ;;  %v7340_v47 = vsel %vm2431_vm9, %v7308_v2, %v11312_v51  ;;  %v11317_v36 = vunpack.i.h.bf16 %v17482_v28  ;;  %v11316_v16 = vunpack.i.l.bf16 %v17482_v28  ;;  %v17681_v33 = vpop.permute.xlu0 %11379  ;;  %v20231_v48 = vld [vmem:[#allocation269_spill] sm:$0xff]  ;;  %v20232_v2 = vld [vmem:[#allocation58_spill] sm:$0xff] }
 0x599   : > { %11659 = vrot.lane.b32.xlu0 %v20226_v19, %s11876_s25  ;;  %11654 = vrot.lane.b32.xlu1 %v20229_v26, %s11875_s24  ;;  %v7291_v9 = vsel %vm2398_vm8, %v7259_v3, %v11306_v38  ;;  %v7292_v12 = vsel %vm2398_vm8, %v7260_v8, %v11307_v1  ;;  %v11327_v54 = vunpack.i.h.bf16 %v17527_v15  ;;  %v11326_v46 = vunpack.i.l.bf16 %v17527_v15 }
 0x59a   : > { %v7371_v27 = vsel %vm2464_vm10, %v7339_v30, %v11321_v49  ;;  %v7372_v51 = vsel %vm2464_vm10, %v7340_v47, %v11322_v50  ;;  %v11342_v60 = vunpack.i.h.bf16 %v17555_v55  ;;  %v11341_v28 = vunpack.i.l.bf16 %v17555_v55  ;;  %v11385_v19 = vpop.permute.xlu1 %11384  ;;  %v20235_v47 = vld [vmem:[#allocation270_spill] sm:$0xff] }
 0x59b   : > { %v17690_v35 = vsel %vm2497_vm11, %v7371_v27, %v11331_v52  ;;  %v17693_v61 = vsel %vm2497_vm11, %v7372_v51, %v11332_v14  ;;  %v11337_v15 = vunpack.i.h.bf16 %v17557_v6  ;;  %v11336_v1 = vunpack.i.l.bf16 %v17557_v6 }
 0x59c   : > { %v20230_v38 = vpack.i.bf16 %v17508_v11, %v17497_v40  ;;  %v20233_v50 = vpack.i.bf16 %v20231_v48, %v20232_v2  ;;  %v7323_v55 = vsel %vm2431_vm9, %v7291_v9, %v11316_v16  ;;  %v7324_v49 = vsel %vm2431_vm9, %v7292_v12, %v11317_v36  ;;  %v17715_v52 = vpop.permute.xlu0 %11389  ;;  %v20236_v36 = vld [vmem:[#allocation13_spill] sm:$0xff] }
 0x59d   : > { %v11352_v8 = vunpack.i.h.bf16 %v17589_v57  ;;  %v11351_v3 = vunpack.i.l.bf16 %v17589_v57  ;;  %v7245_v6 = vsel %vm2332_vm6, %v17604_v25, %v11266_v13  ;;  %v7246_v40 = vsel %vm2332_vm6, %v17607_v17, %v11267_v59 }
 0x59e   : > { %11669 = vrot.lane.b32.xlu0 %v20230_v38, %s11870_s15  ;;  %11664 = vrot.lane.b32.xlu1 %v20233_v50, %s11876_s25  ;;  %v7355_v11 = vsel %vm2464_vm10, %v7323_v55, %v11326_v46  ;;  %v7356_v14 = vsel %vm2464_vm10, %v7324_v49, %v11327_v54  ;;  %v11698_v18 = vpack.i.bf16 %v17693_v61, %v17690_v35  ;;  %v11346_v26 = vunpack.i.l.bf16 %v17591_v43 }
 0x59f   : > { %v7277_v5 = vsel %vm2365_vm7, %v7245_v6, %v11341_v28  ;;  %v7278_v57 = vsel %vm2365_vm7, %v7246_v40, %v11342_v60  ;;  %v17723_v25 = vsel %vm2497_vm11, %v7355_v11, %v11336_v1  ;;  %v17726_v17 = vsel %vm2497_vm11, %v7356_v14, %v11337_v15  ;;  %v17746_v60 = vpop.permute.xlu1 %11394 }
 0x5a0   : > { %v11347_v59 = vunpack.i.h.bf16 %v17591_v43  ;;  %v11361_v13 = vunpack.i.l.bf16 %v17627_v22  ;;  %v20234_v30 = vpack.i.bf16 %v17512_v29, %v17510_v56  ;;  %v20237_v16 = vpack.i.bf16 %v20235_v47, %v20236_v36  ;;  %v11400_v51 = vpop.permute.xlu0 %11399 }
 0x5a1   : > { %v7309_v9 = vsel %vm2398_vm8, %v7277_v5, %v11351_v3  ;;  %v7310_v12 = vsel %vm2398_vm8, %v7278_v57, %v11352_v8  ;;  %v11362_v54 = vunpack.i.h.bf16 %v17627_v22  ;;  %v11356_v43 = vunpack.i.l.bf16 %v17629_v58 }
 0x5a2   : > { %11679 = vrot.lane.b32.xlu0 %v20234_v30, %s11871_s16  ;;  %11674 = vrot.lane.b32.xlu1 %v20237_v16, %s11870_s15  ;;  %v11357_v46 = vunpack.i.h.bf16 %v17629_v58  ;;  %v11372_v27 = vunpack.i.h.bf16 %v17653_v37  ;;  %v11371_v29 = vunpack.i.l.bf16 %v17653_v37  ;;  %v11366_v56 = vunpack.i.l.bf16 %v17655_v32  ;;  %s11884_s15 = smov 64  }
 0x5a3   : > { %v7261_v28 = vsel %vm2365_vm7, %v17620_v7, %v11346_v26  ;;  %v11367_v35 = vunpack.i.h.bf16 %v17655_v32  ;;  %v11382_v22 = vunpack.i.h.bf16 %v17681_v33  ;;  %v11381_v61 = vunpack.i.l.bf16 %v17681_v33  ;;  %v20239_v7 = vld [vmem:[#allocation275_spill] sm:$0xff]  ;;  %v11405_v8 = vpop.permute.xlu1 %11404  ;;  %v20242_v26 = vld [vmem:[#allocation277_spill] sm:$0xff] }
 0x5a4   : > { %v7262_v58 = vsel %vm2365_vm7, %v17623_v21, %v11347_v59  ;;  %v7341_v15 = vsel %vm2431_vm9, %v7309_v9, %v11361_v13  ;;  %v11377_v37 = vunpack.i.h.bf16 %v17683_v24  ;;  %v11376_v1 = vunpack.i.l.bf16 %v17683_v24  ;;  %v20240_v32 = vld [vmem:[#allocation271_spill] sm:$0xff]  ;;  %v20243_v59 = vld [vmem:[#allocation276_spill] sm:$0xff] }
 0x5a5   : > { %v20238_v38 = vpack.i.bf16 %v17537_v34, %v17535_v41  ;;  %v20241_v48 = vpack.i.bf16 %v20239_v7, %v20240_v32  ;;  %v7342_v33 = vsel %vm2431_vm9, %v7310_v12, %v11362_v54  ;;  %v7293_v21 = vsel %vm2398_vm8, %v7261_v28, %v11356_v43  ;;  %v11410_v34 = vpop.permute.xlu0 %11409 }
 0x5a6   : > { %v11387_v2 = vunpack.i.h.bf16 %v11385_v19  ;;  %v11386_v50 = vunpack.i.l.bf16 %v11385_v19  ;;  %v7294_v55 = vsel %vm2398_vm8, %v7262_v58, %v11357_v46  ;;  %v7373_v24 = vsel %vm2464_vm10, %v7341_v15, %v11371_v29 }
 0x5a7   : > { %11689 = vrot.lane.b32.xlu0 %v20238_v38, %s11872_s19  ;;  %11684 = vrot.lane.b32.xlu1 %v20241_v48, %s11871_s16  ;;  %v7374_v49 = vsel %vm2464_vm10, %v7342_v33, %v11372_v27  ;;  %v7325_v41 = vsel %vm2431_vm9, %v7293_v21, %v11366_v56  ;;  %v7326_v3 = vsel %vm2431_vm9, %v7294_v55, %v11367_v35  ;;  %v11391_v11 = vunpack.i.l.bf16 %v17715_v52  ;;  %v11415_v54 = vpop.permute.xlu1 %11414 }
 0x5a8   : > { %v7405_v6 = vsel %vm2497_vm11, %v7373_v24, %v11381_v61  ;;  %v7406_v40 = vsel %vm2497_vm11, %v7374_v49, %v11382_v22  ;;  %v7247_v14 = vsel %vm2332_vm6, %v17595_v31, %v11271_v4  ;;  %v7357_v19 = vsel %vm2464_vm10, %v7325_v41, %v11376_v1 }
 0x5a9   : > { %v7358_v5 = vsel %vm2464_vm10, %v7326_v3, %v11377_v37  ;;  %v11392_v57 = vunpack.i.h.bf16 %v17715_v52  ;;  %v20244_v13 = vpack.i.bf16 %v20242_v26, %v20243_v59  ;;  %v7389_v30 = vsel %vm2497_vm11, %v7357_v19, %v11386_v50  ;;  %v11420_v12 = vpop.permute.xlu0 %11419  ;;  %v20249_v26 = vld [vmem:[#allocation56_spill] sm:$0xff] }
 0x5aa   : > { %v7390_v47 = vsel %vm2497_vm11, %v7358_v5, %v11387_v2  ;;  %v11402_v36 = vunpack.i.h.bf16 %v11400_v51  ;;  %v11401_v31 = vunpack.i.l.bf16 %v11400_v51  ;;  %v11703_v4 = vpack.i.bf16 %v17726_v17, %v17723_v25 }
 0x5ab   : > { %11699 = vrot.lane.b32.xlu0 %v11698_v18, %s11884_s15  ;;  %11694 = vrot.lane.b32.xlu1 %v20244_v13, %s11872_s19  ;;  %v11708_v16 = vpack.i.bf16 %v7406_v40, %v7405_v6  ;;  %v11412_v9 = vunpack.i.h.bf16 %v11410_v34  ;;  %v11411_v52 = vunpack.i.l.bf16 %v11410_v34  ;;  %v7231_v18 = vsel %vm2332_vm6, %v17566_v10, %v11231_v63  ;;  %v11425_v28 = vpop.permute.xlu1 %11424  ;;  %v20246_v6 = vld [vmem:[#allocation66_spill] sm:$0xff]  ;;  %v20250_v13 = vld [vmem:[#allocation159_spill] sm:$0xff] }
 0x5ac   : > { %v7232_v43 = vsel %vm2332_vm6, %v17580_v0, %v11232_v20  ;;  %v7248_v25 = vsel %vm2332_vm6, %v17601_v62, %v11272_v53  ;;  %v7279_v17 = vsel %vm2365_vm7, %v7247_v14, %v11391_v11  ;;  %v11713_v27 = vpack.i.bf16 %v7390_v47, %v7389_v30  ;;  %v20247_v11 = vld [vmem:[#allocation100_spill] sm:$0xff]  ;;  %v20252_v47 = vld [vmem:[#allocation51_spill] sm:$0xff] }
 0x5ad   : > { %v7280_v46 = vsel %vm2365_vm7, %v7248_v25, %v11392_v57  ;;  %v11422_v29 = vunpack.i.h.bf16 %v11420_v12  ;;  %v11421_v56 = vunpack.i.l.bf16 %v11420_v12  ;;  %v7311_v42 = vsel %vm2398_vm8, %v7279_v17, %v11401_v31  ;;  %v11430_v51 = vpop.permute.xlu0 %11429  ;;  %v20256_v17 = vld [vmem:[#allocation70_spill] sm:$0xff] }
 0x5ae   : > { %v7312_v10 = vsel %vm2398_vm8, %v7280_v46, %v11402_v36  ;;  %v11397_v45 = vunpack.i.h.bf16 %v17746_v60  ;;  %v11396_v0 = vunpack.i.l.bf16 %v17746_v60  ;;  %v7343_v62 = vsel %vm2431_vm9, %v7311_v42, %v11411_v52  ;;  %v20258_v42 = vld [vmem:[#allocation171_spill] sm:$0xff] }
 0x5af   : > { %11704 = vrot.lane.b32.xlu1 %v11703_v4, %s11884_s15  ;;  %11709 = vrot.lane.b32.xlu0 %v11708_v16, %s11884_s15  ;;  %v7344_v20 = vsel %vm2431_vm9, %v7312_v10, %v11412_v9  ;;  %v11407_v63 = vunpack.i.h.bf16 %v11405_v8  ;;  %v11406_v53 = vunpack.i.l.bf16 %v11405_v8  ;;  %v11417_v35 = vunpack.i.h.bf16 %v11415_v54  ;;  %v11435_v24 = vpop.permute.xlu1 %11434  ;;  %v20254_v9 = vld [vmem:[#allocation30_spill] sm:$0xff] }
 0x5b0   : > { %v11416_v22 = vunpack.i.l.bf16 %v11415_v54  ;;  %v11432_v61 = vunpack.i.h.bf16 %v11430_v51  ;;  %v11431_v58 = vunpack.i.l.bf16 %v11430_v51  ;;  %v7375_v15 = vsel %vm2464_vm10, %v7343_v62, %v11421_v56 }
 0x5b1   : > { %v7376_v37 = vsel %vm2464_vm10, %v7344_v20, %v11422_v29  ;;  %v11427_v1 = vunpack.i.h.bf16 %v11425_v28  ;;  %v11426_v38 = vunpack.i.l.bf16 %v11425_v28  ;;  %v7264_v60 = vsel %vm2365_vm7, %v7232_v43, %v11397_v45  ;;  %v17824_v55 = vpop.permute.xlu0 %11439  ;;  %v20259_v45 = vld [vmem:[#allocation71_spill] sm:$0xff]  ;;  %v20260_v20 = vld [vmem:[#allocation16_spill] sm:$0xff] }
 0x5b2   : > { %v7263_v7 = vsel %vm2365_vm7, %v7231_v18, %v11396_v0  ;;  %v7407_v32 = vsel %vm2497_vm11, %v7375_v15, %v11431_v58  ;;  %v7408_v48 = vsel %vm2497_vm11, %v7376_v37, %v11432_v61  ;;  %v10661_v33 = vunpack.i.l.bf16 %v20221_v39  ;;  %v20262_v28 = vld [vmem:[#allocation124_spill] sm:$0xff] }
 0x5b3   : > { %11714 = vrot.lane.b32.xlu1 %v11713_v27, %s11884_s15  ;;  %v7295_v21 = vsel %vm2398_vm8, %v7263_v7, %v11406_v53  ;;  %v7296_v2 = vsel %vm2398_vm8, %v7264_v60, %v11407_v63  ;;  %v11718_v50 = vpack.i.bf16 %v7408_v48, %v7407_v32  ;;  %v11437_v34 = vunpack.i.h.bf16 %v11435_v24  ;;  %v17860_v25 = vpop.permute.xlu1 %11444  ;;  %v20257_v27 = vld [vmem:[#allocation29_spill] sm:$0xff]  ;;  %v11838_v15 = vld [vmem:[#allocation4 + $0x91] sm:$0xff] }
 0x5b4   : > { %v7327_v49 = vsel %vm2431_vm9, %v7295_v21, %v11416_v22  ;;  %v7328_v41 = vsel %vm2431_vm9, %v7296_v2, %v11417_v35  ;;  %v11436_v8 = vunpack.i.l.bf16 %v11435_v24  ;;  %v20245_v3 = vunpack.i.l.bf16 %v20201_v23  ;;  %v11837_v61 = vld [vmem:[#allocation4 + $0x99] sm:$0xff]  ;;  %v20265_v2 = vld [vmem:[#allocation142_spill] sm:$0xff] }
 0x5b5   : > { %v10672_v14 = vunpack.i.h.bf16 %v20247_v11  ;;  %v7359_v19 = vsel %vm2464_vm10, %v7327_v49, %v11426_v38  ;;  %v7360_v5 = vsel %vm2464_vm10, %v7328_v41, %v11427_v1  ;;  %11719 = vrot.lane.b32.xlu0 %v11718_v50, %s11884_s15  ;;  %v20248_v57 = vunpack.i.h.bf16 %v20201_v23  ;;  %v20255_v23 = vld [vmem:[#allocation87_spill] sm:$0xff]  ;;  %v11450_v43 = vpop.permute.xlu0 %11449  ;;  %v20263_v1 = vld [vmem:[#allocation97_spill] sm:$0xff]  ;;  %v20264_v48 = vld [vmem:[#allocation64_spill] sm:$0xff] }
 0x5b6   : > { %v17832_v40 = vsel %vm5941_vm14, %v20246_v6, %v20245_v3  ;;  %v20251_v30 = vunpack.i.l.bf16 %v20250_v13  ;;  %v7391_v31 = vsel %vm2497_vm11, %v7359_v19, %v11436_v8  ;;  %v7392_v4 = vsel %vm2497_vm11, %v7360_v5, %v11437_v34  ;;  %v11839_v49 = vld [vmem:[#allocation4 + $0x159] sm:$0xff]  ;;  %v11840_v34 = vld [vmem:[#allocation4 + $0x151] sm:$0xff] }
 0x5b7   : > { %v17842_v59 = vsel %vm5941_vm14, %v20249_v26, %v20248_v57  ;;  %v20253_v16 = vunpack.i.h.bf16 %v20250_v13  ;;  %v11077_v12 = vunpack.i.h.bf16 %v20255_v23  ;;  %v11076_v54 = vunpack.i.l.bf16 %v20255_v23  ;;  %v11455_v32 = vpop.permute.xlu1 %11454 }
 0x5b8   : > { %v17848_v36 = vsel %vm5941_vm14, %v20252_v47, %v20251_v30  ;;  %v11723_v18 = vpack.i.bf16 %v7392_v4, %v7391_v31  ;;  %v17866_v46 = vsel %vm5974_vm15, %v20256_v17, %v10662_v44  ;;  %v17870_v29 = vsel %vm5974_vm15, %v20257_v27, %v10661_v33  ;;  %v20261_v44 = vld [vmem:[#allocation162_spill] sm:$0xff] }
 0x5b9   : > { %v17856_v52 = vsel %vm5941_vm14, %v20254_v9, %v20253_v16  ;;  %v10671_v56 = vunpack.i.l.bf16 %v20247_v11  ;;  %v10667_v10 = vunpack.i.h.bf16 %v20258_v42  ;;  %v17876_v0 = vsel %vm5974_vm15, %v20259_v45, %v10672_v14  ;;  %v11460_v7 = vpop.permute.xlu0 %11459  ;;  %v20269_v11 = vld [vmem:[#allocation20_spill] sm:$0xff] }
 0x5ba   : > { %v10666_v62 = vunpack.i.l.bf16 %v20258_v42  ;;  %v11117_v39 = vunpack.i.h.bf16 %v20260_v20  ;;  %v11116_v63 = vunpack.i.l.bf16 %v20260_v20  ;;  %11724 = vrot.lane.b32.xlu1 %v11723_v18, %s11884_s15  ;;  %v10702_v53 = vunpack.i.h.bf16 %v20261_v44 }
 0x5bb   : > { %v10701_v51 = vunpack.i.l.bf16 %v20261_v44  ;;  %v11157_v35 = vunpack.i.h.bf16 %v20262_v28  ;;  %v11156_v22 = vunpack.i.l.bf16 %v20262_v28  ;;  %v7170_v58 = vsel %vm426_vm1, %v11837_v61, %v11077_v12  ;;  %v11465_v4 = vpop.permute.xlu1 %11464 }
 0x5bc   : > { %v7169_v37 = vsel %vm426_vm1, %v11838_v15, %v11076_v54  ;;  %v11197_v38 = vunpack.i.h.bf16 %v20263_v1  ;;  %v11196_v60 = vunpack.i.l.bf16 %v20263_v1  ;;  %v11237_v33 = vunpack.i.h.bf16 %v20264_v48 }
 0x5bd   : > { %v11236_v21 = vunpack.i.l.bf16 %v20264_v48  ;;  %v11277_v50 = vunpack.i.h.bf16 %v20265_v2  ;;  %v11276_v24 = vunpack.i.l.bf16 %v20265_v2  ;;  %v7186_v41 = vsel %vm426_vm1, %v11839_v49, %v11117_v39  ;;  %v11470_v31 = vpop.permute.xlu0 %11469  ;;  %v20266_v2 = vld [vmem:[#allocation68_spill] sm:$0xff] }
 0x5be   : > { %v7185_v8 = vsel %vm426_vm1, %v11840_v34, %v11116_v63  ;;  %v11442_v3 = vunpack.i.h.bf16 %v17824_v55  ;;  %v11441_v6 = vunpack.i.l.bf16 %v17824_v55  ;;  %v7201_v14 = vsel %vm2299_vm5, %v7169_v37, %v11156_v22 }
 0x5bf   : > { %v7202_v19 = vsel %vm2299_vm5, %v7170_v58, %v11157_v35  ;;  %v11452_v5 = vunpack.i.h.bf16 %v11450_v43  ;;  %v11451_v57 = vunpack.i.l.bf16 %v11450_v43  ;;  %v7217_v26 = vsel %vm2299_vm5, %v7185_v8, %v11196_v60  ;;  %v11475_v61 = vpop.permute.xlu1 %11474 }
 0x5c0   : > { %v7218_v13 = vsel %vm2299_vm5, %v7186_v41, %v11197_v38  ;;  %v11462_v30 = vunpack.i.h.bf16 %v11460_v7  ;;  %v11461_v47 = vunpack.i.l.bf16 %v11460_v7  ;;  %v7233_v16 = vsel %vm2332_vm6, %v7201_v14, %v11236_v21 }
 0x5c1   : > { %v7234_v9 = vsel %vm2332_vm6, %v7202_v19, %v11237_v33  ;;  %v7249_v55 = vsel %vm2332_vm6, %v7217_v26, %v11276_v24  ;;  %v7250_v23 = vsel %vm2332_vm6, %v7218_v13, %v11277_v50  ;;  %v11472_v18 = vunpack.i.h.bf16 %v11470_v31  ;;  %v11480_v22 = vpop.permute.xlu0 %11479 }
 0x5c2   : > { %v7281_v12 = vsel %vm2365_vm7, %v7249_v55, %v11441_v6  ;;  %v7282_v54 = vsel %vm2365_vm7, %v7250_v23, %v11442_v3  ;;  %v11471_v43 = vunpack.i.l.bf16 %v11470_v31  ;;  %v11447_v45 = vunpack.i.h.bf16 %v17860_v25  ;;  %v20271_v23 = vld [vmem:[#allocation134_spill] sm:$0xff] }
 0x5c3   : > { %v7313_v17 = vsel %vm2398_vm8, %v7281_v12, %v11451_v57  ;;  %v7314_v27 = vsel %vm2398_vm8, %v7282_v54, %v11452_v5  ;;  %v11446_v20 = vunpack.i.l.bf16 %v17860_v25  ;;  %v11457_v28 = vunpack.i.h.bf16 %v11455_v32  ;;  %v11485_v8 = vpop.permute.xlu1 %11484  ;;  %v20267_v5 = vld [vmem:[#allocation72_spill] sm:$0xff] }
 0x5c4   : > { %v7345_v39 = vsel %vm2431_vm9, %v7313_v17, %v11461_v47  ;;  %v7346_v63 = vsel %vm2431_vm9, %v7314_v27, %v11462_v30  ;;  %v11456_v35 = vunpack.i.l.bf16 %v11455_v32  ;;  %v11467_v58 = vunpack.i.h.bf16 %v11465_v4  ;;  %v20268_v47 = vld [vmem:[#allocation21_spill] sm:$0xff] }
 0x5c5   : > { %v11466_v15 = vunpack.i.l.bf16 %v11465_v4  ;;  %v11482_v37 = vunpack.i.h.bf16 %v11480_v22  ;;  %v11481_v1 = vunpack.i.l.bf16 %v11480_v22  ;;  %v7377_v38 = vsel %vm2464_vm10, %v7345_v39, %v11471_v43  ;;  %v17923_v34 = vpop.permute.xlu0 %11489  ;;  %v20274_v39 = vld [vmem:[#allocation172_spill] sm:$0xff] }
 0x5c6   : > { %v7378_v60 = vsel %vm2464_vm10, %v7346_v63, %v11472_v18  ;;  %v11477_v7 = vunpack.i.h.bf16 %v11475_v61  ;;  %v11476_v48 = vunpack.i.l.bf16 %v11475_v61  ;;  %v7265_v25 = vsel %vm2365_vm7, %v7233_v16, %v11446_v20  ;;  %v20277_v61 = vld [vmem:[#allocation95_spill] sm:$0xff] }
 0x5c7   : > { %v7266_v33 = vsel %vm2365_vm7, %v7234_v9, %v11447_v45  ;;  %v7409_v21 = vsel %vm2497_vm11, %v7377_v38, %v11481_v1  ;;  %v7410_v32 = vsel %vm2497_vm11, %v7378_v60, %v11482_v37  ;;  %v10712_v50 = vunpack.i.h.bf16 %v20266_v2  ;;  %v20270_v9 = vld [vmem:[#allocation73_spill] sm:$0xff]  ;;  %v17959_v18 = vpop.permute.xlu1 %11494  ;;  %v11841_v37 = vld [vmem:[#allocation4 + $0xb1] sm:$0xff]  ;;  %v11842_v1 = vld [vmem:[#allocation4 + $0xa9] sm:$0xff] }
 0x5c8   : > { %v7297_v24 = vsel %vm2398_vm8, %v7265_v25, %v11456_v35  ;;  %v7298_v49 = vsel %vm2398_vm8, %v7266_v33, %v11457_v28  ;;  %v11728_v41 = vpack.i.bf16 %v7410_v32, %v7409_v21  ;;  %v11487_v14 = vunpack.i.h.bf16 %v11485_v8  ;;  %v20275_v28 = vld [vmem:[#allocation89_spill] sm:$0xff]  ;;  %v20278_v60 = vld [vmem:[#allocation32_spill] sm:$0xff]  ;;  %v20279_v21 = vld [vmem:[#allocation82_spill] sm:$0xff] }
 0x5c9   : > { %v7329_v3 = vsel %vm2431_vm9, %v7297_v24, %v11466_v15  ;;  %v7330_v6 = vsel %vm2431_vm9, %v7298_v49, %v11467_v58  ;;  %v11486_v19 = vunpack.i.l.bf16 %v11485_v8  ;;  %v17931_v57 = vsel %vm5974_vm15, %v20267_v5, %v10671_v56  ;;  %v11500_v42 = vpop.permute.xlu0 %11499 }
 0x5ca   : > { %v10711_v26 = vunpack.i.l.bf16 %v20266_v2  ;;  %v7361_v13 = vsel %vm2464_vm10, %v7329_v3, %v11476_v48  ;;  %v7362_v30 = vsel %vm2464_vm10, %v7330_v6, %v11477_v7  ;;  %11729 = vrot.lane.b32.xlu0 %v11728_v41, %s11884_s15  ;;  %v17941_v31 = vsel %vm5974_vm15, %v20268_v47, %v10666_v62  ;;  %v11843_v41 = vld [vmem:[#allocation4 + $0x171] sm:$0xff]  ;;  %v11844_v3 = vld [vmem:[#allocation4 + $0x169] sm:$0xff] }
 0x5cb   : > { %v17947_v56 = vsel %vm5974_vm15, %v20269_v11, %v10667_v10  ;;  %v7393_v4 = vsel %vm2497_vm11, %v7361_v13, %v11486_v19  ;;  %v7394_v16 = vsel %vm2497_vm11, %v7362_v30, %v11487_v14  ;;  %v17955_v55 = vsel %vm5974_vm15, %v20270_v9, %v10702_v53  ;;  %v20272_v10 = vld [vmem:[#allocation192_spill] sm:$0xff]  ;;  %v20273_v53 = vld [vmem:[#allocation67_spill] sm:$0xff]  ;;  %v11505_v33 = vpop.permute.xlu1 %11504 }
 0x5cc   : > { %v11082_v12 = vunpack.i.h.bf16 %v20271_v23  ;;  %v11081_v62 = vunpack.i.l.bf16 %v20271_v23  ;;  %v11733_v54 = vpack.i.bf16 %v7394_v16, %v7393_v4  ;;  %v17965_v43 = vsel %vm5974_vm15, %v20272_v10, %v10701_v51 }
 0x5cd   : > { %v17969_v17 = vsel %vm5974_vm15, %v17842_v59, %v10712_v50  ;;  %v10707_v27 = vunpack.i.h.bf16 %v20273_v53  ;;  %v10706_v45 = vunpack.i.l.bf16 %v20273_v53  ;;  %v17975_v20 = vsel %vm5974_vm15, %v17832_v40, %v10711_v26  ;;  %v20276_v59 = vld [vmem:[#allocation76_spill] sm:$0xff]  ;;  %v11510_v25 = vpop.permute.xlu0 %11509  ;;  %v20280_v50 = vld [vmem:[#allocation189_spill] sm:$0xff] }
 0x5ce   : > { %v10742_v63 = vunpack.i.h.bf16 %v20274_v39  ;;  %v11122_v44 = vunpack.i.h.bf16 %v20275_v28  ;;  %v11121_v35 = vunpack.i.l.bf16 %v20275_v28  ;;  %11734 = vrot.lane.b32.xlu1 %v11733_v54, %s11884_s15  ;;  %v10741_v51 = vunpack.i.l.bf16 %v20274_v39 }
 0x5cf   : > { %v10747_v22 = vunpack.i.h.bf16 %v20276_v59  ;;  %v11162_v58 = vunpack.i.h.bf16 %v20277_v61  ;;  %v11161_v15 = vunpack.i.l.bf16 %v20277_v61  ;;  %v7172_v40 = vsel %vm426_vm1, %v11841_v37, %v11082_v12  ;;  %v11515_v23 = vpop.permute.xlu1 %11514 }
 0x5d0   : > { %v7171_v38 = vsel %vm426_vm1, %v11842_v1, %v11081_v62  ;;  %v11202_v7 = vunpack.i.h.bf16 %v20278_v60  ;;  %v11201_v48 = vunpack.i.l.bf16 %v20278_v60  ;;  %v11242_v32 = vunpack.i.h.bf16 %v20279_v21 }
 0x5d1   : > { %v11241_v2 = vunpack.i.l.bf16 %v20279_v21  ;;  %v11282_v24 = vunpack.i.h.bf16 %v20280_v50  ;;  %v11281_v49 = vunpack.i.l.bf16 %v20280_v50  ;;  %v7188_v8 = vsel %vm426_vm1, %v11843_v41, %v11122_v44  ;;  %v11520_v9 = vpop.permute.xlu0 %11519 }
 0x5d2   : > { %v7187_v6 = vsel %vm426_vm1, %v11844_v3, %v11121_v35  ;;  %v11492_v14 = vunpack.i.h.bf16 %v17923_v34  ;;  %v11491_v19 = vunpack.i.l.bf16 %v17923_v34  ;;  %v7203_v5 = vsel %vm2299_vm5, %v7171_v38, %v11161_v15 }
 0x5d3   : > { %v7204_v26 = vsel %vm2299_vm5, %v7172_v40, %v11162_v58  ;;  %v11502_v13 = vunpack.i.h.bf16 %v11500_v42  ;;  %v11501_v30 = vunpack.i.l.bf16 %v11500_v42  ;;  %v7219_v47 = vsel %vm2299_vm5, %v7187_v6, %v11201_v48 }
 0x5d4   : > { %v7220_v11 = vsel %vm2299_vm5, %v7188_v8, %v11202_v7  ;;  %v11512_v4 = vunpack.i.h.bf16 %v11510_v25  ;;  %v11511_v16 = vunpack.i.l.bf16 %v11510_v25  ;;  %v7235_v12 = vsel %vm2332_vm6, %v7203_v5, %v11241_v2  ;;  %v11525_v7 = vpop.permute.xlu1 %11524 }
 0x5d5   : > { %v7236_v62 = vsel %vm2332_vm6, %v7204_v26, %v11242_v32  ;;  %v7251_v34 = vsel %vm2332_vm6, %v7219_v47, %v11281_v49  ;;  %v7252_v54 = vsel %vm2332_vm6, %v7220_v11, %v11282_v24  ;;  %v11522_v28 = vunpack.i.h.bf16 %v11520_v9  ;;  %v11530_v60 = vpop.permute.xlu0 %11529 }
 0x5d6   : > { %v7283_v10 = vsel %vm2365_vm7, %v7251_v34, %v11491_v19  ;;  %v7284_v42 = vsel %vm2365_vm7, %v7252_v54, %v11492_v14  ;;  %v11521_v44 = vunpack.i.l.bf16 %v11520_v9  ;;  %v11497_v58 = vunpack.i.h.bf16 %v17959_v18 }
 0x5d7   : > { %v7315_v35 = vsel %vm2398_vm8, %v7283_v10, %v11501_v30  ;;  %v7316_v61 = vsel %vm2398_vm8, %v7284_v42, %v11502_v13  ;;  %v11496_v15 = vunpack.i.l.bf16 %v17959_v18  ;;  %v11507_v1 = vunpack.i.h.bf16 %v11505_v33 }
 0x5d8   : > { %v7347_v37 = vsel %vm2431_vm9, %v7315_v35, %v11511_v16  ;;  %v7348_v40 = vsel %vm2431_vm9, %v7316_v61, %v11512_v4  ;;  %v11506_v38 = vunpack.i.l.bf16 %v11505_v33  ;;  %v11517_v48 = vunpack.i.h.bf16 %v11515_v23  ;;  %v11535_v26 = vpop.permute.xlu1 %11534  ;;  %v20284_v35 = vld [vmem:[#allocation108_spill] sm:$0xff] }
 0x5d9   : > { %v11516_v25 = vunpack.i.l.bf16 %v11515_v23  ;;  %v11532_v21 = vunpack.i.h.bf16 %v11530_v60  ;;  %v11531_v32 = vunpack.i.l.bf16 %v11530_v60  ;;  %v7379_v2 = vsel %vm2464_vm10, %v7347_v37, %v11521_v44  ;;  %v18022_v5 = vpop.permute.xlu0 %11539 }
 0x5da   : > { %v7380_v50 = vsel %vm2464_vm10, %v7348_v40, %v11522_v28  ;;  %v11527_v24 = vunpack.i.h.bf16 %v11525_v7  ;;  %v11526_v49 = vunpack.i.l.bf16 %v11525_v7  ;;  %v7268_v18 = vsel %vm2365_vm7, %v7236_v62, %v11497_v58  ;;  %v20282_v62 = vld [vmem:[#allocation140_spill] sm:$0xff]  ;;  %v20285_v58 = vld [vmem:[#allocation147_spill] sm:$0xff]  ;;  %v11846_v7 = vld [vmem:[#allocation4 + $0xc1] sm:$0xff] }
 0x5db   : > { %v7267_v41 = vsel %vm2365_vm7, %v7235_v12, %v11496_v15  ;;  %v7411_v8 = vsel %vm2497_vm11, %v7379_v2, %v11531_v32  ;;  %v7412_v33 = vsel %vm2497_vm11, %v7380_v50, %v11532_v21  ;;  %v10746_v3 = vunpack.i.l.bf16 %v20276_v59  ;;  %v20286_v40 = vld [vmem:[#allocation123_spill] sm:$0xff] }
 0x5dc   : > { %v7299_v6 = vsel %vm2398_vm8, %v7267_v41, %v11506_v38  ;;  %v7300_v14 = vsel %vm2398_vm8, %v7268_v18, %v11507_v1  ;;  %v11738_v19 = vpack.i.bf16 %v7412_v33, %v7411_v8  ;;  %v11537_v47 = vunpack.i.h.bf16 %v11535_v26  ;;  %v20287_v1 = vld [vmem:[#allocation101_spill] sm:$0xff]  ;;  %v20290_v41 = vld [vmem:[#allocation156_spill] sm:$0xff] }
 0x5dd   : > { %v7331_v13 = vsel %vm2431_vm9, %v7299_v6, %v11516_v25  ;;  %v7332_v30 = vsel %vm2431_vm9, %v7300_v14, %v11517_v48  ;;  %v11536_v11 = vunpack.i.l.bf16 %v11535_v26  ;;  %v18030_v4 = vsel %vm5974_vm15, %v17848_v36, %v10706_v45  ;;  %v11550_v42 = vpop.permute.xlu0 %11549  ;;  %v20288_v25 = vld [vmem:[#allocation63_spill] sm:$0xff]  ;;  %v11848_v14 = vld [vmem:[#allocation4 + $0x181] sm:$0xff] }
 0x5de   : > { %v18036_v16 = vsel %vm5974_vm15, %v17856_v52, %v10707_v27  ;;  %v7363_v9 = vsel %vm2464_vm10, %v7331_v13, %v11526_v49  ;;  %v7364_v23 = vsel %vm2464_vm10, %v7332_v30, %v11527_v24  ;;  %11739 = vrot.lane.b32.xlu0 %v11738_v19, %s11884_s15  ;;  %v18045_v12 = vsel %vm6007_vm0, %v17870_v29, %v10741_v51  ;;  %v20281_v27 = vld [vmem:[#allocation164_spill] sm:$0xff]  ;;  %v18058_v29 = vpop.permute.xlu1 %11544  ;;  %v20283_v51 = vld [vmem:[#allocation41_spill] sm:$0xff]  ;;  %v20289_v24 = vld [vmem:[#allocation179_spill] sm:$0xff] }
 0x5df   : > { %v18051_v36 = vsel %vm6007_vm0, %v17866_v46, %v10742_v63  ;;  %v7395_v52 = vsel %vm2497_vm11, %v7363_v9, %v11536_v11  ;;  %v7396_v53 = vsel %vm2497_vm11, %v7364_v23, %v11537_v47  ;;  %v10752_v45 = vunpack.i.h.bf16 %v20281_v27 }
 0x5e0   : > { %v11087_v34 = vunpack.i.h.bf16 %v20282_v62  ;;  %v11086_v54 = vunpack.i.l.bf16 %v20282_v62  ;;  %v11743_v10 = vpack.i.bf16 %v7396_v53, %v7395_v52  ;;  %v10751_v39 = vunpack.i.l.bf16 %v20281_v27 }
 0x5e1   : > { %v18063_v46 = vsel %vm6007_vm0, %v17941_v31, %v10746_v3  ;;  %v18069_v63 = vsel %vm6007_vm0, %v17947_v56, %v10747_v22  ;;  %v10782_v28 = vunpack.i.h.bf16 %v20283_v51  ;;  %v10781_v44 = vunpack.i.l.bf16 %v20283_v51  ;;  %v11845_v22 = vld [vmem:[#allocation4 + $0xc9] sm:$0xff]  ;;  %v11560_v2 = vpop.permute.xlu0 %11559 }
 0x5e2   : > { %v10787_v61 = vunpack.i.h.bf16 %v20284_v35  ;;  %v11127_v15 = vunpack.i.h.bf16 %v20285_v58  ;;  %v11126_v37 = vunpack.i.l.bf16 %v20285_v58  ;;  %11744 = vrot.lane.b32.xlu1 %v11743_v10, %s11884_s15  ;;  %v10786_v31 = vunpack.i.l.bf16 %v20284_v35  ;;  %v11555_v50 = vpop.permute.xlu1 %11554  ;;  %v11847_v3 = vld [vmem:[#allocation4 + $0x189] sm:$0xff] }
 0x5e3   : > { %v10822_v59 = vunpack.i.h.bf16 %v20286_v40  ;;  %v11167_v38 = vunpack.i.h.bf16 %v20287_v1  ;;  %v11166_v56 = vunpack.i.l.bf16 %v20287_v1  ;;  %v7174_v60 = vsel %vm426_vm1, %v11845_v22, %v11087_v34  ;;  %v20293_v35 = vld [vmem:[#allocation139_spill] sm:$0xff] }
 0x5e4   : > { %v7173_v48 = vsel %vm426_vm1, %v11846_v7, %v11086_v54  ;;  %v11207_v21 = vunpack.i.h.bf16 %v20288_v25  ;;  %v11206_v32 = vunpack.i.l.bf16 %v20288_v25  ;;  %v11247_v49 = vunpack.i.h.bf16 %v20289_v24 }
 0x5e5   : > { %v11246_v18 = vunpack.i.l.bf16 %v20289_v24  ;;  %v11287_v8 = vunpack.i.h.bf16 %v20290_v41  ;;  %v11286_v33 = vunpack.i.l.bf16 %v20290_v41  ;;  %v7190_v6 = vsel %vm426_vm1, %v11847_v3, %v11127_v15  ;;  %v11570_v34 = vpop.permute.xlu0 %11569 }
 0x5e6   : > { %v7189_v19 = vsel %vm426_vm1, %v11848_v14, %v11126_v37  ;;  %v11542_v26 = vunpack.i.h.bf16 %v18022_v5  ;;  %v11541_v13 = vunpack.i.l.bf16 %v18022_v5  ;;  %v7205_v30 = vsel %vm2299_vm5, %v7173_v48, %v11166_v56  ;;  %v11565_v54 = vpop.permute.xlu1 %11564 }
 0x5e7   : > { %v7206_v47 = vsel %vm2299_vm5, %v7174_v60, %v11167_v38  ;;  %v11552_v11 = vunpack.i.h.bf16 %v11550_v42  ;;  %v11551_v9 = vunpack.i.l.bf16 %v11550_v42  ;;  %v7221_v23 = vsel %vm2299_vm5, %v7189_v19, %v11206_v32 }
 0x5e8   : > { %v7222_v52 = vsel %vm2299_vm5, %v7190_v6, %v11207_v21  ;;  %v11562_v53 = vunpack.i.h.bf16 %v11560_v2  ;;  %v11561_v62 = vunpack.i.l.bf16 %v11560_v2  ;;  %v7237_v10 = vsel %vm2332_vm6, %v7205_v30, %v11246_v18 }
 0x5e9   : > { %v7238_v58 = vsel %vm2332_vm6, %v7206_v47, %v11247_v49  ;;  %v7253_v5 = vsel %vm2332_vm6, %v7221_v23, %v11286_v33  ;;  %v7254_v15 = vsel %vm2332_vm6, %v7222_v52, %v11287_v8  ;;  %v11572_v1 = vunpack.i.h.bf16 %v11570_v34  ;;  %v11580_v2 = vpop.permute.xlu0 %11579 }
 0x5ea   : > { %v7285_v37 = vsel %vm2365_vm7, %v7253_v5, %v11541_v13  ;;  %v7286_v42 = vsel %vm2365_vm7, %v7254_v15, %v11542_v26  ;;  %v11571_v38 = vunpack.i.l.bf16 %v11570_v34  ;;  %v11547_v60 = vunpack.i.h.bf16 %v18058_v29  ;;  %v11575_v24 = vpop.permute.xlu1 %11574 }
 0x5eb   : > { %v7317_v56 = vsel %vm2398_vm8, %v7285_v37, %v11551_v9  ;;  %v7318_v22 = vsel %vm2398_vm8, %v7286_v42, %v11552_v11  ;;  %v11546_v7 = vunpack.i.l.bf16 %v18058_v29  ;;  %v11557_v21 = vunpack.i.h.bf16 %v11555_v50  ;;  %v20292_v42 = vld [vmem:[#allocation107_spill] sm:$0xff] }
 0x5ec   : > { %v7349_v48 = vsel %vm2431_vm9, %v7317_v56, %v11561_v62  ;;  %v7350_v25 = vsel %vm2431_vm9, %v7318_v22, %v11562_v53  ;;  %v11556_v32 = vunpack.i.l.bf16 %v11555_v50  ;;  %v11567_v49 = vunpack.i.h.bf16 %v11565_v54 }
 0x5ed   : > { %v11566_v18 = vunpack.i.l.bf16 %v11565_v54  ;;  %v11582_v41 = vunpack.i.h.bf16 %v11580_v2  ;;  %v11581_v8 = vunpack.i.l.bf16 %v11580_v2  ;;  %v7381_v33 = vsel %vm2464_vm10, %v7349_v48, %v11571_v38  ;;  %v18118_v9 = vpop.permute.xlu0 %11589  ;;  %v20294_v48 = vld [vmem:[#allocation178_spill] sm:$0xff] }
 0x5ee   : > { %v7382_v3 = vsel %vm2464_vm10, %v7350_v25, %v11572_v1  ;;  %v11577_v6 = vunpack.i.h.bf16 %v11575_v24  ;;  %v11576_v14 = vunpack.i.l.bf16 %v11575_v24  ;;  %v7269_v29 = vsel %vm2365_vm7, %v7237_v10, %v11546_v7  ;;  %v11585_v23 = vpop.permute.xlu1 %11584  ;;  %v20291_v10 = vld [vmem:[#allocation174_spill] sm:$0xff]  ;;  %v20297_v24 = vld [vmem:[#allocation17_spill] sm:$0xff] }
 0x5ef   : > { %v7270_v19 = vsel %vm2365_vm7, %v7238_v58, %v11547_v60  ;;  %v7413_v26 = vsel %vm2497_vm11, %v7381_v33, %v11581_v8  ;;  %v7414_v50 = vsel %vm2497_vm11, %v7382_v3, %v11582_v41  ;;  %v10821_v13 = vunpack.i.l.bf16 %v20286_v40  ;;  %v20295_v40 = vld [vmem:[#allocation165_spill] sm:$0xff]  ;;  %v20298_v41 = vld [vmem:[#allocation62_spill] sm:$0xff] }
 0x5f0   : > { %v7301_v30 = vsel %vm2398_vm8, %v7269_v29, %v11556_v32  ;;  %v7302_v47 = vsel %vm2398_vm8, %v7270_v19, %v11557_v21  ;;  %v11748_v11 = vpack.i.bf16 %v7414_v50, %v7413_v26  ;;  %v11587_v62 = vunpack.i.h.bf16 %v11585_v23  ;;  %v20300_v26 = vld [vmem:[#allocation240_spill] sm:$0xff] }
 0x5f1   : > { %v7333_v52 = vsel %vm2431_vm9, %v7301_v30, %v11566_v18  ;;  %v7334_v53 = vsel %vm2431_vm9, %v7302_v47, %v11567_v49  ;;  %v11586_v34 = vunpack.i.l.bf16 %v11585_v23  ;;  %v6024_v54 = vsel %vm6007_vm0, %v17965_v43, %v10781_v44  ;;  %v20301_v30 = vld [vmem:[#allocation201_spill] sm:$0xff] }
 0x5f2   : > { %v10861_v58 = vunpack.i.l.bf16 %v20291_v10  ;;  %v7365_v5 = vsel %vm2464_vm10, %v7333_v52, %v11576_v14  ;;  %v7366_v15 = vsel %vm2464_vm10, %v7334_v53, %v11577_v6  ;;  %11749 = vrot.lane.b32.xlu0 %v11748_v11, %s11884_s15  ;;  %v18134_v37 = vsel %vm6007_vm0, %v17955_v55, %v10782_v28  ;;  %v18152_v28 = vpop.permute.xlu0 %11599  ;;  %v18154_v22 = vpop.permute.xlu1 %11594  ;;  %v20299_v14 = vld [vmem:[#allocation9_spill] sm:$0xff] }
 0x5f3   : > { %v10792_v1 = vunpack.i.h.bf16 %v20292_v42  ;;  %v7397_v38 = vsel %vm2497_vm11, %v7365_v5, %v11586_v34  ;;  %v7398_v43 = vsel %vm2497_vm11, %v7366_v15, %v11587_v62  ;;  %v10791_v44 = vunpack.i.l.bf16 %v20292_v42  ;;  %v11849_v53 = vld [vmem:[#allocation4 + $0xe1] sm:$0xff]  ;;  %v11850_v34 = vld [vmem:[#allocation4 + $0xd9] sm:$0xff] }
 0x5f4   : > { %v18144_v56 = vsel %vm6007_vm0, %v18030_v4, %v10786_v31  ;;  %v18150_v55 = vsel %vm6007_vm0, %v18036_v16, %v10787_v61  ;;  %v11753_v51 = vpack.i.bf16 %v7398_v43, %v7397_v38  ;;  %v18158_v60 = vsel %vm6040_vm2, %v18045_v12, %v10821_v13  ;;  %v11852_v15 = vld [vmem:[#allocation4 + $0x199] sm:$0xff] }
 0x5f5   : > { %v18164_v4 = vsel %vm6040_vm2, %v18051_v36, %v10822_v59  ;;  %v10827_v31 = vunpack.i.h.bf16 %v20293_v35  ;;  %v10826_v16 = vunpack.i.l.bf16 %v20293_v35  ;;  %v10862_v61 = vunpack.i.h.bf16 %v20291_v10  ;;  %v20296_v59 = vld [vmem:[#allocation18_spill] sm:$0xff] }
 0x5f6   : > { %v18170_v7 = vsel %vm6040_vm2, %v6024_v54, %v10861_v58  ;;  %v10867_v25 = vunpack.i.h.bf16 %v20294_v48  ;;  %v10866_v12 = vunpack.i.l.bf16 %v20294_v48  ;;  %11754 = vrot.lane.b32.xlu1 %v11753_v51, %s11884_s15  ;;  %v11092_v21 = vunpack.i.h.bf16 %v20295_v40  ;;  %v11610_v3 = vpop.permute.xlu0 %11609  ;;  %v11605_v6 = vpop.permute.xlu1 %11604  ;;  %v11851_v58 = vld [vmem:[#allocation4 + $0x1a1] sm:$0xff] }
 0x5f7   : > { %v11091_v36 = vunpack.i.l.bf16 %v20295_v40  ;;  %v11132_v32 = vunpack.i.h.bf16 %v20296_v59  ;;  %v11131_v2 = vunpack.i.l.bf16 %v20296_v59  ;;  %v11172_v49 = vunpack.i.h.bf16 %v20297_v24 }
 0x5f8   : > { %v11171_v18 = vunpack.i.l.bf16 %v20297_v24  ;;  %v11212_v8 = vunpack.i.h.bf16 %v20298_v41  ;;  %v11211_v33 = vunpack.i.l.bf16 %v20298_v41  ;;  %v10902_v29 = vunpack.i.h.bf16 %v20299_v14 }
 0x5f9   : > { %v10901_v19 = vunpack.i.l.bf16 %v20299_v14  ;;  %v10942_v50 = vunpack.i.h.bf16 %v20300_v26  ;;  %v10941_v13 = vunpack.i.l.bf16 %v20300_v26  ;;  %v11252_v47 = vunpack.i.h.bf16 %v20301_v30  ;;  %v20308_v26 = vld [vmem:[#allocation88_spill] sm:$0xff] }
 0x5fa   : > { %v11251_v11 = vunpack.i.l.bf16 %v20301_v30  ;;  %v11592_v23 = vunpack.i.h.bf16 %v18118_v9  ;;  %v11591_v52 = vunpack.i.l.bf16 %v18118_v9  ;;  %v7176_v62 = vsel %vm426_vm1, %v11849_v53, %v11092_v21  ;;  %v11620_v59 = vpop.permute.xlu0 %11619  ;;  %v11615_v24 = vpop.permute.xlu1 %11614 }
 0x5fb   : > { %v7175_v54 = vsel %vm426_vm1, %v11850_v34, %v11091_v36  ;;  %v7192_v5 = vsel %vm426_vm1, %v11851_v58, %v11132_v32  ;;  %v7191_v38 = vsel %vm426_vm1, %v11852_v15, %v11131_v2  ;;  %v7208_v51 = vsel %vm2299_vm5, %v7176_v62, %v11172_v49 }
 0x5fc   : > { %v7207_v43 = vsel %vm2299_vm5, %v7175_v54, %v11171_v18  ;;  %v7223_v40 = vsel %vm2299_vm5, %v7191_v38, %v11211_v33  ;;  %v7224_v9 = vsel %vm2299_vm5, %v7192_v5, %v11212_v8  ;;  %v11602_v21 = vunpack.i.h.bf16 %v18152_v28 }
 0x5fd   : > { %v11601_v36 = vunpack.i.l.bf16 %v18152_v28  ;;  %v11597_v41 = vunpack.i.h.bf16 %v18154_v22  ;;  %v11596_v32 = vunpack.i.l.bf16 %v18154_v22  ;;  %v7239_v2 = vsel %vm2332_vm6, %v7207_v43, %v11251_v11 }
 0x5fe   : > { %v7240_v18 = vsel %vm2332_vm6, %v7208_v51, %v11252_v47  ;;  %v7255_v49 = vsel %vm2332_vm6, %v7223_v40, %v11591_v52  ;;  %v7256_v33 = vsel %vm2332_vm6, %v7224_v9, %v11592_v23  ;;  %v11612_v30 = vunpack.i.h.bf16 %v11610_v3  ;;  %v11625_v15 = vpop.permute.xlu1 %11624 }
 0x5ff   : > { %v11611_v8 = vunpack.i.l.bf16 %v11610_v3  ;;  %v11607_v53 = vunpack.i.h.bf16 %v11605_v6  ;;  %v11606_v62 = vunpack.i.l.bf16 %v11605_v6  ;;  %v11622_v34 = vunpack.i.h.bf16 %v11620_v59  ;;  %v11630_v5 = vpop.permute.xlu0 %11629 }
 0x600   : > { %v11621_v54 = vunpack.i.l.bf16 %v11620_v59  ;;  %v11617_v58 = vunpack.i.h.bf16 %v11615_v24  ;;  %v11616_v28 = vunpack.i.l.bf16 %v11615_v24  ;;  %v7271_v22 = vsel %vm2365_vm7, %v7239_v2, %v11601_v36 }
 0x601   : > { %v7272_v11 = vsel %vm2365_vm7, %v7240_v18, %v11602_v21  ;;  %v7288_v47 = vsel %vm2365_vm7, %v7256_v33, %v11597_v41  ;;  %v7287_v52 = vsel %vm2365_vm7, %v7255_v49, %v11596_v32  ;;  %v11632_v38 = vunpack.i.h.bf16 %v11630_v5 }
 0x602   : > { %v11631_v23 = vunpack.i.l.bf16 %v11630_v5  ;;  %v11627_v43 = vunpack.i.h.bf16 %v11625_v15  ;;  %v11626_v3 = vunpack.i.l.bf16 %v11625_v15  ;;  %v7303_v6 = vsel %vm2398_vm8, %v7271_v22, %v11611_v8  ;;  %v11635_v32 = vpop.permute.xlu1 %11634  ;;  %v20302_v15 = vld [vmem:[#allocation148_spill] sm:$0xff] }
 0x603   : > { %v7304_v51 = vsel %vm2398_vm8, %v7272_v11, %v11612_v30  ;;  %v7319_v40 = vsel %vm2398_vm8, %v7287_v52, %v11606_v62  ;;  %v7320_v9 = vsel %vm2398_vm8, %v7288_v47, %v11607_v53  ;;  %v7335_v59 = vsel %vm2431_vm9, %v7303_v6, %v11621_v54  ;;  %v11640_v41 = vpop.permute.xlu0 %11639 }
 0x604   : > { %v7336_v24 = vsel %vm2431_vm9, %v7304_v51, %v11622_v34  ;;  %v7351_v21 = vsel %vm2431_vm9, %v7319_v40, %v11616_v28  ;;  %v7352_v36 = vsel %vm2431_vm9, %v7320_v9, %v11617_v58  ;;  %v11642_v2 = vunpack.i.h.bf16 %v11640_v41  ;;  %v20307_v40 = vld [vmem:[#allocation116_spill] sm:$0xff] }
 0x605   : > { %v11641_v18 = vunpack.i.l.bf16 %v11640_v41  ;;  %v11637_v49 = vunpack.i.h.bf16 %v11635_v32  ;;  %v11636_v33 = vunpack.i.l.bf16 %v11635_v32  ;;  %v7367_v30 = vsel %vm2464_vm10, %v7335_v59, %v11631_v23  ;;  %v20310_v32 = vld [vmem:[#allocation42_spill] sm:$0xff] }
 0x606   : > { %v7368_v8 = vsel %vm2464_vm10, %v7336_v24, %v11632_v38  ;;  %v7383_v53 = vsel %vm2464_vm10, %v7351_v21, %v11626_v3  ;;  %v7384_v62 = vsel %vm2464_vm10, %v7352_v36, %v11627_v43  ;;  %v6058_v5 = vsel %vm6040_vm2, %v18134_v37, %v10862_v61  ;;  %v11645_v38 = vpop.permute.xlu1 %11644  ;;  %v20303_v37 = vld [vmem:[#allocation48_spill] sm:$0xff]  ;;  %v20309_v36 = vld [vmem:[#allocation155_spill] sm:$0xff] }
 0x607   : > { %v7399_v34 = vsel %vm2497_vm11, %v7367_v30, %v11641_v18  ;;  %v7400_v54 = vsel %vm2497_vm11, %v7368_v8, %v11642_v2  ;;  %v7415_v58 = vsel %vm2497_vm11, %v7383_v53, %v11636_v33  ;;  %v7416_v28 = vsel %vm2497_vm11, %v7384_v62, %v11637_v49  ;;  %v18232_v52 = vpop.permute.xlu0 %11649  ;;  %v20311_v49 = vld [vmem:[#allocation98_spill] sm:$0xff] }
 0x608   : > { %v10872_v22 = vunpack.i.h.bf16 %v20302_v15  ;;  %v11763_v11 = vpack.i.bf16 %v7400_v54, %v7399_v34  ;;  %v11758_v47 = vpack.i.bf16 %v7416_v28, %v7415_v58  ;;  %v10871_v23 = vunpack.i.l.bf16 %v20302_v15  ;;  %v11853_v54 = vld [vmem:[#allocation4 + $0xf9] sm:$0xff]  ;;  %v11854_v28 = vld [vmem:[#allocation4 + $0xf1] sm:$0xff] }
 0x609   : > { %v6059_v43 = vsel %vm6040_vm2, %v18144_v56, %v10866_v12  ;;  %v18243_v10 = vsel %vm6040_vm2, %v18150_v55, %v10867_v25  ;;  %v10946_v61 = vunpack.i.l.bf16 %v20303_v37  ;;  %v18250_v3 = vsel %vm6073_vm4, %v18158_v60, %v10901_v19  ;;  %v20304_v56 = vld [vmem:[#allocation199_spill] sm:$0xff]  ;;  %v20305_v25 = vld [vmem:[#allocation265_spill] sm:$0xff] }
 0x60a   : > { %v18256_v6 = vsel %vm6073_vm4, %v18164_v4, %v10902_v29  ;;  %v10907_v48 = vunpack.i.h.bf16 %v20304_v56  ;;  %v10906_v12 = vunpack.i.l.bf16 %v20304_v56  ;;  %11759 = vrot.lane.b32.xlu0 %v11758_v47, %s11884_s15  ;;  %11764 = vrot.lane.b32.xlu1 %v11763_v11, %s11884_s15  ;;  %v6090_v55 = vsel %vm6073_vm4, %v18170_v7, %v10941_v13  ;;  %v20306_v29 = vld [vmem:[#allocation83_spill] sm:$0xff]  ;;  %v20312_v47 = vld [vmem:[#allocation65_spill] sm:$0xff] }
 0x60b   : > { %v6091_v60 = vsel %vm6073_vm4, %v6058_v5, %v10942_v50  ;;  %v11022_v4 = vunpack.i.h.bf16 %v20305_v25  ;;  %v11021_v14 = vunpack.i.l.bf16 %v20305_v25  ;;  %v10952_v19 = vunpack.i.h.bf16 %v20306_v29  ;;  %v11660_v24 = vpop.permute.xlu0 %11659  ;;  %v11655_v21 = vpop.permute.xlu1 %11654 }
 0x60c   : > { %v10947_v51 = vunpack.i.h.bf16 %v20303_v37  ;;  %v11097_v9 = vunpack.i.h.bf16 %v20307_v40  ;;  %v11096_v59 = vunpack.i.l.bf16 %v20307_v40  ;;  %v18276_v7 = vsel %vm6073_vm4, %v6059_v43, %v10946_v61  ;;  %v11855_v40 = vld [vmem:[#allocation4 + $0x1b9] sm:$0xff] }
 0x60d   : > { %v11137_v13 = vunpack.i.h.bf16 %v20308_v26  ;;  %v11136_v50 = vunpack.i.l.bf16 %v20308_v26  ;;  %v11176_v41 = vunpack.i.l.bf16 %v20309_v36  ;;  %v10982_v2 = vunpack.i.h.bf16 %v20310_v32 }
 0x60e   : > { %v10981_v18 = vunpack.i.l.bf16 %v20310_v32  ;;  %v11217_v33 = vunpack.i.h.bf16 %v20311_v49  ;;  %v11216_v30 = vunpack.i.l.bf16 %v20311_v49  ;;  %v18286_v8 = vsel %vm6106_vm13, %v6090_v55, %v11021_v14  ;;  %v11856_v14 = vld [vmem:[#allocation4 + $0x1b1] sm:$0xff] }
 0x60f   : > { %v18289_v53 = vsel %vm6106_vm13, %v6091_v60, %v11022_v4  ;;  %v11647_v62 = vunpack.i.h.bf16 %v11645_v38  ;;  %v11646_v34 = vunpack.i.l.bf16 %v11645_v38  ;;  %v7178_v58 = vsel %vm426_vm1, %v11853_v54, %v11097_v9 }
 0x610   : > { %v7177_v5 = vsel %vm426_vm1, %v11854_v28, %v11096_v59  ;;  %v11177_v11 = vunpack.i.h.bf16 %v20309_v36  ;;  %v11256_v43 = vunpack.i.l.bf16 %v20312_v47  ;;  %v11670_v61 = vpop.permute.xlu0 %11669  ;;  %v11665_v25 = vpop.permute.xlu1 %11664  ;;  %v7194_v55 = vsel %vm426_vm1, %v11855_v40, %v11137_v13 }
 0x611   : > { %v7193_v60 = vsel %vm426_vm1, %v11856_v14, %v11136_v50  ;;  %v7209_v38 = vsel %vm2299_vm5, %v7177_v5, %v11176_v41  ;;  %v11257_v4 = vunpack.i.h.bf16 %v20312_v47  ;;  %v7226_v59 = vsel %vm2299_vm5, %v7194_v55, %v11217_v33 }
 0x612   : > { %v7225_v9 = vsel %vm2299_vm5, %v7193_v60, %v11216_v30  ;;  %v11652_v26 = vunpack.i.h.bf16 %v18232_v52  ;;  %v11651_v36 = vunpack.i.l.bf16 %v18232_v52  ;;  %v7258_v54 = vsel %vm2332_vm6, %v7226_v59, %v11647_v62 }
 0x613   : > { %v7257_v49 = vsel %vm2332_vm6, %v7225_v9, %v11646_v34  ;;  %v11662_v13 = vunpack.i.h.bf16 %v11660_v24  ;;  %v11661_v28 = vunpack.i.l.bf16 %v11660_v24  ;;  %v7210_v50 = vsel %vm2299_vm5, %v7178_v58, %v11177_v11 }
 0x614   : > { %v7241_v41 = vsel %vm2332_vm6, %v7209_v38, %v11256_v43  ;;  %v11657_v5 = vunpack.i.h.bf16 %v11655_v21  ;;  %v11656_v47 = vunpack.i.l.bf16 %v11655_v21  ;;  %v11680_v40 = vpop.permute.xlu0 %11679  ;;  %v11675_v30 = vpop.permute.xlu1 %11674  ;;  %v7242_v33 = vsel %vm2332_vm6, %v7210_v50, %v11257_v4 }
 0x615   : > { %v11672_v55 = vunpack.i.h.bf16 %v11670_v61  ;;  %v11671_v14 = vunpack.i.l.bf16 %v11670_v61  ;;  %vm7587_vm1 = vcmask 818176   ;;  %v7289_v52 = vsel %vm2365_vm7, %v7257_v49, %v11651_v36 }
 0x616   : > { %v7290_v34 = vsel %vm2365_vm7, %v7258_v54, %v11652_v26  ;;  %v11682_v62 = vunpack.i.h.bf16 %v11680_v40  ;;  %v11681_v60 = vunpack.i.l.bf16 %v11680_v40  ;;  %v7321_v24 = vsel %vm2398_vm8, %v7289_v52, %v11661_v28  ;;  %vm18355_vm5 = vmpackc.low %vm7587_vm1, %vm7587_vm1 }
 0x617   : > { %v7322_v58 = vsel %vm2398_vm8, %v7290_v34, %v11662_v13  ;;  %v11667_v11 = vunpack.i.h.bf16 %v11665_v25  ;;  %v11666_v43 = vunpack.i.l.bf16 %v11665_v25  ;;  %v7273_v21 = vsel %vm2365_vm7, %v7241_v41, %v11656_v47  ;;  %v18321_v41 = vld [vmem:[%s18678_s7] sm:$0xff] }
 0x618   : > { %v7274_v38 = vsel %vm2365_vm7, %v7242_v33, %v11657_v5  ;;  %v11677_v4 = vunpack.i.h.bf16 %v11675_v30  ;;  %v11676_v9 = vunpack.i.l.bf16 %v11675_v30  ;;  %v7353_v36 = vsel %vm2431_vm9, %v7321_v24, %v11671_v14  ;;  %8910 = vmatprep.mubr.msk.f32.mxu0 %vm7587_vm1, %v18321_v41 }
 0x619   : > { %v11690_v61 = vpop.permute.xlu0 %11689  ;;  %v11685_v59 = vpop.permute.xlu1 %11684  ;;  %v7354_v26 = vsel %vm2431_vm9, %v7322_v58, %v11672_v55  ;;  %v7385_v28 = vsel %vm2464_vm10, %v7353_v36, %v11681_v60  ;;  %v7305_v5 = vsel %vm2398_vm8, %v7273_v21, %v11666_v43  ;;  %v7306_v47 = vsel %vm2398_vm8, %v7274_v38, %v11667_v11  ;;  %v20313_v11 = vld [vmem:[#allocation278_spill] sm:$0xff] }
 0x61a   : > { %v11692_v49 = vunpack.i.h.bf16 %v11690_v61  ;;  %v11691_v54 = vunpack.i.l.bf16 %v11690_v61  ;;  %v7386_v13 = vsel %vm2464_vm10, %v7354_v26, %v11682_v62  ;;  %v11687_v50 = vunpack.i.h.bf16 %v11685_v59  ;;  %v7581_v26 = vld [vmem:[%s18679_s8] sm:$0xff] }
 0x61b   : > { %v11686_v25 = vunpack.i.l.bf16 %v11685_v59  ;;  %v7337_v33 = vsel %vm2431_vm9, %v7305_v5, %v11676_v9  ;;  %v7338_v55 = vsel %vm2431_vm9, %v7306_v47, %v11677_v4  ;;  %v11027_v43 = vunpack.i.h.bf16 %v20313_v11 }
 0x61c   : > { %v7417_v40 = vsel %vm2497_vm11, %v7385_v28, %v11691_v54  ;;  %v7418_v30 = vsel %vm2497_vm11, %v7386_v13, %v11692_v49  ;;  %v11026_v21 = vunpack.i.l.bf16 %v20313_v11  ;;  %v7370_v61 = vsel %vm2464_vm10, %v7338_v55, %v11687_v50 }
 0x61d   : > { %v11768_v14 = vpack.i.bf16 %v7418_v30, %v7417_v40  ;;  %v11700_v52 = vpop.permute.xlu0 %11699  ;;  %v11695_v34 = vpop.permute.xlu1 %11694  ;;  %v7369_v38 = vsel %vm2464_vm10, %v7337_v33, %v11686_v25  ;;  %v6093_v49 = vsel %vm6073_vm4, %v18243_v10, %v10947_v51  ;;  %v10951_v10 = vunpack.i.l.bf16 %v20306_v29 }
 0x61e   : > { %v11702_v62 = vunpack.i.h.bf16 %v11700_v52  ;;  %v11701_v60 = vunpack.i.l.bf16 %v11700_v52  ;;  %v11697_v24 = vunpack.i.h.bf16 %v11695_v34  ;;  %v11696_v58 = vunpack.i.l.bf16 %v11695_v34 }
 0x61f   : > { %11769 = vrot.lane.b32.xlu0 %v11768_v14, %s11884_s15  ;;  %v6125_v51 = vsel %vm6106_vm13, %v18276_v7, %v11026_v21  ;;  %v20316_v7 = vld [vmem:[#allocation45_spill] sm:$0xff]  ;;  %v6043_v11 = vsel %vm6040_vm2, %v18063_v46, %v10826_v16  ;;  %v20317_v21 = vld [vmem:[#allocation59_spill] sm:$0xff] }
 0x620   : > { %v7565_v4 = vsel %vm7547_vm3, %v18289_v53, %v11702_v62  ;;  %v7564_v9 = vsel %vm7547_vm3, %v18286_v8, %v11701_v60  ;;  %v7401_v59 = vsel %vm2497_vm11, %v7369_v38, %v11696_v58  ;;  %v7402_v36 = vsel %vm2497_vm11, %v7370_v61, %v11697_v24 }
 0x621   : > { %v6107_v53 = vsel %vm6106_vm13, %v18250_v3, %v10981_v18  ;;  %v9092_v54 = vpack.c.bf16 %v7565_v4, %v7564_v9  ;;  %v11773_v8 = vpack.i.bf16 %v7402_v36, %v7401_v59  ;;  %v11705_v28 = vpop.permute.xlu1 %11704  ;;  %v11710_v13 = vpop.permute.xlu0 %11709  ;;  %v6108_v3 = vsel %vm6106_vm13, %v18256_v6, %v10982_v2  ;;  %v8359_v6 = vld [vmem:[%s18681_s10] sm:$0xff] }
 0x622   : > { %v11707_v25 = vunpack.i.h.bf16 %v11705_v28  ;;  %v11706_v37 = vunpack.i.l.bf16 %v11705_v28  ;;  %v11712_v5 = vunpack.i.h.bf16 %v11710_v13  ;;  %v11711_v47 = vunpack.i.l.bf16 %v11710_v13 }
 0x623   : > { %v6126_v18 = vsel %vm6106_vm13, %v6093_v49, %v11027_v43  ;;  %7584 = vperm.xlu0 %9216, %v7581_v26   ;;  %11774 = vrot.lane.b32.xlu1 %v11773_v8, %s11884_s15  ;;  %v10987_v32 = vunpack.i.h.bf16 %v20316_v7  ;;  %v10986_v2 = vunpack.i.l.bf16 %v20316_v7  ;;  %v6028_v62 = vsel %vm6007_vm0, %v17975_v20, %v10791_v44  ;;  %v20320_v49 = vld [vmem:[#allocation44_spill] sm:$0xff] }
 0x624   : > { %v7549_v40 = vsel %vm7547_vm3, %v6108_v3, %v11707_v25  ;;  %v7548_v30 = vsel %vm7547_vm3, %v6107_v53, %v11706_v37  ;;  %v7566_v33 = vsel %vm7547_vm3, %v6125_v51, %v11711_v47  ;;  %v7567_v55 = vsel %vm7547_vm3, %v6126_v18, %v11712_v5  ;;  %9094 = vmatprep.subr.msk.bf16.mxu0 %vm18355_vm5, %v9092_v54  ;;  %v20323_v51 = vld [vmem:[#allocation180_spill] sm:$0xff] }
 0x625   : > { %v9095_v14 = vpack.c.bf16 %v7549_v40, %v7548_v30  ;;  %v9098_v52 = vpack.c.bf16 %v7567_v55, %v7566_v33  ;;  %v11715_v34 = vpop.permute.xlu1 %11714  ;;  %v6029_v60 = vsel %vm6007_vm0, %v17969_v17, %v10792_v1  ;;  %v6044_v43 = vsel %vm6040_vm2, %v18069_v63, %v10827_v31  ;;  %v20325_v30 = vld [vmem:[#allocation39_spill] sm:$0xff] }
 0x626   : > { %v11717_v24 = vunpack.i.h.bf16 %v11715_v34  ;;  %v11716_v58 = vunpack.i.l.bf16 %v11715_v34  ;;  %v11032_v38 = vunpack.i.h.bf16 %v20317_v21  ;;  %v11031_v20 = vunpack.i.l.bf16 %v20317_v21  ;;  %v20331_v21 = vld [vmem:[#allocation186_spill] sm:$0xff] }
 0x627   : > { %8362 = vperm.xlu1 %9242, %v8359_v6   ;;  %9097 = vmatpush3.bf16.xpose.msk.msra.mxu0 %vm18355_vm5, %v9095_v14  ;;  %v6061_v17 = vsel %vm6040_vm2, %v6028_v62, %v10871_v23  ;;  %v6062_v46 = vsel %vm6040_vm2, %v6029_v60, %v10872_v22  ;;  %v6076_v63 = vsel %vm6073_vm4, %v6043_v11, %v10906_v12  ;;  %v11720_v16 = vpop.permute.xlu0 %11719  ;;  %v10992_v53 = vunpack.i.h.bf16 %v20320_v49  ;;  %v20330_v60 = vld [vmem:[#allocation154_spill] sm:$0xff] }
 0x628   : > { %v6077_v42 = vsel %vm6073_vm4, %v6044_v43, %v10907_v48  ;;  %9100 = vmatprep.subr.msk.bf16.mxu0 %vm18355_vm5, %v9098_v52  ;;  %v6094_v1 = vsel %vm6073_vm4, %v6061_v17, %v10951_v10  ;;  %v6095_v44 = vsel %vm6073_vm4, %v6062_v46, %v10952_v19  ;;  %v6109_v35 = vsel %vm6106_vm13, %v6076_v63, %v10986_v2  ;;  %v20318_v48 = vld [vmem:[#allocation126_spill] sm:$0xff]  ;;  %v20332_v17 = vld [vmem:[#allocation196_spill] sm:$0xff] }
 0x629   : > { %v6110_v31 = vsel %vm6106_vm13, %v6077_v42, %v10987_v32  ;;  %v7550_v15 = vsel %vm7547_vm3, %v6109_v35, %v11716_v58  ;;  %v11722_v23 = vunpack.i.h.bf16 %v11720_v16  ;;  %v11721_v56 = vunpack.i.l.bf16 %v11720_v16  ;;  %v20319_v19 = vld [vmem:[#allocation198_spill] sm:$0xff]  ;;  %v20333_v42 = vld [vmem:[#allocation55_spill] sm:$0xff]  ;;  %v20334_v35 = vld [vmem:[#allocation104_spill] sm:$0xff] }
 0x62a   : > { %v7551_v22 = vsel %vm7547_vm3, %v6110_v31, %v11717_v24  ;;  %v10832_v12 = vunpack.i.h.bf16 %v20318_v48  ;;  %v10831_v61 = vunpack.i.l.bf16 %v20318_v48  ;;  %v6127_v4 = vsel %vm6106_vm13, %v6094_v1, %v11031_v20  ;;  %v20321_v10 = vld [vmem:[#allocation130_spill] sm:$0xff] }
 0x62b   : > { %v6128_v29 = vsel %vm6106_vm13, %v6095_v44, %v11032_v38  ;;  %v10912_v9 = vunpack.i.h.bf16 %v20319_v19  ;;  %v10911_v59 = vunpack.i.l.bf16 %v20319_v19  ;;  %v7568_v26 = vsel %vm7547_vm3, %v6127_v4, %v11721_v56  ;;  %v20329_v2 = vld [vmem:[#allocation54_spill] sm:$0xff]  ;;  %v20336_v4 = vld [vmem:[#allocation75_spill] sm:$0xff] }
 0x62c   : > { %v7569_v36 = vsel %vm7547_vm3, %v6128_v29, %v11722_v23  ;;  %v10991_v54 = vunpack.i.l.bf16 %v20320_v49  ;;  %v9101_v8 = vpack.c.bf16 %v7551_v22, %v7550_v15  ;;  %v11725_v13 = vpop.permute.xlu1 %11724  ;;  %v6012_v25 = vsel %vm6007_vm0, %v17931_v57, %v10751_v39  ;;  %v20335_v22 = vld [vmem:[#allocation163_spill] sm:$0xff] }
 0x62d   : > { %v9104_v28 = vpack.c.bf16 %v7569_v36, %v7568_v26  ;;  %v6013_v37 = vsel %vm6007_vm0, %v17876_v0, %v10752_v45  ;;  %v11727_v5 = vunpack.i.h.bf16 %v11725_v13  ;;  %v11726_v47 = vunpack.i.l.bf16 %v11725_v13  ;;  %v20326_v0 = vld [vmem:[#allocation138_spill] sm:$0xff] }
 0x62e   : > { %v20322_v3 = vunpack.i.l.bf16 %v20321_v10  ;;  %v20324_v40 = vunpack.i.h.bf16 %v20321_v10  ;;  %v6045_v55 = vsel %vm6040_vm2, %v6012_v25, %v10831_v61  ;;  %v6046_v57 = vsel %vm6040_vm2, %v6013_v37, %v10832_v12  ;;  %v20327_v45 = vld [vmem:[#allocation146_spill] sm:$0xff]  ;;  %v20338_v37 = vld [vmem:[#allocation181_spill] sm:$0xff] }
 0x62f   : > { %9103 = vmatpush3.bf16.xpose.msk.msra.mxu0 %vm18355_vm5, %v9101_v8  ;;  %v10437_v27 = vunpack.i.h.bf16 %v20326_v0  ;;  %v10476_v39 = vunpack.i.l.bf16 %v20327_v45  ;;  %v6078_v6 = vsel %vm6073_vm4, %v6045_v55, %v10911_v59  ;;  %v6079_v7 = vsel %vm6073_vm4, %v6046_v57, %v10912_v9  ;;  %v20341_v57 = vld [vmem:[#allocation60_spill] sm:$0xff] }
 0x630   : > { %v5867_v18 = vsel %vm2464_vm10, %v20323_v51, %v20322_v3  ;;  %v5868_v33 = vsel %vm2464_vm10, %v20325_v30, %v20324_v40  ;;  %9106 = vmatprep.subr.msk.bf16.mxu0 %vm18355_vm5, %v9104_v28  ;;  %v20328_v32 = vunpack.i.l.bf16 %v20326_v0  ;;  %v10477_v52 = vunpack.i.h.bf16 %v20327_v45  ;;  %v20339_v51 = vld [vmem:[#allocation46_spill] sm:$0xff]  ;;  %v20340_v30 = vld [vmem:[#allocation40_spill] sm:$0xff] }
 0x631   : > { %v6111_v34 = vsel %vm6106_vm13, %v6078_v6, %v10991_v54  ;;  %v6112_v62 = vsel %vm6106_vm13, %v6079_v7, %v10992_v53  ;;  %v10517_v24 = vunpack.i.h.bf16 %v20330_v60  ;;  %v10516_v58 = vunpack.i.l.bf16 %v20330_v60  ;;  %v20337_v54 = vld [vmem:[#allocation115_spill] sm:$0xff]  ;;  %v20342_v6 = vld [vmem:[#allocation166_spill] sm:$0xff] }
 0x632   : > { %v5883_v14 = vsel %vm2497_vm11, %v20329_v2, %v20328_v32  ;;  %v7553_v11 = vsel %vm7547_vm3, %v6112_v62, %v11727_v5  ;;  %v7552_v43 = vsel %vm7547_vm3, %v6111_v34, %v11726_v47  ;;  %v10557_v38 = vunpack.i.h.bf16 %v20331_v21 }
 0x633   : > { %v10556_v20 = vunpack.i.l.bf16 %v20331_v21  ;;  %v10597_v46 = vunpack.i.h.bf16 %v20332_v17  ;;  %v10596_v63 = vunpack.i.l.bf16 %v20332_v17  ;;  %v5884_v1 = vsel %vm2497_vm11, %v20333_v42, %v10437_v27  ;;  %v20344_v21 = vld [vmem:[#allocation81_spill] sm:$0xff] }
 0x634   : > { %v5899_v44 = vsel %vm2497_vm11, %v5867_v18, %v10476_v39  ;;  %v10637_v31 = vunpack.i.h.bf16 %v20334_v35  ;;  %v10636_v16 = vunpack.i.l.bf16 %v20334_v35  ;;  %v5900_v15 = vsel %vm2497_vm11, %v5868_v33, %v10477_v52  ;;  %v20343_v52 = vld [vmem:[#allocation220_spill] sm:$0xff]  ;;  %v20345_v35 = vld [vmem:[#allocation129_spill] sm:$0xff] }
 0x635   : > { %v10677_v23 = vunpack.i.h.bf16 %v20335_v22  ;;  %v10676_v56 = vunpack.i.l.bf16 %v20335_v22  ;;  %v9107_v48 = vpack.c.bf16 %v7553_v11, %v7552_v43  ;;  %v5915_v12 = vsel %vm2537_vm12, %v5883_v14, %v10516_v58 }
 0x636   : > { %v5916_v61 = vsel %vm2537_vm12, %v5884_v1, %v10517_v24  ;;  %v10717_v29 = vunpack.i.h.bf16 %v20336_v4  ;;  %v10716_v19 = vunpack.i.l.bf16 %v20336_v4  ;;  %v5931_v9 = vsel %vm2537_vm12, %v5899_v44, %v10556_v20  ;;  %v20346_v4 = vld [vmem:[#allocation113_spill] sm:$0xff] }
 0x637   : > { %v5932_v59 = vsel %vm2537_vm12, %v5900_v15, %v10557_v38  ;;  %v5948_v36 = vsel %vm5941_vm14, %v5915_v12, %v10596_v63  ;;  %v5949_v26 = vsel %vm5941_vm14, %v5916_v61, %v10597_v46  ;;  %9109 = vmatpush3.bf16.xpose.msk.msra.mxu0 %vm18355_vm5, %v9107_v48  ;;  %v5964_v49 = vsel %vm5941_vm14, %v5931_v9, %v10636_v16 }
 0x638   : > { %v5965_v53 = vsel %vm5941_vm14, %v5932_v59, %v10637_v31  ;;  %v10797_v8 = vunpack.i.h.bf16 %v20337_v54  ;;  %v10796_v28 = vunpack.i.l.bf16 %v20337_v54  ;;  %v5981_v13 = vsel %vm5974_vm15, %v5948_v36, %v10676_v56  ;;  %v20349_v59 = vld [vmem:[#allocation121_spill] sm:$0xff] }
 0x639   : > { %v5982_v25 = vsel %vm5974_vm15, %v5949_v26, %v10677_v23  ;;  %v10877_v5 = vunpack.i.h.bf16 %v20338_v37  ;;  %v10876_v47 = vunpack.i.l.bf16 %v20338_v37  ;;  %v5997_v10 = vsel %vm5974_vm15, %v5964_v49, %v10716_v19  ;;  %v20348_v19 = vld [vmem:[#allocation19_spill] sm:$0xff]  ;;  %v20351_v26 = vld [vmem:[#allocation34_spill] sm:$0xff] }
 0x63a   : > { %v5998_v3 = vsel %vm5974_vm15, %v5965_v53, %v10717_v29  ;;  %v10957_v18 = vunpack.i.h.bf16 %v20339_v51  ;;  %v10956_v40 = vunpack.i.l.bf16 %v20339_v51  ;;  %v10757_v33 = vunpack.i.h.bf16 %v20340_v30 }
 0x63b   : > { %v10756_v55 = vunpack.i.l.bf16 %v20340_v30  ;;  %v11037_v0 = vunpack.i.h.bf16 %v20341_v57  ;;  %v11036_v27 = vunpack.i.l.bf16 %v20341_v57  ;;  %v6030_v45 = vsel %vm6007_vm0, %v5997_v10, %v10796_v28 }
 0x63c   : > { %v6031_v39 = vsel %vm6007_vm0, %v5998_v3, %v10797_v8  ;;  %v10837_v7 = vunpack.i.h.bf16 %v20342_v6  ;;  %v10836_v32 = vunpack.i.l.bf16 %v20342_v6  ;;  %v6063_v2 = vsel %vm6040_vm2, %v6030_v45, %v10876_v47  ;;  %v11730_v60 = vpop.permute.xlu0 %11729  ;;  %v20352_v8 = vld [vmem:[#allocation137_spill] sm:$0xff]  ;;  %v20354_v47 = vld [vmem:[#allocation118_spill] sm:$0xff] }
 0x63d   : > { %v6064_v14 = vsel %vm6040_vm2, %v6031_v39, %v10877_v5  ;;  %v10917_v34 = vunpack.i.h.bf16 %v20343_v52  ;;  %v10916_v62 = vunpack.i.l.bf16 %v20343_v52  ;;  %v6096_v24 = vsel %vm6073_vm4, %v6063_v2, %v10956_v40  ;;  %v20355_v3 = vld [vmem:[#allocation145_spill] sm:$0xff] }
 0x63e   : > { %v6097_v58 = vsel %vm6073_vm4, %v6064_v14, %v10957_v18  ;;  %v11732_v11 = vunpack.i.h.bf16 %v11730_v60  ;;  %v11731_v43 = vunpack.i.l.bf16 %v11730_v60  ;;  %v10997_v38 = vunpack.i.h.bf16 %v20344_v21  ;;  %v20359_v39 = vld [vmem:[#allocation185_spill] sm:$0xff] }
 0x63f   : > { %v10996_v20 = vunpack.i.l.bf16 %v20344_v21  ;;  %v6129_v17 = vsel %vm6106_vm13, %v6096_v24, %v11036_v27  ;;  %v6130_v46 = vsel %vm6106_vm13, %v6097_v58, %v11037_v0  ;;  %v6014_v63 = vsel %vm6007_vm0, %v5981_v13, %v10756_v55  ;;  %v20357_v55 = vld [vmem:[#allocation173_spill] sm:$0xff] }
 0x640   : > { %v6015_v42 = vsel %vm6007_vm0, %v5982_v25, %v10757_v33  ;;  %v7570_v1 = vsel %vm7547_vm3, %v6129_v17, %v11731_v43  ;;  %v7571_v44 = vsel %vm7547_vm3, %v6130_v46, %v11732_v11  ;;  %v10401_v31 = vunpack.i.l.bf16 %v20345_v35  ;;  %v11735_v23 = vpop.permute.xlu1 %11734  ;;  %v20358_v0 = vld [vmem:[#allocation153_spill] sm:$0xff] }
 0x641   : > { %v6047_v16 = vsel %vm6040_vm2, %v6014_v63, %v10836_v32  ;;  %v6048_v15 = vsel %vm6040_vm2, %v6015_v42, %v10837_v7  ;;  %v9110_v22 = vpack.c.bf16 %v7571_v44, %v7570_v1  ;;  %v11737_v12 = vunpack.i.h.bf16 %v11735_v23  ;;  %v20360_v32 = vld [vmem:[#allocation195_spill] sm:$0xff]  ;;  %v20362_v43 = vld [vmem:[#allocation161_spill] sm:$0xff] }
 0x642   : > { %v6080_v56 = vsel %vm6073_vm4, %v6047_v16, %v10916_v62  ;;  %v6081_v48 = vsel %vm6073_vm4, %v6048_v15, %v10917_v34  ;;  %v11736_v61 = vunpack.i.l.bf16 %v11735_v23  ;;  %v20347_v29 = vunpack.i.l.bf16 %v20346_v4  ;;  %v20361_v62 = vld [vmem:[#allocation102_spill] sm:$0xff]  ;;  %v20363_v46 = vld [vmem:[#allocation69_spill] sm:$0xff] }
 0x643   : > { %v20350_v36 = vunpack.i.l.bf16 %v20349_v59  ;;  %v6113_v53 = vsel %vm6106_vm13, %v6080_v56, %v10996_v20  ;;  %v6114_v54 = vsel %vm6106_vm13, %v6081_v48, %v10997_v38  ;;  %9112 = vmatprep.subr.msk.bf16.mxu0 %vm18355_vm5, %v9110_v22  ;;  %v10442_v28 = vunpack.i.h.bf16 %v20352_v8  ;;  %v20364_v22 = vld [vmem:[#allocation110_spill] sm:$0xff] }
 0x644   : > { %v5837_v9 = vsel %vm2431_vm9, %v20348_v19, %v20347_v29  ;;  %v10441_v13 = vunpack.i.l.bf16 %v20352_v8  ;;  %v7554_v25 = vsel %vm7547_vm3, %v6113_v53, %v11736_v61  ;;  %v7555_v37 = vsel %vm7547_vm3, %v6114_v54, %v11737_v12  ;;  %v20365_v61 = vld [vmem:[#allocation182_spill] sm:$0xff]  ;;  %v20368_v8 = vld [vmem:[#allocation84_spill] sm:$0xff] }
 0x645   : > { %v5853_v49 = vsel %vm2464_vm10, %v20351_v26, %v20350_v36  ;;  %v20353_v5 = vunpack.i.h.bf16 %v20349_v59  ;;  %v10482_v51 = vunpack.i.h.bf16 %v20355_v3  ;;  %v10481_v18 = vunpack.i.l.bf16 %v20355_v3  ;;  %v20366_v59 = vld [vmem:[#allocation47_spill] sm:$0xff] }
 0x646   : > { %v9113_v40 = vpack.c.bf16 %v7555_v37, %v7554_v25  ;;  %v5869_v30 = vsel %vm2464_vm10, %v5837_v9, %v10401_v31  ;;  %v20356_v33 = vunpack.i.h.bf16 %v20345_v35  ;;  %v10522_v27 = vunpack.i.h.bf16 %v20358_v0 }
 0x647   : > { %v5854_v10 = vsel %vm2464_vm10, %v20354_v47, %v20353_v5  ;;  %v10521_v45 = vunpack.i.l.bf16 %v20358_v0  ;;  %v10562_v6 = vunpack.i.h.bf16 %v20359_v39  ;;  %v10561_v7 = vunpack.i.l.bf16 %v20359_v39  ;;  %v20369_v5 = vld [vmem:[#allocation158_spill] sm:$0xff] }
 0x648   : > { %v5870_v57 = vsel %vm2464_vm10, %v20357_v55, %v20356_v33  ;;  %v10602_v2 = vunpack.i.h.bf16 %v20360_v32  ;;  %v10601_v14 = vunpack.i.l.bf16 %v20360_v32  ;;  %9115 = vmatpush3.bf16.xpose.msk.msra.mxu0 %vm18355_vm5, %v9113_v40  ;;  %v5885_v52 = vsel %vm2497_vm11, %v5853_v49, %v10441_v13  ;;  %v20367_v49 = vld [vmem:[#allocation85_spill] sm:$0xff] }
 0x649   : > { %v5886_v34 = vsel %vm2497_vm11, %v5854_v10, %v10442_v28  ;;  %v10642_v60 = vunpack.i.h.bf16 %v20361_v62  ;;  %v10641_v24 = vunpack.i.l.bf16 %v20361_v62  ;;  %v5901_v58 = vsel %vm2497_vm11, %v5869_v30, %v10481_v18  ;;  %v20370_v18 = vld [vmem:[#allocation219_spill] sm:$0xff] }
 0x64a   : > { %v5902_v11 = vsel %vm2497_vm11, %v5870_v57, %v10482_v51  ;;  %v10682_v21 = vunpack.i.h.bf16 %v20362_v43  ;;  %v10681_v38 = vunpack.i.l.bf16 %v20362_v43  ;;  %v5917_v20 = vsel %vm2537_vm12, %v5885_v52, %v10521_v45  ;;  %v20371_v45 = vld [vmem:[#allocation52_spill] sm:$0xff] }
 0x64b   : > { %v5918_v17 = vsel %vm2537_vm12, %v5886_v34, %v10522_v27  ;;  %v10722_v63 = vunpack.i.h.bf16 %v20363_v46  ;;  %v10721_v42 = vunpack.i.l.bf16 %v20363_v46  ;;  %v5933_v1 = vsel %vm2537_vm12, %v5901_v58, %v10561_v7 }
 0x64c   : > { %v5934_v44 = vsel %vm2537_vm12, %v5902_v11, %v10562_v6  ;;  %v5950_v35 = vsel %vm5941_vm14, %v5917_v20, %v10601_v14  ;;  %v5951_v31 = vsel %vm5941_vm14, %v5918_v17, %v10602_v2  ;;  %v5966_v16 = vsel %vm5941_vm14, %v5933_v1, %v10641_v24 }
 0x64d   : > { %v5967_v15 = vsel %vm5941_vm14, %v5934_v44, %v10642_v60  ;;  %v10802_v23 = vunpack.i.h.bf16 %v20364_v22  ;;  %v10801_v56 = vunpack.i.l.bf16 %v20364_v22  ;;  %v5984_v48 = vsel %vm5974_vm15, %v5951_v31, %v10682_v21 }
 0x64e   : > { %v5983_v12 = vsel %vm5974_vm15, %v5950_v35, %v10681_v38  ;;  %v10882_v4 = vunpack.i.h.bf16 %v20365_v61  ;;  %v10881_v29 = vunpack.i.l.bf16 %v20365_v61  ;;  %v6000_v19 = vsel %vm5974_vm15, %v5967_v15, %v10722_v63  ;;  %v20372_v15 = vld [vmem:[#allocation61_spill] sm:$0xff] }
 0x64f   : > { %v5999_v9 = vsel %vm5974_vm15, %v5966_v16, %v10721_v42  ;;  %v10962_v36 = vunpack.i.h.bf16 %v20366_v59  ;;  %v10961_v26 = vunpack.i.l.bf16 %v20366_v59  ;;  %v10762_v53 = vunpack.i.h.bf16 %v20367_v49 }
 0x650   : > { %v10761_v54 = vunpack.i.l.bf16 %v20367_v49  ;;  %v11042_v28 = vunpack.i.h.bf16 %v20368_v8  ;;  %v11041_v13 = vunpack.i.l.bf16 %v20368_v8  ;;  %v6032_v25 = vsel %vm6007_vm0, %v5999_v9, %v10801_v56  ;;  %v11740_v33 = vpop.permute.xlu0 %11739  ;;  %v20375_v9 = vld [vmem:[#allocation260_spill] sm:$0xff] }
 0x651   : > { %v6033_v37 = vsel %vm6007_vm0, %v6000_v19, %v10802_v23  ;;  %v10842_v47 = vunpack.i.h.bf16 %v20369_v5  ;;  %v10841_v10 = vunpack.i.l.bf16 %v20369_v5  ;;  %v6065_v3 = vsel %vm6040_vm2, %v6032_v25, %v10881_v29  ;;  %v20373_v23 = vld [vmem:[#allocation86_spill] sm:$0xff]  ;;  %v20374_v29 = vld [vmem:[#allocation259_spill] sm:$0xff] }
 0x652   : > { %v6066_v51 = vsel %vm6040_vm2, %v6033_v37, %v10882_v4  ;;  %v10922_v40 = vunpack.i.h.bf16 %v20370_v18  ;;  %v10921_v30 = vunpack.i.l.bf16 %v20370_v18  ;;  %v6098_v55 = vsel %vm6073_vm4, %v6065_v3, %v10961_v26  ;;  %v20377_v37 = vld [vmem:[#allocation92_spill] sm:$0xff]  ;;  %v20379_v3 = vld [vmem:[#allocation257_spill] sm:$0xff] }
 0x653   : > { %v6099_v57 = vsel %vm6073_vm4, %v6066_v51, %v10962_v36  ;;  %v11742_v0 = vunpack.i.h.bf16 %v11740_v33  ;;  %v11741_v27 = vunpack.i.l.bf16 %v11740_v33  ;;  %v11002_v39 = vunpack.i.h.bf16 %v20371_v45 }
 0x654   : > { %v11001_v6 = vunpack.i.l.bf16 %v20371_v45  ;;  %v6131_v7 = vsel %vm6106_vm13, %v6098_v55, %v11041_v13  ;;  %v6132_v32 = vsel %vm6106_vm13, %v6099_v57, %v11042_v28  ;;  %v6016_v2 = vsel %vm6007_vm0, %v5983_v12, %v10761_v54  ;;  %v11745_v58 = vpop.permute.xlu1 %11744  ;;  %v8530_v1 = vpop.f32.mrb[34].mxu1  ;;  %v20376_v13 = vld [vmem:[#allocation12_spill] sm:$0xff] }
 0x655   : > { %v6017_v14 = vsel %vm6007_vm0, %v5984_v48, %v10762_v53  ;;  %v7573_v52 = vsel %vm7547_vm3, %v6132_v32, %v11742_v0  ;;  %v7572_v34 = vsel %vm7547_vm3, %v6131_v7, %v11741_v27  ;;  %v6049_v62 = vsel %vm6040_vm2, %v6016_v2, %v10841_v10  ;;  %v8532_v44 = vpop.f32.mrb[35].mxu1  ;;  %v20380_v57 = vld [vmem:[#allocation176_spill] sm:$0xff]  ;;  %v20381_v27 = vld [vmem:[#allocation175_spill] sm:$0xff] }
 0x656   : > { %v6050_v60 = vsel %vm6040_vm2, %v6017_v14, %v10842_v47  ;;  %v9116_v24 = vpack.c.bf16 %v7573_v52, %v7572_v34  ;;  %v6082_v11 = vsel %vm6073_vm4, %v6049_v62, %v10921_v30  ;;  %v11747_v21 = vunpack.i.h.bf16 %v11745_v58  ;;  %v20378_v47 = vld [vmem:[#allocation258_spill] sm:$0xff]  ;;  %v20382_v2 = vld [vmem:[#allocation272_spill] sm:$0xff]  ;;  %v20383_v52 = vld [vmem:[#allocation273_spill] sm:$0xff] }
 0x657   : > { %v6083_v43 = vsel %vm6073_vm4, %v6050_v60, %v10922_v40  ;;  %v11746_v38 = vunpack.i.l.bf16 %v11745_v58  ;;  %v6115_v20 = vsel %vm6106_vm13, %v6082_v11, %v11001_v6 }
 0x658   : > { %v6116_v17 = vsel %vm6106_vm13, %v6083_v43, %v11002_v39  ;;  %9118 = vmatprep.subr.msk.bf16.mxu0 %vm18355_vm5, %v9116_v24 }
 0x659   : > { %v7557_v46 = vsel %vm7547_vm3, %v6116_v17, %v11747_v21  ;;  %v7556_v63 = vsel %vm7547_vm3, %v6115_v20, %v11746_v38 }
 0x65a   : > { %v9119_v42 = vpack.c.bf16 %v7557_v46, %v7556_v63 }
 0x65c   : > { %9121 = vmatpush3.bf16.xpose.msk.msra.mxu0 %vm18355_vm5, %v9119_v42 }
 0x664   : > { %v11750_v35 = vpop.permute.xlu0 %11749 }
 0x665   : > { %v11752_v31 = vunpack.i.h.bf16 %v11750_v35  ;;  %v11751_v16 = vunpack.i.l.bf16 %v11750_v35 }
 0x667   : > { %v7574_v22 = vsel %vm7547_vm3, %v20372_v15, %v11751_v16  ;;  %v7575_v56 = vsel %vm7547_vm3, %v20373_v23, %v11752_v31 }
 0x668   : > { %v9122_v48 = vpack.c.bf16 %v7575_v56, %v7574_v22  ;;  %v11755_v12 = vpop.permute.xlu1 %11754 }
 0x669   : > { %v11757_v61 = vunpack.i.h.bf16 %v11755_v12  ;;  %v11756_v4 = vunpack.i.l.bf16 %v11755_v12 }
 0x66a   : > { %9124 = vmatprep.subr.msk.bf16.mxu0 %vm18355_vm5, %v9122_v48 }
 0x66b   : > { %v7558_v19 = vsel %vm7547_vm3, %v20374_v29, %v11756_v4  ;;  %v7559_v59 = vsel %vm7547_vm3, %v20375_v9, %v11757_v61 }
 0x66c   : > { %v9125_v36 = vpack.c.bf16 %v7559_v59, %v7558_v19 }
 0x66e   : > { %9127 = vmatpush3.bf16.xpose.msk.msra.mxu0 %vm18355_vm5, %v9125_v36 }
 0x67c   : > { %v11760_v26 = vpop.permute.xlu0 %11759  ;;  %v11765_v49 = vpop.permute.xlu1 %11764 }
 0x67d   : > { %v11762_v53 = vunpack.i.h.bf16 %v11760_v26  ;;  %v11761_v54 = vunpack.i.l.bf16 %v11760_v26  ;;  %v11767_v8 = vunpack.i.h.bf16 %v11765_v49  ;;  %v11766_v28 = vunpack.i.l.bf16 %v11765_v49 }
 0x67f   : > { %v7577_v25 = vsel %vm7547_vm3, %v20376_v13, %v11762_v53  ;;  %v7576_v5 = vsel %vm7547_vm3, %v20377_v37, %v11761_v54  ;;  %v7561_v10 = vsel %vm7547_vm3, %v20378_v47, %v11767_v8  ;;  %v7560_v51 = vsel %vm7547_vm3, %v20379_v3, %v11766_v28 }
 0x680   : > { %v9128_v18 = vpack.c.bf16 %v7577_v25, %v7576_v5  ;;  %v9131_v40 = vpack.c.bf16 %v7561_v10, %v7560_v51 }
 0x682   : > { %9130 = vmatprep.subr.msk.bf16.mxu0 %vm18355_vm5, %v9128_v18 }
 0x683   : > { %9133 = vmatpush3.bf16.xpose.msk.msra.mxu0 %vm18355_vm5, %v9131_v40 }
 0x691   : > { %v11770_v30 = vpop.permute.xlu0 %11769 }
 0x692   : > { %v11772_v33 = vunpack.i.h.bf16 %v11770_v30  ;;  %v11771_v55 = vunpack.i.l.bf16 %v11770_v30 }
 0x694   : > { %v7578_v0 = vsel %vm7547_vm3, %v20380_v57, %v11771_v55  ;;  %v7579_v45 = vsel %vm7547_vm3, %v20381_v27, %v11772_v33 }
 0x695   : > { %v9134_v39 = vpack.c.bf16 %v7579_v45, %v7578_v0  ;;  %v11775_v6 = vpop.permute.xlu1 %11774 }
 0x696   : > { %v11777_v7 = vunpack.i.h.bf16 %v11775_v6  ;;  %v11776_v32 = vunpack.i.l.bf16 %v11775_v6 }
 0x697   : > { %9136 = vmatprep.subr.msk.bf16.mxu0 %vm18355_vm5, %v9134_v39 }
 0x698   : > { %v7562_v14 = vsel %vm7547_vm3, %v20382_v2, %v11776_v32  ;;  %v7563_v34 = vsel %vm7547_vm3, %v20383_v52, %v11777_v7 }
 0x699   : > { %v9137_v62 = vpack.c.bf16 %v7563_v34, %v7562_v14 }
 0x69b   : > { %9139 = vmatpush3.bf16.xpose.msk.msra.mxu0 %vm18355_vm5, %v9137_v62 }
 0x6a2   : > { %8911 = vmatmul.mubr.msk.f32.vlgmr.msra.gmra.mrb[2].mxu0 %vm7587_vm1, %v18321_v41  ;;  %v7585_v11 = vpop.permute.xlu0 %7584 }
 0x6a6   : > { %v8363_v60 = vpop.permute.xlu1 %8362 }
 0x6a7   : > { %v8531_v24 = vadd.f32 %v8530_v1, %v8363_v60  ;;  %v8533_v58 = vadd.f32 %v8532_v44, %v8363_v60 }
 0x6a9   : > { %8541 = vst [vmem:[%s12761_s29 + $0x30] sm:$0xff] %v8531_v24  ;;  %8542 = vst [vmem:[%s12761_s29 + $0x38] sm:$0xff] %v8533_v58 }
 0x775   : > { %v7753_v43 = vpop.f32.mrb[2].mxu0 }
 0x776   : > { %v7754_v21 = vadd.f32 %v7753_v43, %v7585_v11  ;;  %v7755_v38 = vpop.f32.mrb[3].mxu0 }
 0x777   : > { %v7756_v20 = vadd.f32 %v7755_v38, %v7585_v11 }
 0x778   : > { %8539 = vst [vmem:[%s12761_s29 + $0x20] sm:$0xff] %v7754_v21 }
 0x779   : > { %8540 = vst [vmem:[%s12761_s29 + $0x28] sm:$0xff] %v7756_v20 }
 0x77a PF: > { %s21_s17 = sadd.s32 1, %s11863_s17  }
 0x77b   : > { %p18_p4 = scmp.ge.s32.totalorder %s21_s17, 4  }
 0x77d   :  { %20 = sbr.rel (!%p18_p4) target bundleno = 1 (0x1), region = 102 }

</bundles_post_ra>
